<compile_context>
chip_gen: v5e
topology: v5e:2x2
jax: 0.10.0
libtpu: 0.0.40
codegen_flags: <defaults>
</compile_context>

<pallas_src>
import functools

import jax
import jax.numpy as jnp
from jax import lax
from jax.experimental import pallas as pl
from jax.experimental.pallas import tpu as pltpu

_EPS = 1e-5
_VMEM_LIMIT = 32 * 1024 * 1024


def _round_up(n, m=128):
    return ((n + m - 1) // m) * m


def _pad_axis(a, target, axis):
    pads = [(0, 0)] * a.ndim
    pads[axis] = (0, target - a.shape[axis])
    return jnp.pad(a, pads)


# ----------------------------------------------------------------------------
# Kernel 1: expand 1x1 conv as row-tiled bf16 matmul + folded BN + Swish
# ----------------------------------------------------------------------------
def _expand_kernel(x_ref, w_ref, scale_ref, bias_ref, o_ref):
    xb = x_ref[...].astype(jnp.bfloat16)                      # (tm, cin) bf16
    y = jnp.dot(xb, w_ref[...], preferred_element_type=jnp.float32)
    y = y * scale_ref[...] + bias_ref[...]
    o_ref[...] = (y * jax.nn.sigmoid(y)).astype(o_ref.dtype)  # lane-dense bf16 store


def expand_conv_bn_swish(x2d, w, scale, bias, *, tile_m=2048):
    n, cin = x2d.shape
    hp = w.shape[1]                     # hidden padded to 128 lanes
    tm = min(tile_m, n)
    return pl.pallas_call(
        _expand_kernel,
        out_shape=jax.ShapeDtypeStruct((n, hp), jnp.bfloat16),
        grid=(pl.cdiv(n, tm),),
        in_specs=[
            pl.BlockSpec((tm, cin), lambda i: (i, 0)),
            pl.BlockSpec((cin, hp), lambda i: (0, 0)),
            pl.BlockSpec((1, hp), lambda i: (0, 0)),
            pl.BlockSpec((1, hp), lambda i: (0, 0)),
        ],
        out_specs=pl.BlockSpec((tm, hp), lambda i: (i, 0)),
        compiler_params=pltpu.CompilerParams(
            dimension_semantics=("parallel",),
            vmem_limit_bytes=_VMEM_LIMIT),
    )(x2d, w, scale, bias)


# ----------------------------------------------------------------------------
# Kernel 2: depthwise kxk conv (in-kernel zero padding) + folded BN + Swish
#           + SE global-average-pool + SE gate + gate apply
#           + project 1x1 bf16 matmul + folded BN + residual.   Grid over batch.
# ----------------------------------------------------------------------------
def _dw_se_project_kernel(x_ref, wdw_ref, sc2_ref, bi2_ref,
                          wse1_ref, bse1_ref, wse2_ref, bse2_ref,
                          wp_ref, sc3_ref, bi3_ref, *rest,
                          k, s, p0, p1, ho, wo, inv_hw, has_res):
    if has_res:
        res_ref, o_ref, xpad_ref = rest
    else:
        o_ref, xpad_ref = rest
        res_ref = None

    h, w, hp = x_ref.shape
    hpad, wpad, _ = xpad_ref.shape
    zdt = xpad_ref.dtype

    # Zero only the border strips (not the whole scratch): cheap and correct under
    # "parallel" megacore splitting; the interior is fully overwritten each step.
    if p0 > 0:
        xpad_ref[0:p0, :, :] = jnp.zeros((p0, wpad, hp), zdt)
        xpad_ref[:, 0:p0, :] = jnp.zeros((hpad, p0, hp), zdt)
    if p1 > 0:
        xpad_ref[p0 + h:p0 + h + p1, :, :] = jnp.zeros((p1, wpad, hp), zdt)
        xpad_ref[:, p0 + w:p0 + w + p1, :] = jnp.zeros((hpad, p1, hp), zdt)
    xpad_ref[p0:p0 + h, p0:p0 + w, :] = x_ref[...].astype(zdt)

    # Depthwise conv: read the kxk shifted windows directly from the scratch Ref.
    wk = wdw_ref[...]                                         # (k, k, hp) f32
    acc = jnp.zeros((ho, wo, hp), jnp.float32)
    for di in range(k):
        for dj in range(k):
            if s == 1:
                xs = xpad_ref[di:di + ho, dj:dj + wo, :]
            else:
                xs = xpad_ref[pl.ds(di, ho, stride=s), pl.ds(dj, wo, stride=s), :]
            acc = acc + xs * wk[di, dj]

    y = acc * sc2_ref[...] + bi2_ref[...]
    y = y * jax.nn.sigmoid(y)                                 # (ho, wo, hp) f32

    # SE: global average pool + 2-layer MLP gate — once per batch element.
    pooled = jnp.sum(jnp.sum(y, axis=0), axis=0, keepdims=True) * inv_hw   # (1, hp)
    g = jnp.dot(pooled, wse1_ref[...], preferred_element_type=jnp.float32) + bse1_ref[...]
    g = g * jax.nn.sigmoid(g)
    g = jnp.dot(g, wse2_ref[...], preferred_element_type=jnp.float32) + bse2_ref[...]
    gate = jax.nn.sigmoid(g)                                  # (1, hp)

    # Gate apply + project 1x1 (bf16 MXU, f32 accumulate) + folded BN (+ residual).
    y2 = y.reshape(ho * wo, hp)
    xg = (y2 * gate).astype(jnp.bfloat16)
    out = jnp.dot(xg, wp_ref[...], preferred_element_type=jnp.float32)     # (ho*wo, Cp)
    out = out * sc3_ref[...] + bi3_ref[...]
    if has_res:
        out = out + res_ref[...]
    o_ref[...] = out.astype(o_ref.dtype)


def dw_se_project(hcur, res, fp, *, stride, pad):
    b, h, w, hp = hcur.shape
    k = fp["w_dw"].shape[0]
    rp = fp["w_se1"].shape[1]
    cp = fp["w_proj"].shape[1]
    p0, p1 = pad                        # (top/left, bottom/right) — matches ZeroPad2d
    hpad, wpad = h + p0 + p1, w + p0 + p1
    ho = (hpad - k) // stride + 1
    wo = (wpad - k) // stride + 1
    has_res = res is not None

    kernel = functools.partial(
        _dw_se_project_kernel, k=k, s=stride, p0=p0, p1=p1,
        ho=ho, wo=wo, inv_hw=1.0 / float(ho * wo), has_res=has_res)

    in_specs = [
        pl.BlockSpec((None, h, w, hp), lambda i: (i, 0, 0, 0)),
        pl.BlockSpec((k, k, hp), lambda i: (0, 0, 0)),
        pl.BlockSpec((1, 1, hp), lambda i: (0, 0, 0)),
        pl.BlockSpec((1, 1, hp), lambda i: (0, 0, 0)),
        pl.BlockSpec((hp, rp), lambda i: (0, 0)),
        pl.BlockSpec((1, rp), lambda i: (0, 0)),
        pl.BlockSpec((rp, hp), lambda i: (0, 0)),
        pl.BlockSpec((1, hp), lambda i: (0, 0)),
        pl.BlockSpec((hp, cp), lambda i: (0, 0)),
        pl.BlockSpec((1, cp), lambda i: (0, 0)),
        pl.BlockSpec((1, cp), lambda i: (0, 0)),
    ]
    args = [hcur, fp["w_dw"], fp["sc2"], fp["bi2"], fp["w_se1"], fp["b_se1"],
            fp["w_se2"], fp["b_se2"], fp["w_proj"], fp["sc3"], fp["bi3"]]
    if has_res:
        in_specs.append(pl.BlockSpec((None, ho * wo, cp), lambda i: (i, 0, 0)))
        args.append(res)

    return pl.pallas_call(
        kernel,
        out_shape=jax.ShapeDtypeStruct((b, ho * wo, cp), jnp.float32),
        grid=(b,),
        in_specs=in_specs,
        out_specs=pl.BlockSpec((None, ho * wo, cp), lambda i: (i, 0, 0)),
        scratch_shapes=[pltpu.VMEM((hpad, wpad, hp), jnp.float32)],
        compiler_params=pltpu.CompilerParams(
            dimension_semantics=("parallel",),
            vmem_limit_bytes=_VMEM_LIMIT),
    )(*args)


# ----------------------------------------------------------------------------
# Parameter folding (done ONCE): BN running stats -> scale/bias, channel dims
# zero-padded to 128 lanes, matmul weights stored as bf16.
# ----------------------------------------------------------------------------
def fold_params(p):
    def fold(g, b_, m, v):
        s = g / jnp.sqrt(v + _EPS)
        return s, b_ - m * s

    hidden = p["w_dw"].shape[-1]
    reduced = p["w_se1"].shape[1]
    cout = p["w_proj"].shape[1]
    hp = _round_up(hidden)
    rp = _round_up(reduced)
    cp = _round_up(cout)

    sc1, bi1 = fold(p["g1"], p["b1"], p["m1"], p["v1"])
    sc2, bi2 = fold(p["g2"], p["b2"], p["m2"], p["v2"])
    sc3, bi3 = fold(p["g3"], p["b3"], p["m3"], p["v3"])

    f = jnp.float32
    bf = jnp.bfloat16
    pa = _pad_axis
    fp = {
        # MXU matmul weights: zero-padded to 128-lane widths, stored bf16.
        "w_exp": pa(p["w_exp"].astype(f), hp, 1).astype(bf),                    # (cin, hp)
        "w_proj": pa(pa(p["w_proj"].astype(f), cp, 1), hp, 0).astype(bf),       # (hp, cp)
        # Depthwise + SE weights: f32 (VPU work / M=1 matmuls).
        "w_dw": pa(p["w_dw"].astype(f), hp, 2),                                 # (k, k, hp)
        "w_se1": pa(pa(p["w_se1"].astype(f), rp, 1), hp, 0),                    # (hp, rp)
        "b_se1": pa(p["b_se1"].astype(f), rp, 0).reshape(1, rp),
        "w_se2": pa(pa(p["w_se2"].astype(f), hp, 1), rp, 0),                    # (rp, hp)
        "b_se2": pa(p["b_se2"].astype(f), hp, 0).reshape(1, hp),
        # Folded BN scale/bias, zero-padded so padded lanes stay exactly 0.
        "sc1": pa(sc1.astype(f), hp, 0).reshape(1, hp),
        "bi1": pa(bi1.astype(f), hp, 0).reshape(1, hp),
        "sc2": pa(sc2.astype(f), hp, 0).reshape(1, 1, hp),
        "bi2": pa(bi2.astype(f), hp, 0).reshape(1, 1, hp),
        "sc3": pa(sc3.astype(f), cp, 0).reshape(1, cp),
        "bi3": pa(bi3.astype(f), cp, 0).reshape(1, cp),
    }
    return fp


# ----------------------------------------------------------------------------
# MBConvBlock forward (Pallas) and pure-JAX f32 reference
# ----------------------------------------------------------------------------
def mbconv_pallas(x_nchw, fp, cfg):
    k, s = cfg["k"], cfg["s"]
    # NCHW -> NHWC at the block boundary.
    # TODO(synk): in a stacked-block model keep NHWC end-to-end and drop these transposes.
    x = jnp.transpose(x_nchw, (0, 2, 3, 1)).astype(jnp.float32)
    b, h, w, c_in = x.shape
    hp = fp["w_dw"].shape[-1]
    cp = fp["w_proj"].shape[1]
    cout = cfg["cout"]

    if cfg["expand"]:
        h2d = expand_conv_bn_swish(x.reshape(b * h * w, c_in),
                                   fp["w_exp"], fp["sc1"], fp["bi1"])
        hcur = h2d.reshape(b, h, w, hp)
    else:
        hcur = _pad_axis(x, hp, 3).astype(jnp.bfloat16)

    pd = max(k - s, 0)
    pad = (pd // 2, pd - pd // 2)
    res = None
    if cfg["use_residual"]:
        res = _pad_axis(x, cp, 3).reshape(b, h * w, cp)

    out2 = dw_se_project(hcur, res, fp, stride=s, pad=pad)       # (b, ho*wo, cp)
    hpad, wpad = h + pad[0] + pad[1], w + pad[0] + pad[1]
    ho = (hpad - k) // s + 1
    wo = (wpad - k) // s + 1
    out = out2.reshape(b, ho, wo, cp)[..., :cout]                # drop lane padding
    return jnp.transpose(out, (0, 3, 1, 2))


def mbconv_reference(x_nchw, p, cfg):
    k, s = cfg["k"], cfg["s"]
    x = jnp.transpose(x_nchw, (0, 2, 3, 1)).astype(jnp.float32)

    def bn(y, g, b_, m, v):
        return (y - m) / jnp.sqrt(v + _EPS) * g + b_

    h = x
    if cfg["expand"]:
        h = jnp.einsum("bhwc,cd->bhwd", h, p["w_exp"])
        h = bn(h, p["g1"], p["b1"], p["m1"], p["v1"])
        h = h * jax.nn.sigmoid(h)
    c = h.shape[-1]
    pd = max(k - s, 0)
    pads = (pd // 2, pd - pd // 2)
    hp = jnp.pad(h, ((0, 0), pads, pads, (0, 0)))
    dw = lax.conv_general_dilated(
        hp, p["w_dw"].reshape(k, k, 1, c), window_strides=(s, s), padding="VALID",
        dimension_numbers=("NHWC", "HWIO", "NHWC"), feature_group_count=c)
    dw = bn(dw, p["g2"], p["b2"], p["m2"], p["v2"])
    dw = dw * jax.nn.sigmoid(dw)
    pooled = jnp.mean(dw, axis=(1, 2))
    se = pooled @ p["w_se1"] + p["b_se1"]
    se = se * jax.nn.sigmoid(se)
    se = se @ p["w_se2"] + p["b_se2"]
    gate = jax.nn.sigmoid(se)[:, None, None, :]
    out = jnp.einsum("bhwc,cd->bhwd", dw * gate, p["w_proj"])
    out = bn(out, p["g3"], p["b3"], p["m3"], p["v3"])
    if cfg["use_residual"]:
        out = out + x
    return jnp.transpose(out, (0, 3, 1, 2))


def init_params(key, c_in, c_out, hidden, reduced, k):
    ks = jax.random.split(key, 16)
    f = jnp.float32
    n = lambda kk, shp, s=0.1: (s * jax.random.normal(kk, shp)).astype(f)
    return {
        "w_exp": n(ks[0], (c_in, hidden)),
        "g1": 1.0 + n(ks[1], (hidden,)), "b1": n(ks[2], (hidden,)),
        "m1": n(ks[3], (hidden,)), "v1": 1.0 + jnp.abs(n(ks[4], (hidden,))),
        "w_dw": n(ks[5], (k, k, hidden)),
        "g2": 1.0 + n(ks[6], (hidden,)), "b2": n(ks[7], (hidden,)),
        "m2": n(ks[8], (hidden,)), "v2": 1.0 + jnp.abs(n(ks[9], (hidden,))),
        "w_se1": n(ks[10], (hidden, reduced)), "b_se1": n(ks[11], (reduced,)),
        "w_se2": n(ks[12], (reduced, hidden)), "b_se2": n(ks[13], (hidden,)),
        "w_proj": n(ks[14], (hidden, c_out)),
        "g3": 1.0 + n(ks[15], (c_out,)), "b3": jnp.zeros((c_out,), f),
        "m3": jnp.zeros((c_out,), f), "v3": jnp.ones((c_out,), f),
    }


if __name__ == "__main__":
    # MBConvBlock(in_channels=4, out_channels=4, expand_ratio=6, kernel_size=3, stride=1)
    in_channels, out_channels = 4, 4
    expand_ratio, kernel_size, stride = 6, 3, 1
    reduction_ratio = 0.4
    hidden = in_channels * expand_ratio
    reduced = max(1, int(in_channels / reduction_ratio))
    cfg = {
        "k": kernel_size, "s": stride, "cout": out_channels,
        "expand": in_channels != hidden,
        "use_residual": (in_channels == out_channels) and (stride == 1),
    }

    key = jax.random.PRNGKey(0)
    kx, kp = jax.random.split(key)
    x = jax.random.normal(kx, (2, in_channels, 16, 16), dtype=jnp.float32)  # NCHW like PyTorch
    params = init_params(kp, in_channels, out_channels, hidden, reduced, kernel_size)
    folded = fold_params(params)               # BN folding + lane padding done once

    fwd = jax.jit(lambda xx, pp: mbconv_pallas(xx, pp, cfg))
    out = jax.block_until_ready(fwd(x, folded))

    ref = jax.block_until_ready(mbconv_reference(x, params, cfg))
    assert out.shape == ref.shape
    # bf16 MXU operands / bf16 intermediate storage -> relaxed (still tight) tolerance.
    assert jnp.allclose(out, ref, atol=2e-2, rtol=2e-2), float(jnp.max(jnp.abs(out - ref)))

    print("KERNEL_OK")
</pallas_src>

<mosaic_0001>
module attributes {stable_mosaic.version = 11 : i64} {
  func.func @_dw_se_project_kernel(%arg0: i32, %arg1: memref<1x16x16x128xbf16, #tpu.memory_space<vmem>>, %arg2: memref<3x3x128xf32, #tpu.memory_space<vmem>>, %arg3: memref<1x1x128xf32, #tpu.memory_space<vmem>>, %arg4: memref<1x1x128xf32, #tpu.memory_space<vmem>>, %arg5: memref<128x128xf32, #tpu.memory_space<vmem>>, %arg6: memref<1x128xf32, #tpu.memory_space<vmem>>, %arg7: memref<128x128xf32, #tpu.memory_space<vmem>>, %arg8: memref<1x128xf32, #tpu.memory_space<vmem>>, %arg9: memref<128x128xbf16, #tpu.memory_space<vmem>>, %arg10: memref<1x128xf32, #tpu.memory_space<vmem>>, %arg11: memref<1x128xf32, #tpu.memory_space<vmem>>, %arg12: memref<1x256x128xf32, #tpu.memory_space<vmem>>, %arg13: memref<1x256x128xf32, #tpu.memory_space<vmem>>, %arg14: memref<18x18x128xf32, #tpu.memory_space<vmem>>) attributes {dimension_semantics = [#tpu.dimension_semantics<parallel>], iteration_bounds = array<i64: 2>, scalar_prefetch = 0 : i64, scratch_operands = 1 : i64, tpu.core_type = #tpu.core_type<tc>, window_params = [{transform_indices = @transform_0, window_bounds = array<i64: 1, 16, 16, 128>}, {pipeline_mode = #tpu.pipeline_mode<synchronous>, transform_indices = @transform_1, window_bounds = array<i64: 3, 3, 128>}, {pipeline_mode = #tpu.pipeline_mode<synchronous>, transform_indices = @transform_2, window_bounds = array<i64: 1, 1, 128>}, {pipeline_mode = #tpu.pipeline_mode<synchronous>, transform_indices = @transform_3, window_bounds = array<i64: 1, 1, 128>}, {pipeline_mode = #tpu.pipeline_mode<synchronous>, transform_indices = @transform_4, window_bounds = array<i64: 128, 128>}, {pipeline_mode = #tpu.pipeline_mode<synchronous>, transform_indices = @transform_5, window_bounds = array<i64: 1, 128>}, {pipeline_mode = #tpu.pipeline_mode<synchronous>, transform_indices = @transform_6, window_bounds = array<i64: 128, 128>}, {pipeline_mode = #tpu.pipeline_mode<synchronous>, transform_indices = @transform_7, window_bounds = array<i64: 1, 128>}, {pipeline_mode = #tpu.pipeline_mode<synchronous>, transform_indices = @transform_8, window_bounds = array<i64: 128, 128>}, {pipeline_mode = #tpu.pipeline_mode<synchronous>, transform_indices = @transform_9, window_bounds = array<i64: 1, 128>}, {pipeline_mode = #tpu.pipeline_mode<synchronous>, transform_indices = @transform_10, window_bounds = array<i64: 1, 128>}, {transform_indices = @transform_11, window_bounds = array<i64: 1, 256, 128>}, {transform_indices = @transform_12, window_bounds = array<i64: 1, 256, 128>}]} {
    %cst = arith.constant 0.000000e+00 : f32
    %0 = vector.broadcast %cst : f32 to vector<1x18x128xf32>
    %c0 = arith.constant 0 : index
    %c0_0 = arith.constant 0 : index
    %c0_1 = arith.constant 0 : index
    %1 = vector.load %arg14[%c0, %c0_0, %c0_1] : memref<18x18x128xf32, #tpu.memory_space<vmem>>, vector<1x18x128xf32>
    tpu.vector_store %arg14[%c0, %c0_0, %c0_1], %0 {strides = array<i32>} : memref<18x18x128xf32, #tpu.memory_space<vmem>>, vector<1x18x128xf32>,
    %cst_2 = arith.constant 0.000000e+00 : f32
    %2 = vector.broadcast %cst_2 : f32 to vector<18x1x128xf32>
    %c0_3 = arith.constant 0 : index
    %c0_4 = arith.constant 0 : index
    %c0_5 = arith.constant 0 : index
    %3 = vector.load %arg14[%c0_3, %c0_4, %c0_5] : memref<18x18x128xf32, #tpu.memory_space<vmem>>, vector<18x1x128xf32>
    tpu.vector_store %arg14[%c0_3, %c0_4, %c0_5], %2 {strides = array<i32>} : memref<18x18x128xf32, #tpu.memory_space<vmem>>, vector<18x1x128xf32>,
    %cst_6 = arith.constant 0.000000e+00 : f32
    %4 = vector.broadcast %cst_6 : f32 to vector<1x18x128xf32>
    %c17 = arith.constant 17 : index
    %c0_7 = arith.constant 0 : index
    %c0_8 = arith.constant 0 : index
    %5 = vector.load %arg14[%c17, %c0_7, %c0_8] : memref<18x18x128xf32, #tpu.memory_space<vmem>>, vector<1x18x128xf32>
    tpu.vector_store %arg14[%c17, %c0_7, %c0_8], %4 {strides = array<i32>} : memref<18x18x128xf32, #tpu.memory_space<vmem>>, vector<1x18x128xf32>,
    %cst_9 = arith.constant 0.000000e+00 : f32
    %6 = vector.broadcast %cst_9 : f32 to vector<18x1x128xf32>
    %c0_10 = arith.constant 0 : index
    %c17_11 = arith.constant 17 : index
    %c0_12 = arith.constant 0 : index
    %7 = vector.load %arg14[%c0_10, %c17_11, %c0_12] : memref<18x18x128xf32, #tpu.memory_space<vmem>>, vector<18x1x128xf32>
    tpu.vector_store %arg14[%c0_10, %c17_11, %c0_12], %6 {strides = array<i32>} : memref<18x18x128xf32, #tpu.memory_space<vmem>>, vector<18x1x128xf32>,
    %c0_13 = arith.constant 0 : index
    %c0_14 = arith.constant 0 : index
    %c0_15 = arith.constant 0 : index
    %c0_16 = arith.constant 0 : index
    %8 = vector.load %arg1[%c0_13, %c0_14, %c0_15, %c0_16] : memref<1x16x16x128xbf16, #tpu.memory_space<vmem>>, vector<1x16x16x128xbf16>
    %9 = vector.shape_cast %8 : vector<1x16x16x128xbf16> to vector<16x16x128xbf16>
    %10 = arith.extf %9 : vector<16x16x128xbf16> to vector<16x16x128xf32>
    %c1 = arith.constant 1 : index
    %c1_17 = arith.constant 1 : index
    %c0_18 = arith.constant 0 : index
    %11 = vector.load %arg14[%c1, %c1_17, %c0_18] : memref<18x18x128xf32, #tpu.memory_space<vmem>>, vector<16x16x128xf32>
    tpu.vector_store %arg14[%c1, %c1_17, %c0_18], %10 {strides = array<i32>} : memref<18x18x128xf32, #tpu.memory_space<vmem>>, vector<16x16x128xf32>,
    %c0_19 = arith.constant 0 : index
    %c0_20 = arith.constant 0 : index
    %c0_21 = arith.constant 0 : index
    %12 = vector.load %arg2[%c0_19, %c0_20, %c0_21] : memref<3x3x128xf32, #tpu.memory_space<vmem>>, vector<3x3x128xf32>
    %cst_22 = arith.constant 0.000000e+00 : f32
    %13 = vector.broadcast %cst_22 : f32 to vector<16x16x128xf32>
    %c0_23 = arith.constant 0 : index
    %c0_24 = arith.constant 0 : index
    %c0_25 = arith.constant 0 : index
    %14 = vector.load %arg14[%c0_23, %c0_24, %c0_25] : memref<18x18x128xf32, #tpu.memory_space<vmem>>, vector<16x16x128xf32>
    %15 = vector.extract_strided_slice %12 {offsets = [0, 0, 0], sizes = [1, 1, 128], strides = [1, 1, 1]} : vector<3x3x128xf32> to vector<1x1x128xf32>
    %16 = vector.shape_cast %15 : vector<1x1x128xf32> to vector<128xf32>
    %17 = vector.shape_cast %16 : vector<128xf32> to vector<1x1x128xf32>
    %18 = vector.broadcast %17 : vector<1x1x128xf32> to vector<16x16x128xf32>
    %19 = arith.mulf %14, %18 : vector<16x16x128xf32>
    %20 = arith.addf %13, %19 : vector<16x16x128xf32>
    %c0_26 = arith.constant 0 : index
    %c1_27 = arith.constant 1 : index
    %c0_28 = arith.constant 0 : index
    %21 = vector.load %arg14[%c0_26, %c1_27, %c0_28] : memref<18x18x128xf32, #tpu.memory_space<vmem>>, vector<16x16x128xf32>
    %22 = vector.extract_strided_slice %12 {offsets = [0, 1, 0], sizes = [1, 1, 128], strides = [1, 1, 1]} : vector<3x3x128xf32> to vector<1x1x128xf32>
    %23 = vector.shape_cast %22 : vector<1x1x128xf32> to vector<128xf32>
    %24 = vector.shape_cast %23 : vector<128xf32> to vector<1x1x128xf32>
    %25 = vector.broadcast %24 : vector<1x1x128xf32> to vector<16x16x128xf32>
    %26 = arith.mulf %21, %25 : vector<16x16x128xf32>
    %27 = arith.addf %20, %26 : vector<16x16x128xf32>
    %c0_29 = arith.constant 0 : index
    %c2 = arith.constant 2 : index
    %c0_30 = arith.constant 0 : index
    %28 = vector.load %arg14[%c0_29, %c2, %c0_30] : memref<18x18x128xf32, #tpu.memory_space<vmem>>, vector<16x16x128xf32>
    %29 = vector.extract_strided_slice %12 {offsets = [0, 2, 0], sizes = [1, 1, 128], strides = [1, 1, 1]} : vector<3x3x128xf32> to vector<1x1x128xf32>
    %30 = vector.shape_cast %29 : vector<1x1x128xf32> to vector<128xf32>
    %31 = vector.shape_cast %30 : vector<128xf32> to vector<1x1x128xf32>
    %32 = vector.broadcast %31 : vector<1x1x128xf32> to vector<16x16x128xf32>
    %33 = arith.mulf %28, %32 : vector<16x16x128xf32>
    %34 = arith.addf %27, %33 : vector<16x16x128xf32>
    %c1_31 = arith.constant 1 : index
    %c0_32 = arith.constant 0 : index
    %c0_33 = arith.constant 0 : index
    %35 = vector.load %arg14[%c1_31, %c0_32, %c0_33] : memref<18x18x128xf32, #tpu.memory_space<vmem>>, vector<16x16x128xf32>
    %36 = vector.extract_strided_slice %12 {offsets = [1, 0, 0], sizes = [1, 1, 128], strides = [1, 1, 1]} : vector<3x3x128xf32> to vector<1x1x128xf32>
    %37 = vector.shape_cast %36 : vector<1x1x128xf32> to vector<128xf32>
    %38 = vector.shape_cast %37 : vector<128xf32> to vector<1x1x128xf32>
    %39 = vector.broadcast %38 : vector<1x1x128xf32> to vector<16x16x128xf32>
    %40 = arith.mulf %35, %39 : vector<16x16x128xf32>
    %41 = arith.addf %34, %40 : vector<16x16x128xf32>
    %c1_34 = arith.constant 1 : index
    %c1_35 = arith.constant 1 : index
    %c0_36 = arith.constant 0 : index
    %42 = vector.load %arg14[%c1_34, %c1_35, %c0_36] : memref<18x18x128xf32, #tpu.memory_space<vmem>>, vector<16x16x128xf32>
    %43 = vector.extract_strided_slice %12 {offsets = [1, 1, 0], sizes = [1, 1, 128], strides = [1, 1, 1]} : vector<3x3x128xf32> to vector<1x1x128xf32>
    %44 = vector.shape_cast %43 : vector<1x1x128xf32> to vector<128xf32>
    %45 = vector.shape_cast %44 : vector<128xf32> to vector<1x1x128xf32>
    %46 = vector.broadcast %45 : vector<1x1x128xf32> to vector<16x16x128xf32>
    %47 = arith.mulf %42, %46 : vector<16x16x128xf32>
    %48 = arith.addf %41, %47 : vector<16x16x128xf32>
    %c1_37 = arith.constant 1 : index
    %c2_38 = arith.constant 2 : index
    %c0_39 = arith.constant 0 : index
    %49 = vector.load %arg14[%c1_37, %c2_38, %c0_39] : memref<18x18x128xf32, #tpu.memory_space<vmem>>, vector<16x16x128xf32>
    %50 = vector.extract_strided_slice %12 {offsets = [1, 2, 0], sizes = [1, 1, 128], strides = [1, 1, 1]} : vector<3x3x128xf32> to vector<1x1x128xf32>
    %51 = vector.shape_cast %50 : vector<1x1x128xf32> to vector<128xf32>
    %52 = vector.shape_cast %51 : vector<128xf32> to vector<1x1x128xf32>
    %53 = vector.broadcast %52 : vector<1x1x128xf32> to vector<16x16x128xf32>
    %54 = arith.mulf %49, %53 : vector<16x16x128xf32>
    %55 = arith.addf %48, %54 : vector<16x16x128xf32>
    %c2_40 = arith.constant 2 : index
    %c0_41 = arith.constant 0 : index
    %c0_42 = arith.constant 0 : index
    %56 = vector.load %arg14[%c2_40, %c0_41, %c0_42] : memref<18x18x128xf32, #tpu.memory_space<vmem>>, vector<16x16x128xf32>
    %57 = vector.extract_strided_slice %12 {offsets = [2, 0, 0], sizes = [1, 1, 128], strides = [1, 1, 1]} : vector<3x3x128xf32> to vector<1x1x128xf32>
    %58 = vector.shape_cast %57 : vector<1x1x128xf32> to vector<128xf32>
    %59 = vector.shape_cast %58 : vector<128xf32> to vector<1x1x128xf32>
    %60 = vector.broadcast %59 : vector<1x1x128xf32> to vector<16x16x128xf32>
    %61 = arith.mulf %56, %60 : vector<16x16x128xf32>
    %62 = arith.addf %55, %61 : vector<16x16x128xf32>
    %c2_43 = arith.constant 2 : index
    %c1_44 = arith.constant 1 : index
    %c0_45 = arith.constant 0 : index
    %63 = vector.load %arg14[%c2_43, %c1_44, %c0_45] : memref<18x18x128xf32, #tpu.memory_space<vmem>>, vector<16x16x128xf32>
    %64 = vector.extract_strided_slice %12 {offsets = [2, 1, 0], sizes = [1, 1, 128], strides = [1, 1, 1]} : vector<3x3x128xf32> to vector<1x1x128xf32>
    %65 = vector.shape_cast %64 : vector<1x1x128xf32> to vector<128xf32>
    %66 = vector.shape_cast %65 : vector<128xf32> to vector<1x1x128xf32>
    %67 = vector.broadcast %66 : vector<1x1x128xf32> to vector<16x16x128xf32>
    %68 = arith.mulf %63, %67 : vector<16x16x128xf32>
    %69 = arith.addf %62, %68 : vector<16x16x128xf32>
    %c2_46 = arith.constant 2 : index
    %c2_47 = arith.constant 2 : index
    %c0_48 = arith.constant 0 : index
    %70 = vector.load %arg14[%c2_46, %c2_47, %c0_48] : memref<18x18x128xf32, #tpu.memory_space<vmem>>, vector<16x16x128xf32>
    %71 = vector.extract_strided_slice %12 {offsets = [2, 2, 0], sizes = [1, 1, 128], strides = [1, 1, 1]} : vector<3x3x128xf32> to vector<1x1x128xf32>
    %72 = vector.shape_cast %71 : vector<1x1x128xf32> to vector<128xf32>
    %73 = vector.shape_cast %72 : vector<128xf32> to vector<1x1x128xf32>
    %74 = vector.broadcast %73 : vector<1x1x128xf32> to vector<16x16x128xf32>
    %75 = arith.mulf %70, %74 : vector<16x16x128xf32>
    %76 = arith.addf %69, %75 : vector<16x16x128xf32>
    %c0_49 = arith.constant 0 : index
    %c0_50 = arith.constant 0 : index
    %c0_51 = arith.constant 0 : index
    %77 = vector.load %arg3[%c0_49, %c0_50, %c0_51] : memref<1x1x128xf32, #tpu.memory_space<vmem>>, vector<1x1x128xf32>
    %78 = vector.broadcast %77 : vector<1x1x128xf32> to vector<16x16x128xf32>
    %79 = arith.mulf %76, %78 : vector<16x16x128xf32>
    %c0_52 = arith.constant 0 : index
    %c0_53 = arith.constant 0 : index
    %c0_54 = arith.constant 0 : index
    %80 = vector.load %arg4[%c0_52, %c0_53, %c0_54] : memref<1x1x128xf32, #tpu.memory_space<vmem>>, vector<1x1x128xf32>
    %81 = vector.broadcast %80 : vector<1x1x128xf32> to vector<16x16x128xf32>
    %82 = arith.addf %79, %81 : vector<16x16x128xf32>
    %83 = arith.negf %82 : vector<16x16x128xf32>
    %84 = math.exp %83 : vector<16x16x128xf32>
    %cst_55 = arith.constant 1.000000e+00 : f32
    %85 = vector.broadcast %cst_55 : f32 to vector<16x16x128xf32>
    %86 = arith.addf %85, %84 : vector<16x16x128xf32>
    %87 = arith.divf %85, %86 : vector<16x16x128xf32>
    %88 = arith.mulf %82, %87 : vector<16x16x128xf32>
    %cst_56 = arith.constant dense<0.000000e+00> : vector<16x128xf32>
    %89 = vector.multi_reduction <add>, %88, %cst_56 [0] : vector<16x16x128xf32> to vector<16x128xf32>
    %cst_57 = arith.constant dense<0.000000e+00> : vector<128xf32>
    %90 = vector.multi_reduction <add>, %89, %cst_57 [0] : vector<16x128xf32> to vector<128xf32>
    %91 = vector.shape_cast %90 : vector<128xf32> to vector<1x128xf32>
    %cst_58 = arith.constant 3.906250e-03 : f32
    %92 = vector.broadcast %cst_58 : f32 to vector<1x128xf32>
    %93 = arith.mulf %91, %92 : vector<1x128xf32>
    %c0_59 = arith.constant 0 : index
    %c0_60 = arith.constant 0 : index
    %94 = vector.load %arg5[%c0_59, %c0_60] : memref<128x128xf32, #tpu.memory_space<vmem>>, vector<128x128xf32>
    %cst_61 = arith.constant dense<0.000000e+00> : vector<1x128xf32>
    %95 = tpu.matmul %93, %94, %cst_61 {dimension_numbers = #tpu.dot_dimension_numbers<[1], [0], [0], [1], [0, 0, 1, 1], [], []>} : vector<1x128xf32>, vector<128x128xf32>, vector<1x128xf32> -> vector<1x128xf32>
    %c0_62 = arith.constant 0 : index
    %c0_63 = arith.constant 0 : index
    %96 = vector.load %arg6[%c0_62, %c0_63] : memref<1x128xf32, #tpu.memory_space<vmem>>, vector<1x128xf32>
    %97 = arith.addf %95, %96 : vector<1x128xf32>
    %98 = arith.negf %97 : vector<1x128xf32>
    %99 = math.exp %98 : vector<1x128xf32>
    %cst_64 = arith.constant 1.000000e+00 : f32
    %100 = vector.broadcast %cst_64 : f32 to vector<1x128xf32>
    %101 = arith.addf %100, %99 : vector<1x128xf32>
    %102 = arith.divf %100, %101 : vector<1x128xf32>
    %103 = arith.mulf %97, %102 : vector<1x128xf32>
    %c0_65 = arith.constant 0 : index
    %c0_66 = arith.constant 0 : index
    %104 = vector.load %arg7[%c0_65, %c0_66] : memref<128x128xf32, #tpu.memory_space<vmem>>, vector<128x128xf32>
    %cst_67 = arith.constant dense<0.000000e+00> : vector<1x128xf32>
    %105 = tpu.matmul %103, %104, %cst_67 {dimension_numbers = #tpu.dot_dimension_numbers<[1], [0], [0], [1], [0, 0, 1, 1], [], []>} : vector<1x128xf32>, vector<128x128xf32>, vector<1x128xf32> -> vector<1x128xf32>
    %c0_68 = arith.constant 0 : index
    %c0_69 = arith.constant 0 : index
    %106 = vector.load %arg8[%c0_68, %c0_69] : memref<1x128xf32, #tpu.memory_space<vmem>>, vector<1x128xf32>
    %107 = arith.addf %105, %106 : vector<1x128xf32>
    %108 = arith.negf %107 : vector<1x128xf32>
    %109 = math.exp %108 : vector<1x128xf32>
    %cst_70 = arith.constant 1.000000e+00 : f32
    %110 = vector.broadcast %cst_70 : f32 to vector<1x128xf32>
    %111 = arith.addf %110, %109 : vector<1x128xf32>
    %112 = arith.divf %110, %111 : vector<1x128xf32>
    %113 = vector.shape_cast %88 : vector<16x16x128xf32> to vector<256x128xf32>
    %114 = vector.broadcast %112 : vector<1x128xf32> to vector<256x128xf32>
    %115 = arith.mulf %113, %114 : vector<256x128xf32>
    %116 = arith.truncf %115 : vector<256x128xf32> to vector<256x128xbf16>
    %c0_71 = arith.constant 0 : index
    %c0_72 = arith.constant 0 : index
    %117 = vector.load %arg9[%c0_71, %c0_72] : memref<128x128xbf16, #tpu.memory_space<vmem>>, vector<128x128xbf16>
    %cst_73 = arith.constant dense<0.000000e+00> : vector<256x128xf32>
    %118 = tpu.matmul %116, %117, %cst_73 {dimension_numbers = #tpu.dot_dimension_numbers<[1], [0], [0], [1], [0, 0, 1, 1], [], []>} : vector<256x128xbf16>, vector<128x128xbf16>, vector<256x128xf32> -> vector<256x128xf32>
    %c0_74 = arith.constant 0 : index
    %c0_75 = arith.constant 0 : index
    %119 = vector.load %arg10[%c0_74, %c0_75] : memref<1x128xf32, #tpu.memory_space<vmem>>, vector<1x128xf32>
    %120 = vector.broadcast %119 : vector<1x128xf32> to vector<256x128xf32>
    %121 = arith.mulf %118, %120 : vector<256x128xf32>
    %c0_76 = arith.constant 0 : index
    %c0_77 = arith.constant 0 : index
    %122 = vector.load %arg11[%c0_76, %c0_77] : memref<1x128xf32, #tpu.memory_space<vmem>>, vector<1x128xf32>
    %123 = vector.broadcast %122 : vector<1x128xf32> to vector<256x128xf32>
    %124 = arith.addf %121, %123 : vector<256x128xf32>
    %c0_78 = arith.constant 0 : index
    %c0_79 = arith.constant 0 : index
    %c0_80 = arith.constant 0 : index
    %125 = vector.load %arg12[%c0_78, %c0_79, %c0_80] : memref<1x256x128xf32, #tpu.memory_space<vmem>>, vector<1x256x128xf32>
    %126 = vector.shape_cast %125 : vector<1x256x128xf32> to vector<256x128xf32>
    %127 = arith.addf %124, %126 : vector<256x128xf32>
    %c0_81 = arith.constant 0 : index
    %c0_82 = arith.constant 0 : index
    %c0_83 = arith.constant 0 : index
    %128 = vector.load %arg13[%c0_81, %c0_82, %c0_83] : memref<1x256x128xf32, #tpu.memory_space<vmem>>, vector<1x256x128xf32>
    %129 = vector.shape_cast %128 : vector<1x256x128xf32> to vector<256x128xf32>
    %130 = vector.shape_cast %127 : vector<256x128xf32> to vector<1x256x128xf32>
    tpu.vector_store %arg13[%c0_81, %c0_82, %c0_83], %130 {strides = array<i32>} : memref<1x256x128xf32, #tpu.memory_space<vmem>>, vector<1x256x128xf32>,
    return
  }
  func.func @transform_0(%arg0: i32) -> (i32, i32, i32, i32) {
    %c0_i32 = arith.constant 0 : i32
    %c0_i32_0 = arith.constant 0 : i32
    %c0_i32_1 = arith.constant 0 : i32
    %c0_i32_2 = arith.constant 0 : i32
    return %arg0, %c0_i32, %c0_i32_0, %c0_i32_1 : i32, i32, i32, i32
  }
  func.func @transform_1(%arg0: i32) -> (i32, i32, i32) {
    %c0_i32 = arith.constant 0 : i32
    %c0_i32_0 = arith.constant 0 : i32
    %c0_i32_1 = arith.constant 0 : i32
    %c0_i32_2 = arith.constant 0 : i32
    return %c0_i32, %c0_i32_0, %c0_i32_1 : i32, i32, i32
  }
  func.func @transform_2(%arg0: i32) -> (i32, i32, i32) {
    %c0_i32 = arith.constant 0 : i32
    %c0_i32_0 = arith.constant 0 : i32
    %c0_i32_1 = arith.constant 0 : i32
    %c0_i32_2 = arith.constant 0 : i32
    return %c0_i32, %c0_i32_0, %c0_i32_1 : i32, i32, i32
  }
  func.func @transform_3(%arg0: i32) -> (i32, i32, i32) {
    %c0_i32 = arith.constant 0 : i32
    %c0_i32_0 = arith.constant 0 : i32
    %c0_i32_1 = arith.constant 0 : i32
    %c0_i32_2 = arith.constant 0 : i32
    return %c0_i32, %c0_i32_0, %c0_i32_1 : i32, i32, i32
  }
  func.func @transform_4(%arg0: i32) -> (i32, i32) {
    %c0_i32 = arith.constant 0 : i32
    %c0_i32_0 = arith.constant 0 : i32
    %c0_i32_1 = arith.constant 0 : i32
    return %c0_i32, %c0_i32_0 : i32, i32
  }
  func.func @transform_5(%arg0: i32) -> (i32, i32) {
    %c0_i32 = arith.constant 0 : i32
    %c0_i32_0 = arith.constant 0 : i32
    %c0_i32_1 = arith.constant 0 : i32
    return %c0_i32, %c0_i32_0 : i32, i32
  }
  func.func @transform_6(%arg0: i32) -> (i32, i32) {
    %c0_i32 = arith.constant 0 : i32
    %c0_i32_0 = arith.constant 0 : i32
    %c0_i32_1 = arith.constant 0 : i32
    return %c0_i32, %c0_i32_0 : i32, i32
  }
  func.func @transform_7(%arg0: i32) -> (i32, i32) {
    %c0_i32 = arith.constant 0 : i32
    %c0_i32_0 = arith.constant 0 : i32
    %c0_i32_1 = arith.constant 0 : i32
    return %c0_i32, %c0_i32_0 : i32, i32
  }
  func.func @transform_8(%arg0: i32) -> (i32, i32) {
    %c0_i32 = arith.constant 0 : i32
    %c0_i32_0 = arith.constant 0 : i32
    %c0_i32_1 = arith.constant 0 : i32
    return %c0_i32, %c0_i32_0 : i32, i32
  }
  func.func @transform_9(%arg0: i32) -> (i32, i32) {
    %c0_i32 = arith.constant 0 : i32
    %c0_i32_0 = arith.constant 0 : i32
    %c0_i32_1 = arith.constant 0 : i32
    return %c0_i32, %c0_i32_0 : i32, i32
  }
  func.func @transform_10(%arg0: i32) -> (i32, i32) {
    %c0_i32 = arith.constant 0 : i32
    %c0_i32_0 = arith.constant 0 : i32
    %c0_i32_1 = arith.constant 0 : i32
    return %c0_i32, %c0_i32_0 : i32, i32
  }
  func.func @transform_11(%arg0: i32) -> (i32, i32, i32) {
    %c0_i32 = arith.constant 0 : i32
    %c0_i32_0 = arith.constant 0 : i32
    %c0_i32_1 = arith.constant 0 : i32
    return %arg0, %c0_i32, %c0_i32_0 : i32, i32, i32
  }
  func.func @transform_12(%arg0: i32) -> (i32, i32, i32) {
    %c0_i32 = arith.constant 0 : i32
    %c0_i32_0 = arith.constant 0 : i32
    %c0_i32_1 = arith.constant 0 : i32
    return %arg0, %c0_i32, %c0_i32_0 : i32, i32, i32
  }
}

module attributes {stable_mosaic.version = 11 : i64} {
  func.func @_expand_kernel(%arg0: i32, %arg1: memref<512x4xf32, #tpu.memory_space<vmem>>, %arg2: memref<4x128xbf16, #tpu.memory_space<vmem>>, %arg3: memref<1x128xf32, #tpu.memory_space<vmem>>, %arg4: memref<1x128xf32, #tpu.memory_space<vmem>>, %arg5: memref<512x128xbf16, #tpu.memory_space<vmem>>) attributes {dimension_semantics = [#tpu.dimension_semantics<parallel>], iteration_bounds = array<i64: 1>, scalar_prefetch = 0 : i64, scratch_operands = 0 : i64, tpu.core_type = #tpu.core_type<tc>, window_params = [{transform_indices = @transform_0, window_bounds = array<i64: 512, 4>}, {pipeline_mode = #tpu.pipeline_mode<synchronous>, transform_indices = @transform_1, window_bounds = array<i64: 4, 128>}, {pipeline_mode = #tpu.pipeline_mode<synchronous>, transform_indices = @transform_2, window_bounds = array<i64: 1, 128>}, {pipeline_mode = #tpu.pipeline_mode<synchronous>, transform_indices = @transform_3, window_bounds = array<i64: 1, 128>}, {transform_indices = @transform_4, window_bounds = array<i64: 512, 128>}]} {
    %c0 = arith.constant 0 : index
    %c0_0 = arith.constant 0 : index
    %0 = vector.load %arg1[%c0, %c0_0] : memref<512x4xf32, #tpu.memory_space<vmem>>, vector<512x4xf32>
    %1 = arith.truncf %0 : vector<512x4xf32> to vector<512x4xbf16>
    %c0_1 = arith.constant 0 : index
    %c0_2 = arith.constant 0 : index
    %2 = vector.load %arg2[%c0_1, %c0_2] : memref<4x128xbf16, #tpu.memory_space<vmem>>, vector<4x128xbf16>
    %cst = arith.constant dense<0.000000e+00> : vector<512x128xf32>
    %3 = tpu.matmul %1, %2, %cst {dimension_numbers = #tpu.dot_dimension_numbers<[1], [0], [0], [1], [0, 0, 1, 1], [], []>} : vector<512x4xbf16>, vector<4x128xbf16>, vector<512x128xf32> -> vector<512x128xf32>
    %c0_3 = arith.constant 0 : index
    %c0_4 = arith.constant 0 : index
    %4 = vector.load %arg3[%c0_3, %c0_4] : memref<1x128xf32, #tpu.memory_space<vmem>>, vector<1x128xf32>
    %5 = vector.broadcast %4 : vector<1x128xf32> to vector<512x128xf32>
    %6 = arith.mulf %3, %5 : vector<512x128xf32>
    %c0_5 = arith.constant 0 : index
    %c0_6 = arith.constant 0 : index
    %7 = vector.load %arg4[%c0_5, %c0_6] : memref<1x128xf32, #tpu.memory_space<vmem>>, vector<1x128xf32>
    %8 = vector.broadcast %7 : vector<1x128xf32> to vector<512x128xf32>
    %9 = arith.addf %6, %8 : vector<512x128xf32>
    %10 = arith.negf %9 : vector<512x128xf32>
    %11 = math.exp %10 : vector<512x128xf32>
    %cst_7 = arith.constant 1.000000e+00 : f32
    %12 = vector.broadcast %cst_7 : f32 to vector<512x128xf32>
    %13 = arith.addf %12, %11 : vector<512x128xf32>
    %14 = arith.divf %12, %13 : vector<512x128xf32>
    %15 = arith.mulf %9, %14 : vector<512x128xf32>
    %16 = arith.truncf %15 : vector<512x128xf32> to vector<512x128xbf16>
    %c0_8 = arith.constant 0 : index
    %c0_9 = arith.constant 0 : index
    %17 = vector.load %arg5[%c0_8, %c0_9] : memref<512x128xbf16, #tpu.memory_space<vmem>>, vector<512x128xbf16>
    tpu.vector_store %arg5[%c0_8, %c0_9], %16 {strides = array<i32>} : memref<512x128xbf16, #tpu.memory_space<vmem>>, vector<512x128xbf16>,
    return
  }
  func.func @transform_0(%arg0: i32) -> (i32, i32) {
    %c0_i32 = arith.constant 0 : i32
    %c0_i32_0 = arith.constant 0 : i32
    return %arg0, %c0_i32 : i32, i32
  }
  func.func @transform_1(%arg0: i32) -> (i32, i32) {
    %c0_i32 = arith.constant 0 : i32
    %c0_i32_0 = arith.constant 0 : i32
    %c0_i32_1 = arith.constant 0 : i32
    return %c0_i32, %c0_i32_0 : i32, i32
  }
  func.func @transform_2(%arg0: i32) -> (i32, i32) {
    %c0_i32 = arith.constant 0 : i32
    %c0_i32_0 = arith.constant 0 : i32
    %c0_i32_1 = arith.constant 0 : i32
    return %c0_i32, %c0_i32_0 : i32, i32
  }
  func.func @transform_3(%arg0: i32) -> (i32, i32) {
    %c0_i32 = arith.constant 0 : i32
    %c0_i32_0 = arith.constant 0 : i32
    %c0_i32_1 = arith.constant 0 : i32
    return %c0_i32, %c0_i32_0 : i32, i32
  }
  func.func @transform_4(%arg0: i32) -> (i32, i32) {
    %c0_i32 = arith.constant 0 : i32
    %c0_i32_0 = arith.constant 0 : i32
    return %arg0, %c0_i32 : i32, i32
  }
}

</mosaic_0001>

<bundles_post_ra>
// kernel: _lambda_.2
= control target key start
LH: loop header
LB: loop body
LE: loop exit
PB: predicated region body
PF: predicated region fallthrough
CT: control target
= control target key end

     0   :  { %vm212_vm0 = vcmask 1041408   ;;  %vm115_vm1 = vcmask 31744   ;;  %s4623_s1 = inlined_call_operand.vmem [shape: bf16[4,128], index: 1, kind: input, shape index: {}]   ;;  %s4624_s0 = inlined_call_operand.vmem [shape: f32[512,4], index: 0, kind: input, shape index: {}]   ;;  %s4625_s2 = inlined_call_operand.vmem [shape: f32[1,128], index: 2, kind: input, shape index: {}]   ;;  %s4626_s3 = inlined_call_operand.vmem [shape: f32[1,128], index: 3, kind: input, shape index: {}]   ;;  %s4627_s4 = inlined_call_operand.vmem [shape: bf16[512,128], index: 4, kind: output, shape index: {}]  }
   0x1   :  { %v114_v0 = vld [vmem:[%s4623_s1] sm:$0x3]  ;;  %v19_v2 = vld [vmem:[%s4624_s0 + $0x8] sm:$0xff]  ;;  %v20_v14 = vld [vmem:[%s4624_s0 + $0x10] sm:$0xff] }
   0x2   :  { %v18_v1 = vld [vmem:[%s4624_s0] sm:$0xff]  ;;  %v214_v3 = vsel %vm212_vm0, %v114_v0, 0  ;;  %v35_v6 = vld [vmem:[%s4624_s0 + $0x88] sm:$0xff]  ;;  %v21_v15 = vld [vmem:[%s4624_s0 + $0x18] sm:$0xff] }
   0x3   :  { %v82_v4 = vpack.c.bf16 %v19_v2, %v18_v1  ;;  %v34_v5 = vld [vmem:[%s4624_s0 + $0x80] sm:$0xff]  ;;  %223 = vmatpush.bf16.msra.mxu0 %v214_v3  ;;  %2220 = vmatpush.bf16.msra.mxu1 %v214_v3  ;;  %v51_v9 = vld [vmem:[%s4624_s0 + $0x108] sm:$0xff]  ;;  %v36_v16 = vld [vmem:[%s4624_s0 + $0x90] sm:$0xff]  ;;  %v83_v22 = vpack.c.bf16 %v21_v15, %v20_v14 }
   0x4   :  { %v50_v7 = vld [vmem:[%s4624_s0 + $0x100] sm:$0xff]  ;;  %v90_v8 = vpack.c.bf16 %v35_v6, %v34_v5  ;;  %v67_v11 = vld [vmem:[%s4624_s0 + $0x188] sm:$0xff]  ;;  %2221 = vmatpush.bf16.msra.mxu2 %v214_v3  ;;  %2222 = vmatpush.bf16.msra.mxu3 %v214_v3  ;;  %v37_v17 = vld [vmem:[%s4624_s0 + $0x98] sm:$0xff] }
   0x5   :  { %v66_v10 = vld [vmem:[%s4624_s0 + $0x180] sm:$0xff]  ;;  %v98_v12 = vpack.c.bf16 %v51_v9, %v50_v7  ;;  %v52_v18 = vld [vmem:[%s4624_s0 + $0x110] sm:$0xff]  ;;  %v53_v19 = vld [vmem:[%s4624_s0 + $0x118] sm:$0xff]  ;;  %v91_v23 = vpack.c.bf16 %v37_v17, %v36_v16 }
   0x6   :  { %v106_v13 = vpack.c.bf16 %v67_v11, %v66_v10  ;;  %1933 = vmatmul.msk.bf16.vlgmr.msra.gmra.mxu0 %vm115_vm1, %v82_v4  ;;  %1941 = vmatmul.msk.bf16.vlgmr.msra.gmra.mxu1 %vm115_vm1, %v90_v8  ;;  %v68_v20 = vld [vmem:[%s4624_s0 + $0x190] sm:$0xff]  ;;  %v69_v21 = vld [vmem:[%s4624_s0 + $0x198] sm:$0xff]  ;;  %v99_v24 = vpack.c.bf16 %v53_v19, %v52_v18  ;;  %v22_v26 = vld [vmem:[%s4624_s0 + $0x20] sm:$0xff] }
   0x7   :  { %1949 = vmatmul.msk.bf16.vlgmr.msra.gmra.mxu2 %vm115_vm1, %v98_v12  ;;  %v107_v25 = vpack.c.bf16 %v69_v21, %v68_v20  ;;  %v23_v27 = vld [vmem:[%s4624_s0 + $0x28] sm:$0xff]  ;;  %v38_v28 = vld [vmem:[%s4624_s0 + $0xa0] sm:$0xff]  ;;  %v24_v38 = vld [vmem:[%s4624_s0 + $0x30] sm:$0xff] }
   0x8   :  { %1957 = vmatmul.msk.bf16.vlgmr.msra.gmra.mxu3 %vm115_vm1, %v106_v13  ;;  %v39_v29 = vld [vmem:[%s4624_s0 + $0xa8] sm:$0xff]  ;;  %v54_v30 = vld [vmem:[%s4624_s0 + $0x120] sm:$0xff]  ;;  %v84_v34 = vpack.c.bf16 %v23_v27, %v22_v26  ;;  %v25_v39 = vld [vmem:[%s4624_s0 + $0x38] sm:$0xff] }
   0x9   :  { %v55_v31 = vld [vmem:[%s4624_s0 + $0x128] sm:$0xff]  ;;  %v70_v32 = vld [vmem:[%s4624_s0 + $0x1a0] sm:$0xff]  ;;  %v92_v35 = vpack.c.bf16 %v39_v29, %v38_v28  ;;  %v40_v40 = vld [vmem:[%s4624_s0 + $0xb0] sm:$0xff]  ;;  %v85_v46 = vpack.c.bf16 %v25_v39, %v24_v38 }
   0xa   :  { %v71_v33 = vld [vmem:[%s4624_s0 + $0x1a8] sm:$0xff]  ;;  %v100_v36 = vpack.c.bf16 %v55_v31, %v54_v30  ;;  %v41_v41 = vld [vmem:[%s4624_s0 + $0xb8] sm:$0xff]  ;;  %v56_v42 = vld [vmem:[%s4624_s0 + $0x130] sm:$0xff] }
   0xb   :  { %v108_v37 = vpack.c.bf16 %v71_v33, %v70_v32  ;;  %v57_v43 = vld [vmem:[%s4624_s0 + $0x138] sm:$0xff]  ;;  %v72_v44 = vld [vmem:[%s4624_s0 + $0x1b0] sm:$0xff]  ;;  %v93_v47 = vpack.c.bf16 %v41_v41, %v40_v40  ;;  %v26_v50 = vld [vmem:[%s4624_s0 + $0x40] sm:$0xff] }
   0xc   :  { %v73_v45 = vld [vmem:[%s4624_s0 + $0x1b8] sm:$0xff]  ;;  %v101_v48 = vpack.c.bf16 %v57_v43, %v56_v42  ;;  %v27_v51 = vld [vmem:[%s4624_s0 + $0x48] sm:$0xff]  ;;  %v42_v52 = vld [vmem:[%s4624_s0 + $0xc0] sm:$0xff] }
   0xd   :  { %v109_v49 = vpack.c.bf16 %v73_v45, %v72_v44  ;;  %v43_v53 = vld [vmem:[%s4624_s0 + $0xc8] sm:$0xff]  ;;  %v58_v54 = vld [vmem:[%s4624_s0 + $0x140] sm:$0xff]  ;;  %v86_v58 = vpack.c.bf16 %v27_v51, %v26_v50  ;;  %v28_v62 = vld [vmem:[%s4624_s0 + $0x50] sm:$0xff] }
   0xe   :  { %v59_v55 = vld [vmem:[%s4624_s0 + $0x148] sm:$0xff]  ;;  %v74_v56 = vld [vmem:[%s4624_s0 + $0x1c0] sm:$0xff]  ;;  %v94_v59 = vpack.c.bf16 %v43_v53, %v42_v52  ;;  %v29_v63 = vld [vmem:[%s4624_s0 + $0x58] sm:$0xff] }
   0xf   :  { %v75_v57 = vld [vmem:[%s4624_s0 + $0x1c8] sm:$0xff]  ;;  %v102_v60 = vpack.c.bf16 %v59_v55, %v58_v54  ;;  %v44_v0 = vld [vmem:[%s4624_s0 + $0xd0] sm:$0xff]  ;;  %v45_v1 = vld [vmem:[%s4624_s0 + $0xd8] sm:$0xff]  ;;  %v87_v6 = vpack.c.bf16 %v29_v63, %v28_v62 }
  0x10   :  { %v110_v61 = vpack.c.bf16 %v75_v57, %v74_v56  ;;  %v60_v2 = vld [vmem:[%s4624_s0 + $0x150] sm:$0xff]  ;;  %v61_v3 = vld [vmem:[%s4624_s0 + $0x158] sm:$0xff]  ;;  %v95_v7 = vpack.c.bf16 %v45_v1, %v44_v0  ;;  %v30_v10 = vld [vmem:[%s4624_s0 + $0x60] sm:$0xff] }
  0x11   :  { %v76_v4 = vld [vmem:[%s4624_s0 + $0x1d0] sm:$0xff]  ;;  %v77_v5 = vld [vmem:[%s4624_s0 + $0x1d8] sm:$0xff]  ;;  %v103_v8 = vpack.c.bf16 %v61_v3, %v60_v2  ;;  %v31_v11 = vld [vmem:[%s4624_s0 + $0x68] sm:$0xff] }
  0x12   :  { %v111_v9 = vpack.c.bf16 %v77_v5, %v76_v4  ;;  %v46_v12 = vld [vmem:[%s4624_s0 + $0xe0] sm:$0xff]  ;;  %v47_v13 = vld [vmem:[%s4624_s0 + $0xe8] sm:$0xff]  ;;  %v88_v18 = vpack.c.bf16 %v31_v11, %v30_v10  ;;  %v64_v26 = vld [vmem:[%s4624_s0 + $0x170] sm:$0xff] }
  0x13   :  { %v62_v14 = vld [vmem:[%s4624_s0 + $0x160] sm:$0xff]  ;;  %v63_v15 = vld [vmem:[%s4624_s0 + $0x168] sm:$0xff]  ;;  %v96_v19 = vpack.c.bf16 %v47_v13, %v46_v12  ;;  %v65_v27 = vld [vmem:[%s4624_s0 + $0x178] sm:$0xff] }
  0x14   :  { %v78_v16 = vld [vmem:[%s4624_s0 + $0x1e0] sm:$0xff]  ;;  %v79_v17 = vld [vmem:[%s4624_s0 + $0x1e8] sm:$0xff]  ;;  %v104_v20 = vpack.c.bf16 %v63_v15, %v62_v14  ;;  %v80_v28 = vld [vmem:[%s4624_s0 + $0x1f0] sm:$0xff]  ;;  %v105_v32 = vpack.c.bf16 %v65_v27, %v64_v26 }
  0x15   :  { %v112_v21 = vpack.c.bf16 %v79_v17, %v78_v16  ;;  %v81_v29 = vld [vmem:[%s4624_s0 + $0x1f8] sm:$0xff] }
  0x16   :  { %1934 = vmatmul.msk.bf16.gmra.mxu0 %vm115_vm1, %v83_v22  ;;  %1942 = vmatmul.msk.bf16.gmra.mxu1 %vm115_vm1, %v91_v23  ;;  %v32_v22 = vld [vmem:[%s4624_s0 + $0x70] sm:$0xff]  ;;  %v33_v23 = vld [vmem:[%s4624_s0 + $0x78] sm:$0xff]  ;;  %v113_v33 = vpack.c.bf16 %v81_v29, %v80_v28 }
  0x17   :  { %1950 = vmatmul.msk.bf16.gmra.mxu2 %vm115_vm1, %v99_v24  ;;  %v48_v24 = vld [vmem:[%s4624_s0 + $0xf0] sm:$0xff]  ;;  %v89_v30 = vpack.c.bf16 %v33_v23, %v32_v22 }
  0x18   :  { %1958 = vmatmul.msk.bf16.gmra.mxu3 %vm115_vm1, %v107_v25  ;;  %v49_v25 = vld [vmem:[%s4624_s0 + $0xf8] sm:$0xff] }
  0x19   :  { %v97_v31 = vpack.c.bf16 %v49_v25, %v48_v24 }
  0x26   :  { %1935 = vmatmul.msk.bf16.gmra.mxu0 %vm115_vm1, %v84_v34  ;;  %1943 = vmatmul.msk.bf16.gmra.mxu1 %vm115_vm1, %v92_v35  ;;  %v2740_v34 = vld [vmem:[%s4625_s2] ss:$0 sm:$0xff] }
  0x27   :  { %1951 = vmatmul.msk.bf16.gmra.mxu2 %vm115_vm1, %v100_v36  ;;  %v2745_v35 = vld [vmem:[%s4626_s3] ss:$0 sm:$0xff] }
  0x28   :  { %1959 = vmatmul.msk.bf16.gmra.mxu3 %vm115_vm1, %v108_v37 }
  0x36   :  { %1936 = vmatmul.msk.bf16.gmra.mxu0 %vm115_vm1, %v85_v46  ;;  %1944 = vmatmul.msk.bf16.gmra.mxu1 %vm115_vm1, %v93_v47 }
  0x37   :  { %1952 = vmatmul.msk.bf16.gmra.mxu2 %vm115_vm1, %v101_v48 }
  0x38   :  { %1960 = vmatmul.msk.bf16.gmra.mxu3 %vm115_vm1, %v109_v49 }
  0x46   :  { %1937 = vmatmul.msk.bf16.gmra.mxu0 %vm115_vm1, %v86_v58  ;;  %1945 = vmatmul.msk.bf16.gmra.mxu1 %vm115_vm1, %v94_v59 }
  0x47   :  { %1953 = vmatmul.msk.bf16.gmra.mxu2 %vm115_vm1, %v102_v60 }
  0x48   :  { %1961 = vmatmul.msk.bf16.gmra.mxu3 %vm115_vm1, %v110_v61 }
  0x56   :  { %1938 = vmatmul.msk.bf16.gmra.mxu0 %vm115_vm1, %v87_v6  ;;  %1946 = vmatmul.msk.bf16.gmra.mxu1 %vm115_vm1, %v95_v7 }
  0x57   :  { %1954 = vmatmul.msk.bf16.gmra.mxu2 %vm115_vm1, %v103_v8 }
  0x58   :  { %1962 = vmatmul.msk.bf16.gmra.mxu3 %vm115_vm1, %v111_v9 }
  0x66   :  { %1939 = vmatmul.msk.bf16.gmra.mxu0 %vm115_vm1, %v88_v18  ;;  %1947 = vmatmul.msk.bf16.gmra.mxu1 %vm115_vm1, %v96_v19 }
  0x67   :  { %1955 = vmatmul.msk.bf16.gmra.mxu2 %vm115_vm1, %v104_v20 }
  0x68   :  { %1963 = vmatmul.msk.bf16.gmra.mxu3 %vm115_vm1, %v112_v21 }
  0x76   :  { %1940 = vmatmul.msk.bf16.gmra.mxu0 %vm115_vm1, %v89_v30  ;;  %1948 = vmatmul.msk.bf16.gmra.mxu1 %vm115_vm1, %v97_v31 }
  0x77   :  { %1956 = vmatmul.msk.bf16.gmra.mxu2 %vm115_vm1, %v105_v32 }
  0x78   :  { %1964 = vmatmul.msk.bf16.gmra.mxu3 %vm115_vm1, %v113_v33 }
  0x83   :  { %v225_v36 = vpop.f32.mrf.mxu0  ;;  %v265_v37 = vpop.f32.mrf.mxu1 }
  0x84   :  { %v389_v38 = vmul.f32 %v2740_v34, %v225_v36  ;;  %v405_v39 = vmul.f32 %v2740_v34, %v265_v37 }
  0x86   :  { %v2750_v40 = vadd.f32 %v2745_v35, %v389_v38  ;;  %v2753_v41 = vadd.f32 %v2745_v35, %v405_v39 }
  0x88   :  { %v1965_v42 = vmul.f32 -1.442695, %v2750_v40  ;;  %v1981_v43 = vmul.f32 -1.442695, %v2753_v41 }
  0x8a   :  { %2225 = vpow2.f32 %v1965_v42  ;;  %v305_v44 = vpop.f32.mrf.mxu2 }
  0x8b   :  { %v345_v45 = vpop.f32.mrf.mxu3  ;;  %2227 = vpow2.f32 %v1981_v43  ;;  %v421_v46 = vmul.f32 %v2740_v34, %v305_v44  ;;  %v227_v48 = vpop.f32.mrf.mxu0 }
  0x8c   :  { %v437_v47 = vmul.f32 %v2740_v34, %v345_v45  ;;  %v267_v49 = vpop.f32.mrf.mxu1  ;;  %v390_v50 = vmul.f32 %v2740_v34, %v227_v48 }
  0x8d   :  { %v406_v51 = vmul.f32 %v2740_v34, %v267_v49  ;;  %v2762_v52 = vadd.f32 %v2745_v35, %v421_v46 }
  0x8e   :  { %v2765_v53 = vadd.f32 %v2745_v35, %v437_v47  ;;  %v2768_v54 = vadd.f32 %v2745_v35, %v390_v50 }
  0x8f   :  { %v2771_v55 = vadd.f32 %v2745_v35, %v406_v51  ;;  %v1997_v56 = vmul.f32 -1.442695, %v2762_v52 }
  0x90   :  { %v2013_v57 = vmul.f32 -1.442695, %v2765_v53  ;;  %v2226_v58 = vpop.eup %2225  ;;  %v1966_v61 = vmul.f32 -1.442695, %v2768_v54 }
  0x91   :  { %v2228_v59 = vpop.eup %2227  ;;  %v2775_v60 = vadd.f32 1.0, %v2226_v58  ;;  %2229 = vpow2.f32 %v1997_v56  ;;  %v1982_v63 = vmul.f32 -1.442695, %v2771_v55 }
  0x92   :  { %v2778_v62 = vadd.f32 1.0, %v2228_v59  ;;  %2231 = vpow2.f32 %v2013_v57  ;;  %v307_v0 = vpop.f32.mrf.mxu2 }
  0x93   :  { %2233 = vrcp.f32 %v2775_v60  ;;  %v422_v1 = vmul.f32 %v2740_v34, %v307_v0  ;;  %v347_v4 = vpop.f32.mrf.mxu3  ;;  %v788_v8 = vand.u32 2147483648, %v2775_v60  ;;  %v786_v12 = vand.u32 2147483647, %v2775_v60  ;;  %v230_v14 = vpop.f32.mrf.mxu0 }
  0x94   :  { %2235 = vrcp.f32 %v2778_v62  ;;  %v438_v13 = vmul.f32 %v2740_v34, %v347_v4  ;;  %v270_v15 = vpop.f32.mrf.mxu1  ;;  %vm782_vm2 = vweird.f32 %v2775_v60  ;;  %v1028_v18 = vand.u32 2147483648, %v2778_v62 }
  0x95   :  { %2237 = vpow2.f32 %v1966_v61  ;;  %v2785_v3 = vadd.f32 %v2745_v35, %v422_v1  ;;  %vm1022_vm3 = vweird.f32 %v2778_v62  ;;  %v1026_v22 = vand.u32 2147483647, %v2778_v62 }
  0x96   :  { %2239 = vpow2.f32 %v1982_v63  ;;  %v789_v23 = vor.u32 1.1754944e-38, %v788_v8  ;;  %v391_v25 = vmul.f32 %v2740_v34, %v230_v14  ;;  %v407_v26 = vmul.f32 %v2740_v34, %v270_v15 }
  0x97   :  { %v2230_v2 = vpop.eup %2229  ;;  %v1998_v19 = vmul.f32 -1.442695, %v2785_v3  ;;  %vm2812_vm4 = vcmp.eq.f32.partialorder %v786_v12, 8.507059e+37  ;;  %v2821_v31 = vadd.f32 %v2745_v35, %v438_v13  ;;  %v1029_v33 = vor.u32 1.1754944e-38, %v1028_v18 }
  0x98   :  { %v2232_v5 = vpop.eup %2231  ;;  %v2787_v6 = vadd.f32 1.0, %v2230_v2  ;;  %vm2828_vm6 = vcmp.eq.f32.partialorder %v1026_v22, 8.507059e+37  ;;  %v2839_v45 = vadd.f32 %v2745_v35, %v391_v25  ;;  %v2842_v46 = vadd.f32 %v2745_v35, %v407_v26 }
  0x99   :  { %v2789_v7 = vpop.eup %2233  ;;  %v2792_v9 = vadd.f32 1.0, %v2232_v5  ;;  %v2014_v49 = vmul.f32 -1.442695, %v2821_v31 }
  0x9a   :  { %v2794_v10 = vpop.eup %2235  ;;  %v778_v11 = vmul.f32 %v2789_v7, %v2775_v60  ;;  %2241 = vrcp.f32 %v2787_v6  ;;  %vm783_vm5 = vweird.f32 %v2789_v7  ;;  %v1268_v39 = vand.u32 2147483648, %v2787_v6 }
  0x9b   :  { %v2238_v16 = vpop.eup %2237  ;;  %v1018_v17 = vmul.f32 %v2794_v10, %v2778_v62  ;;  %2243 = vrcp.f32 %v2792_v9  ;;  %v1508_v42 = vand.u32 2147483648, %v2792_v9  ;;  %v1266_v44 = vand.u32 2147483647, %v2787_v6  ;;  %vm2854_vm8 = vmor %vm782_vm2, %vm783_vm5  ;;  %v232_v50 = vpop.f32.mrf.mxu0 }
  0x9c   :  { %v2240_v20 = vpop.eup %2239  ;;  %v779_v21 = vsub.f32 1.0, %v778_v11  ;;  %v2816_v29 = vadd.f32 1.0, %v2238_v16  ;;  %2245 = vpow2.f32 %v1998_v19  ;;  %vm1023_vm7 = vweird.f32 %v2794_v10 }
  0x9d   :  { %v1019_v24 = vsub.f32 1.0, %v1018_v17  ;;  %v2818_v30 = vadd.f32 1.0, %v2240_v20  ;;  %vm1262_vm9 = vweird.f32 %v2787_v6  ;;  %v1269_v59 = vor.u32 1.1754944e-38, %v1268_v39  ;;  %vm2870_vm10 = vmor %vm1022_vm3, %vm1023_vm7 }
  0x9e   :  { %v780_v27 = vmul.f32 %v2789_v7, %v779_v21  ;;  %2247 = vrcp.f32 %v2816_v29  ;;  %v801_v57 = vand.u32 2147483647, %v2816_v29  ;;  %v1506_v61 = vand.u32 2147483647, %v2792_v9  ;;  %v310_v21 = vpop.f32.mrf.mxu2 }
  0x9f   :  { %v1020_v32 = vmul.f32 %v2794_v10, %v1019_v24  ;;  %2249 = vrcp.f32 %v2818_v30  ;;  %v2866_v60 = vor.u32 1.1754944e-38, %v1508_v42  ;;  %vm2876_vm12 = vcmp.eq.f32.partialorder %v1266_v44, 8.507059e+37  ;;  %v350_v42 = vpop.f32.mrf.mxu3 }
  0xa0   :  { %v2825_v36 = vpop.eup %2241  ;;  %v781_v37 = vadd.f32 %v2789_v7, %v780_v27  ;;  %vm797_vm13 = vweird.f32 %v2816_v29  ;;  %v803_v4 = vand.u32 2147483648, %v2816_v29  ;;  %2251 = vpow2.f32 %v2014_v49 }
  0xa1   :  { %v1258_v43 = vmul.f32 %v2825_v36, %v2787_v6  ;;  %v2844_v47 = vpop.eup %2243  ;;  %v1021_v48 = vadd.f32 %v2794_v10, %v1020_v32  ;;  %vm1263_vm11 = vweird.f32 %v2825_v36  ;;  %vm2891_vm14 = vcmp.eq.f32.partialorder %v801_v57, 8.507059e+37 }
  0xa2   :  { %v1498_v56 = vmul.f32 %v2844_v47, %v2792_v9  ;;  %v785_v58 = vsel %vm2854_vm8, %v2789_v7, %v781_v37  ;;  %v2246_v63 = vpop.eup %2245  ;;  %vm1502_vm15 = vweird.f32 %v2792_v9  ;;  %v1043_v16 = vand.u32 2147483648, %v2818_v30  ;;  %vm2909_vm1 = vmor %vm1262_vm9, %vm1263_vm11 }
  0xa3   :  { %v1259_v51 = vsub.f32 1.0, %v1258_v43  ;;  %v1025_v62 = vsel %vm2870_vm10, %v2794_v10, %v1021_v48  ;;  %v2885_v8 = vadd.f32 1.0, %v2246_v63  ;;  %v790_v11 = vsel %vm2812_vm4, %v789_v23, %v785_v58 }
  0xa4   :  { %v2248_v5 = vpop.eup %2247  ;;  %v1499_v7 = vsub.f32 1.0, %v1498_v56  ;;  %v1041_v10 = vand.u32 2147483647, %v2818_v30  ;;  %v1967_v17 = vmul.f32 -1.442695, %v2839_v45  ;;  %v1030_v18 = vsel %vm2828_vm6, %v1029_v33, %v1025_v62 }
  0xa5   :  { %v1260_v1 = vmul.f32 %v2825_v36, %v1259_v51  ;;  %v793_v13 = vmul.f32 %v2248_v5, %v2816_v29  ;;  %v2250_v15 = vpop.eup %2249  ;;  %2253 = vrcp.f32 %v2885_v8  ;;  %vm1037_vm0 = vweird.f32 %v2818_v30 }
  0xa6   :  { %v1033_v20 = vmul.f32 %v2250_v15, %v2818_v30  ;;  %v1737_v22 = vmul.f32 %v790_v11, %v2750_v40  ;;  %v1500_v24 = vmul.f32 %v2844_v47, %v1499_v7  ;;  %vm1503_vm2 = vweird.f32 %v2844_v47  ;;  %v2252_v28 = vpop.eup %2251 }
  0xa7   :  { %v1261_v12 = vadd.f32 %v2825_v36, %v1260_v1  ;;  %v794_v19 = vsub.f32 1.0, %v793_v13  ;;  %v804_v25 = vor.u32 1.1754944e-38, %v803_v4  ;;  %vm798_vm3 = vweird.f32 %v2248_v5  ;;  %vm2952_vm10 = vmor %vm1502_vm15, %vm1503_vm2  ;;  %v312_v13 = vpop.f32.mrf.mxu2 }
  0xa8   :  { %v1034_v40 = vsub.f32 1.0, %v1033_v20  ;;  %v1753_v32 = vmul.f32 %v1030_v18, %v2753_v41  ;;  %vm2919_vm4 = vcmp.eq.f32.partialorder %v1506_v61, 8.507059e+37  ;;  %vm2923_vm5 = vcmp.eq.f32.partialorder %v1041_v10, 8.507059e+37  ;;  %vm799_vm8 = vmor %vm797_vm13, %vm798_vm3 }
  0xa9   :  { %v1265_v26 = vsel %vm2909_vm1, %v2825_v36, %v1261_v12  ;;  %v795_v27 = vmul.f32 %v2248_v5, %v794_v19  ;;  %v1044_v37 = vor.u32 1.1754944e-38, %v1043_v16  ;;  %2255 = vpow2.f32 %v1967_v17  ;;  %v272_v12 = vpop.f32.mrf.mxu1 }
  0xaa   :  { %v1035_v39 = vmul.f32 %v2250_v15, %v1034_v40  ;;  %vm1038_vm6 = vweird.f32 %v2250_v15  ;;  %vm1277_vm7 = vweird.f32 %v2885_v8  ;;  %v2928_v36 = vadd.f32 1.0, %v2252_v28 }
  0xab   :  { %v796_v38 = vadd.f32 %v2248_v5, %v795_v27  ;;  %v2254_v43 = vpop.eup %2253  ;;  %v1270_v41 = vsel %vm2876_vm12, %v1269_v59, %v1265_v26  ;;  %v1501_v44 = vadd.f32 %v2844_v47, %v1500_v24  ;;  %v1983_v48 = vmul.f32 -1.442695, %v2842_v46  ;;  %vm1039_vm9 = vmor %vm1037_vm0, %vm1038_vm6  ;;  %v352_v27 = vpop.f32.mrf.mxu3 }
  0xac   :  { %v423_v49 = vmul.f32 %v2740_v34, %v310_v21  ;;  %v1036_v56 = vadd.f32 %v2250_v15, %v1035_v39  ;;  %v1273_v57 = vmul.f32 %v2254_v43, %v2885_v8  ;;  %v1281_v58 = vand.u32 2147483647, %v2885_v8 }
  0xad   :  { %v800_v51 = vsel %vm799_vm8, %v2248_v5, %v796_v38  ;;  %v1283_v29 = vand.u32 2147483648, %v2885_v8  ;;  %2257 = vrcp.f32 %v2928_v36  ;;  %v439_v61 = vmul.f32 %v2740_v34, %v350_v42 }
  0xae   :  { %v805_v59 = vsel %vm2891_vm14, %v804_v25, %v800_v51  ;;  %v1040_v1 = vsel %vm1039_vm9, %v2250_v15, %v1036_v56  ;;  %v1274_v2 = vsub.f32 1.0, %v1273_v57  ;;  %v392_v30 = vmul.f32 %v2740_v34, %v232_v50 }
  0xaf   :  { %v1738_v0 = vmul.f32 %v805_v59, %v2768_v54  ;;  %v2256_v4 = vpop.eup %2255  ;;  %v1505_v5 = vsel %vm2952_vm10, %v2844_v47, %v1501_v44  ;;  %v1045_v62 = vsel %vm2923_vm5, %v1044_v37, %v1040_v1  ;;  %2259 = vpow2.f32 %v1983_v48 }
  0xb0   :  { %v2964_v9 = vadd.f32 %v2745_v35, %v423_v49  ;;  %v1754_v11 = vmul.f32 %v1045_v62, %v2771_v55  ;;  %v1275_v54 = vmul.f32 %v2254_v43, %v1274_v2  ;;  %vm1278_vm11 = vweird.f32 %v2254_v43 }
  0xb1   :  { %v2032_v7 = vpack.c.bf16 %v1738_v0, %v1737_v22  ;;  %v1769_v14 = vmul.f32 %v1270_v41, %v2762_v52  ;;  %v2968_v15 = vadd.f32 1.0, %v2256_v4  ;;  %v2972_v10 = vadd.f32 %v2745_v35, %v439_v61  ;;  %vm1279_vm12 = vmor %vm1277_vm7, %vm1278_vm11 }
  0xb2   :  { %v1999_v47 = vmul.f32 -1.442695, %v2964_v9  ;;  %v1510_v16 = vsel %vm2919_vm4, %v2866_v60, %v1505_v5  ;;  %v2072_v55 = vpack.c.bf16 %v1754_v11, %v1753_v32  ;;  %v1276_v17 = vadd.f32 %v2254_v43, %v1275_v54 }
  0xb3   :  { %2033 = vst [vmem:[%s4627_s4] sm:$0xff] %v2032_v7   ;;  %v2981_v18 = vadd.f32 %v2745_v35, %v392_v30  ;;  %v2258_v52 = vpop.eup %2257  ;;  %v1284_v19 = vor.u32 1.1754944e-38, %v1283_v29  ;;  %2261 = vrcp.f32 %v2968_v15  ;;  %v408_v20 = vmul.f32 %v2740_v34, %v272_v12 }
  0xb4   :  { %v424_v60 = vmul.f32 %v2740_v34, %v312_v13  ;;  %2196 = vst [vmem:[%s4627_s4 + $0x40] sm:$0xff] %v2072_v55   ;;  %v1280_v21 = vsel %vm1279_vm12, %v2254_v43, %v1276_v17  ;;  %vm1282_vm13 = vcmp.eq.f32.partialorder %v1281_v58, 8.507059e+37  ;;  %v1513_v22 = vmul.f32 %v2258_v52, %v2928_v36 }
  0xb5   :  { %2263 = vpow2.f32 %v1999_v47  ;;  %v2260_v23 = vpop.eup %2259  ;;  %v1285_v24 = vsel %vm1282_vm13, %v1284_v19, %v1280_v21  ;;  %v1521_v8 = vand.u32 2147483647, %v2928_v36  ;;  %v1523_v25 = vand.u32 2147483648, %v2928_v36 }
  0xb6   :  { %v2015_v26 = vmul.f32 -1.442695, %v2972_v10  ;;  %v1770_v40 = vmul.f32 %v1285_v24, %v2785_v3  ;;  %v1514_v28 = vsub.f32 1.0, %v1513_v22  ;;  %v2996_v32 = vadd.f32 1.0, %v2260_v23 }
  0xb7   :  { %v1968_v6 = vmul.f32 -1.442695, %v2981_v18  ;;  %vm1518_vm14 = vweird.f32 %v2258_v52  ;;  %v3000_v33 = vadd.f32 %v2745_v35, %v408_v20  ;;  %v3003_v37 = vadd.f32 %v2745_v35, %v424_v60 }
  0xb8   :  { %2265 = vpow2.f32 %v2015_v26  ;;  %v2112_v38 = vpack.c.bf16 %v1770_v40, %v1769_v14  ;;  %v1515_v39 = vmul.f32 %v2258_v52, %v1514_v28  ;;  %v440_v42 = vmul.f32 %v2740_v34, %v352_v27 }
  0xb9   :  { %2267 = vrcp.f32 %v2996_v32  ;;  %v3007_v3 = vpop.eup %2261  ;;  %v1984_v43 = vmul.f32 -1.442695, %v3000_v33  ;;  %v1785_v44 = vmul.f32 %v1510_v16, %v2765_v53  ;;  %vm1517_vm15 = vweird.f32 %v2928_v36 }
  0xba   :  { %2269 = vpow2.f32 %v1968_v6  ;;  %2204 = vst [vmem:[%s4627_s4 + $0x80] sm:$0xff] %v2112_v38   ;;  %v1516_v48 = vadd.f32 %v2258_v52, %v1515_v39  ;;  %v808_v49 = vmul.f32 %v3007_v3, %v2968_v15  ;;  %vm1519_vm0 = vmor %vm1517_vm15, %vm1518_vm14  ;;  %v1524_v50 = vor.u32 1.1754944e-38, %v1523_v25 }
  0xbb   :  { %v2264_v41 = vpop.eup %2263  ;;  %2271 = vpow2.f32 %v1984_v43  ;;  %v2000_v56 = vmul.f32 -1.442695, %v3003_v37  ;;  %vm1522_vm1 = vcmp.eq.f32.partialorder %v1521_v8, 8.507059e+37  ;;  %v3022_v58 = vadd.f32 %v2745_v35, %v440_v42 }
  0xbc   :  { %v3018_v51 = vadd.f32 1.0, %v2264_v41  ;;  %v1520_v57 = vsel %vm1519_vm0, %v2258_v52, %v1516_v48  ;;  %v809_v53 = vsub.f32 1.0, %v808_v49  ;;  %vm812_vm2 = vweird.f32 %v2968_v15 }
  0xbd   :  { %v1525_v29 = vsel %vm1522_vm1, %v1524_v50, %v1520_v57  ;;  %v816_v36 = vand.u32 2147483647, %v2968_v15  ;;  %v818_v1 = vand.u32 2147483648, %v2968_v15  ;;  %v1056_v5 = vand.u32 2147483647, %v2996_v32 }
  0xbe   :  { %v2266_v59 = vpop.eup %2265  ;;  %2273 = vrcp.f32 %v3018_v51  ;;  %v1786_v63 = vmul.f32 %v1525_v29, %v2821_v31  ;;  %v810_v0 = vmul.f32 %v3007_v3, %v809_v53  ;;  %v2016_v62 = vmul.f32 -1.442695, %v3022_v58 }
  0xbf   :  { %v3027_v61 = vpop.eup %2267  ;;  %v3032_v2 = vadd.f32 1.0, %v2266_v59  ;;  %2275 = vpow2.f32 %v2000_v56  ;;  %vm813_vm3 = vweird.f32 %v3007_v3  ;;  %vm3041_vm4 = vcmp.eq.f32.partialorder %v816_v36, 8.507059e+37 }
  0xc0   :  { %v2270_v30 = vpop.eup %2269  ;;  %v1048_v4 = vmul.f32 %v3027_v61, %v2996_v32  ;;  %v2152_v7 = vpack.c.bf16 %v1786_v63, %v1785_v44  ;;  %v811_v11 = vadd.f32 %v3007_v3, %v810_v0  ;;  %v1058_v13 = vand.u32 2147483648, %v2996_v32  ;;  %vm3057_vm5 = vmor %vm812_vm2, %vm813_vm3  ;;  %v235_v63 = vpop.f32.mrf.mxu0 }
  0xc1   :  { %2277 = vrcp.f32 %v3032_v2  ;;  %v2272_v31 = vpop.eup %2271  ;;  %v1296_v14 = vand.u32 2147483647, %v3018_v51  ;;  %v1298_v47 = vand.u32 2147483648, %v3018_v51  ;;  %v3051_v16 = vadd.f32 1.0, %v2270_v30  ;;  %v275_v0 = vpop.f32.mrf.mxu1 }
  0xc2   :  { %v1049_v12 = vsub.f32 1.0, %v1048_v4  ;;  %2212 = vst [vmem:[%s4627_s4 + $0xc0] sm:$0xff] %v2152_v7   ;;  %v3053_v55 = vadd.f32 1.0, %v2272_v31  ;;  %2279 = vpow2.f32 %v2016_v62  ;;  %v819_v19 = vor.u32 1.1754944e-38, %v818_v1 }
  0xc3   :  { %vm1052_vm6 = vweird.f32 %v2996_v32  ;;  %vm3063_vm7 = vcmp.eq.f32.partialorder %v1056_v5, 8.507059e+37  ;;  %v815_v21 = vsel %vm3057_vm5, %v3007_v3, %v811_v11  ;;  %vm1053_vm8 = vweird.f32 %v3027_v61  ;;  %v315_v5 = vpop.f32.mrf.mxu2 }
  0xc4   :  { %v2274_v17 = vpop.eup %2273  ;;  %v1050_v20 = vmul.f32 %v3027_v61, %v1049_v12  ;;  %2281 = vrcp.f32 %v3051_v16  ;;  %v1059_v24 = vor.u32 1.1754944e-38, %v1058_v13  ;;  %vm1292_vm9 = vweird.f32 %v3018_v51  ;;  %vm3087_vm11 = vmor %vm1052_vm6, %vm1053_vm8 }
  0xc5   :  { %v1288_v15 = vmul.f32 %v2274_v17, %v3018_v51  ;;  %v2276_v22 = vpop.eup %2275  ;;  %v1538_v8 = vand.u32 2147483648, %v3032_v2  ;;  %vm3078_vm10 = vcmp.eq.f32.partialorder %v1296_v14, 8.507059e+37  ;;  %v1299_v40 = vor.u32 1.1754944e-38, %v1298_v47 }
  0xc6   :  { %v1051_v23 = vadd.f32 %v3027_v61, %v1050_v20  ;;  %2283 = vrcp.f32 %v3053_v55  ;;  %v820_v28 = vsel %vm3041_vm4, %v819_v19, %v815_v21  ;;  %vm1532_vm12 = vweird.f32 %v3032_v2 }
  0xc7   :  { %v3076_v25 = vpop.eup %2277  ;;  %v1289_v26 = vsub.f32 1.0, %v1288_v15  ;;  %v1536_v39 = vand.u32 2147483647, %v3032_v2  ;;  %v831_v42 = vand.u32 2147483647, %v3051_v16  ;;  %vm1293_vm13 = vweird.f32 %v2274_v17 }
  0xc8   :  { %v1528_v38 = vmul.f32 %v3076_v25, %v3032_v2  ;;  %v2280_v3 = vpop.eup %2279  ;;  %v1055_v43 = vsel %vm3087_vm11, %v3027_v61, %v1051_v23  ;;  %v833_v32 = vand.u32 2147483648, %v3051_v16  ;;  %v3100_v48 = vor.u32 1.1754944e-38, %v1538_v8  ;;  %vm1294_vm0 = vmor %vm1292_vm9, %vm1293_vm13 }
  0xc9   :  { %v1290_v41 = vmul.f32 %v2274_v17, %v1289_v26  ;;  %v1071_v49 = vand.u32 2147483647, %v3053_v55  ;;  %v3103_v50 = vadd.f32 1.0, %v2276_v22  ;;  %v3106_v57 = vmul.f32 %v820_v28, %v2839_v45 }
  0xca   :  { %v1529_v44 = vsub.f32 1.0, %v1528_v38  ;;  %v2282_v56 = vpop.eup %2281  ;;  %vm1533_vm14 = vweird.f32 %v3076_v25  ;;  %vm827_vm15 = vweird.f32 %v3051_v16  ;;  %v1060_v59 = vsel %vm3063_vm7, %v1059_v24, %v1055_v43  ;;  %v355_v38 = vpop.f32.mrf.mxu3 }
  0xcb   :  { %v1291_v53 = vadd.f32 %v2274_v17, %v1290_v41  ;;  %v823_v36 = vmul.f32 %v2282_v56, %v3051_v16  ;;  %vm3116_vm1 = vcmp.eq.f32.partialorder %v831_v42, 8.507059e+37  ;;  %vm1067_vm2 = vweird.f32 %v3053_v55  ;;  %vm3148_vm5 = vmor %vm1532_vm12, %vm1533_vm14 }
  0xcc   :  { %v1530_v29 = vmul.f32 %v3076_v25, %v1529_v44  ;;  %v3121_v45 = vadd.f32 1.0, %v2280_v3  ;;  %v2284_v1 = vpop.eup %2283  ;;  %v834_v4 = vor.u32 1.1754944e-38, %v833_v32  ;;  %v1073_v51 = vand.u32 2147483648, %v3053_v55 }
  0xcd   :  { %v1295_v30 = vsel %vm1294_vm0, %v2274_v17, %v1291_v53  ;;  %2285 = vrcp.f32 %v3103_v50  ;;  %v824_v11 = vsub.f32 1.0, %v823_v36  ;;  %v1063_v31 = vmul.f32 %v2284_v1, %v3053_v55 }
  0xce   :  { %v1300_v62 = vsel %vm3078_vm10, %v1299_v40, %v1295_v30  ;;  %v3128_v7 = vadd.f32 %v3076_v25, %v1530_v29  ;;  %vm3131_vm3 = vcmp.eq.f32.partialorder %v1071_v49, 8.507059e+37  ;;  %vm828_vm4 = vweird.f32 %v2282_v56  ;;  %v317_v29 = vpop.f32.mrf.mxu2 }
  0xcf   :  { %v1313_v12 = vand.u32 2147483648, %v3103_v50  ;;  %v393_v13 = vmul.f32 %v2740_v34, %v235_v63  ;;  %v409_v14 = vmul.f32 %v2740_v34, %v275_v0  ;;  %v825_v47 = vmul.f32 %v2282_v56, %v824_v11  ;;  %vm829_vm9 = vmor %vm827_vm15, %vm828_vm4 }
  0xd0   :  { %v1064_v17 = vsub.f32 1.0, %v1063_v31  ;;  %v1311_v52 = vand.u32 2147483647, %v3103_v50  ;;  %2287 = vrcp.f32 %v3121_v45  ;;  %v1755_v19 = vmul.f32 %v1060_v59, %v2842_v46  ;;  %v277_v59 = vpop.f32.mrf.mxu1 }
  0xd1   :  { %v3142_v20 = vmul.f32 %v1300_v62, %v2964_v9  ;;  %vm1068_vm6 = vweird.f32 %v2284_v1  ;;  %v1074_v21 = vor.u32 1.1754944e-38, %v1073_v51  ;;  %v1535_v15 = vsel %vm3148_vm5, %v3076_v25, %v3128_v7 }
  0xd2   :  { %v826_v22 = vadd.f32 %v2282_v56, %v825_v47  ;;  %v1065_v46 = vmul.f32 %v2284_v1, %v1064_v17  ;;  %vm1307_vm7 = vweird.f32 %v3103_v50  ;;  %v1314_v9 = vor.u32 1.1754944e-38, %v1313_v12  ;;  %vm1069_vm11 = vmor %vm1067_vm2, %vm1068_vm6  ;;  %v357_v60 = vpop.f32.mrf.mxu3 }
  0xd3   :  { %v2286_v23 = vpop.eup %2285  ;;  %vm3157_vm8 = vcmp.eq.f32.partialorder %v1536_v39, 8.507059e+37  ;;  %v1551_v2 = vand.u32 2147483647, %v3121_v45  ;;  %v3166_v8 = vadd.f32 %v2745_v35, %v393_v13  ;;  %v3169_v25 = vadd.f32 %v2745_v35, %v409_v14 }
  0xd4   :  { %v425_v26 = vmul.f32 %v2740_v34, %v315_v5  ;;  %v830_v27 = vsel %vm829_vm9, %v2282_v56, %v826_v22  ;;  %v1066_v40 = vadd.f32 %v2284_v1, %v1065_v46  ;;  %v1303_v28 = vmul.f32 %v2286_v23, %v3103_v50  ;;  %v237_v56 = vpop.f32.mrf.mxu0 }
  0xd5   :  { %vm3173_vm10 = vcmp.eq.f32.partialorder %v1311_v52, 8.507059e+37  ;;  %v1553_v16 = vand.u32 2147483648, %v3121_v45  ;;  %v835_v39 = vsel %vm3116_vm1, %v834_v4, %v830_v27  ;;  %vm1308_vm12 = vweird.f32 %v2286_v23 }
  0xd6   :  { %v1969_v42 = vmul.f32 -1.442695, %v3166_v8  ;;  %v1985_v3 = vmul.f32 -1.442695, %v3169_v25  ;;  %v2288_v43 = vpop.eup %2287  ;;  %v1740_v41 = vmul.f32 %v835_v39, %v2981_v18  ;;  %v1070_v32 = vsel %vm1069_vm11, %v2284_v1, %v1066_v40  ;;  %vm1309_vm14 = vmor %vm1307_vm7, %vm1308_vm12 }
  0xd7   :  { %v1304_v44 = vsub.f32 1.0, %v1303_v28  ;;  %v3187_v49 = vadd.f32 %v2745_v35, %v425_v26  ;;  %v1075_v53 = vsel %vm3131_vm3, %v1074_v21, %v1070_v32  ;;  %v1543_v55 = vmul.f32 %v2288_v43, %v3121_v45 }
  0xd8   :  { %vm1548_vm13 = vweird.f32 %v2288_v43  ;;  %2289 = vpow2.f32 %v1969_v42  ;;  %v2037_v36 = vpack.c.bf16 %v1740_v41, %v3106_v57  ;;  %v1756_v61 = vmul.f32 %v1075_v53, %v3000_v33 }
  0xd9   :  { %v1305_v18 = vmul.f32 %v2286_v23, %v1304_v44  ;;  %2291 = vpow2.f32 %v1985_v3  ;;  %v1544_v63 = vsub.f32 1.0, %v1543_v55  ;;  %v2001_v0 = vmul.f32 -1.442695, %v3187_v49 }
  0xda   :  { %v441_v1 = vmul.f32 %v2740_v34, %v355_v38  ;;  %v394_v30 = vmul.f32 %v2740_v34, %v237_v56  ;;  %2189 = vst [vmem:[%s4627_s4 + $0x8] sm:$0xff] %v2037_v36   ;;  %v2077_v4 = vpack.c.bf16 %v1756_v61, %v1755_v19  ;;  %v410_v5 = vmul.f32 %v2740_v34, %v277_v59  ;;  %v280_v56 = vpop.f32.mrf.mxu1 }
  0xdb   :  { %v1306_v51 = vadd.f32 %v2286_v23, %v1305_v18  ;;  %v426_v57 = vmul.f32 %v2740_v34, %v317_v29  ;;  %v1545_v33 = vmul.f32 %v2288_v43, %v1544_v63  ;;  %2293 = vpow2.f32 %v2001_v0 }
  0xdc   :  { %v3206_v62 = vadd.f32 %v2745_v35, %v441_v1  ;;  %v3209_v7 = vadd.f32 %v2745_v35, %v394_v30  ;;  %v1540_v11 = vsel %vm3157_vm8, %v3100_v48, %v1535_v15  ;;  %2197 = vst [vmem:[%s4627_s4 + $0x48] sm:$0xff] %v2077_v4   ;;  %vm1547_vm15 = vweird.f32 %v3121_v45 }
  0xdd   :  { %v1310_v31 = vsel %vm1309_vm14, %v2286_v23, %v1306_v51  ;;  %vm3218_vm0 = vcmp.eq.f32.partialorder %v1551_v2, 8.507059e+37  ;;  %v1546_v13 = vadd.f32 %v2288_v43, %v1545_v33  ;;  %v3226_v48 = vadd.f32 %v2745_v35, %v410_v5  ;;  %vm1549_vm1 = vmor %vm1547_vm15, %vm1548_vm13 }
  0xde   :  { %v2290_v54 = vpop.eup %2289  ;;  %v1315_v12 = vsel %vm3173_vm10, %v1314_v9, %v1310_v31  ;;  %v2017_v14 = vmul.f32 -1.442695, %v3206_v62  ;;  %v1554_v45 = vor.u32 1.1754944e-38, %v1553_v16  ;;  %v3233_v19 = vadd.f32 %v2745_v35, %v426_v57 }
  0xdf   :  { %v2292_v47 = vpop.eup %2291  ;;  %v1772_v17 = vmul.f32 %v1315_v12, %v3003_v37  ;;  %v3230_v52 = vadd.f32 1.0, %v2290_v54  ;;  %v1550_v21 = vsel %vm1549_vm1, %v2288_v43, %v1546_v13  ;;  %v1970_v22 = vmul.f32 -1.442695, %v3209_v7  ;;  %v240_v43 = vpop.f32.mrf.mxu0 }
  0xe0   :  { %v3235_v15 = vadd.f32 1.0, %v2292_v47  ;;  %2295 = vpow2.f32 %v2017_v14  ;;  %v1787_v46 = vmul.f32 %v1540_v11, %v2972_v10  ;;  %v1555_v37 = vsel %vm3218_vm0, %v1554_v45, %v1550_v21 }
  0xe1   :  { %v2117_v9 = vpack.c.bf16 %v1772_v17, %v3142_v20  ;;  %2297 = vrcp.f32 %v3230_v52  ;;  %v2294_v23 = vpop.eup %2293  ;;  %v1788_v24 = vmul.f32 %v1555_v37, %v3022_v58  ;;  %v1986_v2 = vmul.f32 -1.442695, %v3226_v48 }
  0xe2   :  { %2299 = vrcp.f32 %v3235_v15  ;;  %v442_v26 = vmul.f32 %v2740_v34, %v357_v60  ;;  %v3250_v10 = vadd.f32 1.0, %v2294_v23  ;;  %v2002_v27 = vmul.f32 -1.442695, %v3233_v19 }
  0xe3   :  { %2205 = vst [vmem:[%s4627_s4 + $0x88] sm:$0xff] %v2117_v9   ;;  %v2157_v20 = vpack.c.bf16 %v1788_v24, %v1787_v46  ;;  %2301 = vpow2.f32 %v1970_v22  ;;  %v848_v58 = vand.u32 2147483648, %v3230_v52  ;;  %v846_v16 = vand.u32 2147483647, %v3230_v52  ;;  %v3440_v24 = vld [vmem:[%s4626_s3] ss:$0 sm:$0xff] }
  0xe4   :  { %2303 = vrcp.f32 %v3250_v10  ;;  %v3259_v28 = vadd.f32 %v2745_v35, %v442_v26  ;;  %v1088_v38 = vand.u32 2147483648, %v3235_v15  ;;  %vm842_vm2 = vweird.f32 %v3230_v52 }
  0xe5   :  { %2213 = vst [vmem:[%s4627_s4 + $0xc8] sm:$0xff] %v2157_v20   ;;  %2305 = vpow2.f32 %v1986_v2  ;;  %vm1082_vm3 = vweird.f32 %v3235_v15  ;;  %v1086_v32 = vand.u32 2147483647, %v3235_v15  ;;  %v1328_v44 = vand.u32 2147483648, %v3250_v10 }
  0xe6   :  { %v2296_v40 = vpop.eup %2295  ;;  %2307 = vpow2.f32 %v2002_v27  ;;  %v849_v59 = vor.u32 1.1754944e-38, %v848_v58  ;;  %v1326_v29 = vand.u32 2147483647, %v3250_v10  ;;  %v2018_v36 = vmul.f32 -1.442695, %v3259_v28 }
  0xe7   :  { %v3261_v6 = vpop.eup %2297  ;;  %v3265_v39 = vadd.f32 1.0, %v2296_v40  ;;  %vm3282_vm4 = vcmp.eq.f32.partialorder %v846_v16, 8.507059e+37  ;;  %v1089_v0 = vor.u32 1.1754944e-38, %v1088_v38  ;;  %v395_v30 = vmul.f32 %v2740_v34, %v240_v43 }
  0xe8   :  { %v3267_v42 = vpop.eup %2299  ;;  %v838_v3 = vmul.f32 %v3261_v6, %v3230_v52  ;;  %vm1322_vm5 = vweird.f32 %v3250_v10  ;;  %v411_v57 = vmul.f32 %v2740_v34, %v280_v56  ;;  %vm843_vm6 = vweird.f32 %v3261_v6 }
  0xe9   :  { %v1078_v41 = vmul.f32 %v3267_v42, %v3235_v15  ;;  %2309 = vrcp.f32 %v3265_v39  ;;  %v2302_v53 = vpop.eup %2301  ;;  %vm3296_vm7 = vcmp.eq.f32.partialorder %v1086_v32, 8.507059e+37  ;;  %v1329_v31 = vor.u32 1.1754944e-38, %v1328_v44  ;;  %vm3320_vm10 = vmor %vm842_vm2, %vm843_vm6 }
  0xea   :  { %v839_v55 = vsub.f32 1.0, %v838_v3  ;;  %v3280_v61 = vpop.eup %2303  ;;  %v3286_v1 = vadd.f32 1.0, %v2302_v53  ;;  %vm3302_vm8 = vcmp.eq.f32.partialorder %v1326_v29, 8.507059e+37  ;;  %v1568_v34 = vand.u32 2147483648, %v3265_v39 }
  0xeb   :  { %v1079_v63 = vsub.f32 1.0, %v1078_v41  ;;  %v2306_v4 = vpop.eup %2305  ;;  %v1318_v5 = vmul.f32 %v3280_v61, %v3250_v10  ;;  %vm1083_vm9 = vweird.f32 %v3267_v42  ;;  %v3314_v45 = vadd.f32 %v2745_v35, %v395_v30 }
  0xec   :  { %v840_v51 = vmul.f32 %v3261_v6, %v839_v55  ;;  %2311 = vrcp.f32 %v3286_v1  ;;  %v2308_v50 = vpop.eup %2307  ;;  %v3311_v17 = vadd.f32 1.0, %v2306_v4  ;;  %vm1323_vm11 = vweird.f32 %v3280_v61  ;;  %vm3339_vm13 = vmor %vm1082_vm3, %vm1083_vm9 }
  0xed   :  { %v1080_v33 = vmul.f32 %v3267_v42, %v1079_v63  ;;  %v1319_v12 = vsub.f32 1.0, %v1318_v5  ;;  %2313 = vpow2.f32 %v2018_v36  ;;  %vm1562_vm12 = vweird.f32 %v3265_v39  ;;  %vm3354_vm14 = vmor %vm1322_vm5, %vm1323_vm11 }
  0xee   :  { %v841_v54 = vadd.f32 %v3261_v6, %v840_v51  ;;  %v1566_v46 = vand.u32 2147483647, %v3265_v39  ;;  %v861_v52 = vand.u32 2147483647, %v3286_v1  ;;  %v863_v37 = vand.u32 2147483648, %v3286_v1 }
  0xef   :  { %v3307_v14 = vpop.eup %2309  ;;  %v1081_v47 = vadd.f32 %v3267_v42, %v1080_v33  ;;  %v1320_v21 = vmul.f32 %v3280_v61, %v1319_v12  ;;  %v3335_v23 = vadd.f32 1.0, %v2308_v50  ;;  %v1569_v20 = vor.u32 1.1754944e-38, %v1568_v34 }
  0xf0   :  { %v1558_v22 = vmul.f32 %v3307_v14, %v3265_v39  ;;  %v845_v9 = vsel %vm3320_vm10, %v3261_v6, %v841_v54  ;;  %v3345_v27 = vadd.f32 %v2745_v35, %v411_v57  ;;  %vm857_vm15 = vweird.f32 %v3286_v1  ;;  %v320_v39 = vpop.f32.mrf.mxu2 }
  0xf1   :  { %v1321_v2 = vadd.f32 %v3280_v61, %v1320_v21  ;;  %v1085_v58 = vsel %vm3339_vm13, %v3267_v42, %v1081_v47  ;;  %2315 = vrcp.f32 %v3311_v17  ;;  %v1971_v35 = vmul.f32 -1.442695, %v3314_v45 }
  0xf2   :  { %v1559_v26 = vsub.f32 1.0, %v1558_v22  ;;  %v2312_v40 = vpop.eup %2311  ;;  %v850_v16 = vsel %vm3282_vm4, %v849_v59, %v845_v9  ;;  %vm3367_vm0 = vcmp.eq.f32.partialorder %v1566_v46, 8.507059e+37  ;;  %vm1563_vm1 = vweird.f32 %v3307_v14  ;;  %v360_v46 = vpop.f32.mrf.mxu3 }
  0xf3   :  { %v2314_v6 = vpop.eup %2313  ;;  %v1325_v38 = vsel %vm3354_vm14, %v3280_v61, %v1321_v2  ;;  %v853_v3 = vmul.f32 %v2312_v40, %v3286_v1  ;;  %vm3373_vm2 = vcmp.eq.f32.partialorder %v861_v52, 8.507059e+37  ;;  %v864_v41 = vor.u32 1.1754944e-38, %v863_v37  ;;  %vm3396_vm4 = vmor %vm1562_vm12, %vm1563_vm1  ;;  %v3431_v1 = vld [vmem:[%s4625_s2] ss:$0 sm:$0xff] }
  0xf4   :  { %v1560_v10 = vmul.f32 %v3307_v14, %v1559_v26  ;;  %2317 = vrcp.f32 %v3335_v23  ;;  %v1090_v32 = vsel %vm3296_vm7, %v1089_v0, %v1085_v58  ;;  %v1101_v53 = vand.u32 2147483647, %v3311_v17  ;;  %v242_v26 = vpop.f32.mrf.mxu0 }
  0xf5   :  { %v854_v56 = vsub.f32 1.0, %v853_v3  ;;  %v1741_v55 = vmul.f32 %v850_v16, %v3166_v8  ;;  %v1330_v59 = vsel %vm3302_vm8, %v1329_v31, %v1325_v38  ;;  %vm858_vm3 = vweird.f32 %v2312_v40  ;;  %v282_v3 = vpop.f32.mrf.mxu1 }
  0xf6   :  { %v1561_v44 = vadd.f32 %v3307_v14, %v1560_v10  ;;  %v3385_v29 = vadd.f32 1.0, %v2314_v6  ;;  %v1103_v61 = vand.u32 2147483648, %v3311_v17  ;;  %2319 = vpow2.f32 %v1971_v35  ;;  %vm859_vm7 = vmor %vm857_vm15, %vm858_vm3 }
  0xf7   :  { %v855_v36 = vmul.f32 %v2312_v40, %v854_v56  ;;  %v1987_v18 = vmul.f32 -1.442695, %v3345_v27  ;;  %v2316_v63 = vpop.eup %2315  ;;  %v3390_v0 = vmul.f32 %v1090_v32, %v3169_v25  ;;  %vm1097_vm5 = vweird.f32 %v3311_v17 }
  0xf8   :  { %v1341_v30 = vand.u32 2147483647, %v3335_v23  ;;  %2321 = vrcp.f32 %v3385_v29  ;;  %v1565_v4 = vsel %vm3396_vm4, %v3307_v14, %v1561_v44  ;;  %v1093_v51 = vmul.f32 %v2316_v63, %v3311_v17 }
  0xf9   :  { %v856_v25 = vadd.f32 %v2312_v40, %v855_v36  ;;  %vm3407_vm6 = vcmp.eq.f32.partialorder %v1101_v53, 8.507059e+37  ;;  %v3412_v33 = vmul.f32 %v1330_v59, %v3187_v49  ;;  %vm1337_vm8 = vweird.f32 %v3335_v23 }
  0xfa   :  { %v2318_v57 = vpop.eup %2317  ;;  %v1343_v11 = vand.u32 2147483648, %v3335_v23  ;;  %2323 = vpow2.f32 %v1987_v18  ;;  %v1094_v50 = vsub.f32 1.0, %v1093_v51  ;;  %v1104_v54 = vor.u32 1.1754944e-38, %v1103_v61 }
  0xfb   :  { %v860_v31 = vsel %vm859_vm7, %v2312_v40, %v856_v25  ;;  %v1333_v12 = vmul.f32 %v2318_v57, %v3335_v23  ;;  %v1570_v13 = vsel %vm3367_vm0, %v1569_v20, %v1565_v4  ;;  %vm3424_vm9 = vcmp.eq.f32.partialorder %v1341_v30, 8.507059e+37  ;;  %v322_v30 = vpop.f32.mrf.mxu2  ;;  %v362_v25 = vpop.f32.mrf.mxu3 }
  0xfc   :  { %v865_v49 = vsel %vm3373_vm2, %v864_v41, %v860_v31  ;;  %v427_v14 = vmul.f32 %v3431_v1, %v320_v39  ;;  %v2320_v47 = vpop.eup %2319  ;;  %v1095_v21 = vmul.f32 %v2316_v63, %v1094_v50  ;;  %vm1098_vm10 = vweird.f32 %v2316_v63 }
  0xfd   :  { %v1742_v60 = vmul.f32 %v865_v49, %v3209_v7  ;;  %v1334_v22 = vsub.f32 1.0, %v1333_v12  ;;  %vm1338_vm11 = vweird.f32 %v2318_v57  ;;  %v1344_v52 = vor.u32 1.1754944e-38, %v1343_v11  ;;  %vm1099_vm12 = vmor %vm1097_vm5, %vm1098_vm10  ;;  %v245_v11 = vpop.f32.mrf.mxu0 }
  0xfe   :  { %v2322_v9 = vpop.eup %2321  ;;  %v3435_v37 = vadd.f32 1.0, %v2320_v47  ;;  %v3443_v2 = vadd.f32 %v3440_v24, %v427_v14  ;;  %v1096_v7 = vadd.f32 %v2316_v63, %v1095_v21  ;;  %v3447_v35 = vmul.f32 %v1570_v13, %v3206_v62  ;;  %vm1339_vm13 = vmor %vm1337_vm8, %vm1338_vm11 }
  0xff   :  { %v2042_v20 = vpack.c.bf16 %v1742_v60, %v1741_v55  ;;  %v1335_v40 = vmul.f32 %v2318_v57, %v1334_v22  ;;  %v1573_v58 = vmul.f32 %v2322_v9, %v3385_v29  ;;  %v1581_v6 = vand.u32 2147483647, %v3385_v29  ;;  %v285_v60 = vpop.f32.mrf.mxu1 }
 0x100   :  { %v2324_v15 = vpop.eup %2323  ;;  %v1583_v16 = vand.u32 2147483648, %v3385_v29  ;;  %2325 = vrcp.f32 %v3435_v37  ;;  %v1100_v38 = vsel %vm1099_vm12, %v2316_v63, %v1096_v7  ;;  %v443_v62 = vmul.f32 %v3431_v1, %v360_v46 }
 0x101   :  { %2190 = vst [vmem:[%s4627_s4 + $0x10] sm:$0xff] %v2042_v20   ;;  %v1336_v10 = vadd.f32 %v2318_v57, %v1335_v40  ;;  %v1574_v42 = vsub.f32 1.0, %v1573_v58  ;;  %v1105_v17 = vsel %vm3407_vm6, %v1104_v54, %v1100_v38  ;;  %v3464_v43 = vadd.f32 1.0, %v2324_v15 }
 0x102   :  { %v2003_v41 = vmul.f32 -1.442695, %v3443_v2  ;;  %v396_v32 = vmul.f32 %v3431_v1, %v242_v26  ;;  %v1758_v44 = vmul.f32 %v1105_v17, %v3226_v48  ;;  %vm1578_vm14 = vweird.f32 %v2322_v9 }
 0x103   :  { %v1340_v56 = vsel %vm1339_vm13, %v2318_v57, %v1336_v10  ;;  %v1575_v53 = vmul.f32 %v2322_v9, %v1574_v42  ;;  %vm1577_vm15 = vweird.f32 %v3385_v29  ;;  %vm3472_vm0 = vcmp.eq.f32.partialorder %v1581_v6, 8.507059e+37 }
 0x104   :  { %v1345_v55 = vsel %vm3424_vm9, %v1344_v52, %v1340_v56  ;;  %2327 = vrcp.f32 %v3464_v43  ;;  %v2082_v23 = vpack.c.bf16 %v1758_v44, %v3390_v0  ;;  %v412_v48 = vmul.f32 %v3431_v1, %v282_v3  ;;  %vm1579_vm1 = vmor %vm1577_vm15, %vm1578_vm14 }
 0x105   :  { %v1774_v36 = vmul.f32 %v1345_v55, %v3233_v19  ;;  %v1576_v61 = vadd.f32 %v2322_v9, %v1575_v53  ;;  %v1584_v63 = vor.u32 1.1754944e-38, %v1583_v16  ;;  %2329 = vpow2.f32 %v2003_v41 }
 0x106   :  { %v3480_v18 = vpop.eup %2325  ;;  %v3483_v29 = vadd.f32 %v3440_v24, %v443_v62  ;;  %v3486_v8 = vadd.f32 %v3440_v24, %v396_v32  ;;  %2198 = vst [vmem:[%s4627_s4 + $0x50] sm:$0xff] %v2082_v23   ;;  %vm872_vm2 = vweird.f32 %v3435_v37  ;;  %v876_v5 = vand.u32 2147483647, %v3435_v37 }
 0x107   :  { %v2122_v19 = vpack.c.bf16 %v1774_v36, %v3412_v33  ;;  %v1580_v0 = vsel %vm1579_vm1, %v2322_v9, %v1576_v61  ;;  %v868_v4 = vmul.f32 %v3480_v18, %v3435_v37  ;;  %v3505_v50 = vadd.f32 %v3440_v24, %v412_v48 }
 0x108   :  { %v1585_v51 = vsel %vm3472_vm0, %v1584_v63, %v1580_v0  ;;  %v2019_v39 = vmul.f32 -1.442695, %v3483_v29  ;;  %v1972_v57 = vmul.f32 -1.442695, %v3486_v8  ;;  %v428_v54 = vmul.f32 %v3431_v1, %v322_v30 }
 0x109   :  { %2206 = vst [vmem:[%s4627_s4 + $0x90] sm:$0xff] %v2122_v19   ;;  %v1790_v33 = vmul.f32 %v1585_v51, %v3259_v28  ;;  %v869_v31 = vsub.f32 1.0, %v868_v4  ;;  %v878_v13 = vand.u32 2147483648, %v3435_v37  ;;  %vm1112_vm3 = vweird.f32 %v3464_v43 }
 0x10a   :  { %v2328_v12 = vpop.eup %2327  ;;  %2331 = vpow2.f32 %v2019_v39  ;;  %v444_v49 = vmul.f32 %v3431_v1, %v362_v25  ;;  %v397_v47 = vmul.f32 %v3431_v1, %v245_v11  ;;  %v1988_v22 = vmul.f32 -1.442695, %v3505_v50  ;;  %v365_v11 = vpop.f32.mrf.mxu3 }
 0x10b   :  { %v2162_v34 = vpack.c.bf16 %v1790_v33, %v3447_v35  ;;  %v870_v14 = vmul.f32 %v3480_v18, %v869_v31  ;;  %v1108_v28 = vmul.f32 %v2328_v12, %v3464_v43  ;;  %v2330_v21 = vpop.eup %2329  ;;  %2333 = vpow2.f32 %v1972_v57 }
 0x10c   :  { %v3517_v46 = vadd.f32 %v3440_v24, %v428_v54  ;;  %v3520_v9 = vadd.f32 %v3440_v24, %v444_v49  ;;  %vm873_vm4 = vweird.f32 %v3480_v18  ;;  %v3527_v20 = vadd.f32 1.0, %v2330_v21 }
 0x10d   :  { %2214 = vst [vmem:[%s4627_s4 + $0xd0] sm:$0xff] %v2162_v34   ;;  %v871_v52 = vadd.f32 %v3480_v18, %v870_v14  ;;  %v1109_v26 = vsub.f32 1.0, %v1108_v28  ;;  %2335 = vpow2.f32 %v1988_v22  ;;  %v413_v58 = vmul.f32 %v3431_v1, %v285_v60  ;;  %vm3536_vm6 = vmor %vm872_vm2, %vm873_vm4 }
 0x10e   :  { %v2004_v7 = vmul.f32 -1.442695, %v3517_v46  ;;  %v2020_v40 = vmul.f32 -1.442695, %v3520_v9  ;;  %vm1113_vm5 = vweird.f32 %v2328_v12  ;;  %v1118_v35 = vand.u32 2147483648, %v3464_v43 }
 0x10f   :  { %v1110_v15 = vmul.f32 %v2328_v12, %v1109_v26  ;;  %2337 = vrcp.f32 %v3527_v20  ;;  %v1116_v38 = vand.u32 2147483647, %v3464_v43  ;;  %v3542_v10 = vadd.f32 %v3440_v24, %v397_v47  ;;  %vm1114_vm8 = vmor %vm1112_vm3, %vm1113_vm5 }
 0x110   :  { %v2332_v6 = vpop.eup %2331  ;;  %2339 = vpow2.f32 %v2004_v7  ;;  %v875_v42 = vsel %vm3536_vm6, %v3480_v18, %v871_v52  ;;  %vm877_vm7 = vcmp.eq.f32.partialorder %v876_v5, 8.507059e+37  ;;  %v879_v37 = vor.u32 1.1754944e-38, %v878_v13 }
 0x111   :  { %v1111_v62 = vadd.f32 %v2328_v12, %v1110_v15  ;;  %v3547_v3 = vadd.f32 1.0, %v2332_v6  ;;  %2341 = vpow2.f32 %v2020_v40  ;;  %v2334_v17 = vpop.eup %2333  ;;  %v3553_v41 = vadd.f32 %v3440_v24, %v413_v58 }
 0x112   :  { %v1119_v44 = vor.u32 1.1754944e-38, %v1118_v35  ;;  %v1358_v56 = vand.u32 2147483648, %v3527_v20  ;;  %v880_v55 = vsel %vm877_vm7, %v879_v37, %v875_v42  ;;  %vm1117_vm9 = vcmp.eq.f32.partialorder %v1116_v38, 8.507059e+37 }
 0x113   :  { %v1115_v32 = vsel %vm1114_vm8, %v2328_v12, %v1111_v62  ;;  %2343 = vrcp.f32 %v3547_v3  ;;  %v2336_v53 = vpop.eup %2335  ;;  %v3557_v59 = vadd.f32 1.0, %v2334_v17  ;;  %v1973_v23 = vmul.f32 -1.442695, %v3542_v10 }
 0x114   :  { %v1120_v43 = vsel %vm1117_vm9, %v1119_v44, %v1115_v32  ;;  %v1356_v61 = vand.u32 2147483647, %v3527_v20  ;;  %v3563_v48 = vadd.f32 1.0, %v2336_v53  ;;  %vm1352_vm10 = vweird.f32 %v3527_v20 }
 0x115   :  { %v3560_v36 = vpop.eup %2337  ;;  %2345 = vrcp.f32 %v3557_v59  ;;  %v1989_v30 = vmul.f32 -1.442695, %v3553_v41  ;;  %v3571_v0 = vmul.f32 %v880_v55, %v3314_v45  ;;  %v1359_v4 = vor.u32 1.1754944e-38, %v1358_v56 }
 0x116   :  { %v2340_v18 = vpop.eup %2339  ;;  %v1348_v63 = vmul.f32 %v3560_v36, %v3527_v20  ;;  %v1598_v25 = vand.u32 2147483648, %v3547_v3  ;;  %2347 = vrcp.f32 %v3563_v48  ;;  %v3576_v51 = vmul.f32 %v1120_v43, %v3345_v27 }
 0x117   :  { %v2342_v19 = vpop.eup %2341  ;;  %v1596_v39 = vand.u32 2147483647, %v3547_v3  ;;  %2349 = vpow2.f32 %v1973_v23  ;;  %vm3581_vm11 = vcmp.eq.f32.partialorder %v1356_v61, 8.507059e+37  ;;  %vm1592_vm12 = vweird.f32 %v3547_v3 }
 0x118   :  { %v1349_v5 = vsub.f32 1.0, %v1348_v63  ;;  %v891_v45 = vand.u32 2147483647, %v3557_v59  ;;  %v893_v33 = vand.u32 2147483648, %v3557_v59  ;;  %v3588_v31 = vadd.f32 1.0, %v2340_v18 }
 0x119   :  { %v3579_v57 = vpop.eup %2343  ;;  %v3590_v27 = vadd.f32 1.0, %v2342_v19  ;;  %vm1353_vm13 = vweird.f32 %v3560_v36  ;;  %2351 = vpow2.f32 %v1989_v30  ;;  %v1599_v13 = vor.u32 1.1754944e-38, %v1598_v25  ;;  %v325_v19 = vpop.f32.mrf.mxu2 }
 0x11a   :  { %v1350_v54 = vmul.f32 %v3560_v36, %v1349_v5  ;;  %v1588_v12 = vmul.f32 %v3579_v57, %v3547_v3  ;;  %v1131_v49 = vand.u32 2147483647, %v3563_v48  ;;  %v1133_v34 = vand.u32 2147483648, %v3563_v48  ;;  %vm3616_vm2 = vmor %vm1352_vm10, %vm1353_vm13 }
 0x11b   :  { %2353 = vrcp.f32 %v3588_v31  ;;  %v2346_v14 = vpop.eup %2345  ;;  %vm887_vm14 = vweird.f32 %v3557_v59  ;;  %vm3602_vm15 = vcmp.eq.f32.partialorder %v1596_v39, 8.507059e+37  ;;  %vm3607_vm0 = vcmp.eq.f32.partialorder %v891_v45, 8.507059e+37 }
 0x11c   :  { %v1351_v28 = vadd.f32 %v3560_v36, %v1350_v54  ;;  %v1589_v47 = vsub.f32 1.0, %v1588_v12  ;;  %2355 = vrcp.f32 %v3590_v27  ;;  %v2348_v60 = vpop.eup %2347  ;;  %v883_v22 = vmul.f32 %v2346_v14, %v3557_v59 }
 0x11d   :  { %v894_v26 = vor.u32 1.1754944e-38, %v893_v33  ;;  %vm1127_vm1 = vweird.f32 %v3563_v48  ;;  %v2350_v7 = vpop.eup %2349  ;;  %vm1593_vm3 = vweird.f32 %v3579_v57  ;;  %v1123_v15 = vmul.f32 %v2348_v60, %v3563_v48  ;;  %v247_v48 = vpop.f32.mrf.mxu0 }
 0x11e   :  { %v1590_v58 = vmul.f32 %v3579_v57, %v1589_v47  ;;  %v1371_v35 = vand.u32 2147483647, %v3588_v31  ;;  %v1355_v6 = vsel %vm3616_vm2, %v3560_v36, %v1351_v28  ;;  %v884_v16 = vsub.f32 1.0, %v883_v22  ;;  %vm3643_vm8 = vmor %vm1592_vm12, %vm1593_vm3 }
 0x11f   :  { %vm3627_vm4 = vcmp.eq.f32.partialorder %v1131_v49, 8.507059e+37  ;;  %v1134_v20 = vor.u32 1.1754944e-38, %v1133_v34  ;;  %v2352_v42 = vpop.eup %2351  ;;  %v1124_v17 = vsub.f32 1.0, %v1123_v15  ;;  %vm1367_vm5 = vweird.f32 %v3588_v31 }
 0x120   :  { %v1591_v62 = vadd.f32 %v3579_v57, %v1590_v58  ;;  %v1373_v37 = vand.u32 2147483648, %v3588_v31  ;;  %v885_v44 = vmul.f32 %v2346_v14, %v884_v16  ;;  %vm888_vm6 = vweird.f32 %v2346_v14 }
 0x121   :  { %v2354_v32 = vpop.eup %2353  ;;  %vm1607_vm7 = vweird.f32 %v3590_v27  ;;  %v3635_v56 = vadd.f32 1.0, %v2350_v7  ;;  %v1360_v55 = vsel %vm3581_vm11, %v1359_v4, %v1355_v6  ;;  %v1125_v36 = vmul.f32 %v2348_v60, %v1124_v17  ;;  %vm889_vm11 = vmor %vm887_vm14, %vm888_vm6  ;;  %v327_v38 = vpop.f32.mrf.mxu2 }
 0x122   :  { %v2356_v53 = vpop.eup %2355  ;;  %vm1128_vm9 = vweird.f32 %v2348_v60  ;;  %v1363_v43 = vmul.f32 %v2354_v32, %v3588_v31  ;;  %vm3648_vm10 = vcmp.eq.f32.partialorder %v1371_v35, 8.507059e+37  ;;  %v1595_v18 = vsel %vm3643_vm8, %v3579_v57, %v1591_v62 }
 0x123   :  { %v886_v63 = vadd.f32 %v2346_v14, %v885_v44  ;;  %v1603_v30 = vmul.f32 %v2356_v53, %v3590_v27  ;;  %v1611_v3 = vand.u32 2147483647, %v3590_v27  ;;  %v1126_v4 = vadd.f32 %v2348_v60, %v1125_v36  ;;  %vm1129_vm12 = vmor %vm1127_vm1, %vm1128_vm9 }
 0x124   :  { %v1364_v25 = vsub.f32 1.0, %v1363_v43  ;;  %v1613_v5 = vand.u32 2147483648, %v3590_v27  ;;  %v3661_v39 = vadd.f32 1.0, %v2352_v42  ;;  %vm1368_vm13 = vweird.f32 %v2354_v32 }
 0x125   :  { %v890_v45 = vsel %vm889_vm11, %v2346_v14, %v886_v63  ;;  %v1604_v57 = vsub.f32 1.0, %v1603_v30  ;;  %2357 = vrcp.f32 %v3635_v56  ;;  %v1600_v59 = vsel %vm3602_vm15, %v1599_v13, %v1595_v18  ;;  %v287_v13 = vpop.f32.mrf.mxu1  ;;  %vm1369_vm15 = vmor %vm1367_vm5, %vm1368_vm13  ;;  %v250_v30 = vpop.f32.mrf.mxu0 }
 0x126   :  { %v895_v33 = vsel %vm3607_vm0, %v894_v26, %v890_v45  ;;  %v1130_v54 = vsel %vm1129_vm12, %v2348_v60, %v1126_v4  ;;  %v1365_v12 = vmul.f32 %v2354_v32, %v1364_v25  ;;  %vm1608_vm14 = vweird.f32 %v2356_v53 }
 0x127   :  { %v1744_v49 = vmul.f32 %v895_v33, %v3486_v8  ;;  %v1135_v34 = vsel %vm3627_vm4, %v1134_v20, %v1130_v54  ;;  %v1605_v14 = vmul.f32 %v2356_v53, %v1604_v57  ;;  %v1374_v22 = vor.u32 1.1754944e-38, %v1373_v37  ;;  %vm1609_vm1 = vmor %vm1607_vm7, %vm1608_vm14  ;;  %v367_v37 = vpop.f32.mrf.mxu3 }
 0x128   :  { %v1760_v28 = vmul.f32 %v1135_v34, %v3505_v50  ;;  %v1366_v47 = vadd.f32 %v2354_v32, %v1365_v12  ;;  %2359 = vrcp.f32 %v3661_v39  ;;  %v1775_v21 = vmul.f32 %v1360_v55, %v3443_v2 }
 0x129   :  { %v2047_v60 = vpack.c.bf16 %v1744_v49, %v3571_v0  ;;  %v1606_v8 = vadd.f32 %v2356_v53, %v1605_v14  ;;  %vm1612_vm0 = vcmp.eq.f32.partialorder %v1611_v3, 8.507059e+37  ;;  %v1791_v52 = vmul.f32 %v1600_v59, %v3483_v29 }
 0x12a   :  { %v2087_v26 = vpack.c.bf16 %v1760_v28, %v3576_v51  ;;  %v1370_v50 = vsel %vm1369_vm15, %v2354_v32, %v1366_v47  ;;  %v1614_v7 = vor.u32 1.1754944e-38, %v1613_v5  ;;  %vm902_vm2 = vweird.f32 %v3635_v56 }
 0x12b   :  { %v3686_v40 = vpop.eup %2357  ;;  %2191 = vst [vmem:[%s4627_s4 + $0x18] sm:$0xff] %v2047_v60   ;;  %v1375_v2 = vsel %vm3648_vm10, %v1374_v22, %v1370_v50  ;;  %v1610_v0 = vsel %vm1609_vm1, %v2356_v53, %v1606_v8  ;;  %v429_v29 = vmul.f32 %v3431_v1, %v325_v19  ;;  %v445_v51 = vmul.f32 %v3431_v1, %v365_v11 }
 0x12c   :  { %2199 = vst [vmem:[%s4627_s4 + $0x58] sm:$0xff] %v2087_v26   ;;  %v1776_v31 = vmul.f32 %v1375_v2, %v3517_v46  ;;  %v1615_v27 = vsel %vm1612_vm0, %v1614_v7, %v1610_v0  ;;  %v898_v58 = vmul.f32 %v3686_v40, %v3635_v56  ;;  %v906_v15 = vand.u32 2147483647, %v3635_v56 }
 0x12d   :  { %v1792_v35 = vmul.f32 %v1615_v27, %v3520_v9  ;;  %v908_v6 = vand.u32 2147483648, %v3635_v56  ;;  %vm1142_vm3 = vweird.f32 %v3661_v39  ;;  %v3707_v16 = vadd.f32 %v3440_v24, %v429_v29  ;;  %v290_v4 = vpop.f32.mrf.mxu1  ;;  %v330_v56 = vpop.f32.mrf.mxu2 }
 0x12e   :  { %v3709_v20 = vpop.eup %2359  ;;  %v2127_v42 = vpack.c.bf16 %v1776_v31, %v1775_v21  ;;  %v899_v46 = vsub.f32 1.0, %v898_v58  ;;  %v3712_v62 = vadd.f32 %v3440_v24, %v445_v51  ;;  %v398_v17 = vmul.f32 %v3431_v1, %v247_v48 }
 0x12f   :  { %v2167_v32 = vpack.c.bf16 %v1792_v35, %v1791_v52  ;;  %v1138_v9 = vmul.f32 %v3709_v20, %v3661_v39  ;;  %v1148_v44 = vand.u32 2147483648, %v3661_v39  ;;  %v2005_v53 = vmul.f32 -1.442695, %v3707_v16  ;;  %v370_v0 = vpop.f32.mrf.mxu3 }
 0x130   :  { %2207 = vst [vmem:[%s4627_s4 + $0x98] sm:$0xff] %v2127_v42   ;;  %v900_v55 = vmul.f32 %v3686_v40, %v899_v46  ;;  %v2021_v23 = vmul.f32 -1.442695, %v3712_v62  ;;  %v3725_v36 = vadd.f32 %v3440_v24, %v398_v17  ;;  %v414_v43 = vmul.f32 %v3431_v1, %v287_v13 }
 0x131   :  { %2215 = vst [vmem:[%s4627_s4 + $0xd8] sm:$0xff] %v2167_v32   ;;  %v1139_v61 = vsub.f32 1.0, %v1138_v9  ;;  %2361 = vpow2.f32 %v2005_v53  ;;  %v430_v18 = vmul.f32 %v3431_v1, %v327_v38  ;;  %v446_v63 = vmul.f32 %v3431_v1, %v367_v37 }
 0x132   :  { %vm903_vm4 = vweird.f32 %v3686_v40  ;;  %2363 = vpow2.f32 %v2021_v23  ;;  %v1974_v3 = vmul.f32 -1.442695, %v3725_v36  ;;  %v3736_v19 = vadd.f32 %v3440_v24, %v414_v43 }
 0x133   :  { %v901_v25 = vadd.f32 %v3686_v40, %v900_v55  ;;  %v1140_v5 = vmul.f32 %v3709_v20, %v1139_v61  ;;  %v3741_v11 = vadd.f32 %v3440_v24, %v430_v18  ;;  %v3744_v45 = vadd.f32 %v3440_v24, %v446_v63  ;;  %vm3757_vm6 = vmor %vm902_vm2, %vm903_vm4 }
 0x134   :  { %vm1143_vm5 = vweird.f32 %v3709_v20  ;;  %2365 = vpow2.f32 %v1974_v3  ;;  %v1990_v57 = vmul.f32 -1.442695, %v3736_v19  ;;  %v399_v59 = vmul.f32 %v3431_v1, %v250_v30 }
 0x135   :  { %v1141_v33 = vadd.f32 %v3709_v20, %v1140_v5  ;;  %v2006_v54 = vmul.f32 -1.442695, %v3741_v11  ;;  %v2022_v12 = vmul.f32 -1.442695, %v3744_v45  ;;  %v415_v49 = vmul.f32 %v3431_v1, %v290_v4  ;;  %vm3767_vm7 = vmor %vm1142_vm3, %vm1143_vm5 }
 0x136   :  { %v1146_v14 = vand.u32 2147483647, %v3661_v39  ;;  %2367 = vpow2.f32 %v1990_v57  ;;  %v905_v28 = vsel %vm3757_vm6, %v3686_v40, %v901_v25  ;;  %v909_v47 = vor.u32 1.1754944e-38, %v908_v6 }
 0x137   :  { %v2362_v48 = vpop.eup %2361  ;;  %2369 = vpow2.f32 %v2006_v54  ;;  %v1145_v21 = vsel %vm3767_vm7, %v3709_v20, %v1141_v33  ;;  %v3777_v8 = vadd.f32 %v3440_v24, %v399_v59  ;;  %vm907_vm8 = vcmp.eq.f32.partialorder %v906_v15, 8.507059e+37 }
 0x138   :  { %v2364_v13 = vpop.eup %2363  ;;  %v3774_v60 = vadd.f32 1.0, %v2362_v48  ;;  %2371 = vpow2.f32 %v2022_v12  ;;  %v1149_v52 = vor.u32 1.1754944e-38, %v1148_v44  ;;  %v3782_v26 = vadd.f32 %v3440_v24, %v415_v49 }
 0x139   :  { %v3779_v39 = vadd.f32 1.0, %v2364_v13  ;;  %v910_v7 = vsel %vm907_vm8, %v909_v47, %v905_v28  ;;  %vm1147_vm9 = vcmp.eq.f32.partialorder %v1146_v14, 8.507059e+37  ;;  %v431_v40 = vmul.f32 %v3431_v1, %v330_v56 }
 0x13a   :  { %v2366_v50 = vpop.eup %2365  ;;  %2373 = vrcp.f32 %v3774_v60  ;;  %v1150_v2 = vsel %vm1147_vm9, %v1149_v52, %v1145_v21  ;;  %v1975_v31 = vmul.f32 -1.442695, %v3777_v8  ;;  %v3791_v58 = vmul.f32 %v910_v7, %v3542_v10 }
 0x13b   :  { %2375 = vrcp.f32 %v3779_v39  ;;  %v3787_v51 = vadd.f32 1.0, %v2366_v50  ;;  %v1991_v35 = vmul.f32 -1.442695, %v3782_v26  ;;  %v3797_v38 = vmul.f32 %v1150_v2, %v3553_v41 }
 0x13c   :  { %v2368_v29 = vpop.eup %2367  ;;  %v3801_v20 = vadd.f32 %v3440_v24, %v431_v40  ;;  %v3804_v42 = vmul.f32 %v3431_v1, %v370_v0  ;;  %v1386_v46 = vand.u32 2147483647, %v3774_v60  ;;  %v1388_v10 = vand.u32 2147483648, %v3774_v60 }
 0x13d   :  { %v2370_v27 = vpop.eup %2369  ;;  %v3793_v15 = vadd.f32 1.0, %v2368_v29  ;;  %2377 = vrcp.f32 %v3787_v51  ;;  %v1628_v17 = vand.u32 2147483648, %v3779_v39  ;;  %vm1382_vm10 = vweird.f32 %v3774_v60 }
 0x13e   :  { %v2372_v6 = vpop.eup %2371  ;;  %v923_v41 = vand.u32 2147483648, %v3787_v51  ;;  %v3814_v32 = vadd.f32 1.0, %v2370_v27  ;;  %v1626_v55 = vand.u32 2147483647, %v3779_v39  ;;  %v921_v23 = vand.u32 2147483647, %v3787_v51 }
 0x13f   :  { %2379 = vrcp.f32 %v3793_v15  ;;  %v3816_v9 = vadd.f32 1.0, %v2372_v6  ;;  %vm1622_vm11 = vweird.f32 %v3779_v39  ;;  %v1161_v61 = vand.u32 2147483647, %v3793_v15 }
 0x140   :  { %v3810_v37 = vpop.eup %2373  ;;  %2381 = vpow2.f32 %v1975_v31  ;;  %v1163_v18 = vand.u32 2147483648, %v3793_v15  ;;  %v1389_v30 = vor.u32 1.1754944e-38, %v1388_v10  ;;  %v3830_v3 = vor.u32 1.1754944e-38, %v1628_v17 }
 0x141   :  { %v3818_v44 = vpop.eup %2375  ;;  %v1378_v53 = vmul.f32 %v3810_v37, %v3774_v60  ;;  %2383 = vpow2.f32 %v1991_v35  ;;  %vm3833_vm12 = vcmp.eq.f32.partialorder %v1386_v46, 8.507059e+37  ;;  %vm917_vm13 = vweird.f32 %v3787_v51 }
 0x142   :  { %v1618_v43 = vmul.f32 %v3818_v44, %v3779_v39  ;;  %2385 = vrcp.f32 %v3814_v32  ;;  %v924_v57 = vor.u32 1.1754944e-38, %v923_v41  ;;  %vm1157_vm14 = vweird.f32 %v3793_v15 }
 0x143   :  { %v1379_v63 = vsub.f32 1.0, %v1378_v53  ;;  %2387 = vrcp.f32 %v3816_v9  ;;  %v2378_v4 = vpop.eup %2377  ;;  %vm1383_vm15 = vweird.f32 %v3810_v37  ;;  %vm3842_vm0 = vcmp.eq.f32.partialorder %v921_v23, 8.507059e+37 }
 0x144   :  { %v1619_v5 = vsub.f32 1.0, %v1618_v43  ;;  %v913_v54 = vmul.f32 %v2378_v4, %v3787_v51  ;;  %v1401_v49 = vand.u32 2147483647, %v3814_v32  ;;  %vm1623_vm1 = vweird.f32 %v3818_v44  ;;  %vm3869_vm7 = vmor %vm1382_vm10, %vm1383_vm15 }
 0x145   :  { %v2380_v59 = vpop.eup %2379  ;;  %v1380_v33 = vmul.f32 %v3810_v37, %v1379_v63  ;;  %vm3849_vm2 = vcmp.eq.f32.partialorder %v1626_v55, 8.507059e+37  ;;  %vm3854_vm3 = vcmp.eq.f32.partialorder %v1161_v61, 8.507059e+37  ;;  %v1164_v22 = vor.u32 1.1754944e-38, %v1163_v18  ;;  %vm3888_vm10 = vmor %vm1622_vm11, %vm1623_vm1  ;;  %v252_v18 = vpop.f32.mrf.mxu0 }
 0x146   :  { %v2382_v34 = vpop.eup %2381  ;;  %v1620_v14 = vmul.f32 %v3818_v44, %v1619_v5  ;;  %v1153_v28 = vmul.f32 %v2380_v59, %v3793_v15  ;;  %v914_v21 = vsub.f32 1.0, %v913_v54  ;;  %vm1397_vm4 = vweird.f32 %v3814_v32 }
 0x147   :  { %v2384_v56 = vpop.eup %2383  ;;  %v1381_v13 = vadd.f32 %v3810_v37, %v1380_v33  ;;  %v1403_v52 = vand.u32 2147483648, %v3814_v32  ;;  %v1641_v50 = vand.u32 2147483647, %v3816_v9  ;;  %vm918_vm5 = vweird.f32 %v2378_v4 }
 0x148   :  { %v2386_v7 = vpop.eup %2385  ;;  %v1621_v40 = vadd.f32 %v3818_v44, %v1620_v14  ;;  %v1154_v2 = vsub.f32 1.0, %v1153_v28  ;;  %vm1637_vm6 = vweird.f32 %v3816_v9  ;;  %v1643_v0 = vand.u32 2147483648, %v3816_v9  ;;  %vm919_vm15 = vmor %vm917_vm13, %vm918_vm5 }
 0x149   :  { %v2388_v29 = vpop.eup %2387  ;;  %v915_v27 = vmul.f32 %v2378_v4, %v914_v21  ;;  %v1393_v35 = vmul.f32 %v2386_v7, %v3814_v32  ;;  %vm3874_vm8 = vcmp.eq.f32.partialorder %v1401_v49, 8.507059e+37  ;;  %v3878_v46 = vadd.f32 1.0, %v2382_v34  ;;  %v292_v49 = vpop.f32.mrf.mxu1 }
 0x14a   :  { %v1385_v10 = vsel %vm3869_vm7, %v3810_v37, %v1381_v13  ;;  %v1155_v17 = vmul.f32 %v2380_v59, %v1154_v2  ;;  %vm1158_vm9 = vweird.f32 %v2380_v59  ;;  %v1633_v60 = vmul.f32 %v2388_v29, %v3816_v9  ;;  %v372_v21 = vpop.f32.mrf.mxu3 }
 0x14b   :  { %v916_v53 = vadd.f32 %v2378_v4, %v915_v27  ;;  %v1394_v55 = vsub.f32 1.0, %v1393_v35  ;;  %v1404_v23 = vor.u32 1.1754944e-38, %v1403_v52  ;;  %v3892_v43 = vadd.f32 1.0, %v2384_v56  ;;  %vm1159_vm11 = vmor %vm1157_vm14, %vm1158_vm9  ;;  %v332_v56 = vpop.f32.mrf.mxu2 }
 0x14c   :  { %v1625_v37 = vsel %vm3888_vm10, %v3818_v44, %v1621_v40  ;;  %v1156_v61 = vadd.f32 %v2380_v59, %v1155_v17  ;;  %vm1398_vm7 = vweird.f32 %v2386_v7  ;;  %v1634_v39 = vsub.f32 1.0, %v1633_v60 }
 0x14d   :  { %v1390_v63 = vsel %vm3833_vm12, %v1389_v30, %v1385_v10  ;;  %v920_v5 = vsel %vm919_vm15, %v2378_v4, %v916_v53  ;;  %v1395_v33 = vmul.f32 %v2386_v7, %v1394_v55  ;;  %2389 = vrcp.f32 %v3878_v46  ;;  %vm1399_vm12 = vmor %vm1397_vm4, %vm1398_vm7  ;;  %v255_v2 = vpop.f32.mrf.mxu0 }
 0x14e   :  { %v925_v44 = vsel %vm3842_vm0, %v924_v57, %v920_v5  ;;  %v1160_v51 = vsel %vm1159_vm11, %v2380_v59, %v1156_v61  ;;  %v1635_v54 = vmul.f32 %v2388_v29, %v1634_v39  ;;  %vm1638_vm13 = vweird.f32 %v2388_v29 }
 0x14f   :  { %v1630_v25 = vsel %vm3849_vm2, %v3830_v3, %v1625_v37  ;;  %v1746_v30 = vmul.f32 %v925_v44, %v3725_v36  ;;  %v1165_v15 = vsel %vm3854_vm3, %v1164_v22, %v1160_v51  ;;  %v1396_v4 = vadd.f32 %v2386_v7, %v1395_v33  ;;  %vm1639_vm0 = vmor %vm1637_vm6, %vm1638_vm13 }
 0x150   :  { %v1762_v34 = vmul.f32 %v1165_v15, %v3736_v19  ;;  %v1636_v57 = vadd.f32 %v2388_v29, %v1635_v54  ;;  %vm1642_vm14 = vcmp.eq.f32.partialorder %v1641_v50, 8.507059e+37  ;;  %2391 = vrcp.f32 %v3892_v43 }
 0x151   :  { %v1777_v59 = vmul.f32 %v1390_v63, %v3707_v16  ;;  %v2052_v3 = vpack.c.bf16 %v1746_v30, %v3791_v58  ;;  %v1400_v12 = vsel %vm1399_vm12, %v2386_v7, %v1396_v4  ;;  %v1644_v36 = vor.u32 1.1754944e-38, %v1643_v0  ;;  %v295_v10 = vpop.f32.mrf.mxu1 }
 0x152   :  { %v1793_v14 = vmul.f32 %v1630_v25, %v3712_v62  ;;  %v2092_v19 = vpack.c.bf16 %v1762_v34, %v3797_v38  ;;  %v1405_v32 = vsel %vm3874_vm8, %v1404_v23, %v1400_v12  ;;  %v1640_v48 = vsel %vm1639_vm0, %v2388_v29, %v1636_v57 }
 0x153   :  { %v3927_v28 = vpop.eup %2389  ;;  %2192 = vst [vmem:[%s4627_s4 + $0x20] sm:$0xff] %v2052_v3   ;;  %v1778_v16 = vmul.f32 %v1405_v32, %v3741_v11  ;;  %v1645_v58 = vsel %vm1642_vm14, %v1644_v36, %v1640_v48  ;;  %vm932_vm1 = vweird.f32 %v3878_v46  ;;  %v2007_v9 = vmul.f32 -1.442695, %v3801_v20 }
 0x154   :  { %2200 = vst [vmem:[%s4627_s4 + $0x60] sm:$0xff] %v2092_v19   ;;  %v1794_v62 = vmul.f32 %v1645_v58, %v3744_v45  ;;  %v928_v38 = vmul.f32 %v3927_v28, %v3878_v46  ;;  %v936_v47 = vand.u32 2147483647, %v3878_v46  ;;  %v938_v22 = vand.u32 2147483648, %v3878_v46 }
 0x155   :  { %v2132_v11 = vpack.c.bf16 %v1778_v16, %v1777_v59  ;;  %vm1172_vm2 = vweird.f32 %v3892_v43  ;;  %2393 = vpow2.f32 %v2007_v9  ;;  %v3946_v13 = vadd.f32 %v3440_v24, %v3804_v42  ;;  %v335_v9 = vpop.f32.mrf.mxu2 }
 0x156   :  { %v2392_v52 = vpop.eup %2391  ;;  %v2172_v50 = vpack.c.bf16 %v1794_v62, %v1793_v14  ;;  %v929_v45 = vsub.f32 1.0, %v928_v38  ;;  %v400_v7 = vmul.f32 %v3431_v1, %v252_v18  ;;  %v416_v40 = vmul.f32 %v3431_v1, %v292_v49 }
 0x157   :  { %2208 = vst [vmem:[%s4627_s4 + $0xa0] sm:$0xff] %v2132_v11   ;;  %vm933_vm3 = vweird.f32 %v3927_v28  ;;  %v1168_v0 = vmul.f32 %v2392_v52, %v3892_v43  ;;  %v2023_v42 = vmul.f32 -1.442695, %v3946_v13  ;;  %v432_v29 = vmul.f32 %v3431_v1, %v332_v56 }
 0x158   :  { %2216 = vst [vmem:[%s4627_s4 + $0xe0] sm:$0xff] %v2172_v50   ;;  %v930_v31 = vmul.f32 %v3927_v28, %v929_v45  ;;  %v3962_v27 = vadd.f32 %v3440_v24, %v400_v7  ;;  %v3965_v35 = vadd.f32 %v3440_v24, %v416_v40  ;;  %v448_v6 = vmul.f32 %v3431_v1, %v372_v21  ;;  %vm3990_vm5 = vmor %vm932_vm1, %vm933_vm3  ;;  %v4042_v7 = vld [vmem:[%s4625_s2] ss:$0 sm:$0xff] }
 0x159   :  { %v1169_v17 = vsub.f32 1.0, %v1168_v0  ;;  %2395 = vpow2.f32 %v2023_v42  ;;  %v3969_v60 = vadd.f32 %v3440_v24, %v432_v29  ;;  %v401_v41 = vmul.f32 %v3431_v1, %v255_v2 }
 0x15a   :  { %v931_v53 = vadd.f32 %v3927_v28, %v930_v31  ;;  %v1976_v55 = vmul.f32 -1.442695, %v3962_v27  ;;  %v1992_v23 = vmul.f32 -1.442695, %v3965_v35  ;;  %v3976_v37 = vadd.f32 %v3440_v24, %v448_v6 }
 0x15b   :  { %v2394_v61 = vpop.eup %2393  ;;  %v1170_v39 = vmul.f32 %v2392_v52, %v1169_v17  ;;  %v2008_v18 = vmul.f32 -1.442695, %v3969_v60  ;;  %v3980_v63 = vadd.f32 %v3440_v24, %v401_v41  ;;  %v417_v5 = vmul.f32 %v3431_v1, %v295_v10 }
 0x15c   :  { %vm1173_vm4 = vweird.f32 %v2392_v52  ;;  %v3983_v33 = vadd.f32 1.0, %v2394_v61  ;;  %2397 = vpow2.f32 %v1976_v55  ;;  %v2024_v44 = vmul.f32 -1.442695, %v3976_v37 }
 0x15d   :  { %v1171_v54 = vadd.f32 %v2392_v52, %v1170_v39  ;;  %v1178_v49 = vand.u32 2147483648, %v3892_v43  ;;  %2399 = vpow2.f32 %v1992_v23  ;;  %v935_v1 = vsel %vm3990_vm5, %v3927_v28, %v931_v53  ;;  %vm4002_vm6 = vmor %vm1172_vm2, %vm1173_vm4 }
 0x15e   :  { %v1176_v25 = vand.u32 2147483647, %v3892_v43  ;;  %2401 = vrcp.f32 %v3983_v33  ;;  %v939_v15 = vor.u32 1.1754944e-38, %v938_v22  ;;  %v1977_v4 = vmul.f32 -1.442695, %v3980_v63  ;;  %v375_v22 = vpop.f32.mrf.mxu3 }
 0x15f   :  { %v2396_v30 = vpop.eup %2395  ;;  %2403 = vpow2.f32 %v2008_v18  ;;  %v4008_v34 = vadd.f32 %v3440_v24, %v417_v5  ;;  %vm937_vm8 = vcmp.eq.f32.partialorder %v936_v47, 8.507059e+37  ;;  %v1175_v57 = vsel %vm4002_vm6, %v2392_v52, %v1171_v54  ;;  %v257_v52 = vpop.f32.mrf.mxu0 }
 0x160   :  { %v4012_v59 = vadd.f32 1.0, %v2396_v30  ;;  %2405 = vpow2.f32 %v2024_v44  ;;  %v940_v3 = vsel %vm937_vm8, %v939_v15, %v935_v1  ;;  %v1179_v12 = vor.u32 1.1754944e-38, %v1178_v49 }
 0x161   :  { %vm1177_vm9 = vcmp.eq.f32.partialorder %v1176_v25, 8.507059e+37  ;;  %v1418_v36 = vand.u32 2147483648, %v3983_v33  ;;  %v1993_v24 = vmul.f32 -1.442695, %v4008_v34  ;;  %v4022_v28 = vmul.f32 %v940_v3, %v3777_v8 }
 0x162   :  { %v2398_v43 = vpop.eup %2397  ;;  %2407 = vrcp.f32 %v4012_v59  ;;  %v1180_v19 = vsel %vm1177_vm9, %v1179_v12, %v1175_v57  ;;  %v1658_v16 = vand.u32 2147483648, %v4012_v59  ;;  %vm1412_vm10 = vweird.f32 %v3983_v33 }
 0x163   :  { %v2400_v14 = vpop.eup %2399  ;;  %v4016_v32 = vadd.f32 1.0, %v2398_v43  ;;  %2409 = vpow2.f32 %v1977_v4  ;;  %v1416_v47 = vand.u32 2147483647, %v3983_v33  ;;  %v4033_v8 = vmul.f32 %v1180_v19, %v3782_v26 }
 0x164   :  { %v4019_v48 = vpop.eup %2401  ;;  %v4025_v58 = vadd.f32 1.0, %v2400_v14  ;;  %v1419_v11 = vor.u32 1.1754944e-38, %v1418_v36  ;;  %v1656_v21 = vand.u32 2147483647, %v4012_v59  ;;  %v4045_v40 = vmul.f32 %v4042_v7, %v335_v9 }
 0x165   :  { %v2404_v62 = vpop.eup %2403  ;;  %v1408_v38 = vmul.f32 %v4019_v48, %v3983_v33  ;;  %2411 = vrcp.f32 %v4016_v32  ;;  %v4049_v2 = vor.u32 1.1754944e-38, %v1658_v16  ;;  %v951_v0 = vand.u32 2147483647, %v4016_v32 }
 0x166   :  { %v2406_v56 = vpop.eup %2405  ;;  %2413 = vrcp.f32 %v4025_v58  ;;  %v4037_v45 = vadd.f32 1.0, %v2404_v62  ;;  %v4055_v29 = vmul.f32 %v4042_v7, %v375_v22  ;;  %vm4058_vm15 = vcmp.eq.f32.partialorder %v1416_v47, 8.507059e+37  ;;  %v377_v46 = vpop.f32.mrf.mxu3 }
 0x167   :  { %v1409_v50 = vsub.f32 1.0, %v1408_v38  ;;  %2415 = vpow2.f32 %v1993_v24  ;;  %v4052_v42 = vadd.f32 1.0, %v2406_v56  ;;  %vm1652_vm7 = vweird.f32 %v4012_v59 }
 0x168   :  { %v4047_v26 = vpop.eup %2407  ;;  %v953_v41 = vand.u32 2147483648, %v4016_v32  ;;  %v4067_v53 = vmul.f32 %v4042_v7, %v257_v52  ;;  %vm1413_vm11 = vweird.f32 %v4019_v48  ;;  %v1191_v55 = vand.u32 2147483647, %v4025_v58 }
 0x169   :  { %v2410_v31 = vpop.eup %2409  ;;  %v1410_v6 = vmul.f32 %v4019_v48, %v1409_v50  ;;  %v1648_v17 = vmul.f32 %v4047_v26, %v4012_v59  ;;  %v1193_v23 = vand.u32 2147483648, %v4025_v58  ;;  %2417 = vrcp.f32 %v4037_v45  ;;  %vm4091_vm0 = vmor %vm1412_vm10, %vm1413_vm11 }
 0x16a   :  { %vm947_vm13 = vweird.f32 %v4016_v32  ;;  %2419 = vrcp.f32 %v4052_v42  ;;  %vm4077_vm12 = vcmp.eq.f32.partialorder %v951_v0, 8.507059e+37  ;;  %vm1187_vm14 = vweird.f32 %v4025_v58 }
 0x16b   :  { %v2412_v61 = vpop.eup %2411  ;;  %v1411_v39 = vadd.f32 %v4019_v48, %v1410_v6  ;;  %v1649_v18 = vsub.f32 1.0, %v1648_v17  ;;  %v4082_v54 = vadd.f32 1.0, %v2410_v31  ;;  %v954_v25 = vor.u32 1.1754944e-38, %v953_v41 }
 0x16c   :  { %v2414_v5 = vpop.eup %2413  ;;  %v943_v44 = vmul.f32 %v2412_v61, %v4016_v32  ;;  %v1431_v15 = vand.u32 2147483647, %v4037_v45  ;;  %vm1653_vm1 = vweird.f32 %v4047_v26  ;;  %vm4096_vm2 = vcmp.eq.f32.partialorder %v1191_v55, 8.507059e+37 }
 0x16d   :  { %v2416_v49 = vpop.eup %2415  ;;  %v1650_v1 = vmul.f32 %v4047_v26, %v1649_v18  ;;  %v1183_v30 = vmul.f32 %v2414_v5, %v4025_v58  ;;  %v1194_v3 = vor.u32 1.1754944e-38, %v1193_v23  ;;  %v1415_v12 = vsel %vm4091_vm0, %v4019_v48, %v1411_v39  ;;  %vm4122_vm9 = vmor %vm1652_vm7, %vm1653_vm1 }
 0x16e   :  { %v944_v4 = vsub.f32 1.0, %v943_v44  ;;  %vm4103_vm3 = vcmp.eq.f32.partialorder %v1656_v21, 8.507059e+37  ;;  %vm1427_vm4 = vweird.f32 %v4037_v45  ;;  %v1433_v36 = vand.u32 2147483648, %v4037_v45 }
 0x16f   :  { %v1184_v33 = vsub.f32 1.0, %v1183_v30  ;;  %v2418_v14 = vpop.eup %2417  ;;  %v1651_v19 = vadd.f32 %v4047_v26, %v1650_v1  ;;  %vm948_vm5 = vweird.f32 %v2412_v61  ;;  %2421 = vrcp.f32 %v4082_v54 }
 0x170   :  { %v945_v24 = vmul.f32 %v2412_v61, %v944_v4  ;;  %v2420_v16 = vpop.eup %2419  ;;  %vm1188_vm6 = vweird.f32 %v2414_v5  ;;  %v1423_v48 = vmul.f32 %v2418_v14, %v4037_v45  ;;  %vm4112_vm8 = vcmp.eq.f32.partialorder %v1431_v15, 8.507059e+37  ;;  %vm949_vm11 = vmor %vm947_vm13, %vm948_vm5 }
 0x171   :  { %v1185_v9 = vmul.f32 %v2414_v5, %v1184_v33  ;;  %v1420_v38 = vsel %vm4058_vm15, %v1419_v11, %v1415_v12  ;;  %v1663_v56 = vmul.f32 %v2420_v16, %v4052_v42  ;;  %vm1667_vm10 = vweird.f32 %v4052_v42  ;;  %vm1189_vm15 = vmor %vm1187_vm14, %vm1188_vm6 }
 0x172   :  { %v946_v22 = vadd.f32 %v2412_v61, %v945_v24  ;;  %v1424_v52 = vsub.f32 1.0, %v1423_v48  ;;  %v1671_v11 = vand.u32 2147483647, %v4052_v42  ;;  %v1673_v50 = vand.u32 2147483648, %v4052_v42 }
 0x173   :  { %v1186_v21 = vadd.f32 %v2414_v5, %v1185_v9  ;;  %v1655_v59 = vsel %vm4122_vm9, %v4047_v26, %v1651_v19  ;;  %vm1428_vm7 = vweird.f32 %v2418_v14  ;;  %v1664_v31 = vsub.f32 1.0, %v1663_v56 }
 0x174   :  { %v950_v0 = vsel %vm949_vm11, %v2412_v61, %v946_v22  ;;  %v1425_v10 = vmul.f32 %v2418_v14, %v1424_v52  ;;  %v4140_v17 = vadd.f32 1.0, %v2416_v49  ;;  %vm1668_vm13 = vweird.f32 %v2420_v16 }
 0x175   :  { %v955_v32 = vsel %vm4077_vm12, %v954_v25, %v950_v0  ;;  %v1190_v6 = vsel %vm1189_vm15, %v2414_v5, %v1186_v21  ;;  %v4142_v41 = vpop.eup %2421  ;;  %v1665_v23 = vmul.f32 %v2420_v16, %v1664_v31  ;;  %v1434_v39 = vor.u32 1.1754944e-38, %v1433_v36  ;;  %v297_v5 = vpop.f32.mrf.mxu1  ;;  %vm1429_vm12 = vmor %vm1427_vm4, %vm1428_vm7 }
 0x176   :  { %v1748_v55 = vmul.f32 %v955_v32, %v3962_v27  ;;  %v1195_v26 = vsel %vm4096_vm2, %v1194_v3, %v1190_v6  ;;  %v1426_v61 = vadd.f32 %v2418_v14, %v1425_v10  ;;  %v958_v18 = vmul.f32 %v4142_v41, %v4082_v54  ;;  %vm1669_vm14 = vmor %vm1667_vm10, %vm1668_vm13 }
 0x177   :  { %v1764_v58 = vmul.f32 %v1195_v26, %v3965_v35  ;;  %v1660_v44 = vsel %vm4103_vm3, %v4049_v2, %v1655_v59  ;;  %v1666_v27 = vadd.f32 %v2420_v16, %v1665_v23  ;;  %2423 = vrcp.f32 %v4140_v17  ;;  %v337_v35 = vpop.f32.mrf.mxu2 }
 0x178   :  { %v2057_v51 = vpack.c.bf16 %v1748_v55, %v4022_v28  ;;  %v1430_v1 = vsel %vm1429_vm12, %v2418_v14, %v1426_v61  ;;  %v1674_v25 = vor.u32 1.1754944e-38, %v1673_v50  ;;  %v959_v30 = vsub.f32 1.0, %v958_v18 }
 0x179   :  { %v2097_v49 = vpack.c.bf16 %v1764_v58, %v4033_v8  ;;  %v1779_v2 = vmul.f32 %v1420_v38, %v3801_v20  ;;  %v1435_v28 = vsel %vm4112_vm8, %v1434_v39, %v1430_v1  ;;  %v1670_v45 = vsel %vm1669_vm14, %v2420_v16, %v1666_v27  ;;  %v4175_v20 = vld [vmem:[%s4626_s3] ss:$0 sm:$0xff]  ;;  %v380_v58 = vpop.f32.mrf.mxu3 }
 0x17a   :  { %2193 = vst [vmem:[%s4627_s4 + $0x28] sm:$0xff] %v2057_v51   ;;  %vm1672_vm0 = vcmp.eq.f32.partialorder %v1671_v11, 8.507059e+37  ;;  %v1780_v8 = vmul.f32 %v1435_v28, %v3969_v60  ;;  %vm962_vm1 = vweird.f32 %v4082_v54  ;;  %v4179_v15 = vadd.f32 %v4175_v20, %v4045_v40 }
 0x17b   :  { %2201 = vst [vmem:[%s4627_s4 + $0x68] sm:$0xff] %v2097_v49   ;;  %v1675_v42 = vsel %vm1672_vm0, %v1674_v25, %v1670_v45  ;;  %v1795_v4 = vmul.f32 %v1660_v44, %v3946_v13  ;;  %v960_v3 = vmul.f32 %v4142_v41, %v959_v30  ;;  %v4186_v60 = vadd.f32 %v4175_v20, %v4055_v29 }
 0x17c   :  { %v1796_v57 = vmul.f32 %v1675_v42, %v3976_v37  ;;  %v2137_v12 = vpack.c.bf16 %v1780_v8, %v1779_v2  ;;  %v966_v43 = vand.u32 2147483647, %v4082_v54  ;;  %v2009_v33 = vmul.f32 -1.442695, %v4179_v15 }
 0x17d   :  { %v4192_v40 = vadd.f32 %v4175_v20, %v4067_v53  ;;  %v2424_v36 = vpop.eup %2423  ;;  %v2025_v13 = vmul.f32 -1.442695, %v4186_v60  ;;  %v418_v37 = vmul.f32 %v4042_v7, %v297_v5  ;;  %v434_v19 = vmul.f32 %v4042_v7, %v337_v35  ;;  %v260_v53 = vpop.f32.mrf.mxu0 }
 0x17e   :  { %v2177_v14 = vpack.c.bf16 %v1796_v57, %v1795_v4  ;;  %2209 = vst [vmem:[%s4627_s4 + $0xa8] sm:$0xff] %v2137_v12   ;;  %vm963_vm2 = vweird.f32 %v4142_v41  ;;  %v968_v29 = vand.u32 2147483648, %v4082_v54  ;;  %v1198_v24 = vmul.f32 %v2424_v36, %v4140_v17  ;;  %v300_v22 = vpop.f32.mrf.mxu1 }
 0x17f   :  { %2425 = vpow2.f32 %v2009_v33  ;;  %v961_v16 = vadd.f32 %v4142_v41, %v960_v3  ;;  %v1978_v9 = vmul.f32 -1.442695, %v4192_v40  ;;  %v4209_v48 = vadd.f32 %v4175_v20, %v418_v37  ;;  %v340_v11 = vpop.f32.mrf.mxu2  ;;  %vm4223_vm4 = vmor %vm962_vm1, %vm963_vm2 }
 0x180   :  { %2217 = vst [vmem:[%s4627_s4 + $0xe8] sm:$0xff] %v2177_v14   ;;  %2427 = vpow2.f32 %v2025_v13  ;;  %v1199_v62 = vsub.f32 1.0, %v1198_v24  ;;  %vm1202_vm3 = vweird.f32 %v4140_v17  ;;  %v4213_v38 = vadd.f32 %v4175_v20, %v434_v19 }
 0x181   :  { %v450_v47 = vmul.f32 %v4042_v7, %v377_v46  ;;  %v1208_v56 = vand.u32 2147483648, %v4140_v17  ;;  %2429 = vpow2.f32 %v1978_v9  ;;  %v1994_v21 = vmul.f32 -1.442695, %v4209_v48 }
 0x182   :  { %v403_v52 = vmul.f32 %v4042_v7, %v260_v53  ;;  %v1200_v59 = vmul.f32 %v2424_v36, %v1199_v62  ;;  %vm1203_vm5 = vweird.f32 %v2424_v36  ;;  %v2010_v0 = vmul.f32 -1.442695, %v4213_v38 }
 0x183   :  { %v4229_v31 = vadd.f32 %v4175_v20, %v450_v47  ;;  %v965_v32 = vsel %vm4223_vm4, %v4142_v41, %v961_v16  ;;  %v1206_v6 = vand.u32 2147483647, %v4140_v17  ;;  %2431 = vpow2.f32 %v1994_v21  ;;  %vm4241_vm8 = vmor %vm1202_vm3, %vm1203_vm5 }
 0x184   :  { %v419_v54 = vmul.f32 %v4042_v7, %v300_v22  ;;  %v1201_v55 = vadd.f32 %v2424_v36, %v1200_v59  ;;  %2433 = vpow2.f32 %v2010_v0  ;;  %v435_v23 = vmul.f32 %v4042_v7, %v340_v11 }
 0x185   :  { %v2426_v10 = vpop.eup %2425  ;;  %v2026_v26 = vmul.f32 -1.442695, %v4229_v31  ;;  %vm967_vm6 = vcmp.eq.f32.partialorder %v966_v43, 8.507059e+37  ;;  %v969_v39 = vor.u32 1.1754944e-38, %v968_v29  ;;  %v4248_v5 = vadd.f32 %v4175_v20, %v403_v52 }
 0x186   :  { %v2428_v61 = vpop.eup %2427  ;;  %v4245_v18 = vadd.f32 1.0, %v2426_v10  ;;  %v1205_v44 = vsel %vm4241_vm8, %v2424_v36, %v1201_v55  ;;  %v1209_v51 = vor.u32 1.1754944e-38, %v1208_v56  ;;  %v4256_v17 = vadd.f32 %v4175_v20, %v419_v54 }
 0x187   :  { %v4252_v27 = vadd.f32 1.0, %v2428_v61  ;;  %2435 = vpow2.f32 %v2026_v26  ;;  %v2430_v35 = vpop.eup %2429  ;;  %v970_v49 = vsel %vm967_vm6, %v969_v39, %v965_v32  ;;  %v451_v1 = vmul.f32 %v4042_v7, %v380_v58 }
 0x188   :  { %2437 = vrcp.f32 %v4245_v18  ;;  %vm1207_vm9 = vcmp.eq.f32.partialorder %v1206_v6, 8.507059e+37  ;;  %v4261_v25 = vadd.f32 %v4175_v20, %v435_v23  ;;  %v4263_v28 = vadd.f32 1.0, %v2430_v35 }
 0x189   :  { %2439 = vrcp.f32 %v4252_v27  ;;  %v2432_v30 = vpop.eup %2431  ;;  %v1210_v2 = vsel %vm1207_vm9, %v1209_v51, %v1205_v44  ;;  %v1979_v45 = vmul.f32 -1.442695, %v4248_v5  ;;  %v4267_v42 = vmul.f32 %v970_v49, %v3980_v63 }
 0x18a   :  { %v2434_v8 = vpop.eup %2433  ;;  %v1448_v46 = vand.u32 2147483648, %v4245_v18  ;;  %v4270_v4 = vadd.f32 1.0, %v2432_v30  ;;  %v1688_v57 = vand.u32 2147483648, %v4252_v27  ;;  %2441 = vrcp.f32 %v4263_v28 }
 0x18b   :  { %v1995_v3 = vmul.f32 -1.442695, %v4256_v17  ;;  %v4276_v12 = vadd.f32 %v4175_v20, %v451_v1  ;;  %v4279_v33 = vmul.f32 %v1210_v2, %v4008_v34  ;;  %v1446_v63 = vand.u32 2147483647, %v4245_v18 }
 0x18c   :  { %2443 = vrcp.f32 %v4270_v4  ;;  %v4284_v36 = vmul.f32 -1.442695, %v4261_v25  ;;  %v1686_v13 = vand.u32 2147483647, %v4252_v27  ;;  %v4289_v37 = vadd.f32 1.0, %v2434_v8 }
 0x18d   :  { %v2436_v43 = vpop.eup %2435  ;;  %2445 = vpow2.f32 %v1979_v45  ;;  %vm1442_vm10 = vweird.f32 %v4245_v18  ;;  %v4298_v24 = vor.u32 1.1754944e-38, %v1448_v46  ;;  %v981_v53 = vand.u32 2147483647, %v4263_v28 }
 0x18e   :  { %v4286_v14 = vpop.eup %2437  ;;  %v4291_v19 = vadd.f32 1.0, %v2436_v43  ;;  %v983_v16 = vand.u32 2147483648, %v4263_v28  ;;  %vm1682_vm11 = vweird.f32 %v4252_v27  ;;  %v4305_v62 = vor.u32 1.1754944e-38, %v1688_v57 }
 0x18f   :  { %v4293_v29 = vpop.eup %2439  ;;  %v1438_v34 = vmul.f32 %v4286_v14, %v4245_v18  ;;  %v1221_v47 = vand.u32 2147483647, %v4270_v4  ;;  %v4309_v22 = vmul.f32 -1.442695, %v4276_v12  ;;  %vm977_vm15 = vweird.f32 %v4263_v28 }
 0x190   :  { %v1678_v9 = vmul.f32 %v4293_v29, %v4252_v27  ;;  %v1223_v21 = vand.u32 2147483648, %v4270_v4  ;;  %2447 = vrcp.f32 %v4289_v37  ;;  %v2442_v52 = vpop.eup %2441  ;;  %vm1443_vm7 = vweird.f32 %v4286_v14 }
 0x191   :  { %v1439_v56 = vsub.f32 1.0, %v1438_v34  ;;  %vm1217_vm13 = vweird.f32 %v4270_v4  ;;  %2449 = vrcp.f32 %v4291_v19  ;;  %v973_v0 = vmul.f32 %v2442_v52, %v4263_v28  ;;  %vm4349_vm5 = vmor %vm1442_vm10, %vm1443_vm7 }
 0x192   :  { %v1679_v11 = vsub.f32 1.0, %v1678_v9  ;;  %v2444_v50 = vpop.eup %2443  ;;  %vm4319_vm12 = vcmp.eq.f32.partialorder %v981_v53, 8.507059e+37  ;;  %v984_v6 = vor.u32 1.1754944e-38, %v983_v16  ;;  %vm1683_vm14 = vweird.f32 %v4293_v29 }
 0x193   :  { %v1440_v59 = vmul.f32 %v4286_v14, %v1439_v56  ;;  %v2446_v54 = vpop.eup %2445  ;;  %v1213_v55 = vmul.f32 %v2444_v50, %v4270_v4  ;;  %vm4326_vm0 = vcmp.eq.f32.partialorder %v1221_v47, 8.507059e+37  ;;  %v974_v23 = vsub.f32 1.0, %v973_v0  ;;  %vm4359_vm9 = vmor %vm1682_vm11, %vm1683_vm14 }
 0x194   :  { %v1680_v10 = vmul.f32 %v4293_v29, %v1679_v11  ;;  %v1224_v58 = vor.u32 1.1754944e-38, %v1223_v21  ;;  %v1461_v61 = vand.u32 2147483647, %v4289_v37  ;;  %v1463_v39 = vand.u32 2147483648, %v4289_v37 }
 0x195   :  { %v1441_v41 = vadd.f32 %v4286_v14, %v1440_v59  ;;  %vm4333_vm1 = vcmp.eq.f32.partialorder %v1446_v63, 8.507059e+37  ;;  %vm4337_vm2 = vcmp.eq.f32.partialorder %v1686_v13, 8.507059e+37  ;;  %v1214_v35 = vsub.f32 1.0, %v1213_v55 }
 0x196   :  { %2451 = vpow2.f32 %v1995_v3  ;;  %v2448_v49 = vpop.eup %2447  ;;  %v1681_v1 = vadd.f32 %v4293_v29, %v1680_v10  ;;  %v975_v30 = vmul.f32 %v2442_v52, %v974_v23  ;;  %vm978_vm4 = vweird.f32 %v2442_v52  ;;  %v302_v23 = vpop.f32.mrf.mxu1 }
 0x197   :  { %v4343_v2 = vadd.f32 1.0, %v2446_v54  ;;  %v2450_v45 = vpop.eup %2449  ;;  %v1215_v46 = vmul.f32 %v2444_v50, %v1214_v35  ;;  %vm1218_vm6 = vweird.f32 %v2444_v50  ;;  %v1453_v57 = vmul.f32 %v2448_v49, %v4289_v37  ;;  %vm979_vm10 = vmor %vm977_vm15, %vm978_vm4 }
 0x198   :  { %vm1697_vm8 = vweird.f32 %v4291_v19  ;;  %v976_v43 = vadd.f32 %v2442_v52, %v975_v30  ;;  %vm4363_vm3 = vcmp.eq.f32.partialorder %v1461_v61, 8.507059e+37  ;;  %v1464_v63 = vor.u32 1.1754944e-38, %v1463_v39  ;;  %vm1219_vm11 = vmor %vm1217_vm13, %vm1218_vm6 }
 0x199   :  { %v1701_v13 = vand.u32 2147483647, %v4291_v19  ;;  %v1445_v34 = vsel %vm4349_vm5, %v4286_v14, %v1441_v41  ;;  %v1216_v27 = vadd.f32 %v2444_v50, %v1215_v46  ;;  %v1454_v53 = vsub.f32 1.0, %v1453_v57 }
 0x19a   :  { %v1693_v16 = vmul.f32 %v2450_v45, %v4291_v19  ;;  %v1685_v9 = vsel %vm4359_vm9, %v4293_v29, %v1681_v1  ;;  %v980_v47 = vsel %vm979_vm10, %v2442_v52, %v976_v43  ;;  %vm1458_vm7 = vweird.f32 %v2448_v49  ;;  %v382_v1 = vpop.f32.mrf.mxu3 }
 0x19b   :  { %2453 = vrcp.f32 %v4343_v2  ;;  %v985_v28 = vsel %vm4319_vm12, %v984_v6, %v980_v47  ;;  %v1220_v56 = vsel %vm1219_vm11, %v2444_v50, %v1216_v27  ;;  %v1455_v21 = vmul.f32 %v2448_v49, %v1454_v53 }
 0x19c   :  { %v2452_v14 = vpop.eup %2451  ;;  %v1694_v11 = vsub.f32 1.0, %v1693_v16  ;;  %v1750_v59 = vmul.f32 %v985_v28, %v4192_v40  ;;  %v1225_v29 = vsel %vm4326_vm0, %v1224_v58, %v1220_v56  ;;  %vm1698_vm15 = vweird.f32 %v2450_v45  ;;  %v342_v58 = vpop.f32.mrf.mxu2 }
 0x19d   :  { %v1703_v52 = vand.u32 2147483648, %v4291_v19  ;;  %v1766_v4 = vmul.f32 %v1225_v29, %v4209_v48  ;;  %v1456_v0 = vadd.f32 %v2448_v49, %v1455_v21  ;;  %v4388_v10 = vadd.f32 1.0, %v2452_v14  ;;  %vm1699_vm14 = vmor %vm1697_vm8, %vm1698_vm15 }
 0x19e   :  { %v1695_v54 = vmul.f32 %v2450_v45, %v1694_v11  ;;  %v1450_v50 = vsel %vm4333_vm1, %v4298_v24, %v1445_v34  ;;  %v1690_v40 = vsel %vm4337_vm2, %v4305_v62, %v1685_v9  ;;  %v2062_v32 = vpack.c.bf16 %v1750_v59, %v4267_v42 }
 0x19f   :  { %vm4764_vm13 = vweird.f32 %v4289_v37  ;;  %2455 = vpow2.f32 %v4284_v36  ;;  %v2102_v48 = vpack.c.bf16 %v1766_v4, %v4279_v33  ;;  %v1704_v36 = vor.u32 1.1754944e-38, %v1703_v52  ;;  %v262_v37 = vpop.f32.mrf.mxu0 }
 0x1a0   :  { %vm1459_vm12 = vmor %vm4764_vm13, %vm1458_vm7  ;;  %v1696_v55 = vadd.f32 %v2450_v45, %v1695_v54  ;;  %2457 = vrcp.f32 %v4388_v10  ;;  %2194 = vst [vmem:[%s4627_s4 + $0x30] sm:$0xff] %v2062_v32   ;;  %v1781_v33 = vmul.f32 %v1450_v50, %v4179_v15  ;;  %vm1702_vm0 = vcmp.eq.f32.partialorder %v1701_v13, 8.507059e+37 }
 0x1a1   :  { %v1460_v6 = vsel %vm1459_vm12, %v2448_v49, %v1456_v0  ;;  %v4403_v26 = vpop.eup %2453  ;;  %2202 = vst [vmem:[%s4627_s4 + $0x70] sm:$0xff] %v2102_v48   ;;  %v1797_v61 = vmul.f32 %v1690_v40, %v4186_v60  ;;  %2459 = vpow2.f32 %v4309_v22  ;;  %v404_v44 = vmul.f32 %v4042_v7, %v262_v37 }
 0x1a2   :  { %v1465_v42 = vsel %vm4363_vm3, %v1464_v63, %v1460_v6  ;;  %v1700_v62 = vsel %vm1699_vm14, %v2450_v45, %v1696_v55  ;;  %v988_v15 = vmul.f32 %v4403_v26, %v4343_v2  ;;  %v436_v35 = vmul.f32 %v4042_v7, %v342_v58 }
 0x1a3   :  { %v1782_v24 = vmul.f32 %v1465_v42, %v4213_v38  ;;  %v1705_v39 = vsel %vm1702_vm0, %v1704_v36, %v1700_v62  ;;  %v420_v38 = vmul.f32 %v4042_v7, %v302_v23  ;;  %v452_v18 = vmul.f32 %v4042_v7, %v382_v1 }
 0x1a4   :  { %v1798_v41 = vmul.f32 %v1705_v39, %v4229_v31  ;;  %v4434_v31 = vadd.f32 %v4175_v20, %v404_v44  ;;  %v4440_v45 = vadd.f32 %v4175_v20, %v436_v35  ;;  %v989_v8 = vsub.f32 1.0, %v988_v15 }
 0x1a5   :  { %v2142_v19 = vpack.c.bf16 %v1782_v24, %v1781_v33  ;;  %v2456_v51 = vpop.eup %2455  ;;  %v4437_v30 = vadd.f32 %v4175_v20, %v420_v38  ;;  %v4457_v53 = vadd.f32 %v4175_v20, %v452_v18  ;;  %v998_v9 = vand.u32 2147483648, %v4343_v2 }
 0x1a6   :  { %v4426_v49 = vpop.eup %2457  ;;  %v2182_v60 = vpack.c.bf16 %v1798_v41, %v1797_v61  ;;  %v4431_v22 = vadd.f32 1.0, %v2456_v51  ;;  %v1980_v3 = vmul.f32 -1.442695, %v4434_v31  ;;  %v2012_v13 = vmul.f32 -1.442695, %v4440_v45 }
 0x1a7   :  { %2210 = vst [vmem:[%s4627_s4 + $0xb0] sm:$0xff] %v2142_v19   ;;  %v2460_v46 = vpop.eup %2459  ;;  %v1228_v57 = vmul.f32 %v4426_v49, %v4388_v10  ;;  %v1996_v43 = vmul.f32 -1.442695, %v4437_v30  ;;  %v990_v34 = vmul.f32 %v4403_v26, %v989_v8  ;;  %vm992_vm1 = vweird.f32 %v4343_v2 }
 0x1a8   :  { %2218 = vst [vmem:[%s4627_s4 + $0xf0] sm:$0xff] %v2182_v60   ;;  %2461 = vrcp.f32 %v4431_v22  ;;  %v4451_v63 = vadd.f32 1.0, %v2460_v46  ;;  %vm993_vm2 = vweird.f32 %v4403_v26  ;;  %v2028_v14 = vmul.f32 -1.442695, %v4457_v53 }
 0x1a9   :  { %2463 = vpow2.f32 %v1980_v3  ;;  %v1229_v27 = vsub.f32 1.0, %v1228_v57  ;;  %v991_v47 = vadd.f32 %v4403_v26, %v990_v34  ;;  %v996_v11 = vand.u32 2147483647, %v4343_v2  ;;  %vm4474_vm3 = vmor %vm992_vm1, %vm993_vm2 }
 0x1aa   :  { %2465 = vrcp.f32 %v4451_v63  ;;  %v999_v59 = vor.u32 1.1754944e-38, %v998_v9  ;;  %vm1232_vm4 = vweird.f32 %v4388_v10  ;;  %vm1233_vm5 = vweird.f32 %v4426_v49 }
 0x1ab   :  { %2467 = vpow2.f32 %v1996_v43  ;;  %v1230_v20 = vmul.f32 %v4426_v49, %v1229_v27  ;;  %v1236_v0 = vand.u32 2147483647, %v4388_v10  ;;  %v1238_v54 = vand.u32 2147483648, %v4388_v10  ;;  %vm4505_vm9 = vmor %vm1232_vm4, %vm1233_vm5 }
 0x1ac   :  { %2469 = vpow2.f32 %v2012_v13  ;;  %v995_v2 = vsel %vm4474_vm3, %v4403_v26, %v991_v47  ;;  %v1476_v40 = vand.u32 2147483647, %v4431_v22  ;;  %vm997_vm6 = vcmp.eq.f32.partialorder %v996_v11, 8.507059e+37 }
 0x1ad   :  { %2471 = vpow2.f32 %v2028_v14  ;;  %v1231_v48 = vadd.f32 %v4426_v49, %v1230_v20  ;;  %v1478_v36 = vand.u32 2147483648, %v4431_v22  ;;  %v1000_v37 = vsel %vm997_vm6, %v999_v59, %v995_v2 }
 0x1ae   :  { %v4459_v16 = vpop.eup %2461  ;;  %vm4496_vm8 = vcmp.eq.f32.partialorder %v1236_v0, 8.507059e+37  ;;  %v1239_v33 = vor.u32 1.1754944e-38, %v1238_v54  ;;  %vm1472_vm10 = vweird.f32 %v4431_v22  ;;  %vm4510_vm11 = vcmp.eq.f32.partialorder %v1476_v40, 8.507059e+37 }
 0x1af   :  { %v1468_v7 = vmul.f32 %v4459_v16, %v4431_v22  ;;  %v2464_v28 = vpop.eup %2463  ;;  %v1235_v61 = vsel %vm4505_vm9, %v4426_v49, %v1231_v48  ;;  %vm1473_vm7 = vweird.f32 %v4459_v16  ;;  %v4522_v41 = vmul.f32 %v1000_v37, %v4248_v5 }
 0x1b0   :  { %v4469_v21 = vpop.eup %2465  ;;  %v4472_v29 = vadd.f32 1.0, %v2464_v28  ;;  %v1479_v15 = vor.u32 1.1754944e-38, %v1478_v36  ;;  %vm1712_vm15 = vweird.f32 %v4451_v63  ;;  %v1716_v38 = vand.u32 2147483647, %v4451_v63  ;;  %vm4535_vm13 = vmor %vm1472_vm10, %vm1473_vm7 }
 0x1b1   :  { %v1469_v56 = vsub.f32 1.0, %v1468_v7  ;;  %v2468_v52 = vpop.eup %2467  ;;  %v1708_v32 = vmul.f32 %v4469_v21, %v4451_v63  ;;  %v1718_v35 = vand.u32 2147483648, %v4451_v63  ;;  %v1240_v60 = vsel %vm4496_vm8, %v1239_v33, %v1235_v61 }
 0x1b2   :  { %v2470_v50 = vpop.eup %2469  ;;  %2473 = vrcp.f32 %v4472_v29  ;;  %v4491_v55 = vadd.f32 1.0, %v2468_v52  ;;  %v1011_v10 = vand.u32 2147483647, %v4472_v29  ;;  %v1013_v44 = vand.u32 2147483648, %v4472_v29 }
 0x1b3   :  { %v1470_v6 = vmul.f32 %v4459_v16, %v1469_v56  ;;  %v4493_v42 = vadd.f32 1.0, %v2470_v50  ;;  %v2472_v24 = vpop.eup %2471  ;;  %v1709_v58 = vsub.f32 1.0, %v1708_v32  ;;  %vm1713_vm12 = vweird.f32 %v4469_v21 }
 0x1b4   :  { %2475 = vrcp.f32 %v4491_v55  ;;  %v4525_v51 = vadd.f32 1.0, %v2472_v24  ;;  %vm1007_vm14 = vweird.f32 %v4472_v29  ;;  %vm4546_vm0 = vcmp.eq.f32.partialorder %v1011_v10, 8.507059e+37  ;;  %vm4575_vm9 = vmor %vm1712_vm15, %vm1713_vm12 }
 0x1b5   :  { %2477 = vrcp.f32 %v4493_v42  ;;  %v1471_v39 = vadd.f32 %v4459_v16, %v1470_v6  ;;  %v1710_v1 = vmul.f32 %v4469_v21, %v1709_v58  ;;  %v1014_v43 = vor.u32 1.1754944e-38, %v1013_v44 }
 0x1b6   :  { %2479 = vrcp.f32 %v4525_v51  ;;  %v1251_v13 = vand.u32 2147483647, %v4491_v55  ;;  %v1253_v34 = vand.u32 2147483648, %v4491_v55  ;;  %vm1247_vm2 = vweird.f32 %v4491_v55 }
 0x1b7   :  { %v1475_v46 = vsel %vm4535_vm13, %v4459_v16, %v1471_v39  ;;  %v1711_v7 = vadd.f32 %v4469_v21, %v1710_v1  ;;  %v1491_v14 = vand.u32 2147483647, %v4493_v42  ;;  %vm4559_vm3 = vcmp.eq.f32.partialorder %v1716_v38, 8.507059e+37 }
 0x1b8   :  { %v2474_v19 = vpop.eup %2473  ;;  %v1480_v9 = vsel %vm4510_vm11, %v1479_v15, %v1475_v46  ;;  %vm1487_vm4 = vweird.f32 %v4493_v42  ;;  %v1493_v11 = vand.u32 2147483648, %v4493_v42  ;;  %vm4567_vm8 = vcmp.eq.f32.partialorder %v1251_v13, 8.507059e+37 }
 0x1b9   :  { %v1003_v49 = vmul.f32 %v2474_v19, %v4472_v29  ;;  %vm1008_vm1 = vweird.f32 %v2474_v19  ;;  %v1254_v0 = vor.u32 1.1754944e-38, %v1253_v34  ;;  %v1715_v40 = vsel %vm4575_vm9, %v4469_v21, %v1711_v7 }
 0x1ba   :  { %v2476_v8 = vpop.eup %2475  ;;  %vm1009_vm5 = vmor %vm1007_vm14, %vm1008_vm1  ;;  %vm4585_vm11 = vcmp.eq.f32.partialorder %v1491_v14, 8.507059e+37  ;;  %v1494_v37 = vor.u32 1.1754944e-38, %v1493_v11  ;;  %v1731_v21 = vand.u32 2147483647, %v4525_v51  ;;  %v1733_v24 = vand.u32 2147483648, %v4525_v51 }
 0x1bb   :  { %v1004_v57 = vsub.f32 1.0, %v1003_v49  ;;  %v2478_v3 = vpop.eup %2477  ;;  %v1243_v18 = vmul.f32 %v2476_v8, %v4491_v55  ;;  %vm1248_vm6 = vweird.f32 %v2476_v8  ;;  %v1767_v58 = vmul.f32 %v1240_v60, %v4256_v17 }
 0x1bc   :  { %v1483_v16 = vmul.f32 %v2478_v3, %v4493_v42  ;;  %v2480_v59 = vpop.eup %2479  ;;  %vm1488_vm10 = vweird.f32 %v2478_v3  ;;  %vm1249_vm7 = vmor %vm1247_vm2, %vm1248_vm6  ;;  %v1719_v61 = vor.u32 1.1754944e-38, %v1718_v35  ;;  %v1783_v10 = vmul.f32 %v1480_v9, %v4261_v25 }
 0x1bd   :  { %v1005_v27 = vmul.f32 %v2474_v19, %v1004_v57  ;;  %v1244_v47 = vsub.f32 1.0, %v1243_v18  ;;  %v1723_v29 = vmul.f32 %v2480_v59, %v4525_v51  ;;  %vm1489_vm15 = vmor %vm1487_vm4, %vm1488_vm10  ;;  %vm1728_vm13 = vweird.f32 %v2480_v59 }
 0x1be   :  { %v1484_v56 = vsub.f32 1.0, %v1483_v16  ;;  %vm1727_vm12 = vweird.f32 %v4525_v51  ;;  %v1720_v17 = vsel %vm4559_vm3, %v1719_v61, %v1715_v40 }
 0x1bf   :  { %v1006_v20 = vadd.f32 %v2474_v19, %v1005_v27  ;;  %v1245_v52 = vmul.f32 %v2476_v8, %v1244_v47  ;;  %v1724_v26 = vsub.f32 1.0, %v1723_v29  ;;  %vm1729_vm14 = vmor %vm1727_vm12, %vm1728_vm13 }
 0x1c0   :  { %v1485_v2 = vmul.f32 %v2478_v3, %v1484_v56 }
 0x1c1   :  { %v1010_v50 = vsel %vm1009_vm5, %v2474_v19, %v1006_v20  ;;  %v1246_v48 = vadd.f32 %v2476_v8, %v1245_v52  ;;  %v1725_v55 = vmul.f32 %v2480_v59, %v1724_v26 }
 0x1c2   :  { %v1015_v32 = vsel %vm4546_vm0, %v1014_v43, %v1010_v50  ;;  %v1486_v36 = vadd.f32 %v2478_v3, %v1485_v2  ;;  %vm1732_vm0 = vcmp.eq.f32.partialorder %v1731_v21, 8.507059e+37 }
 0x1c3   :  { %v1752_v63 = vmul.f32 %v1015_v32, %v4434_v31  ;;  %v1250_v33 = vsel %vm1249_vm7, %v2476_v8, %v1246_v48 }
 0x1c4   :  { %v1255_v31 = vsel %vm4567_vm8, %v1254_v0, %v1250_v33  ;;  %v1490_v23 = vsel %vm1489_vm15, %v2478_v3, %v1486_v36 }
 0x1c5   :  { %v2067_v62 = vpack.c.bf16 %v1752_v63, %v4522_v41  ;;  %v1768_v39 = vmul.f32 %v1255_v31, %v4437_v30  ;;  %v1495_v42 = vsel %vm4585_vm11, %v1494_v37, %v1490_v23  ;;  %v1726_v41 = vadd.f32 %v2480_v59, %v1725_v55 }
 0x1c6   :  { %v1784_v19 = vmul.f32 %v1495_v42, %v4440_v45  ;;  %v1734_v30 = vor.u32 1.1754944e-38, %v1733_v24  ;;  %v1799_v45 = vmul.f32 %v1720_v17, %v4276_v12 }
 0x1c7   :  { %2195 = vst [vmem:[%s4627_s4 + $0x38] sm:$0xff] %v2067_v62   ;;  %v2107_v15 = vpack.c.bf16 %v1768_v39, %v1767_v58  ;;  %v1730_v38 = vsel %vm1729_vm14, %v2480_v59, %v1726_v41 }
 0x1c8   :  { %v2147_v44 = vpack.c.bf16 %v1784_v19, %v1783_v10  ;;  %v1735_v25 = vsel %vm1732_vm0, %v1734_v30, %v1730_v38 }
 0x1c9   :  { %2203 = vst [vmem:[%s4627_s4 + $0x78] sm:$0xff] %v2107_v15   ;;  %v1800_v51 = vmul.f32 %v1735_v25, %v4457_v53 }
 0x1ca   :  { %2211 = vst [vmem:[%s4627_s4 + $0xb8] sm:$0xff] %v2147_v44  }
 0x1cb   :  { %v2187_v35 = vpack.c.bf16 %v1800_v51, %v1799_v45 }
 0x1cd   :  { %2219 = vst [vmem:[%s4627_s4 + $0xf8] sm:$0xff] %v2187_v35  }

// kernel: _lambda_.3
= control target key start
LH: loop header
LB: loop body
LE: loop exit
PB: predicated region body
PF: predicated region fallthrough
CT: control target
= control target key end

     0   :  { %s3168_s21 = smov 0   ;;  %s6234_s0 = inlined_call_operand.vmem [shape: bf16[2,16,16,128], index: 0, kind: input, shape index: {}]   ;;  %s6235_s1 = inlined_call_operand.vmem [shape: f32[3,3,128], index: 1, kind: input, shape index: {}]   ;;  %s6236_s2 = inlined_call_operand.vmem [shape: f32[1,1,128], index: 2, kind: input, shape index: {}]   ;;  %s6237_s3 = inlined_call_operand.vmem [shape: f32[1,1,128], index: 3, kind: input, shape index: {}]   ;;  %s6238_s4 = inlined_call_operand.vmem [shape: f32[128,128], index: 4, kind: input, shape index: {}]   ;;  %s6239_s5 = inlined_call_operand.vmem [shape: f32[1,128], index: 5, kind: input, shape index: {}]   ;;  %s6240_s6 = inlined_call_operand.vmem [shape: f32[128,128], index: 6, kind: input, shape index: {}]   ;;  %s6241_s7 = inlined_call_operand.vmem [shape: f32[1,128], index: 7, kind: input, shape index: {}]   ;;  %s6242_s8 = inlined_call_operand.vmem [shape: bf16[128,128], index: 8, kind: input, shape index: {}]   ;;  %s6243_s9 = inlined_call_operand.vmem [shape: f32[1,128], index: 9, kind: input, shape index: {}]   ;;  %s6244_s10 = inlined_call_operand.vmem [shape: f32[1,128], index: 10, kind: input, shape index: {}]   ;;  %s6245_s11 = inlined_call_operand.vmem [shape: f32[2,256,128], index: 11, kind: input, shape index: {}]   ;;  %s6246_s12 = inlined_call_operand.vmem [shape: f32[2,256,128], index: 12, kind: output, shape index: {}]  }
   0x1 LB: > { %s2751_s22 = sadd.s32 4294967295, %s3100_s21   ;;  %p2755_p0 = scmp.ge.s32.totalorder %s3100_s21, 1  ;;  %s3100_s21 = sphi %s3168_s21, %s22_s21  }
   0x2   : > { %p372_p1 = scmp.lt.s32.totalorder %s3100_s21, 3 }
   0x4   : > { %p373_p2 = pnand %p2755_p0, %p372_p1 }
   0x6   : > { %376 = sbr.rel (%p373_p2) target bundleno = 996 (0x3e4), region = 68 }
   0xb   : > { %v2216_v0 = vld [vmem:[%s6238_s4 + $0x78] sm:$0xff]  ;;  %v2215_v1 = vld [vmem:[%s6238_s4 + $0x70] sm:$0xff]  ;;  %v3102_v2 = vmov 0.0   ;;  %v2214_v3 = vld [vmem:[%s6238_s4 + $0x68] sm:$0xff]  ;;  %p419_p3 = scmp.lt.s32.totalorder %s2751_s22, 1 }
   0xc   : > { %2218 = vmatpush.msra.mxu0 %v2216_v0  ;;  %434 = vst [vmem:[#allocation2] sm:$0xff] %v3102_v2  ;;  %v2213_v4 = vld [vmem:[%s6238_s4 + $0x60] sm:$0xff]  ;;  %v2212_v5 = vld [vmem:[%s6238_s4 + $0x58] sm:$0xff]  ;;  %v2211_v6 = vld [vmem:[%s6238_s4 + $0x50] sm:$0xff] }
   0xd   : > { %435 = vst [vmem:[#allocation2 + $0x8] sm:$0xff] %v3102_v2  ;;  %v2210_v7 = vld [vmem:[%s6238_s4 + $0x48] sm:$0xff]  ;;  %v2209_v8 = vld [vmem:[%s6238_s4 + $0x40] sm:$0xff]  ;;  %v2208_v9 = vld [vmem:[%s6238_s4 + $0x38] sm:$0xff]  ;;  %s6903_s22 = smov (!%p419_p3, %s2751_s22), 1 }
   0xe   : > { %2219 = vmatpush.msra.mxu0 %v2215_v1  ;;  %436 = vst [vmem:[#allocation2 + $0x10] sm:$0x3] %v3102_v2  ;;  %v2207_v10 = vld [vmem:[%s6238_s4 + $0x30] sm:$0xff]  ;;  %v2206_v11 = vld [vmem:[%s6238_s4 + $0x28] sm:$0xff]  ;;  %v2205_v12 = vld [vmem:[%s6238_s4 + $0x20] sm:$0xff]  ;;  %s2830_s23 = sshll.u32 %s6903_s22, 7 }
   0xf   : > { %457 = vst [vmem:[#allocation2 + $0x1a0] sm:$0xff] %v3102_v2  ;;  %v2204_v13 = vld [vmem:[%s6238_s4 + $0x18] sm:$0xff]  ;;  %v2203_v14 = vld [vmem:[%s6238_s4 + $0x10] sm:$0xff]  ;;  %v2202_v15 = vld [vmem:[%s6238_s4 + $0x8] sm:$0xff]  ;;  %s3265_s26 = scalar_lea.vmem %s6234_s0, %s2830_s23  ;;  %s2831_s25 = sshll.u32 %s6903_s22, 8 }
  0x10   : > { %2220 = vmatpush.msra.mxu0 %v2214_v3  ;;  %437 = vst [vmem:[#allocation2] sm:$0x1] %v3102_v2  ;;  %v2201_v16 = vld [vmem:[%s6238_s4] sm:$0xff]  ;;  %v2905_v18 = vld [vmem:[%s3265_s26 + $0x8] sm:$0xff]   ;;  %v2906_v21 = vld [vmem:[%s3265_s26 + $0x10] sm:$0xff]   ;;  %s6091_s30 = scalar_lea.vmem %s6245_s11, %s2831_s25  ;;  %s6107_s16 = scalar_lea.vmem %s6246_s12, %s2831_s25 }
  0x11   : > { %438 = vst [vmem:[#allocation2 + $0x18] sm:$0x1] %v3102_v2  ;;  %v2842_v17 = vld [vmem:[%s3265_s26] sm:$0xff]   ;;  %v3283_v22 = vunpack.c.l.bf16 %v2905_v18  ;;  %v3286_v23 = vunpack.c.h.bf16 %v2905_v18  ;;  %v2907_v24 = vld [vmem:[%s3265_s26 + $0x18] sm:$0xff]   ;;  %v3289_v25 = vunpack.c.l.bf16 %v2906_v21  ;;  %v3292_v26 = vunpack.c.h.bf16 %v2906_v21  ;;  %v2909_v30 = vld [vmem:[%s3265_s26 + $0x28] sm:$0xff]  }
  0x12   : > { %2221 = vmatpush.msra.mxu0 %v2213_v4  ;;  %439 = vst [vmem:[#allocation2 + $0x30] sm:$0x1] %v3102_v2  ;;  %v3276_v19 = vunpack.c.l.bf16 %v2842_v17  ;;  %v3279_v20 = vunpack.c.h.bf16 %v2842_v17  ;;  %v2908_v27 = vld [vmem:[%s3265_s26 + $0x20] sm:$0xff]   ;;  %v3296_v28 = vunpack.c.l.bf16 %v2907_v24  ;;  %v3299_v29 = vunpack.c.h.bf16 %v2907_v24  ;;  %v2910_v33 = vld [vmem:[%s3265_s26 + $0x30] sm:$0xff]   ;;  %v2911_v36 = vld [vmem:[%s3265_s26 + $0x38] sm:$0xff]  }
  0x13   : > { %440 = vst [vmem:[#allocation2 + $0x48] sm:$0x1] %v3102_v2  ;;  %v3303_v31 = vunpack.c.l.bf16 %v2908_v27  ;;  %v3306_v32 = vunpack.c.h.bf16 %v2908_v27  ;;  %v3310_v34 = vunpack.c.l.bf16 %v2909_v30  ;;  %v3313_v35 = vunpack.c.h.bf16 %v2909_v30  ;;  %v2912_v39 = vld [vmem:[%s3265_s26 + $0x40] sm:$0xff]   ;;  %v2913_v42 = vld [vmem:[%s3265_s26 + $0x48] sm:$0xff]   ;;  %v2914_v45 = vld [vmem:[%s3265_s26 + $0x50] sm:$0xff]  }
  0x14   : > { %2222 = vmatpush.msra.mxu0 %v2212_v5  ;;  %441 = vst [vmem:[#allocation2 + $0x60] sm:$0x1] %v3102_v2  ;;  %v3317_v37 = vunpack.c.l.bf16 %v2910_v33  ;;  %v3320_v38 = vunpack.c.h.bf16 %v2910_v33  ;;  %v3324_v40 = vunpack.c.l.bf16 %v2911_v36  ;;  %v3327_v41 = vunpack.c.h.bf16 %v2911_v36  ;;  %v2915_v48 = vld [vmem:[%s3265_s26 + $0x58] sm:$0xff]   ;;  %v574_v49 = vld [vmem:[%s6235_s1] sm:$0x7]  ;;  %v2917_v57 = vld [vmem:[%s3265_s26 + $0x68] sm:$0xff]  }
  0x15   : > { %442 = vst [vmem:[#allocation2 + $0x78] sm:$0x1] %v3102_v2  ;;  %v3331_v43 = vunpack.c.l.bf16 %v2912_v39  ;;  %v3334_v44 = vunpack.c.h.bf16 %v2912_v39  ;;  %v3338_v46 = vunpack.c.l.bf16 %v2913_v42  ;;  %v3341_v47 = vunpack.c.h.bf16 %v2913_v42  ;;  %v2916_v52 = vld [vmem:[%s3265_s26 + $0x60] sm:$0xff]   ;;  %v2918_v62 = vld [vmem:[%s3265_s26 + $0x70] sm:$0xff]   ;;  %v3383_v5 = vld [vmem:[%s3265_s26 + $0x78] sm:$0xff]  }
  0x16   : > { %2223 = vmatpush.msra.mxu0 %v2211_v6  ;;  %443 = vst [vmem:[#allocation2 + $0x90] sm:$0x1] %v3102_v2  ;;  %v3348_v50 = vunpack.c.l.bf16 %v2914_v45  ;;  %v3351_v51 = vunpack.c.h.bf16 %v2914_v45  ;;  %v3355_v53 = vunpack.c.l.bf16 %v2915_v48  ;;  %v3358_v54 = vperm.slane %v574_v49, 0  ;;  %v674_v59 = vld [vmem:[#allocation2 + $0x1] sm:$0xff]  ;;  %v675_v63 = vld [vmem:[#allocation2 + $0x9] sm:$0xff] }
  0x17   : > { %444 = vst [vmem:[#allocation2 + $0xa8] sm:$0x1] %v3102_v2  ;;  %v3360_v55 = vperm.slane %v574_v49, 1  ;;  %v3362_v56 = vunpack.c.h.bf16 %v2915_v48  ;;  %v577_v58 = vld [vmem:[#allocation2] sm:$0xff]  ;;  %v3366_v60 = vunpack.c.l.bf16 %v2916_v52  ;;  %v3369_v61 = vunpack.c.h.bf16 %v2916_v52 }
  0x18   : > { %2224 = vmatpush.msra.mxu0 %v2210_v7  ;;  %445 = vst [vmem:[#allocation2 + $0xc0] sm:$0x1] %v3102_v2  ;;  %v3373_v0 = vunpack.c.l.bf16 %v2917_v57  ;;  %v610_v1 = vmul.f32 %v3358_v54, %v577_v58  ;;  %v3378_v3 = vperm.slane %v574_v49, 2  ;;  %v3380_v4 = vunpack.c.h.bf16 %v2917_v57  ;;  %v771_v6 = vld [vmem:[#allocation2 + $0x2] sm:$0xff] }
  0x19   : > { %446 = vst [vmem:[#allocation2 + $0xd8] sm:$0x1] %v3102_v2  ;;  %v3386_v7 = vunpack.c.l.bf16 %v2918_v62  ;;  %v709_v17 = vmul.f32 %v3276_v19, %v3360_v55  ;;  %v710_v18 = vmul.f32 %v3279_v20, %v3360_v55  ;;  %v3411_v21 = vmul.f32 %v3283_v22, %v3360_v55 }
  0x1a   : > { %2225 = vmatpush.msra.mxu0 %v2209_v8  ;;  %447 = vst [vmem:[#allocation2 + $0xf0] sm:$0x1] %v3102_v2  ;;  %v611_v8 = vmul.f32 0.0, %v3358_v54  ;;  %v3417_v30 = vmul.f32 %v3286_v23, %v3360_v55  ;;  %v3421_v33 = vmul.f32 %v3289_v25, %v3360_v55  ;;  %v3425_v36 = vmul.f32 %v3292_v26, %v3360_v55 }
  0x1b   : > { %448 = vst [vmem:[#allocation2 + $0x108] sm:$0x1] %v3102_v2  ;;  %v3434_v45 = vmul.f32 %v3296_v28, %v3360_v55  ;;  %v3438_v48 = vmul.f32 %v3299_v29, %v3360_v55  ;;  %v3442_v49 = vmul.f32 %v3303_v31, %v3360_v55  ;;  %v3448_v58 = vmul.f32 %v3306_v32, %v3360_v55 }
  0x1c   : > { %2226 = vmatpush.msra.mxu0 %v2208_v9  ;;  %449 = vst [vmem:[#allocation2 + $0x120] sm:$0x1] %v3102_v2  ;;  %v708_v9 = vmul.f32 %v3360_v55, %v675_v63  ;;  %v3460_v63 = vmul.f32 %v3317_v37, %v3360_v55 }
  0x1d   : > { %450 = vst [vmem:[#allocation2 + $0x138] sm:$0x1] %v3102_v2 }
  0x1e   : > { %2227 = vmatpush.msra.mxu0 %v2207_v10  ;;  %451 = vst [vmem:[#allocation2 + $0x150] sm:$0x1] %v3102_v2  ;;  %v3391_v10 = vunpack.c.h.bf16 %v2918_v62  ;;  %v740_v24 = vadd.f32 %v708_v9, %v611_v8  ;;  %v3456_v62 = vmul.f32 %v3313_v35, %v3360_v55  ;;  %v3472_v8 = vmul.f32 %v3327_v41, %v3360_v55 }
  0x1f   : > { %452 = vst [vmem:[#allocation2 + $0x168] sm:$0x1] %v3102_v2 }
  0x20   : > { %2228 = vmatpush.msra.mxu0 %v2206_v11  ;;  %453 = vst [vmem:[#allocation2 + $0x180] sm:$0x1] %v3102_v2 }
  0x21   : > { %456 = vst [vmem:[#allocation2 + $0x198] sm:$0xff] %v3102_v2 }
  0x22   : > { %2229 = vmatpush.msra.mxu0 %v2205_v12  ;;  %458 = vst [vmem:[#allocation2 + $0x1a8] sm:$0x3] %v3102_v2  ;;  %v6248_v12 = vunpack.c.l.bf16 %v3383_v5 }
  0x23   : > { %459 = vst [vmem:[#allocation2 + $0x11] sm:$0x1] %v3102_v2 }
  0x24   : > { %2230 = vmatpush.msra.mxu0 %v2204_v13  ;;  %460 = vst [vmem:[#allocation2 + $0x29] sm:$0x1] %v3102_v2  ;;  %v3399_v13 = vld [vmem:[%s6235_s1 + $0x4] sm:$0x7] }
  0x25   : > { %461 = vst [vmem:[#allocation2 + $0x41] sm:$0x1] %v3102_v2  ;;  %v3428_v39 = vperm.slane %v3399_v13, 0 }
  0x26   : > { %2231 = vmatpush.msra.mxu0 %v2203_v14  ;;  %462 = vst [vmem:[#allocation2 + $0x59] sm:$0x1] %v3102_v2 }
  0x27   : > { %463 = vst [vmem:[#allocation2 + $0x71] sm:$0x1] %v3102_v2 }
  0x28   : > { %2232 = vmatpush.msra.mxu0 %v2202_v15  ;;  %464 = vst [vmem:[#allocation2 + $0x89] sm:$0x1] %v3102_v2  ;;  %v804_v15 = vmul.f32 %v3378_v3, %v771_v6  ;;  %v3468_v6 = vmul.f32 %v3324_v40, %v3360_v55 }
  0x29   : > { %465 = vst [vmem:[#allocation2 + $0xa1] sm:$0x1] %v3102_v2 }
  0x2a   : > { %2233 = vmatpush.msra.mxu0 %v2201_v16  ;;  %466 = vst [vmem:[#allocation2 + $0xb9] sm:$0x1] %v3102_v2  ;;  %v772_v11 = vld [vmem:[#allocation2 + $0xa] sm:$0xff]  ;;  %v6247_v16 = vunpack.c.h.bf16 %v3383_v5 }
  0x2b   : > { %467 = vst [vmem:[#allocation2 + $0xd1] sm:$0x1] %v3102_v2  ;;  %v805_v27 = vmul.f32 %v3378_v3, %v772_v11 }
  0x2c   : > { %468 = vst [vmem:[#allocation2 + $0xe9] sm:$0x1] %v3102_v2 }
  0x2d   : > { %469 = vst [vmem:[#allocation2 + $0x101] sm:$0x1] %v3102_v2  ;;  %v3474_v9 = vadd.f32 %v805_v27, %v740_v24  ;;  %v3492_v24 = vmul.f32 %v3341_v47, %v3360_v55  ;;  %v3496_v27 = vmul.f32 %v3348_v50, %v3360_v55 }
  0x2e   : > { %470 = vst [vmem:[#allocation2 + $0x119] sm:$0x1] %v3102_v2 }
  0x2f   : > { %471 = vst [vmem:[#allocation2 + $0x131] sm:$0x1] %v3102_v2 }
  0x30   : > { %472 = vst [vmem:[#allocation2 + $0x149] sm:$0x1] %v3102_v2 }
  0x31   : > { %473 = vst [vmem:[#allocation2 + $0x161] sm:$0x1] %v3102_v2 }
  0x32   : > { %6370 = vst [vmem:[#allocation3_spill] sm:$0xff] %v3276_v19 }
  0x33   : > { %474 = vst [vmem:[#allocation2 + $0x179] sm:$0x1] %v3102_v2 }
  0x34   : > { %6371 = vst [vmem:[#allocation4_spill] sm:$0xff] %v3279_v20 }
  0x35   : > { %475 = vst [vmem:[#allocation2 + $0x191] sm:$0x1] %v3102_v2 }
  0x36   : > { %6372 = vst [vmem:[#allocation5_spill] sm:$0xff] %v3283_v22 }
  0x37   : > { %476 = vst [vmem:[#allocation2 + $0x1a9] sm:$0x1] %v3102_v2  ;;  %v707_v2 = vmul.f32 %v3360_v55, %v674_v59  ;;  %v3452_v59 = vmul.f32 %v3310_v34, %v3360_v55 }
  0x38   : > { %6373 = vst [vmem:[#allocation6_spill] sm:$0xff] %v3286_v23 }
  0x39   : > { %6374 = vst [vmem:[#allocation7_spill] sm:$0xff] %v3289_v25  ;;  %v739_v14 = vadd.f32 %v707_v2, %v610_v1  ;;  %v3464_v2 = vmul.f32 %v3320_v38, %v3360_v55 }
  0x3a   : > { %542 = vst [vmem:[#allocation2 + $0x19] sm:$0xff] %v3276_v19 }
  0x3b   : > { %6375 = vst [vmem:[#allocation8_spill] sm:$0xff] %v3292_v26  ;;  %v836_v52 = vadd.f32 %v804_v15, %v739_v14  ;;  %v3479_v14 = vmul.f32 %v3331_v43, %v3360_v55  ;;  %v3483_v15 = vmul.f32 %v3334_v44, %v3360_v55 }
  0x3c   : > { %543 = vst [vmem:[#allocation2 + $0x21] sm:$0xff] %v3279_v20 }
  0x3d   : > { %6376 = vst [vmem:[#allocation9_spill] sm:$0xff] %v3296_v28 }
  0x3e   : > { %544 = vst [vmem:[#allocation2 + $0x31] sm:$0xff] %v3283_v22 }
  0x3f   : > { %6377 = vst [vmem:[#allocation10_spill] sm:$0xff] %v3299_v29 }
  0x40   : > { %545 = vst [vmem:[#allocation2 + $0x39] sm:$0xff] %v3286_v23 }
  0x41   : > { %6378 = vst [vmem:[#allocation11_spill] sm:$0xff] %v3303_v31  ;;  %v579_v42 = vld [vmem:[#allocation2 + $0x18] sm:$0xff] }
  0x42   : > { %546 = vst [vmem:[#allocation2 + $0x49] sm:$0xff] %v3289_v25  ;;  %v612_v11 = vmul.f32 %v3358_v54, %v579_v42  ;;  %v3543_v25 = vmul.f32 %v3386_v7, %v3360_v55 }
  0x43   : > { %6379 = vst [vmem:[#allocation12_spill] sm:$0xff] %v3306_v32  ;;  %v580_v57 = vld [vmem:[#allocation2 + $0x20] sm:$0xff] }
  0x44   : > { %547 = vst [vmem:[#allocation2 + $0x51] sm:$0xff] %v3292_v26  ;;  %v741_v23 = vadd.f32 %v709_v17, %v612_v11 }
  0x45   : > { %6380 = vst [vmem:[#allocation13_spill] sm:$0xff] %v3310_v34  ;;  %v581_v1 = vld [vmem:[#allocation2 + $0x30] sm:$0xff] }
  0x46   : > { %548 = vst [vmem:[#allocation2 + $0x61] sm:$0xff] %v3296_v28 }
  0x47   : > { %6381 = vst [vmem:[#allocation14_spill] sm:$0xff] %v3313_v35  ;;  %v3545_v22 = vld [vmem:[#allocation2 + $0x3a] sm:$0xff] }
  0x48   : > { %549 = vst [vmem:[#allocation2 + $0x69] sm:$0xff] %v3299_v29  ;;  %v901_v29 = vmul.f32 %v3428_v39, %v579_v42 }
  0x49   : > { %6382 = vst [vmem:[#allocation15_spill] sm:$0xff] %v3317_v37 }
  0x4a   : > { %550 = vst [vmem:[#allocation2 + $0x79] sm:$0xff] %v3303_v31  ;;  %v3535_v31 = vld [vmem:[#allocation2 + $0x32] sm:$0xff] }
  0x4b   : > { %6383 = vst [vmem:[#allocation16_spill] sm:$0xff] %v3320_v38 }
  0x4c   : > { %551 = vst [vmem:[#allocation2 + $0x81] sm:$0xff] %v3306_v32  ;;  %v3533_v32 = vmul.f32 %v3380_v4, %v3360_v55 }
  0x4d   : > { %6384 = vst [vmem:[#allocation17_spill] sm:$0xff] %v3324_v40  ;;  %v3538_v28 = vld [vmem:[#allocation2 + $0x60] sm:$0xff] }
  0x4e   : > { %552 = vst [vmem:[#allocation2 + $0x91] sm:$0xff] %v3310_v34  ;;  %v3529_v34 = vmul.f32 %v3373_v0, %v3360_v55 }
  0x4f   : > { %6385 = vst [vmem:[#allocation18_spill] sm:$0xff] %v3327_v41  ;;  %v3549_v19 = vld [vmem:[#allocation2 + $0x68] sm:$0xff] }
  0x50   : > { %553 = vst [vmem:[#allocation2 + $0x99] sm:$0xff] %v3313_v35  ;;  %v3525_v35 = vmul.f32 %v3369_v61, %v3360_v55 }
  0x51   : > { %6386 = vst [vmem:[#allocation19_spill] sm:$0xff] %v3331_v43  ;;  %v3562_v17 = vld [vmem:[#allocation2 + $0x78] sm:$0xff] }
  0x52   : > { %554 = vst [vmem:[#allocation2 + $0xa9] sm:$0xff] %v3317_v37  ;;  %v3521_v37 = vld [vmem:[#allocation2 + $0x50] sm:$0xff] }
  0x53   : > { %6387 = vst [vmem:[#allocation20_spill] sm:$0xff] %v3334_v44  ;;  %v3564_v11 = vld [vmem:[#allocation2 + $0x80] sm:$0xff] }
  0x54   : > { %555 = vst [vmem:[#allocation2 + $0xb1] sm:$0xff] %v3320_v38  ;;  %v3517_v38 = vld [vmem:[#allocation2 + $0x22] sm:$0xff] }
  0x55   : > { %6388 = vst [vmem:[#allocation21_spill] sm:$0xff] %v3338_v46 }
  0x56   : > { %556 = vst [vmem:[#allocation2 + $0xc1] sm:$0xff] %v3324_v40  ;;  %v3507_v40 = vmul.f32 %v3355_v53, %v3360_v55 }
  0x57   : > { %6389 = vst [vmem:[#allocation22_spill] sm:$0xff] %v3341_v47 }
  0x58   : > { %557 = vst [vmem:[#allocation2 + $0xc9] sm:$0xff] %v3327_v41  ;;  %v613_v41 = vmul.f32 %v3358_v54, %v580_v57 }
  0x59   : > { %6390 = vst [vmem:[#allocation23_spill] sm:$0xff] %v3348_v50 }
  0x5a   : > { %558 = vst [vmem:[#allocation2 + $0xd9] sm:$0xff] %v3331_v43  ;;  %v3500_v43 = vmul.f32 %v3351_v51, %v3360_v55  ;;  %v742_v42 = vadd.f32 %v710_v18, %v613_v41  ;;  %v3571_v18 = vld [vmem:[#allocation2 + $0x52] sm:$0xff] }
  0x5b   : > { %6391 = vst [vmem:[#allocation24_spill] sm:$0xff] %v3351_v51 }
  0x5c   : > { %559 = vst [vmem:[#allocation2 + $0xe1] sm:$0xff] %v3334_v44  ;;  %v3502_v44 = vld [vmem:[#allocation2 + $0x1a] sm:$0xff] }
  0x5d   : > { %560 = vst [vmem:[#allocation2 + $0xf1] sm:$0xff] %v3338_v46  ;;  %v806_v20 = vmul.f32 %v3378_v3, %v3502_v44 }
  0x5e   : > { %561 = vst [vmem:[#allocation2 + $0xf9] sm:$0xff] %v3341_v47  ;;  %v3511_v47 = vmul.f32 %v3362_v56, %v3360_v55 }
  0x5f   : > { %562 = vst [vmem:[#allocation2 + $0x109] sm:$0xff] %v3348_v50  ;;  %v3515_v50 = vmul.f32 %v3366_v60, %v3360_v55 }
  0x60   : > { %563 = vst [vmem:[#allocation2 + $0x111] sm:$0xff] %v3351_v51  ;;  %v3519_v51 = vld [vmem:[#allocation2 + $0x48] sm:$0xff] }
  0x61   : > { %564 = vst [vmem:[#allocation2 + $0x121] sm:$0xff] %v3355_v53 }
  0x62   : > { %565 = vst [vmem:[#allocation2 + $0x129] sm:$0xff] %v3362_v56 }
  0x63   : > { %566 = vst [vmem:[#allocation2 + $0x139] sm:$0xff] %v3366_v60 }
  0x64   : > { %567 = vst [vmem:[#allocation2 + $0x141] sm:$0xff] %v3369_v61 }
  0x65   : > { %568 = vst [vmem:[#allocation2 + $0x151] sm:$0xff] %v3373_v0 }
  0x66   : > { %569 = vst [vmem:[#allocation2 + $0x159] sm:$0xff] %v3380_v4 }
  0x67   : > { %570 = vst [vmem:[#allocation2 + $0x169] sm:$0xff] %v3386_v7 }
  0x68   : > { %571 = vst [vmem:[#allocation2 + $0x171] sm:$0xff] %v3391_v10 }
  0x69   : > { %572 = vst [vmem:[#allocation2 + $0x181] sm:$0xff] %v6248_v12  ;;  %v582_v12 = vld [vmem:[#allocation2 + $0x38] sm:$0xff] }
  0x6a   : > { %573 = vst [vmem:[#allocation2 + $0x189] sm:$0xff] %v6247_v16  ;;  %v3487_v16 = vmul.f32 %v3338_v46, %v3360_v55  ;;  %v614_v46 = vmul.f32 %v3358_v54, %v581_v1  ;;  %v615_v26 = vmul.f32 %v3358_v54, %v582_v12 }
  0x6b   : > { %6392 = vst [vmem:[#allocation25_spill] sm:$0xff] %v3472_v8  ;;  %v3584_v8 = vld [vmem:[#allocation2 + $0x90] sm:$0xff] }
  0x6c   : > { %6393 = vst [vmem:[#allocation26_spill] sm:$0xff] %v3474_v9  ;;  %v3553_v9 = vmul.f32 %v3391_v10, %v3360_v55  ;;  %v617_v55 = vmul.f32 %v3358_v54, %v3521_v37  ;;  %v743_v41 = vadd.f32 %v3411_v21, %v614_v46  ;;  %v619_v46 = vmul.f32 %v3358_v54, %v3549_v19 }
  0x6d   : > { %6394 = vst [vmem:[#allocation27_spill] sm:$0xff] %v3479_v14  ;;  %v3580_v14 = vmul.f32 %v3428_v39, %v581_v1  ;;  %v744_v21 = vadd.f32 %v3417_v30, %v615_v26  ;;  %v3598_v1 = vld [vmem:[#allocation2 + $0x98] sm:$0xff]  ;;  %v3606_v26 = vld [vmem:[#allocation2 + $0x82] sm:$0xff] }
  0x6e   : > { %6395 = vst [vmem:[#allocation28_spill] sm:$0xff] %v3483_v15  ;;  %v3560_v15 = vmul.f32 %v3428_v39, %v580_v57  ;;  %v618_v57 = vmul.f32 %v3358_v54, %v3538_v28 }
  0x6f   : > { %6396 = vst [vmem:[#allocation29_spill] sm:$0xff] %v3487_v16  ;;  %v807_v16 = vmul.f32 %v3378_v3, %v3517_v38 }
  0x70   : > { %6397 = vst [vmem:[#allocation30_spill] sm:$0xff] %v3492_v24  ;;  %v3555_v24 = vld [vmem:[#allocation2 + $0x4a] sm:$0xff] }
  0x71   : > { %6398 = vst [vmem:[#allocation31_spill] sm:$0xff] %v3502_v44  ;;  %v616_v44 = vmul.f32 %v3358_v54, %v3519_v51  ;;  %v3610_v30 = vmul.f32 %v3378_v3, %v3555_v24 }
  0x72   : > { %6399 = vst [vmem:[#allocation32_spill] sm:$0xff] %v3517_v38  ;;  %v808_v38 = vmul.f32 %v3378_v3, %v3535_v31 }
  0x73   : > { %6400 = vst [vmem:[#allocation33_spill] sm:$0xff] %v3519_v51  ;;  %v3582_v51 = vadd.f32 %v901_v29, %v836_v52  ;;  %v620_v29 = vmul.f32 %v3358_v54, %v3562_v17  ;;  %v621_v52 = vmul.f32 %v3358_v54, %v3564_v11 }
  0x74   : > { %6401 = vst [vmem:[#allocation34_spill] sm:$0xff] %v3521_v37  ;;  %v3589_v37 = vld [vmem:[#allocation2 + $0x62] sm:$0xff] }
  0x75   : > { %6402 = vst [vmem:[#allocation35_spill] sm:$0xff] %v3535_v31  ;;  %v3591_v31 = vld [vmem:[#allocation2 + $0x6a] sm:$0xff] }
  0x76   : > { %6403 = vst [vmem:[#allocation36_spill] sm:$0xff] %v3538_v28  ;;  %v3593_v28 = vadd.f32 %v806_v20, %v741_v23  ;;  %v3614_v20 = vmul.f32 %v3378_v3, %v3571_v18  ;;  %v3616_v23 = vld [vmem:[#allocation2 + $0xa8] sm:$0xff] }
  0x77   : > { %6404 = vst [vmem:[#allocation37_spill] sm:$0xff] %v3545_v22 }
  0x78   : > { %6405 = vst [vmem:[#allocation38_spill] sm:$0xff] %v3549_v19  ;;  %v3636_v19 = vld [vmem:[#allocation2 + $0x110] sm:$0xff] }
  0x79   : > { %6406 = vst [vmem:[#allocation39_spill] sm:$0xff] %v3555_v24  ;;  %v3630_v24 = vadd.f32 %v808_v38, %v743_v41  ;;  %v3649_v38 = vmul.f32 %v3378_v3, %v3591_v31  ;;  %v3658_v41 = vadd.f32 %v3438_v48, %v619_v46  ;;  %v3678_v48 = vld [vmem:[#allocation2 + $0x10a] sm:$0xff]  ;;  %v3682_v46 = vmul.f32 %v3378_v3, %v3606_v26 }
  0x7a   : > { %6407 = vst [vmem:[#allocation40_spill] sm:$0xff] %v3560_v15  ;;  %v809_v15 = vmul.f32 %v3378_v3, %v3545_v22  ;;  %v3596_v22 = vmul.f32 %v3428_v39, %v582_v12  ;;  %v3619_v12 = vadd.f32 %v3421_v33, %v616_v44  ;;  %v622_v44 = vmul.f32 %v3358_v54, %v3584_v8 }
  0x7b   : > { %6408 = vst [vmem:[#allocation41_spill] sm:$0xff] %v3562_v17  ;;  %v3632_v17 = vld [vmem:[#allocation2 + $0xb0] sm:$0xff]  ;;  %v3641_v33 = vadd.f32 %v3434_v45, %v618_v57 }
  0x7c   : > { %6409 = vst [vmem:[#allocation42_spill] sm:$0xff] %v3564_v11  ;;  %v3628_v11 = vadd.f32 %v807_v16, %v742_v42  ;;  %v3651_v16 = vld [vmem:[#allocation2 + $0x120] sm:$0xff]  ;;  %v3653_v42 = vld [vmem:[#allocation2 + $0x128] sm:$0xff] }
  0x7d   : > { %6410 = vst [vmem:[#allocation43_spill] sm:$0xff] %v3571_v18  ;;  %v3634_v18 = vld [vmem:[#allocation2 + $0x108] sm:$0xff] }
  0x7e   : > { %6411 = vst [vmem:[#allocation44_spill] sm:$0xff] %v3580_v14  ;;  %v3624_v14 = vld [vmem:[#allocation2 + $0x92] sm:$0xff]  ;;  %v3660_v45 = vld [vmem:[#allocation2 + $0xaa] sm:$0xff] }
  0x7f   : > { %6412 = vst [vmem:[#allocation45_spill] sm:$0xff] %v3582_v51  ;;  %v3604_v51 = vld [vmem:[#allocation2 + $0x7a] sm:$0xff] }
  0x80   : > { %6413 = vst [vmem:[#allocation46_spill] sm:$0xff] %v3584_v8  ;;  %v3664_v57 = vmul.f32 %v3378_v3, %v3604_v51  ;;  %v634_v8 = vmul.f32 %v3358_v54, %v3651_v16 }
  0x81   : > { %6414 = vst [vmem:[#allocation47_spill] sm:$0xff] %v3589_v37 }
  0x82   : > { %6415 = vst [vmem:[#allocation48_spill] sm:$0xff] %v3591_v31  ;;  %v3668_v31 = vld [vmem:[#allocation2 + $0xc0] sm:$0xff] }
  0x83   : > { %6416 = vst [vmem:[#allocation49_spill] sm:$0xff] %v3593_v28  ;;  %v3626_v28 = vld [vmem:[#allocation2 + $0x9a] sm:$0xff] }
  0x84   : > { %6417 = vst [vmem:[#allocation50_spill] sm:$0xff] %v3596_v22  ;;  %v3622_v22 = vadd.f32 %v3425_v36, %v617_v55  ;;  %v3645_v36 = vmul.f32 %v3378_v3, %v3589_v37  ;;  %v623_v55 = vmul.f32 %v3358_v54, %v3598_v1  ;;  %v3666_v37 = vadd.f32 %v809_v15, %v744_v21  ;;  %v3688_v21 = vld [vmem:[#allocation2 + $0x138] sm:$0xff] }
  0x85   : > { %6418 = vst [vmem:[#allocation51_spill] sm:$0xff] %v3598_v1  ;;  %v3676_v1 = vld [vmem:[#allocation2 + $0xb2] sm:$0xff]  ;;  %v3686_v15 = vmul.f32 %v3378_v3, %v3624_v14 }
  0x86   : > { %6419 = vst [vmem:[#allocation52_spill] sm:$0xff] %v3604_v51  ;;  %v3690_v51 = vld [vmem:[#allocation2 + $0x140] sm:$0xff] }
  0x87   : > { %6420 = vst [vmem:[#allocation53_spill] sm:$0xff] %v3606_v26  ;;  %v3702_v26 = vmul.f32 %v3378_v3, %v3626_v28 }
  0x88   : > { %6421 = vst [vmem:[#allocation54_spill] sm:$0xff] %v3614_v20 }
  0x89   : > { %6422 = vst [vmem:[#allocation55_spill] sm:$0xff] %v3616_v23 }
  0x8a   : > { %6423 = vst [vmem:[#allocation56_spill] sm:$0xff] %v3624_v14  ;;  %v3704_v14 = vld [vmem:[#allocation2 + $0x158] sm:$0xff] }
  0x8b   : > { %6424 = vst [vmem:[#allocation57_spill] sm:$0xff] %v3626_v28  ;;  %v3721_v28 = vmul.f32 %v3358_v54, %v3668_v31 }
  0x8c   : > { %6425 = vst [vmem:[#allocation58_spill] sm:$0xff] %v3628_v11  ;;  %v3674_v11 = vadd.f32 %v3448_v58, %v621_v52  ;;  %v624_v58 = vmul.f32 %v3358_v54, %v3616_v23  ;;  %v633_v52 = vmul.f32 %v3358_v54, %v3636_v19  ;;  %v635_v23 = vmul.f32 %v3358_v54, %v3653_v42 }
  0x8d   : > { %6426 = vst [vmem:[#allocation59_spill] sm:$0xff] %v3630_v24  ;;  %v3671_v24 = vadd.f32 %v3442_v49, %v620_v29  ;;  %v3692_v49 = vld [vmem:[#allocation2 + $0x150] sm:$0xff]  ;;  %v632_v29 = vmul.f32 %v3358_v54, %v3634_v18 }
  0x8e   : > { %6427 = vst [vmem:[#allocation60_spill] sm:$0xff] %v3632_v17 }
  0x8f   : > { %6428 = vst [vmem:[#allocation61_spill] sm:$0xff] %v3634_v18  ;;  %v3715_v18 = vadd.f32 %v3452_v59, %v622_v44  ;;  %v3738_v59 = vmul.f32 %v3378_v3, %v3676_v1  ;;  %v607_v44 = vld [vmem:[#allocation2 + $0x168] sm:$0xff] }
  0x90   : > { %6429 = vst [vmem:[#allocation62_spill] sm:$0xff] %v3636_v19  ;;  %v3717_v19 = vld [vmem:[#allocation2 + $0x112] sm:$0xff] }
  0x91   : > { %6430 = vst [vmem:[#allocation63_spill] sm:$0xff] %v3641_v33  ;;  %v3762_v33 = vld [vmem:[#allocation2 + $0x15a] sm:$0xff] }
  0x92   : > { %6431 = vst [vmem:[#allocation64_spill] sm:$0xff] %v3645_v36  ;;  %v764_v36 = vadd.f32 %v3511_v47, %v635_v23 }
  0x93   : > { %6432 = vst [vmem:[#allocation65_spill] sm:$0xff] %v3649_v38  ;;  %v3758_v38 = vld [vmem:[#allocation2 + $0xc8] sm:$0xff] }
  0x94   : > { %6433 = vst [vmem:[#allocation66_spill] sm:$0xff] %v3658_v41  ;;  %v763_v41 = vadd.f32 %v3507_v40, %v634_v8  ;;  %v3785_v20 = vmul.f32 %v3358_v54, %v3758_v38 }
  0x95   : > { %6434 = vst [vmem:[#allocation67_spill] sm:$0xff] %v3660_v45 }
  0x96   : > { %6435 = vst [vmem:[#allocation68_spill] sm:$0xff] %v3664_v57  ;;  %v3754_v57 = vld [vmem:[#allocation2 + $0x152] sm:$0xff] }
  0x97   : > { %6436 = vst [vmem:[#allocation69_spill] sm:$0xff] %v3666_v37  ;;  %v3708_v37 = vmul.f32 %v3358_v54, %v3632_v17  ;;  %v3726_v17 = vld [vmem:[#allocation2 + $0x122] sm:$0xff] }
  0x98   : > { %6437 = vst [vmem:[#allocation70_spill] sm:$0xff] %v3668_v31  ;;  %v608_v31 = vld [vmem:[#allocation2 + $0x170] sm:$0xff] }
  0x99   : > { %6438 = vst [vmem:[#allocation71_spill] sm:$0xff] %v3671_v24  ;;  %v827_v24 = vmul.f32 %v3378_v3, %v3717_v19 }
  0x9a   : > { %6439 = vst [vmem:[#allocation72_spill] sm:$0xff] %v3674_v11  ;;  %v3734_v11 = vmul.f32 %v3378_v3, %v3660_v45  ;;  %v826_v45 = vmul.f32 %v3378_v3, %v3678_v48 }
  0x9b   : > { %6440 = vst [vmem:[#allocation73_spill] sm:$0xff] %v3676_v1  ;;  %v639_v1 = vmul.f32 %v3358_v54, %v3704_v14 }
  0x9c   : > { %6441 = vst [vmem:[#allocation74_spill] sm:$0xff] %v3678_v48  ;;  %v828_v48 = vmul.f32 %v3378_v3, %v3726_v17 }
  0x9d   : > { %6442 = vst [vmem:[#allocation75_spill] sm:$0xff] %v3682_v46  ;;  %v3730_v46 = vld [vmem:[#allocation2 + $0x13a] sm:$0xff] }
  0x9e   : > { %6443 = vst [vmem:[#allocation76_spill] sm:$0xff] %v3686_v15  ;;  %v3728_v15 = vld [vmem:[#allocation2 + $0x12a] sm:$0xff] }
  0x9f   : > { %6444 = vst [vmem:[#allocation77_spill] sm:$0xff] %v3702_v26  ;;  %v3724_v26 = vadd.f32 %v3456_v62, %v623_v55  ;;  %v636_v62 = vmul.f32 %v3358_v54, %v3688_v21  ;;  %v637_v55 = vmul.f32 %v3358_v54, %v3690_v51 }
  0xa0   : > { %6445 = vst [vmem:[#allocation78_spill] sm:$0xff] %v3715_v18  ;;  %v3746_v18 = vld [vmem:[#allocation2 + $0x142] sm:$0xff] }
  0xa1   : > { %6446 = vst [vmem:[#allocation79_spill] sm:$0xff] %v3717_v19  ;;  %v831_v40 = vmul.f32 %v3378_v3, %v3746_v18  ;;  %v765_v47 = vadd.f32 %v3515_v50, %v636_v62  ;;  %v766_v8 = vadd.f32 %v3525_v35, %v637_v55  ;;  %v3779_v19 = vld [vmem:[#allocation2 + $0x172] sm:$0xff]  ;;  %v768_v50 = vadd.f32 %v3533_v32, %v639_v1  ;;  %v3799_v1 = vld [vmem:[#allocation2 + $0x180] sm:$0xff] }
  0xa2   : > { %6447 = vst [vmem:[#allocation80_spill] sm:$0xff] %v3724_v26  ;;  %v638_v26 = vmul.f32 %v3358_v54, %v3692_v49  ;;  %v833_v35 = vmul.f32 %v3378_v3, %v3762_v33  ;;  %v860_v62 = vadd.f32 %v828_v48, %v763_v41  ;;  %v925_v41 = vmul.f32 %v3428_v39, %v3688_v21 }
  0xa3   : > { %6448 = vst [vmem:[#allocation81_spill] sm:$0xff] %v3726_v17  ;;  %v3777_v17 = vld [vmem:[#allocation2 + $0x16a] sm:$0xff]  ;;  %v927_v48 = vmul.f32 %v3428_v39, %v3692_v49 }
  0xa4   : > { %6449 = vst [vmem:[#allocation82_spill] sm:$0xff] %v3728_v15  ;;  %v767_v23 = vadd.f32 %v3529_v34, %v638_v26 }
  0xa5   : > { %6450 = vst [vmem:[#allocation83_spill] sm:$0xff] %v3730_v46 }
  0xa6   : > { %6451 = vst [vmem:[#allocation84_spill] sm:$0xff] %v3734_v11  ;;  %v762_v11 = vadd.f32 %v3500_v43, %v633_v52  ;;  %v640_v43 = vmul.f32 %v3358_v54, %v607_v44  ;;  %v830_v52 = vmul.f32 %v3378_v3, %v3730_v46  ;;  %v3788_v46 = vadd.f32 %v3460_v63, %v624_v58 }
  0xa7   : > { %6452 = vst [vmem:[#allocation85_spill] sm:$0xff] %v3738_v59  ;;  %v761_v59 = vadd.f32 %v3496_v27, %v632_v29  ;;  %v829_v27 = vmul.f32 %v3378_v3, %v3728_v15  ;;  %v641_v29 = vmul.f32 %v3358_v54, %v608_v31  ;;  %v832_v15 = vmul.f32 %v3378_v3, %v3754_v57 }
  0xa8   : > { %6453 = vst [vmem:[#allocation86_spill] sm:$0xff] %v3746_v18  ;;  %v859_v26 = vadd.f32 %v827_v24, %v762_v11  ;;  %v769_v18 = vadd.f32 %v3543_v25, %v640_v43  ;;  %v835_v63 = vmul.f32 %v3378_v3, %v3779_v19  ;;  %v862_v58 = vadd.f32 %v830_v52, %v765_v47  ;;  %v3805_v11 = vld [vmem:[#allocation2 + $0xc2] sm:$0xff]  ;;  %v3807_v25 = vld [vmem:[#allocation2 + $0xca] sm:$0xff] }
  0xa9   : > { %6454 = vst [vmem:[#allocation87_spill] sm:$0xff] %v3754_v57  ;;  %v858_v34 = vadd.f32 %v826_v45, %v761_v59  ;;  %v861_v55 = vadd.f32 %v829_v27, %v764_v36  ;;  %v770_v57 = vadd.f32 %v3553_v9, %v641_v29  ;;  %v864_v32 = vadd.f32 %v832_v15, %v767_v23  ;;  %v3842_v47 = vld [vmem:[#allocation2 + $0xe0] sm:$0xff] }
  0xaa   : > { %6455 = vst [vmem:[#allocation88_spill] sm:$0xff] %v3758_v38  ;;  %v834_v38 = vmul.f32 %v3378_v3, %v3777_v17  ;;  %v923_v24 = vmul.f32 %v3428_v39, %v3651_v16  ;;  %v865_v9 = vadd.f32 %v833_v35, %v768_v50  ;;  %v924_v36 = vmul.f32 %v3428_v39, %v3653_v42 }
  0xab   : > { %6456 = vst [vmem:[#allocation89_spill] sm:$0xff] %v3762_v33  ;;  %v3801_v33 = vld [vmem:[#allocation2 + $0x188] sm:$0xff]  ;;  %v926_v45 = vmul.f32 %v3428_v39, %v3690_v51  ;;  %v928_v16 = vmul.f32 %v3428_v39, %v3704_v14  ;;  %v929_v15 = vmul.f32 %v3428_v39, %v607_v44  ;;  %v930_v59 = vmul.f32 %v3428_v39, %v608_v31 }
  0xac   : > { %6457 = vst [vmem:[#allocation90_spill] sm:$0xff] %v3777_v17  ;;  %v866_v27 = vadd.f32 %v834_v38, %v769_v18  ;;  %v867_v43 = vadd.f32 %v835_v63, %v770_v57  ;;  %v931_v42 = vmul.f32 %v3428_v39, %v3799_v1  ;;  %v932_v21 = vmul.f32 %v3428_v39, %v3801_v33 }
  0xad   : > { %6458 = vst [vmem:[#allocation91_spill] sm:$0xff] %v3779_v19  ;;  %v3827_v51 = vadd.f32 %v3464_v2, %v3708_v37  ;;  %v3831_v49 = vmul.f32 %v3378_v3, %v3805_v11  ;;  %v3835_v14 = vmul.f32 %v3378_v3, %v3807_v25  ;;  %v955_v31 = vadd.f32 %v923_v24, %v858_v34  ;;  %v3840_v2 = vld [vmem:[#allocation2 + $0xd8] sm:$0xff]  ;;  %v3848_v34 = vld [vmem:[#allocation2 + $0xf0] sm:$0xff]  ;;  %v6466_v24 = vld [vmem:[#allocation25_spill] sm:$0xff] }
  0xae   : > { %6459 = vst [vmem:[#allocation92_spill] sm:$0xff] %v3788_v46  ;;  %v863_v46 = vadd.f32 %v831_v40, %v766_v8  ;;  %v956_v18 = vadd.f32 %v924_v36, %v859_v26  ;;  %v957_v38 = vadd.f32 %v925_v41, %v860_v62  ;;  %v958_v57 = vadd.f32 %v926_v45, %v861_v55  ;;  %v3850_v26 = vld [vmem:[#allocation2 + $0xf8] sm:$0xff]  ;;  %v3884_v41 = vld [vmem:[#allocation2 + $0xe2] sm:$0xff] }
  0xaf   : > { %6460 = vst [vmem:[#allocation93_spill] sm:$0xff] %v3799_v1  ;;  %v3838_v44 = vperm.slane %v3399_v13, 1  ;;  %v959_v29 = vadd.f32 %v927_v48, %v862_v58  ;;  %v961_v40 = vadd.f32 %v929_v15, %v864_v32  ;;  %v962_v37 = vadd.f32 %v930_v59, %v865_v9 }
  0xb0   : > { %6461 = vst [vmem:[#allocation94_spill] sm:$0xff] %v3801_v33  ;;  %v960_v52 = vadd.f32 %v928_v16, %v863_v46  ;;  %v963_v8 = vadd.f32 %v931_v42, %v866_v27  ;;  %v964_v23 = vadd.f32 %v932_v21, %v867_v43  ;;  %v6464_v58 = vunpack.c.l.bf16 %v3383_v5  ;;  %v3890_v16 = vld [vmem:[#allocation2 + $0xf2] sm:$0xff]  ;;  %v6515_v33 = vld [vmem:[#allocation26_spill] sm:$0xff] }
  0xb1   : > { %6462 = vst [vmem:[#allocation95_spill] sm:$0xff] %v3805_v11  ;;  %v1020_v50 = vmul.f32 %v3355_v53, %v3838_v44  ;;  %v1021_v35 = vmul.f32 %v3362_v56, %v3838_v44  ;;  %v1022_v46 = vmul.f32 %v3366_v60, %v3838_v44  ;;  %v1023_v62 = vmul.f32 %v3369_v61, %v3838_v44  ;;  %v6481_v21 = vld [vmem:[#allocation27_spill] sm:$0xff] }
  0xb2   : > { %6463 = vst [vmem:[#allocation96_spill] sm:$0xff] %v3807_v25  ;;  %v1024_v55 = vmul.f32 %v3373_v0, %v3838_v44  ;;  %v1025_v63 = vmul.f32 %v3380_v4, %v3838_v44  ;;  %v1026_v53 = vmul.f32 %v3386_v7, %v3838_v44  ;;  %v1027_v56 = vmul.f32 %v3391_v10, %v3838_v44 }
  0xb3   : > { %v1028_v32 = vmul.f32 %v6464_v58, %v3838_v44  ;;  %v6465_v60 = vunpack.c.h.bf16 %v3383_v5  ;;  %v628_v0 = vmul.f32 %v3358_v54, %v3840_v2  ;;  %v629_v4 = vmul.f32 %v3358_v54, %v3842_v47  ;;  %v3882_v5 = vld [vmem:[#allocation2 + $0xda] sm:$0xff]  ;;  %6468 = vst [vmem:[#allocation97_spill] sm:$0xff] %v3884_v41 }
  0xb4   : > { %v755_v7 = vadd.f32 %v3468_v6, %v3721_v28  ;;  %v756_v10 = vadd.f32 %v6466_v24, %v3785_v20  ;;  %v630_v9 = vmul.f32 %v3358_v54, %v3848_v34  ;;  %v631_v36 = vmul.f32 %v3358_v54, %v3850_v26  ;;  %6467 = vst [vmem:[#allocation25_spill] sm:$0xff] %v3882_v5  ;;  %v3892_v28 = vld [vmem:[#allocation2 + $0xfa] sm:$0xff]  ;;  %v6493_v24 = vld [vmem:[#allocation75_spill] sm:$0xff] }
  0xb5   : > { %v1029_v61 = vmul.f32 %v6465_v60, %v3838_v44  ;;  %v3886_v45 = vadd.f32 %v1020_v50, %v955_v31  ;;  %v3888_v48 = vadd.f32 %v1021_v35, %v956_v18  ;;  %6471 = vst [vmem:[#allocation100_spill] sm:$0xff] %v3890_v16  ;;  %v3894_v6 = vadd.f32 %v1022_v46, %v957_v38  ;;  %v6482_v18 = vld [vmem:[#allocation28_spill] sm:$0xff]  ;;  %v6485_v46 = vld [vmem:[#allocation54_spill] sm:$0xff]  ;;  %v6489_v58 = vld [vmem:[#allocation65_spill] sm:$0xff] }
  0xb6   : > { %6472 = vst [vmem:[#allocation101_spill] sm:$0xff] %v3892_v28  ;;  %v3896_v20 = vadd.f32 %v1023_v62, %v958_v57  ;;  %v3898_v15 = vadd.f32 %v1024_v55, %v959_v29  ;;  %v3900_v59 = vadd.f32 %v1025_v63, %v960_v52  ;;  %v3902_v54 = vadd.f32 %v1026_v53, %v961_v40  ;;  %v6483_v29 = vld [vmem:[#allocation29_spill] sm:$0xff]  ;;  %v6484_v40 = vld [vmem:[#allocation30_spill] sm:$0xff]  ;;  %v6486_v55 = vld [vmem:[#allocation63_spill] sm:$0xff] }
  0xb7   : > { %6469 = vst [vmem:[#allocation98_spill] sm:$0xff] %v3886_v45  ;;  %v3904_v27 = vadd.f32 %v1027_v56, %v962_v37  ;;  %v3906_v43 = vadd.f32 %v1028_v32, %v963_v8  ;;  %v3908_v42 = vadd.f32 %v1029_v61, %v964_v23  ;;  %v757_v31 = vadd.f32 %v6481_v21, %v628_v0  ;;  %v6487_v63 = vld [vmem:[#allocation64_spill] sm:$0xff]  ;;  %v6488_v56 = vld [vmem:[#allocation66_spill] sm:$0xff]  ;;  %v6490_v60 = vld [vmem:[#allocation71_spill] sm:$0xff] }
  0xb8   : > { %6470 = vst [vmem:[#allocation99_spill] sm:$0xff] %v3888_v48  ;;  %v758_v50 = vadd.f32 %v6482_v18, %v629_v4  ;;  %v822_v38 = vmul.f32 %v3378_v3, %v3882_v5  ;;  %v823_v57 = vmul.f32 %v3378_v3, %v3884_v41  ;;  %v759_v52 = vadd.f32 %v6483_v29, %v630_v9  ;;  %v6491_v61 = vld [vmem:[#allocation68_spill] sm:$0xff] }
  0xb9   : > { %6473 = vst [vmem:[#allocation102_spill] sm:$0xff] %v3894_v6  ;;  %v760_v35 = vadd.f32 %v6484_v40, %v631_v36  ;;  %v824_v37 = vmul.f32 %v3378_v3, %v3890_v16  ;;  %v825_v8 = vmul.f32 %v3378_v3, %v3892_v28  ;;  %v842_v23 = vadd.f32 %v3610_v30, %v3619_v12  ;;  %v6492_v4 = vld [vmem:[#allocation72_spill] sm:$0xff]  ;;  %v6494_v36 = vld [vmem:[#allocation78_spill] sm:$0xff]  ;;  %v6497_v30 = vld [vmem:[#allocation77_spill] sm:$0xff] }
  0xba   : > { %6474 = vst [vmem:[#allocation103_spill] sm:$0xff] %v3896_v20  ;;  %v843_v62 = vadd.f32 %v6485_v46, %v3622_v22  ;;  %v844_v53 = vadd.f32 %v6487_v63, %v6486_v55  ;;  %v845_v32 = vadd.f32 %v6489_v58, %v6488_v56  ;;  %v846_v0 = vadd.f32 %v6491_v61, %v6490_v60  ;;  %v6495_v3 = vld [vmem:[#allocation76_spill] sm:$0xff]  ;;  %v6500_v46 = vld [vmem:[#allocation85_spill] sm:$0xff] }
  0xbb   : > { %6475 = vst [vmem:[#allocation104_spill] sm:$0xff] %v3898_v15  ;;  %v847_v9 = vadd.f32 %v6493_v24, %v6492_v4  ;;  %v848_v21 = vadd.f32 %v6495_v3, %v6494_v36  ;;  %v6496_v18 = vld [vmem:[#allocation80_spill] sm:$0xff]  ;;  %v851_v55 = vadd.f32 %v6500_v46, %v3827_v51  ;;  %v852_v63 = vadd.f32 %v3831_v49, %v755_v7  ;;  %v6501_v24 = vld [vmem:[#allocation33_spill] sm:$0xff]  ;;  %v6502_v3 = vld [vmem:[#allocation34_spill] sm:$0xff] }
  0xbc   : > { %6476 = vst [vmem:[#allocation105_spill] sm:$0xff] %v3900_v59  ;;  %v849_v12 = vadd.f32 %v6497_v30, %v6496_v18  ;;  %v6498_v29 = vld [vmem:[#allocation92_spill] sm:$0xff]  ;;  %v853_v56 = vadd.f32 %v3835_v14, %v756_v10  ;;  %v854_v58 = vadd.f32 %v822_v38, %v757_v31  ;;  %v855_v60 = vadd.f32 %v823_v57, %v758_v50  ;;  %v6505_v46 = vld [vmem:[#allocation41_spill] sm:$0xff]  ;;  %v6506_v14 = vld [vmem:[#allocation42_spill] sm:$0xff] }
  0xbd   : > { %6477 = vst [vmem:[#allocation106_spill] sm:$0xff] %v3902_v54  ;;  %v6499_v22 = vld [vmem:[#allocation84_spill] sm:$0xff]  ;;  %v856_v61 = vadd.f32 %v824_v37, %v759_v52  ;;  %v857_v4 = vadd.f32 %v825_v8, %v760_v35  ;;  %v905_v36 = vmul.f32 %v3428_v39, %v6501_v24  ;;  %v906_v18 = vmul.f32 %v3428_v39, %v6502_v3  ;;  %v6507_v10 = vld [vmem:[#allocation46_spill] sm:$0xff]  ;;  %v6508_v50 = vld [vmem:[#allocation51_spill] sm:$0xff] }
  0xbe   : > { %6478 = vst [vmem:[#allocation107_spill] sm:$0xff] %v3904_v27  ;;  %v850_v40 = vadd.f32 %v6499_v22, %v6498_v29  ;;  %v6503_v30 = vld [vmem:[#allocation36_spill] sm:$0xff]  ;;  %v6504_v22 = vld [vmem:[#allocation38_spill] sm:$0xff]  ;;  %v909_v49 = vmul.f32 %v3428_v39, %v6505_v46  ;;  %v910_v7 = vmul.f32 %v3428_v39, %v6506_v14  ;;  %v911_v31 = vmul.f32 %v3428_v39, %v6507_v10  ;;  %v6509_v57 = vld [vmem:[#allocation55_spill] sm:$0xff] }
  0xbf   : > { %6479 = vst [vmem:[#allocation108_spill] sm:$0xff] %v3906_v43  ;;  %v907_v29 = vmul.f32 %v3428_v39, %v6503_v30  ;;  %v908_v51 = vmul.f32 %v3428_v39, %v6504_v22  ;;  %v912_v38 = vmul.f32 %v3428_v39, %v6508_v50  ;;  %v913_v52 = vmul.f32 %v3428_v39, %v6509_v57  ;;  %v6510_v35 = vld [vmem:[#allocation60_spill] sm:$0xff]  ;;  %v6511_v8 = vld [vmem:[#allocation70_spill] sm:$0xff]  ;;  %v6513_v50 = vld [vmem:[#allocation61_spill] sm:$0xff] }
  0xc0   : > { %6480 = vst [vmem:[#allocation109_spill] sm:$0xff] %v3908_v42  ;;  %v914_v37 = vmul.f32 %v3428_v39, %v6510_v35  ;;  %v915_v24 = vmul.f32 %v3428_v39, %v6511_v8  ;;  %v6512_v3 = vld [vmem:[#allocation88_spill] sm:$0xff]  ;;  %v917_v22 = vmul.f32 %v3428_v39, %v3840_v2  ;;  %v918_v46 = vmul.f32 %v3428_v39, %v3842_v47  ;;  %v6514_v35 = vld [vmem:[#allocation62_spill] sm:$0xff]  ;;  %v6517_v42 = vld [vmem:[#allocation49_spill] sm:$0xff] }
  0xc1   : > { %v916_v30 = vmul.f32 %v3428_v39, %v6512_v3  ;;  %v919_v14 = vmul.f32 %v3428_v39, %v3848_v34  ;;  %v920_v10 = vmul.f32 %v3428_v39, %v3850_v26  ;;  %v921_v57 = vmul.f32 %v3428_v39, %v6513_v50  ;;  %v6516_v3 = vld [vmem:[#allocation40_spill] sm:$0xff]  ;;  %v6519_v27 = vld [vmem:[#allocation58_spill] sm:$0xff]  ;;  %v6521_v59 = vld [vmem:[#allocation59_spill] sm:$0xff] }
  0xc2   : > { %v922_v8 = vmul.f32 %v3428_v39, %v6514_v35  ;;  %v934_v1 = vadd.f32 %v6516_v3, %v6515_v33  ;;  %v6518_v2 = vld [vmem:[#allocation44_spill] sm:$0xff]  ;;  %v6520_v47 = vld [vmem:[#allocation50_spill] sm:$0xff]  ;;  %v937_v34 = vadd.f32 %v905_v36, %v6521_v59  ;;  %v6522_v15 = vld [vmem:[#allocation69_spill] sm:$0xff]  ;;  %v939_v26 = vadd.f32 %v907_v29, %v842_v23 }
  0xc3   : > { %v935_v43 = vadd.f32 %v6518_v2, %v6517_v42  ;;  %v936_v54 = vadd.f32 %v6520_v47, %v6519_v27  ;;  %v938_v20 = vadd.f32 %v906_v18, %v6522_v15  ;;  %v940_v6 = vadd.f32 %v908_v51, %v843_v62  ;;  %v3991_v39 = vld [vmem:[%s6235_s1 + $0x8] sm:$0x7]  ;;  %v6534_v51 = vld [vmem:[#allocation11_spill] sm:$0xff] }
  0xc4   : > { %v941_v48 = vadd.f32 %v909_v49, %v844_v53  ;;  %v942_v50 = vadd.f32 %v910_v7, %v845_v32  ;;  %v943_v45 = vadd.f32 %v911_v31, %v846_v0  ;;  %6523 = vst [vmem:[#allocation27_spill] sm:$0xff] %v3991_v39  ;;  %v944_v33 = vadd.f32 %v912_v38, %v847_v9  ;;  %v6525_v53 = vld [vmem:[#allocation3_spill] sm:$0xff]  ;;  %v6526_v0 = vld [vmem:[#allocation4_spill] sm:$0xff]  ;;  %v6527_v9 = vld [vmem:[#allocation5_spill] sm:$0xff] }
  0xc5   : > { %v945_v35 = vadd.f32 %v913_v52, %v848_v21  ;;  %v946_v42 = vadd.f32 %v914_v37, %v849_v12  ;;  %v947_v3 = vadd.f32 %v915_v24, %v850_v40  ;;  %v948_v2 = vadd.f32 %v916_v30, %v851_v55  ;;  %v6529_v40 = vld [vmem:[#allocation6_spill] sm:$0xff]  ;;  %v6535_v7 = vld [vmem:[#allocation12_spill] sm:$0xff]  ;;  %v6536_v38 = vld [vmem:[#allocation13_spill] sm:$0xff] }
  0xc6   : > { %v949_v27 = vadd.f32 %v917_v22, %v852_v63  ;;  %v950_v47 = vadd.f32 %v918_v46, %v853_v56  ;;  %v951_v59 = vadd.f32 %v919_v14, %v854_v58  ;;  %v952_v36 = vadd.f32 %v920_v10, %v855_v60  ;;  %v6530_v63 = vld [vmem:[#allocation7_spill] sm:$0xff]  ;;  %v6532_v60 = vld [vmem:[#allocation9_spill] sm:$0xff]  ;;  %v6537_v37 = vld [vmem:[#allocation14_spill] sm:$0xff] }
  0xc7   : > { %v953_v15 = vadd.f32 %v921_v57, %v856_v61  ;;  %v954_v23 = vadd.f32 %v922_v8, %v857_v4  ;;  %v3994_v62 = vperm.slane %v3399_v13, 2  ;;  %v998_v32 = vmul.f32 %v6525_v53, %v3838_v44  ;;  %v6531_v13 = vld [vmem:[#allocation8_spill] sm:$0xff]  ;;  %v6533_v4 = vld [vmem:[#allocation10_spill] sm:$0xff]  ;;  %v6538_v30 = vld [vmem:[#allocation15_spill] sm:$0xff] }
  0xc8   : > { %v999_v18 = vmul.f32 %v6526_v0, %v3838_v44  ;;  %v1000_v21 = vmul.f32 %v6527_v9, %v3838_v44  ;;  %v4003_v12 = vperm.slane %v3991_v39, 0  ;;  %v1001_v55 = vmul.f32 %v6529_v40, %v3838_v44  ;;  %v6539_v46 = vld [vmem:[#allocation16_spill] sm:$0xff]  ;;  %v6540_v10 = vld [vmem:[#allocation17_spill] sm:$0xff]  ;;  %v6541_v8 = vld [vmem:[#allocation18_spill] sm:$0xff] }
  0xc9   : > { %6524 = vst [vmem:[#allocation28_spill] sm:$0xff] %v3994_v62  ;;  %v1002_v56 = vmul.f32 %v6530_v63, %v3838_v44  ;;  %v1003_v58 = vmul.f32 %v6531_v13, %v3838_v44  ;;  %v1004_v61 = vmul.f32 %v6532_v60, %v3838_v44  ;;  %v1005_v29 = vmul.f32 %v6533_v4, %v3838_v44  ;;  %v6542_v0 = vld [vmem:[#allocation19_spill] sm:$0xff]  ;;  %v6543_v40 = vld [vmem:[#allocation20_spill] sm:$0xff]  ;;  %v6544_v13 = vld [vmem:[#allocation21_spill] sm:$0xff] }
  0xca   : > { %6528 = vst [vmem:[#allocation29_spill] sm:$0xff] %v4003_v12  ;;  %v1006_v49 = vmul.f32 %v6534_v51, %v3838_v44  ;;  %v1007_v31 = vmul.f32 %v6535_v7, %v3838_v44  ;;  %v1008_v52 = vmul.f32 %v6536_v38, %v3838_v44  ;;  %v1009_v24 = vmul.f32 %v6537_v37, %v3838_v44  ;;  %v6545_v4 = vld [vmem:[#allocation22_spill] sm:$0xff]  ;;  %v6546_v7 = vld [vmem:[#allocation23_spill] sm:$0xff]  ;;  %v6547_v37 = vld [vmem:[#allocation24_spill] sm:$0xff] }
  0xcb   : > { %v1010_v22 = vmul.f32 %v6538_v30, %v3838_v44  ;;  %v1011_v14 = vmul.f32 %v6539_v46, %v3838_v44  ;;  %v1012_v57 = vmul.f32 %v6540_v10, %v3838_v44  ;;  %v1013_v53 = vmul.f32 %v6541_v8, %v3838_v44  ;;  %v6548_v46 = vld [vmem:[#allocation45_spill] sm:$0xff] }
  0xcc   : > { %v1014_v9 = vmul.f32 %v6542_v0, %v3838_v44  ;;  %v1015_v63 = vmul.f32 %v6543_v40, %v3838_v44  ;;  %v1016_v60 = vmul.f32 %v6544_v13, %v3838_v44  ;;  %v1017_v51 = vmul.f32 %v6545_v4, %v3838_v44 }
  0xcd   : > { %v1018_v38 = vmul.f32 %v6546_v7, %v3838_v44  ;;  %v1019_v30 = vmul.f32 %v6547_v37, %v3838_v44  ;;  %v1030_v10 = vadd.f32 %v998_v32, %v6548_v46  ;;  %v1031_v8 = vadd.f32 %v999_v18, %v934_v1  ;;  %v6571_v46 = vld [vmem:[#allocation101_spill] sm:$0xff] }
  0xce   : > { %v1032_v39 = vadd.f32 %v1000_v21, %v935_v43  ;;  %v1033_v0 = vadd.f32 %v1001_v55, %v936_v54  ;;  %v1034_v12 = vadd.f32 %v1002_v56, %v937_v34  ;;  %v1035_v19 = vadd.f32 %v1003_v58, %v938_v20  ;;  %v6549_v43 = vld [vmem:[#allocation31_spill] sm:$0xff]  ;;  %v6551_v20 = vld [vmem:[#allocation32_spill] sm:$0xff]  ;;  %v6561_v56 = vld [vmem:[#allocation57_spill] sm:$0xff] }
  0xcf   : > { %v1036_v40 = vadd.f32 %v1004_v61, %v939_v26  ;;  %v1037_v17 = vadd.f32 %v1005_v29, %v940_v6  ;;  %v1038_v28 = vadd.f32 %v1006_v49, %v941_v48  ;;  %v1039_v13 = vadd.f32 %v1007_v31, %v942_v50  ;;  %v6552_v48 = vld [vmem:[#allocation35_spill] sm:$0xff]  ;;  %v6553_v26 = vld [vmem:[#allocation37_spill] sm:$0xff]  ;;  %v6560_v21 = vld [vmem:[#allocation56_spill] sm:$0xff] }
  0xd0   : > { %v1040_v16 = vadd.f32 %v1008_v52, %v943_v45  ;;  %v1041_v41 = vadd.f32 %v1009_v24, %v944_v33  ;;  %v1042_v4 = vadd.f32 %v1010_v22, %v945_v35  ;;  %v1043_v5 = vadd.f32 %v1011_v14, %v946_v42  ;;  %v6550_v54 = vld [vmem:[#allocation28_spill] sm:$0xff]  ;;  %v6554_v33 = vld [vmem:[#allocation39_spill] sm:$0xff]  ;;  %v6563_v49 = vld [vmem:[#allocation73_spill] sm:$0xff] }
  0xd1   : > { %v1044_v25 = vadd.f32 %v1012_v57, %v947_v3  ;;  %v1045_v7 = vadd.f32 %v1013_v53, %v948_v2  ;;  %v1046_v11 = vadd.f32 %v1014_v9, %v949_v27  ;;  %v1047_v62 = vadd.f32 %v1015_v63, %v950_v47  ;;  %v6555_v42 = vld [vmem:[#allocation43_spill] sm:$0xff]  ;;  %v6557_v47 = vld [vmem:[#allocation48_spill] sm:$0xff]  ;;  %v4074_v22 = vld [vmem:[#allocation2 + $0x182] sm:$0xff] }
  0xd2   : > { %v1048_v44 = vadd.f32 %v1016_v60, %v951_v59  ;;  %v1049_v37 = vadd.f32 %v1017_v51, %v952_v36  ;;  %v1050_v32 = vadd.f32 %v1018_v38, %v953_v15  ;;  %v1051_v1 = vadd.f32 %v1019_v30, %v954_v23  ;;  %v6556_v2 = vld [vmem:[#allocation47_spill] sm:$0xff]  ;;  %v6558_v36 = vld [vmem:[#allocation52_spill] sm:$0xff]  ;;  %v6559_v23 = vld [vmem:[#allocation53_spill] sm:$0xff]  ;;  %6565 = vst [vmem:[#allocation30_spill] sm:$0xff] %v4074_v22 }
  0xd3   : > { %v1095_v34 = vmul.f32 %v6550_v54, %v6549_v43  ;;  %v1096_v6 = vmul.f32 %v6550_v54, %v6551_v20  ;;  %v1097_v45 = vmul.f32 %v6550_v54, %v6552_v48  ;;  %v1098_v50 = vmul.f32 %v6550_v54, %v6553_v26  ;;  %v6562_v61 = vld [vmem:[#allocation67_spill] sm:$0xff]  ;;  %v6566_v14 = vld [vmem:[#allocation96_spill] sm:$0xff]  ;;  %v6567_v53 = vld [vmem:[#allocation25_spill] sm:$0xff] }
  0xd4   : > { %v1099_v35 = vmul.f32 %v6550_v54, %v6554_v33  ;;  %v1100_v3 = vmul.f32 %v6550_v54, %v6555_v42  ;;  %v1101_v27 = vmul.f32 %v6550_v54, %v6556_v2  ;;  %v1102_v59 = vmul.f32 %v6550_v54, %v6557_v47  ;;  %v6564_v52 = vld [vmem:[#allocation95_spill] sm:$0xff]  ;;  %v6568_v63 = vld [vmem:[#allocation97_spill] sm:$0xff]  ;;  %v6569_v51 = vld [vmem:[#allocation100_spill] sm:$0xff] }
  0xd5   : > { %v1103_v15 = vmul.f32 %v6550_v54, %v6558_v36  ;;  %v1104_v18 = vmul.f32 %v6550_v54, %v6559_v23  ;;  %v1105_v55 = vmul.f32 %v6550_v54, %v6560_v21  ;;  %v1106_v58 = vmul.f32 %v6550_v54, %v6561_v56  ;;  %v4084_v30 = vld [vmem:[#allocation2 + $0x18a] sm:$0xff]  ;;  %v6574_v42 = vld [vmem:[#allocation81_spill] sm:$0xff] }
  0xd6   : > { %v1107_v29 = vmul.f32 %v6550_v54, %v6562_v61  ;;  %v1108_v31 = vmul.f32 %v6550_v54, %v6563_v49  ;;  %v1109_v24 = vmul.f32 %v6550_v54, %v6564_v52  ;;  %v1110_v57 = vmul.f32 %v6550_v54, %v6566_v14  ;;  %6570 = vst [vmem:[#allocation54_spill] sm:$0xff] %v4084_v30  ;;  %v6572_v20 = vld [vmem:[#allocation74_spill] sm:$0xff]  ;;  %v6573_v26 = vld [vmem:[#allocation79_spill] sm:$0xff]  ;;  %v6579_v14 = vld [vmem:[#allocation89_spill] sm:$0xff] }
  0xd7   : > { %v1111_v9 = vmul.f32 %v6550_v54, %v6567_v53  ;;  %v1112_v60 = vmul.f32 %v6550_v54, %v6568_v63  ;;  %v1113_v38 = vmul.f32 %v6550_v54, %v6569_v51  ;;  %v1114_v43 = vmul.f32 %v6550_v54, %v6571_v46  ;;  %v6575_v47 = vld [vmem:[#allocation82_spill] sm:$0xff]  ;;  %v6576_v23 = vld [vmem:[#allocation83_spill] sm:$0xff] }
  0xd8   : > { %v1115_v48 = vmul.f32 %v6550_v54, %v6572_v20  ;;  %v1116_v33 = vmul.f32 %v6550_v54, %v6573_v26  ;;  %v1117_v2 = vmul.f32 %v6550_v54, %v6574_v42  ;;  %v1118_v36 = vmul.f32 %v6550_v54, %v6575_v47  ;;  %v6577_v56 = vld [vmem:[#allocation86_spill] sm:$0xff]  ;;  %v6578_v49 = vld [vmem:[#allocation87_spill] sm:$0xff] }
  0xd9   : > { %v1119_v21 = vmul.f32 %v6550_v54, %v6576_v23  ;;  %v1120_v61 = vmul.f32 %v6550_v54, %v6577_v56  ;;  %v1121_v52 = vmul.f32 %v6550_v54, %v6578_v49  ;;  %v1122_v53 = vmul.f32 %v6550_v54, %v6579_v14  ;;  %v6580_v63 = vld [vmem:[#allocation90_spill] sm:$0xff]  ;;  %v6581_v46 = vld [vmem:[#allocation91_spill] sm:$0xff] }
  0xda   : > { %v1123_v51 = vmul.f32 %v6550_v54, %v6580_v63  ;;  %v1124_v20 = vmul.f32 %v6550_v54, %v6581_v46  ;;  %v1125_v26 = vmul.f32 %v6550_v54, %v4074_v22  ;;  %v1126_v42 = vmul.f32 %v6550_v54, %v4084_v30 }
  0xdb   : > { %v4112_v47 = vadd.f32 %v1095_v34, %v1030_v10  ;;  %v4114_v23 = vadd.f32 %v1096_v6, %v1031_v8  ;;  %v4116_v56 = vadd.f32 %v1097_v45, %v1032_v39  ;;  %v4118_v49 = vadd.f32 %v1098_v50, %v1033_v0  ;;  %v1161_v34 = vld [vmem:[#allocation2 + $0x38] sm:$0xff]  ;;  %v1165_v45 = vld [vmem:[#allocation2 + $0x68] sm:$0xff] }
  0xdc   : > { %v4120_v14 = vadd.f32 %v1099_v35, %v1034_v12  ;;  %v4122_v63 = vadd.f32 %v1100_v3, %v1035_v19  ;;  %v4124_v46 = vadd.f32 %v1101_v27, %v1036_v40  ;;  %v4126_v22 = vadd.f32 %v1102_v59, %v1037_v17  ;;  %v1160_v19 = vld [vmem:[#allocation2 + $0x30] sm:$0xff]  ;;  %v1162_v40 = vld [vmem:[#allocation2 + $0x48] sm:$0xff]  ;;  %v1167_v3 = vld [vmem:[#allocation2 + $0x80] sm:$0xff] }
  0xdd   : > { %v4128_v30 = vadd.f32 %v1103_v15, %v1038_v28  ;;  %v4130_v54 = vadd.f32 %v1104_v18, %v1039_v13  ;;  %v4132_v10 = vadd.f32 %v1105_v55, %v1040_v16  ;;  %v4134_v8 = vadd.f32 %v1106_v58, %v1041_v41  ;;  %v1163_v16 = vld [vmem:[#allocation2 + $0x50] sm:$0xff]  ;;  %v1164_v41 = vld [vmem:[#allocation2 + $0x60] sm:$0xff]  ;;  %v6582_v50 = vld [vmem:[#allocation98_spill] sm:$0xff] }
  0xde   : > { %v4136_v39 = vadd.f32 %v1107_v29, %v1042_v4  ;;  %v4138_v0 = vadd.f32 %v1108_v31, %v1043_v5  ;;  %v4140_v12 = vadd.f32 %v1109_v24, %v1044_v25  ;;  %v4142_v6 = vadd.f32 %v1110_v57, %v1045_v7  ;;  %v1166_v7 = vld [vmem:[#allocation2 + $0x78] sm:$0xff]  ;;  %v6583_v27 = vld [vmem:[#allocation99_spill] sm:$0xff]  ;;  %v1170_v55 = vld [vmem:[#allocation2 + $0xa8] sm:$0xff] }
  0xdf   : > { %v4144_v17 = vadd.f32 %v1111_v9, %v1046_v11  ;;  %v4146_v28 = vadd.f32 %v1112_v60, %v1047_v62  ;;  %v4148_v13 = vadd.f32 %v1113_v38, %v1048_v44  ;;  %v4150_v4 = vadd.f32 %v1114_v43, %v1049_v37  ;;  %v1168_v11 = vld [vmem:[#allocation2 + $0x90] sm:$0xff]  ;;  %v6585_v44 = vld [vmem:[#allocation102_spill] sm:$0xff]  ;;  %v6589_v37 = vld [vmem:[#allocation104_spill] sm:$0xff] }
  0xe0   : > { %v4152_v5 = vadd.f32 %v1115_v48, %v1050_v32  ;;  %v4154_v25 = vadd.f32 %v1116_v33, %v1051_v1  ;;  %v4157_v35 = vadd.f32 %v1117_v2, %v6582_v50  ;;  %v4160_v62 = vadd.f32 %v1118_v36, %v6583_v27  ;;  %v6587_v15 = vld [vmem:[#allocation103_spill] sm:$0xff]  ;;  %v1169_v1 = vld [vmem:[#allocation2 + $0x98] sm:$0xff]  ;;  %v6591_v29 = vld [vmem:[#allocation105_spill] sm:$0xff] }
  0xe1   : > { %v4163_v59 = vadd.f32 %v1119_v21, %v6585_v44  ;;  %v4166_v18 = vadd.f32 %v1120_v61, %v6587_v15  ;;  %v4169_v32 = vadd.f32 %v1121_v52, %v6589_v37  ;;  %v1171_v58 = vld [vmem:[#allocation2 + $0xb0] sm:$0xff]  ;;  %v4172_v31 = vadd.f32 %v1122_v53, %v6591_v29  ;;  %v6593_v24 = vld [vmem:[#allocation106_spill] sm:$0xff]  ;;  %v6597_v38 = vld [vmem:[#allocation108_spill] sm:$0xff] }
  0xe2   : > { %6584 = vst [vmem:[#allocation63_spill] sm:$0xff] %v4160_v62  ;;  %v4175_v57 = vadd.f32 %v1123_v51, %v6593_v24  ;;  %v6595_v9 = vld [vmem:[#allocation107_spill] sm:$0xff]  ;;  %v4181_v43 = vadd.f32 %v1125_v26, %v6597_v38  ;;  %v1172_v48 = vld [vmem:[#allocation2 + $0xc0] sm:$0xff]  ;;  %v1173_v33 = vld [vmem:[#allocation2 + $0xc8] sm:$0xff] }
  0xe3   : > { %6586 = vst [vmem:[#allocation64_spill] sm:$0xff] %v4163_v59  ;;  %v4178_v60 = vadd.f32 %v1124_v20, %v6595_v9  ;;  %v1174_v2 = vld [vmem:[#allocation2 + $0xd8] sm:$0xff]  ;;  %v6599_v36 = vld [vmem:[#allocation109_spill] sm:$0xff]  ;;  %v1176_v52 = vld [vmem:[#allocation2 + $0xf0] sm:$0xff] }
  0xe4   : > { %6588 = vst [vmem:[#allocation66_spill] sm:$0xff] %v4166_v18  ;;  %v4184_v21 = vadd.f32 %v1126_v42, %v6599_v36  ;;  %v1175_v61 = vld [vmem:[#allocation2 + $0xe0] sm:$0xff]  ;;  %v1177_v50 = vld [vmem:[#allocation2 + $0xf8] sm:$0xff]  ;;  %v1178_v20 = vld [vmem:[#allocation2 + $0x108] sm:$0xff] }
  0xe5   : > { %6590 = vst [vmem:[#allocation65_spill] sm:$0xff] %v4169_v32  ;;  %v6601_v53 = vld [vmem:[#allocation29_spill] sm:$0xff]  ;;  %v1179_v15 = vld [vmem:[#allocation2 + $0x110] sm:$0xff]  ;;  %v1181_v9 = vld [vmem:[#allocation2 + $0x128] sm:$0xff] }
  0xe6   : > { %6592 = vst [vmem:[#allocation71_spill] sm:$0xff] %v4172_v31  ;;  %v1193_v27 = vmul.f32 %v6601_v53, %v1160_v19  ;;  %v1194_v51 = vmul.f32 %v6601_v53, %v1161_v34  ;;  %v1195_v44 = vmul.f32 %v6601_v53, %v1162_v40  ;;  %v1180_v37 = vld [vmem:[#allocation2 + $0x120] sm:$0xff]  ;;  %v1196_v26 = vmul.f32 %v6601_v53, %v1163_v16  ;;  %v1182_v38 = vld [vmem:[#allocation2 + $0x138] sm:$0xff]  ;;  %v1186_v16 = vld [vmem:[#allocation2 + $0x168] sm:$0xff] }
  0xe7   : > { %6594 = vst [vmem:[#allocation68_spill] sm:$0xff] %v4175_v57  ;;  %v1197_v29 = vmul.f32 %v6601_v53, %v1164_v41  ;;  %v1198_v24 = vmul.f32 %v6601_v53, %v1165_v45  ;;  %v1199_v42 = vmul.f32 %v6601_v53, %v1166_v7  ;;  %v1183_v36 = vld [vmem:[#allocation2 + $0x140] sm:$0xff]  ;;  %v1200_v19 = vmul.f32 %v6601_v53, %v1167_v3  ;;  %v1187_v31 = vld [vmem:[#allocation2 + $0x170] sm:$0xff]  ;;  %v3093_v62 = vld [vmem:[#allocation2 + $0x8] sm:$0xff] }
  0xe8   : > { %6596 = vst [vmem:[#allocation72_spill] sm:$0xff] %v4178_v60  ;;  %v1201_v34 = vmul.f32 %v6601_v53, %v1168_v11  ;;  %v1202_v40 = vmul.f32 %v6601_v53, %v1169_v1  ;;  %v1185_v60 = vld [vmem:[#allocation2 + $0x158] sm:$0xff]  ;;  %v1204_v41 = vmul.f32 %v6601_v53, %v1171_v58  ;;  %v1205_v45 = vmul.f32 %v6601_v53, %v1172_v48  ;;  %v6602_v59 = vld [vmem:[#allocation93_spill] sm:$0xff] }
  0xe9   : > { %6598 = vst [vmem:[#allocation75_spill] sm:$0xff] %v4181_v43  ;;  %v1184_v43 = vld [vmem:[#allocation2 + $0x150] sm:$0xff]  ;;  %v1206_v7 = vmul.f32 %v6601_v53, %v1173_v33  ;;  %v1207_v57 = vmul.f32 %v6601_v53, %v1174_v2  ;;  %v1208_v3 = vmul.f32 %v6601_v53, %v1175_v61  ;;  %v1209_v11 = vmul.f32 %v6601_v53, %v1176_v52 }
  0xea   : > { %6600 = vst [vmem:[#allocation78_spill] sm:$0xff] %v4184_v21  ;;  %v1203_v21 = vmul.f32 %v6601_v53, %v1170_v55  ;;  %v1210_v1 = vmul.f32 %v6601_v53, %v1177_v50  ;;  %v1211_v55 = vmul.f32 %v6601_v53, %v1178_v20  ;;  %v1212_v32 = vmul.f32 %v6601_v53, %v1179_v15  ;;  %v6603_v15 = vld [vmem:[#allocation94_spill] sm:$0xff] }
  0xeb   : > { %v1213_v18 = vmul.f32 %v6601_v53, %v1180_v37  ;;  %v1214_v58 = vmul.f32 %v6601_v53, %v1181_v9  ;;  %v1215_v48 = vmul.f32 %v6601_v53, %v1182_v38  ;;  %v1216_v33 = vmul.f32 %v6601_v53, %v1183_v36 }
  0xec   : > { %v1217_v2 = vmul.f32 %v6601_v53, %v1184_v43  ;;  %v1218_v61 = vmul.f32 %v6601_v53, %v1185_v60  ;;  %v1219_v52 = vmul.f32 %v6601_v53, %v1186_v16  ;;  %v1220_v50 = vmul.f32 %v6601_v53, %v1187_v31  ;;  %v1268_v16 = vld [vmem:[#allocation2 + $0xb1] sm:$0xff] }
  0xed   : > { %v1221_v20 = vmul.f32 %v6601_v53, %v6602_v59  ;;  %v1222_v37 = vmul.f32 %v6601_v53, %v6603_v15  ;;  %v1223_v9 = vmul.f32 %v3093_v62, %v6601_v53  ;;  %v4220_v38 = vadd.f32 %v1193_v27, %v4112_v47  ;;  %v1258_v53 = vld [vmem:[#allocation2 + $0x39] sm:$0xff]  ;;  %v1261_v27 = vld [vmem:[#allocation2 + $0x61] sm:$0xff]  ;;  %v1273_v15 = vld [vmem:[#allocation2 + $0xf1] sm:$0xff] }
  0xee   : > { %v4223_v43 = vadd.f32 %v1194_v51, %v4114_v23  ;;  %v4226_v60 = vadd.f32 %v1195_v44, %v4116_v56  ;;  %v4229_v31 = vadd.f32 %v1196_v26, %v4118_v49  ;;  %v4232_v59 = vadd.f32 %v1197_v29, %v4120_v14  ;;  %v1262_v51 = vld [vmem:[#allocation2 + $0x69] sm:$0xff]  ;;  %v1264_v26 = vld [vmem:[#allocation2 + $0x81] sm:$0xff]  ;;  %v1265_v29 = vld [vmem:[#allocation2 + $0x91] sm:$0xff] }
  0xef   : > { %v4235_v36 = vadd.f32 %v1198_v24, %v4122_v63  ;;  %v4238_v62 = vadd.f32 %v1199_v42, %v4124_v46  ;;  %v4241_v47 = vadd.f32 %v1200_v19, %v4126_v22  ;;  %v4244_v23 = vadd.f32 %v1201_v34, %v4128_v30  ;;  %v6607_v24 = vld [vmem:[#allocation63_spill] sm:$0xff]  ;;  %v6609_v19 = vld [vmem:[#allocation64_spill] sm:$0xff] }
  0xf0   : > { %v4247_v56 = vadd.f32 %v1202_v40, %v4130_v54  ;;  %v4250_v49 = vadd.f32 %v1203_v21, %v4132_v10  ;;  %v4253_v14 = vadd.f32 %v1204_v41, %v4134_v8  ;;  %v4256_v63 = vadd.f32 %v1205_v45, %v4136_v39  ;;  %v1257_v54 = vld [vmem:[#allocation2 + $0x31] sm:$0xff]  ;;  %v1259_v21 = vld [vmem:[#allocation2 + $0x49] sm:$0xff] }
  0xf1   : > { %v4259_v46 = vadd.f32 %v1206_v7, %v4138_v0  ;;  %v4262_v22 = vadd.f32 %v1207_v57, %v4140_v12  ;;  %v4265_v30 = vadd.f32 %v1208_v3, %v4142_v6  ;;  %v4268_v10 = vadd.f32 %v1209_v11, %v4144_v17  ;;  %v1260_v0 = vld [vmem:[#allocation2 + $0x51] sm:$0xff]  ;;  %v1267_v40 = vld [vmem:[#allocation2 + $0xa9] sm:$0xff] }
  0xf2   : > { %v4271_v8 = vadd.f32 %v1210_v1, %v4146_v28  ;;  %v4274_v39 = vadd.f32 %v1211_v55, %v4148_v13  ;;  %v6604_v12 = vld [vmem:[#allocation27_spill] sm:$0xff]  ;;  %v4280_v6 = vadd.f32 %v1212_v32, %v4150_v4  ;;  %v4283_v44 = vadd.f32 %v1213_v18, %v4152_v5  ;;  %v1263_v13 = vld [vmem:[#allocation2 + $0x79] sm:$0xff]  ;;  %v6611_v4 = vld [vmem:[#allocation66_spill] sm:$0xff] }
  0xf3   : > { %v4277_v57 = vperm.slane %v6604_v12, 1  ;;  %v4286_v17 = vadd.f32 %v1214_v58, %v4154_v25  ;;  %v4289_v28 = vadd.f32 %v1215_v48, %v4157_v35  ;;  %v4292_v42 = vadd.f32 %v1216_v33, %v6607_v24  ;;  %v6613_v5 = vld [vmem:[#allocation65_spill] sm:$0xff]  ;;  %v6615_v35 = vld [vmem:[#allocation71_spill] sm:$0xff]  ;;  %v6617_v45 = vld [vmem:[#allocation68_spill] sm:$0xff] }
  0xf4   : > { %v4295_v34 = vadd.f32 %v1217_v2, %v6609_v19  ;;  %v4298_v32 = vadd.f32 %v1218_v61, %v6611_v4  ;;  %v4301_v18 = vadd.f32 %v1219_v52, %v6613_v5  ;;  %v1266_v25 = vld [vmem:[#allocation2 + $0x99] sm:$0xff]  ;;  %v4304_v41 = vadd.f32 %v1220_v50, %v6615_v35  ;;  %v6621_v1 = vld [vmem:[#allocation75_spill] sm:$0xff]  ;;  %v1269_v58 = vld [vmem:[#allocation2 + $0xc1] sm:$0xff] }
  0xf5   : > { %6605 = vst [vmem:[#allocation76_spill] sm:$0xff] %v4286_v17  ;;  %v4307_v7 = vadd.f32 %v1221_v20, %v6617_v45  ;;  %v6619_v3 = vld [vmem:[#allocation72_spill] sm:$0xff]  ;;  %v4313_v55 = vadd.f32 %v1223_v9, %v6621_v1  ;;  %v1270_v48 = vld [vmem:[#allocation2 + $0xc9] sm:$0xff]  ;;  %v1272_v52 = vld [vmem:[#allocation2 + $0xe1] sm:$0xff]  ;;  %v1290_v50 = vmul.f32 %v4277_v57, %v1257_v54  ;;  %v1291_v20 = vmul.f32 %v4277_v57, %v1258_v53 }
  0xf6   : > { %6606 = vst [vmem:[#allocation80_spill] sm:$0xff] %v4289_v28  ;;  %v4310_v11 = vadd.f32 %v1222_v37, %v6619_v3  ;;  %v1271_v33 = vld [vmem:[#allocation2 + $0xd9] sm:$0xff]  ;;  %v6623_v2 = vld [vmem:[#allocation78_spill] sm:$0xff]  ;;  %v4321_v19 = vperm.slane %v6604_v12, 2  ;;  %v1276_v4 = vld [vmem:[#allocation2 + $0x111] sm:$0xff]  ;;  %v1292_v35 = vmul.f32 %v4277_v57, %v1259_v21  ;;  %v1293_v45 = vmul.f32 %v4277_v57, %v1260_v0 }
  0xf7   : > { %6608 = vst [vmem:[#allocation77_spill] sm:$0xff] %v4292_v42  ;;  %v4316_v61 = vadd.f32 %v1223_v9, %v6623_v2  ;;  %v1274_v24 = vld [vmem:[#allocation2 + $0xf9] sm:$0xff]  ;;  %v1275_v37 = vld [vmem:[#allocation2 + $0x109] sm:$0xff]  ;;  %v1277_v5 = vld [vmem:[#allocation2 + $0x121] sm:$0xff]  ;;  %v1294_v9 = vmul.f32 %v4277_v57, %v1261_v27  ;;  %v1295_v3 = vmul.f32 %v4277_v57, %v1262_v51  ;;  %v1296_v54 = vmul.f32 %v4277_v57, %v1263_v13 }
  0xf8   : > { %6610 = vst [vmem:[#allocation92_spill] sm:$0xff] %v4295_v34  ;;  %v1278_v1 = vld [vmem:[#allocation2 + $0x129] sm:$0xff]  ;;  %v1279_v2 = vld [vmem:[#allocation2 + $0x139] sm:$0xff]  ;;  %v1297_v53 = vmul.f32 %v4277_v57, %v1264_v26  ;;  %v1298_v12 = vmul.f32 %v4277_v57, %v1265_v29  ;;  %v1300_v0 = vmul.f32 %v4277_v57, %v1267_v40  ;;  %v1301_v27 = vmul.f32 %v4277_v57, %v1268_v16  ;;  %v1288_v42 = vld [vmem:[#allocation2 + $0x1a1] sm:$0xff] }
  0xf9   : > { %6612 = vst [vmem:[#allocation84_spill] sm:$0xff] %v4298_v32  ;;  %v1283_v21 = vld [vmem:[#allocation2 + $0x169] sm:$0xff]  ;;  %v1302_v51 = vmul.f32 %v4277_v57, %v1269_v58  ;;  %v1304_v26 = vmul.f32 %v4277_v57, %v1271_v33  ;;  %v1305_v29 = vmul.f32 %v4277_v57, %v1272_v52  ;;  %v1307_v32 = vmul.f32 %v4277_v57, %v1274_v24  ;;  %v1287_v34 = vld [vmem:[#allocation2 + $0x199] sm:$0xff] }
  0xfa   : > { %6614 = vst [vmem:[#allocation85_spill] sm:$0xff] %v4301_v18  ;;  %v1285_v18 = vld [vmem:[#allocation2 + $0x181] sm:$0xff]  ;;  %v1286_v13 = vld [vmem:[#allocation2 + $0x189] sm:$0xff]  ;;  %v1308_v40 = vmul.f32 %v4277_v57, %v1275_v37  ;;  %v1309_v16 = vmul.f32 %v4277_v57, %v1276_v4  ;;  %v1310_v58 = vmul.f32 %v4277_v57, %v1277_v5  ;;  %v1312_v28 = vmul.f32 %v4277_v57, %v1279_v2 }
  0xfb   : > { %6616 = vst [vmem:[#allocation33_spill] sm:$0xff] %v4304_v41  ;;  %v1284_v41 = vld [vmem:[#allocation2 + $0x171] sm:$0xff]  ;;  %v1316_v24 = vmul.f32 %v4277_v57, %v1283_v21  ;;  %v1318_v37 = vmul.f32 %v4277_v57, %v1285_v18  ;;  %v1319_v4 = vmul.f32 %v4277_v57, %v1286_v13  ;;  %v1320_v5 = vmul.f32 %v4277_v57, %v1287_v34 }
  0xfc   : > { %6618 = vst [vmem:[#allocation34_spill] sm:$0xff] %v4307_v7  ;;  %v1303_v7 = vmul.f32 %v4277_v57, %v1270_v48  ;;  %v1311_v48 = vmul.f32 %v4277_v57, %v1278_v1  ;;  %v1317_v17 = vmul.f32 %v4277_v57, %v1284_v41  ;;  %v1321_v1 = vmul.f32 %v4277_v57, %v1288_v42  ;;  %v1355_v42 = vld [vmem:[#allocation2 + $0x3a] sm:$0xff]  ;;  %v1356_v34 = vld [vmem:[#allocation2 + $0x4a] sm:$0xff] }
  0xfd   : > { %6620 = vst [vmem:[#allocation36_spill] sm:$0xff] %v4310_v11  ;;  %v1282_v11 = vld [vmem:[#allocation2 + $0x159] sm:$0xff]  ;;  %v4354_v2 = vadd.f32 %v1290_v50, %v4220_v38  ;;  %v4366_v18 = vadd.f32 %v1294_v9, %v4232_v59  ;;  %v4369_v41 = vadd.f32 %v1295_v3, %v4235_v36  ;;  %v4375_v38 = vadd.f32 %v1297_v53, %v4241_v47  ;;  %v1358_v50 = vld [vmem:[#allocation2 + $0x62] sm:$0xff] }
  0xfe   : > { %6622 = vst [vmem:[#allocation38_spill] sm:$0xff] %v4313_v55  ;;  %v1281_v55 = vld [vmem:[#allocation2 + $0x151] sm:$0xff]  ;;  %v4387_v59 = vadd.f32 %v1301_v27, %v4253_v14  ;;  %v4390_v36 = vadd.f32 %v1302_v51, %v4256_v63  ;;  %v4405_v14 = vadd.f32 %v1307_v32, %v4271_v8  ;;  %v1363_v53 = vld [vmem:[#allocation2 + $0x9a] sm:$0xff] }
  0xff   : > { %6624 = vst [vmem:[#allocation41_spill] sm:$0xff] %v4316_v61  ;;  %v1280_v61 = vld [vmem:[#allocation2 + $0x141] sm:$0xff]  ;;  %v1314_v52 = vmul.f32 %v4277_v57, %v1281_v55  ;;  %v4363_v55 = vadd.f32 %v1293_v45, %v4229_v31  ;;  %v4384_v31 = vadd.f32 %v1300_v0, %v4250_v49  ;;  %v1354_v47 = vld [vmem:[#allocation2 + $0x32] sm:$0xff] }
 0x100   : > { %6625 = vst [vmem:[#allocation42_spill] sm:$0xff] %v4321_v19  ;;  %v1299_v19 = vmul.f32 %v4277_v57, %v1266_v25  ;;  %v1306_v25 = vmul.f32 %v4277_v57, %v1273_v15  ;;  %v1313_v33 = vmul.f32 %v4277_v57, %v1280_v61  ;;  %v1315_v15 = vmul.f32 %v4277_v57, %v1282_v11  ;;  %v1357_v63 = vld [vmem:[#allocation2 + $0x52] sm:$0xff]  ;;  %v6630_v45 = vld [vmem:[#allocation77_spill] sm:$0xff] }
 0x101   : > { %v4357_v61 = vadd.f32 %v1291_v20, %v4223_v43  ;;  %v4360_v11 = vadd.f32 %v1292_v35, %v4226_v60  ;;  %v4372_v57 = vadd.f32 %v1296_v54, %v4238_v62  ;;  %v4378_v43 = vadd.f32 %v1298_v12, %v4244_v23  ;;  %v1361_v35 = vld [vmem:[#allocation2 + $0x82] sm:$0xff]  ;;  %v6628_v8 = vld [vmem:[#allocation80_spill] sm:$0xff]  ;;  %v1364_v12 = vld [vmem:[#allocation2 + $0xaa] sm:$0xff] }
 0x102   : > { %v4381_v60 = vadd.f32 %v1299_v19, %v4247_v56  ;;  %v4393_v62 = vadd.f32 %v1303_v7, %v4259_v46  ;;  %v4396_v23 = vadd.f32 %v1304_v26, %v4262_v22  ;;  %v4399_v56 = vadd.f32 %v1305_v29, %v4265_v30  ;;  %v6626_v30 = vld [vmem:[#allocation76_spill] sm:$0xff]  ;;  %v6636_v21 = vld [vmem:[#allocation85_spill] sm:$0xff] }
 0x103   : > { %v4402_v49 = vadd.f32 %v1306_v25, %v4268_v10  ;;  %v4408_v46 = vadd.f32 %v1308_v40, %v4274_v39  ;;  %v4411_v7 = vadd.f32 %v1309_v16, %v4280_v6  ;;  %v4414_v22 = vadd.f32 %v1310_v58, %v4283_v44  ;;  %v1359_v10 = vld [vmem:[#allocation2 + $0x6a] sm:$0xff]  ;;  %v1360_v19 = vld [vmem:[#allocation2 + $0x7a] sm:$0xff]  ;;  %v1362_v44 = vld [vmem:[#allocation2 + $0x92] sm:$0xff] }
 0x104   : > { %v4417_v20 = vadd.f32 %v1311_v48, %v6626_v30  ;;  %v4420_v32 = vadd.f32 %v1312_v28, %v6628_v8  ;;  %v4423_v9 = vadd.f32 %v1313_v33, %v6630_v45  ;;  %v6632_v39 = vld [vmem:[#allocation92_spill] sm:$0xff]  ;;  %v4432_v0 = vadd.f32 %v1316_v24, %v6636_v21  ;;  %v6638_v27 = vld [vmem:[#allocation33_spill] sm:$0xff]  ;;  %v6640_v28 = vld [vmem:[#allocation34_spill] sm:$0xff] }
 0x105   : > { %v4426_v3 = vadd.f32 %v1314_v52, %v6632_v39  ;;  %v6634_v6 = vld [vmem:[#allocation84_spill] sm:$0xff]  ;;  %v4435_v51 = vadd.f32 %v1317_v17, %v6638_v27  ;;  %v4438_v13 = vadd.f32 %v1318_v37, %v6640_v28  ;;  %v1366_v40 = vld [vmem:[#allocation2 + $0xc2] sm:$0xff]  ;;  %v1367_v16 = vld [vmem:[#allocation2 + $0xca] sm:$0xff] }
 0x106   : > { %6627 = vst [vmem:[#allocation46_spill] sm:$0xff] %v4417_v20  ;;  %v4429_v54 = vadd.f32 %v1315_v15, %v6634_v6  ;;  %v6642_v26 = vld [vmem:[#allocation36_spill] sm:$0xff]  ;;  %v6644_v58 = vld [vmem:[#allocation38_spill] sm:$0xff]  ;;  %v6646_v33 = vld [vmem:[#allocation41_spill] sm:$0xff] }
 0x107   : > { %6629 = vst [vmem:[#allocation51_spill] sm:$0xff] %v4420_v32  ;;  %v4441_v29 = vadd.f32 %v1319_v4, %v6642_v26  ;;  %v1365_v25 = vld [vmem:[#allocation2 + $0xb2] sm:$0xff]  ;;  %v4444_v48 = vadd.f32 %v1320_v5, %v6644_v58  ;;  %v4447_v52 = vadd.f32 %v1321_v1, %v6646_v33  ;;  %v1368_v15 = vld [vmem:[#allocation2 + $0xda] sm:$0xff]  ;;  %v1369_v24 = vld [vmem:[#allocation2 + $0xe2] sm:$0xff] }
 0x108   : > { %6631 = vst [vmem:[#allocation55_spill] sm:$0xff] %v4423_v9  ;;  %v1370_v30 = vld [vmem:[#allocation2 + $0xf2] sm:$0xff]  ;;  %v6648_v17 = vld [vmem:[#allocation42_spill] sm:$0xff]  ;;  %v1371_v45 = vld [vmem:[#allocation2 + $0xfa] sm:$0xff] }
 0x109   : > { %6633 = vst [vmem:[#allocation60_spill] sm:$0xff] %v4426_v3  ;;  %v1387_v8 = vmul.f32 %v6648_v17, %v1354_v47  ;;  %v1388_v37 = vmul.f32 %v6648_v17, %v1355_v42  ;;  %v1372_v39 = vld [vmem:[#allocation2 + $0x10a] sm:$0xff]  ;;  %v1373_v4 = vld [vmem:[#allocation2 + $0x112] sm:$0xff]  ;;  %v1389_v6 = vmul.f32 %v6648_v17, %v1356_v34  ;;  %v1390_v21 = vmul.f32 %v6648_v17, %v1357_v63  ;;  %v1374_v1 = vld [vmem:[#allocation2 + $0x122] sm:$0xff] }
 0x10a   : > { %6635 = vst [vmem:[#allocation70_spill] sm:$0xff] %v4429_v54  ;;  %v1391_v5 = vmul.f32 %v6648_v17, %v1358_v50  ;;  %v1392_v27 = vmul.f32 %v6648_v17, %v1359_v10  ;;  %v1375_v28 = vld [vmem:[#allocation2 + $0x12a] sm:$0xff]  ;;  %v1376_v26 = vld [vmem:[#allocation2 + $0x13a] sm:$0xff]  ;;  %v1393_v58 = vmul.f32 %v6648_v17, %v1360_v19  ;;  %v1394_v47 = vmul.f32 %v6648_v17, %v1361_v35  ;;  %v1385_v54 = vld [vmem:[#allocation2 + $0x1a2] sm:$0xff] }
 0x10b   : > { %6637 = vst [vmem:[#allocation88_spill] sm:$0xff] %v4432_v0  ;;  %v1395_v42 = vmul.f32 %v6648_v17, %v1362_v44  ;;  %v1396_v33 = vmul.f32 %v6648_v17, %v1363_v53  ;;  %v1379_v34 = vld [vmem:[#allocation2 + $0x15a] sm:$0xff]  ;;  %v1397_v63 = vmul.f32 %v6648_v17, %v1364_v12  ;;  %v1398_v50 = vmul.f32 %v6648_v17, %v1365_v25  ;;  %v6649_v32 = vld [vmem:[#allocation30_spill] sm:$0xff] }
 0x10c   : > { %6639 = vst [vmem:[#allocation61_spill] sm:$0xff] %v4435_v51  ;;  %v1399_v10 = vmul.f32 %v6648_v17, %v1366_v40  ;;  %v1381_v51 = vld [vmem:[#allocation2 + $0x172] sm:$0xff]  ;;  %v1401_v19 = vmul.f32 %v6648_v17, %v1368_v15  ;;  %v1402_v35 = vmul.f32 %v6648_v17, %v1369_v24  ;;  %v1403_v44 = vmul.f32 %v6648_v17, %v1370_v30  ;;  %v1384_v0 = vld [vmem:[#allocation2 + $0x19a] sm:$0xff] }
 0x10d   : > { %6641 = vst [vmem:[#allocation62_spill] sm:$0xff] %v4438_v13  ;;  %v1380_v13 = vld [vmem:[#allocation2 + $0x16a] sm:$0xff]  ;;  %v1404_v53 = vmul.f32 %v6648_v17, %v1371_v45  ;;  %v1405_v12 = vmul.f32 %v6648_v17, %v1372_v39  ;;  %v1406_v25 = vmul.f32 %v6648_v17, %v1373_v4  ;;  %v1407_v40 = vmul.f32 %v6648_v17, %v1374_v1  ;;  %v4483_v1 = vld [vmem:[%s6236_s2] ss:$0 sm:$0xff] }
 0x10e   : > { %6643 = vst [vmem:[#allocation26_spill] sm:$0xff] %v4441_v29  ;;  %v1400_v29 = vmul.f32 %v6648_v17, %v1367_v16  ;;  %v1408_v16 = vmul.f32 %v6648_v17, %v1375_v28  ;;  %v1409_v3 = vmul.f32 %v6648_v17, %v1376_v26  ;;  %v1412_v30 = vmul.f32 %v6648_v17, %v1379_v34  ;;  %v6650_v28 = vld [vmem:[#allocation54_spill] sm:$0xff] }
 0x10f   : > { %6645 = vst [vmem:[#allocation40_spill] sm:$0xff] %v4444_v48  ;;  %v1378_v48 = vld [vmem:[#allocation2 + $0x152] sm:$0xff]  ;;  %v1413_v45 = vmul.f32 %v6648_v17, %v1380_v13  ;;  %v1414_v9 = vmul.f32 %v6648_v17, %v1381_v51  ;;  %v1415_v39 = vmul.f32 %v6648_v17, %v6649_v32  ;;  %v1419_v4 = vadd.f32 %v1387_v8, %v4354_v2 }
 0x110   : > { %6647 = vst [vmem:[#allocation49_spill] sm:$0xff] %v4447_v52  ;;  %v1377_v52 = vld [vmem:[#allocation2 + $0x142] sm:$0xff]  ;;  %v1411_v24 = vmul.f32 %v6648_v17, %v1378_v48  ;;  %v1417_v48 = vmul.f32 %v6648_v17, %v1384_v0  ;;  %v1418_v26 = vmul.f32 %v6648_v17, %v1385_v54  ;;  %v1420_v13 = vadd.f32 %v1388_v37, %v4357_v61 }
 0x111   : > { %v1410_v15 = vmul.f32 %v6648_v17, %v1377_v52  ;;  %v1416_v52 = vmul.f32 %v6648_v17, %v6650_v28  ;;  %v1421_v51 = vadd.f32 %v1389_v6, %v4360_v11  ;;  %v1422_v32 = vadd.f32 %v1390_v21, %v4363_v55  ;;  %v6651_v6 = vld [vmem:[#allocation46_spill] sm:$0xff]  ;;  %v6653_v21 = vld [vmem:[#allocation55_spill] sm:$0xff] }
 0x112   : > { %v1423_v2 = vadd.f32 %v1391_v5, %v4366_v18  ;;  %v1424_v8 = vadd.f32 %v1392_v27, %v4369_v41  ;;  %v1425_v34 = vadd.f32 %v1393_v58, %v4372_v57  ;;  %v1426_v20 = vadd.f32 %v1394_v47, %v4375_v38  ;;  %v4505_v18 = vld [vmem:[%s6237_s3] ss:$0 sm:$0xff]  ;;  %v6655_v5 = vld [vmem:[#allocation60_spill] sm:$0xff] }
 0x113   : > { %v1427_v28 = vadd.f32 %v1395_v42, %v4378_v43  ;;  %v1428_v0 = vadd.f32 %v1396_v33, %v4381_v60  ;;  %v1429_v54 = vadd.f32 %v1397_v63, %v4384_v31  ;;  %v1430_v61 = vadd.f32 %v1398_v50, %v4387_v59  ;;  %v6659_v33 = vld [vmem:[#allocation61_spill] sm:$0xff] }
 0x114   : > { %v1431_v11 = vadd.f32 %v1399_v10, %v4390_v36  ;;  %v1455_v55 = vmul.f32 %v4483_v1, %v1419_v4  ;;  %v1432_v41 = vadd.f32 %v1400_v29, %v4393_v62  ;;  %v1433_v57 = vadd.f32 %v1401_v19, %v4396_v23  ;;  %v6661_v19 = vld [vmem:[#allocation62_spill] sm:$0xff] }
 0x115   : > { %v1434_v38 = vadd.f32 %v1402_v35, %v4399_v56  ;;  %v1456_v43 = vmul.f32 %v4483_v1, %v1420_v13  ;;  %v1435_v60 = vadd.f32 %v1403_v44, %v4402_v49  ;;  %v1436_v31 = vadd.f32 %v1404_v53, %v4405_v14  ;;  %v6652_v56 = vld [vmem:[#allocation51_spill] sm:$0xff]  ;;  %v6662_v44 = vld [vmem:[#allocation26_spill] sm:$0xff] }
 0x116   : > { %v1437_v59 = vadd.f32 %v1405_v12, %v4408_v46  ;;  %v1457_v36 = vmul.f32 %v4483_v1, %v1421_v51  ;;  %v1438_v17 = vadd.f32 %v1406_v25, %v4411_v7  ;;  %v1439_v37 = vadd.f32 %v1407_v40, %v4414_v22  ;;  %v6656_v22 = vld [vmem:[#allocation70_spill] sm:$0xff]  ;;  %v6664_v40 = vld [vmem:[#allocation40_spill] sm:$0xff] }
 0x117   : > { %v4518_v62 = vadd.f32 %v1408_v16, %v6651_v6  ;;  %v1458_v23 = vmul.f32 %v4483_v1, %v1422_v32  ;;  %v4522_v29 = vadd.f32 %v1409_v3, %v6652_v56  ;;  %v4525_v49 = vadd.f32 %v1410_v15, %v6653_v21  ;;  %v6658_v3 = vld [vmem:[#allocation88_spill] sm:$0xff] }
 0x118   : > { %v1459_v14 = vmul.f32 %v4483_v1, %v1423_v2  ;;  %v4529_v46 = vadd.f32 %v4505_v18, %v1455_v55  ;;  %v4532_v7 = vadd.f32 %v1411_v24, %v6655_v5  ;;  %v4535_v27 = vadd.f32 %v1412_v30, %v6656_v22  ;;  %v6666_v30 = vld [vmem:[#allocation49_spill] sm:$0xff] }
 0x119   : > { %v1460_v58 = vmul.f32 %v4483_v1, %v1424_v8  ;;  %v4539_v47 = vadd.f32 %v4505_v18, %v1456_v43  ;;  %v4542_v42 = vadd.f32 %v1413_v45, %v6658_v3  ;;  %v4545_v63 = vadd.f32 %v1414_v9, %v6659_v33 }
 0x11a   : > { %6654 = vst [vmem:[#allocation44_spill] sm:$0xff] %v4529_v46  ;;  %v1461_v50 = vmul.f32 %v4483_v1, %v1425_v34  ;;  %v4549_v10 = vadd.f32 %v4505_v18, %v1457_v36  ;;  %v4552_v35 = vadd.f32 %v1415_v39, %v6661_v19  ;;  %v4555_v53 = vadd.f32 %v1416_v52, %v6662_v44 }
 0x11b   : > { %6657 = vst [vmem:[#allocation58_spill] sm:$0xff] %v4539_v47  ;;  %v1462_v12 = vmul.f32 %v4483_v1, %v1426_v20  ;;  %v4559_v25 = vadd.f32 %v4505_v18, %v1458_v23  ;;  %v4562_v16 = vadd.f32 %v1417_v48, %v6664_v40  ;;  %v1463_v9 = vmul.f32 %v4483_v1, %v1427_v28 }
 0x11c   : > { %6660 = vst [vmem:[#allocation50_spill] sm:$0xff] %v4549_v10  ;;  %v4566_v15 = vadd.f32 %v4505_v18, %v1459_v14  ;;  %v2762_v24 = vmul.f32 -1.442695, %v4529_v46  ;;  %v4570_v45 = vadd.f32 %v1418_v26, %v6666_v30  ;;  %v1464_v39 = vmul.f32 %v4483_v1, %v1428_v0 }
 0x11d   : > { %6663 = vst [vmem:[#allocation59_spill] sm:$0xff] %v4559_v25  ;;  %v4574_v20 = vadd.f32 %v4505_v18, %v1460_v58  ;;  %v2763_v4 = vmul.f32 -1.442695, %v4539_v47  ;;  %v1465_v52 = vmul.f32 %v4483_v1, %v1429_v54  ;;  %v1466_v48 = vmul.f32 %v4483_v1, %v1430_v61 }
 0x11e   : > { %6665 = vst [vmem:[#allocation69_spill] sm:$0xff] %v4566_v15  ;;  %v4580_v13 = vadd.f32 %v4505_v18, %v1461_v50  ;;  %v2764_v51 = vmul.f32 -1.442695, %v4549_v10  ;;  %v1467_v32 = vmul.f32 %v4483_v1, %v1431_v11  ;;  %v1468_v26 = vmul.f32 %v4483_v1, %v1432_v41 }
 0x11f   : > { %6667 = vst [vmem:[#allocation3_spill] sm:$0xff] %v4574_v20  ;;  %v4586_v2 = vadd.f32 %v4505_v18, %v1462_v12  ;;  %v2765_v8 = vmul.f32 -1.442695, %v4559_v25  ;;  %v1469_v34 = vmul.f32 %v4483_v1, %v1433_v57  ;;  %v4591_v28 = vadd.f32 %v4505_v18, %v1463_v9 }
 0x120   : > { %6668 = vst [vmem:[#allocation4_spill] sm:$0xff] %v4580_v13  ;;  %2957 = vpow2.f32 %v2762_v24  ;;  %v2766_v0 = vmul.f32 -1.442695, %v4566_v15  ;;  %v1470_v54 = vmul.f32 %v4483_v1, %v1434_v38  ;;  %v4596_v61 = vadd.f32 %v4505_v18, %v1464_v39 }
 0x121   : > { %6669 = vst [vmem:[#allocation5_spill] sm:$0xff] %v4586_v2  ;;  %2959 = vpow2.f32 %v2763_v4  ;;  %v2767_v11 = vmul.f32 -1.442695, %v4574_v20  ;;  %v1471_v55 = vmul.f32 %v4483_v1, %v1435_v60  ;;  %v4601_v41 = vadd.f32 %v4505_v18, %v1465_v52 }
 0x122   : > { %6670 = vst [vmem:[#allocation6_spill] sm:$0xff] %v4591_v28  ;;  %2961 = vpow2.f32 %v2764_v51  ;;  %v2768_v57 = vmul.f32 -1.442695, %v4580_v13  ;;  %v1472_v43 = vmul.f32 %v4483_v1, %v1436_v31  ;;  %v4606_v36 = vadd.f32 %v4505_v18, %v1466_v48 }
 0x123   : > { %6671 = vst [vmem:[#allocation7_spill] sm:$0xff] %v4596_v61  ;;  %2963 = vpow2.f32 %v2765_v8  ;;  %v2769_v38 = vmul.f32 -1.442695, %v4586_v2  ;;  %v1473_v6 = vmul.f32 %v4483_v1, %v1437_v59  ;;  %v4611_v23 = vadd.f32 %v4505_v18, %v1467_v32 }
 0x124   : > { %6672 = vst [vmem:[#allocation8_spill] sm:$0xff] %v4601_v41  ;;  %2965 = vpow2.f32 %v2766_v0  ;;  %v2770_v60 = vmul.f32 -1.442695, %v4591_v28  ;;  %v1474_v56 = vmul.f32 %v4483_v1, %v1438_v17  ;;  %v4616_v21 = vadd.f32 %v4505_v18, %v1468_v26 }
 0x125   : > { %6673 = vst [vmem:[#allocation9_spill] sm:$0xff] %v4606_v36  ;;  %2967 = vpow2.f32 %v2767_v11  ;;  %v2771_v31 = vmul.f32 -1.442695, %v4596_v61  ;;  %v1475_v5 = vmul.f32 %v4483_v1, %v1439_v37  ;;  %v4623_v59 = vadd.f32 %v4505_v18, %v1469_v34 }
 0x126   : > { %6674 = vst [vmem:[#allocation10_spill] sm:$0xff] %v4611_v23  ;;  %v4619_v14 = vpop.eup %2957  ;;  %2969 = vpow2.f32 %v2768_v57  ;;  %v2772_v22 = vmul.f32 -1.442695, %v4601_v41  ;;  %v1476_v17 = vmul.f32 %v4483_v1, %v4518_v62  ;;  %v4631_v3 = vadd.f32 %v4505_v18, %v1470_v54 }
 0x127   : > { %6675 = vst [vmem:[#allocation11_spill] sm:$0xff] %v4616_v21  ;;  %v4626_v58 = vpop.eup %2959  ;;  %2971 = vpow2.f32 %v2769_v38  ;;  %v2773_v33 = vmul.f32 -1.442695, %v4606_v36  ;;  %v1477_v37 = vmul.f32 %v4483_v1, %v4522_v29  ;;  %v4639_v19 = vadd.f32 %v4505_v18, %v1471_v55 }
 0x128   : > { %6676 = vst [vmem:[#allocation12_spill] sm:$0xff] %v4623_v59  ;;  %v4634_v50 = vpop.eup %2961  ;;  %2973 = vpow2.f32 %v2770_v60  ;;  %v2774_v44 = vmul.f32 -1.442695, %v4611_v23  ;;  %v1478_v62 = vmul.f32 %v4483_v1, %v4525_v49  ;;  %v4647_v40 = vadd.f32 %v4505_v18, %v1472_v43 }
 0x129   : > { %6677 = vst [vmem:[#allocation13_spill] sm:$0xff] %v4631_v3  ;;  %v4642_v12 = vpop.eup %2963  ;;  %2975 = vpow2.f32 %v2771_v31  ;;  %v2775_v9 = vmul.f32 -1.442695, %v4616_v21  ;;  %v1479_v29 = vmul.f32 %v4483_v1, %v4532_v7  ;;  %v4655_v30 = vadd.f32 %v4505_v18, %v1473_v6 }
 0x12a   : > { %6678 = vst [vmem:[#allocation14_spill] sm:$0xff] %v4639_v19  ;;  %v4650_v24 = vpop.eup %2965  ;;  %2977 = vpow2.f32 %v2772_v22  ;;  %v2776_v39 = vmul.f32 -1.442695, %v4623_v59  ;;  %v1480_v49 = vmul.f32 %v4483_v1, %v4535_v27  ;;  %v4663_v52 = vadd.f32 %v4505_v18, %v1474_v56 }
 0x12b   : > { %6679 = vst [vmem:[#allocation15_spill] sm:$0xff] %v4647_v40  ;;  %v4658_v4 = vpop.eup %2967  ;;  %2979 = vpow2.f32 %v2773_v33  ;;  %v2777_v48 = vmul.f32 -1.442695, %v4631_v3  ;;  %v1481_v7 = vmul.f32 %v4483_v1, %v4542_v42  ;;  %v4671_v32 = vadd.f32 %v4505_v18, %v1475_v5 }
 0x12c   : > { %6680 = vst [vmem:[#allocation16_spill] sm:$0xff] %v4655_v30  ;;  %v4666_v51 = vpop.eup %2969  ;;  %2981 = vpow2.f32 %v2774_v44  ;;  %v2778_v26 = vmul.f32 -1.442695, %v4639_v19  ;;  %v1482_v27 = vmul.f32 %v4483_v1, %v4545_v63  ;;  %v4679_v34 = vadd.f32 %v4505_v18, %v1476_v17 }
 0x12d   : > { %6681 = vst [vmem:[#allocation17_spill] sm:$0xff] %v4663_v52  ;;  %v4674_v8 = vpop.eup %2971  ;;  %2983 = vpow2.f32 %v2775_v9  ;;  %v2779_v0 = vmul.f32 -1.442695, %v4647_v40  ;;  %v1483_v42 = vmul.f32 %v4483_v1, %v4552_v35  ;;  %v4687_v11 = vadd.f32 %v4505_v18, %v1477_v37 }
 0x12e   : > { %6682 = vst [vmem:[#allocation18_spill] sm:$0xff] %v4671_v32  ;;  %v4682_v54 = vpop.eup %2973  ;;  %2985 = vpow2.f32 %v2776_v39  ;;  %v2780_v55 = vmul.f32 -1.442695, %v4655_v30  ;;  %v1484_v63 = vmul.f32 %v4483_v1, %v4555_v53  ;;  %v4695_v43 = vadd.f32 %v4505_v18, %v1478_v62 }
 0x12f   : > { %6683 = vst [vmem:[#allocation19_spill] sm:$0xff] %v4679_v34  ;;  %v4690_v57 = vpop.eup %2975  ;;  %2987 = vpow2.f32 %v2777_v48  ;;  %v2781_v38 = vmul.f32 -1.442695, %v4663_v52  ;;  %v1485_v35 = vmul.f32 %v4483_v1, %v4562_v16  ;;  %v4703_v60 = vadd.f32 %v4505_v18, %v1479_v29 }
 0x130   : > { %6684 = vst [vmem:[#allocation20_spill] sm:$0xff] %v4687_v11  ;;  %v4698_v6 = vpop.eup %2977  ;;  %2989 = vpow2.f32 %v2778_v26  ;;  %v2782_v56 = vmul.f32 -1.442695, %v4671_v32  ;;  %v1486_v53 = vmul.f32 %v4483_v1, %v4570_v45  ;;  %v4711_v5 = vadd.f32 %v4505_v18, %v1480_v49 }
 0x131   : > { %6685 = vst [vmem:[#allocation21_spill] sm:$0xff] %v4695_v43  ;;  %v4706_v31 = vpop.eup %2979  ;;  %2991 = vpow2.f32 %v2779_v0  ;;  %v2783_v22 = vmul.f32 -1.442695, %v4679_v34  ;;  %v4717_v16 = vadd.f32 %v4505_v18, %v1481_v7  ;;  %v2784_v33 = vmul.f32 -1.442695, %v4687_v11 }
 0x132   : > { %6686 = vst [vmem:[#allocation22_spill] sm:$0xff] %v4703_v60  ;;  %v4714_v17 = vpop.eup %2981  ;;  %2993 = vpow2.f32 %v2780_v55  ;;  %v4721_v44 = vadd.f32 %v4505_v18, %v1482_v27  ;;  %v2785_v1 = vmul.f32 -1.442695, %v4695_v43  ;;  %v4727_v62 = vadd.f32 %v4505_v18, %v1483_v42 }
 0x133   : > { %6687 = vst [vmem:[#allocation23_spill] sm:$0xff] %v4711_v5  ;;  %v2984_v37 = vpop.eup %2983  ;;  %2995 = vpow2.f32 %v2781_v38  ;;  %v4730_v9 = vadd.f32 %v4505_v18, %v1484_v63  ;;  %v2786_v29 = vmul.f32 -1.442695, %v4703_v60  ;;  %v4736_v49 = vadd.f32 %v4505_v18, %v1485_v35 }
 0x134   : > { %6688 = vst [vmem:[#allocation24_spill] sm:$0xff] %v4717_v16  ;;  %v4724_v45 = vpop.eup %2985  ;;  %2997 = vpow2.f32 %v2782_v56  ;;  %v4739_v48 = vadd.f32 %v4505_v18, %v1486_v53  ;;  %v2787_v7 = vmul.f32 -1.442695, %v4711_v5  ;;  %v2788_v27 = vmul.f32 -1.442695, %v4717_v16 }
 0x135   : > { %6689 = vst [vmem:[#allocation45_spill] sm:$0xff] %v4721_v44  ;;  %v4733_v39 = vpop.eup %2987  ;;  %2999 = vpow2.f32 %v2783_v22  ;;  %v2789_v42 = vmul.f32 -1.442695, %v4721_v44  ;;  %v4747_v55 = vadd.f32 1.0, %v4619_v14  ;;  %v2790_v18 = vmul.f32 -1.442695, %v4727_v62 }
 0x136   : > { %6690 = vst [vmem:[#allocation31_spill] sm:$0xff] %v4727_v62  ;;  %v2990_v26 = vpop.eup %2989  ;;  %3001 = vpow2.f32 %v2784_v33  ;;  %v2791_v38 = vmul.f32 -1.442695, %v4730_v9  ;;  %v2792_v56 = vmul.f32 -1.442695, %v4736_v49  ;;  %v4758_v14 = vadd.f32 1.0, %v4634_v50 }
 0x137   : > { %6691 = vst [vmem:[#allocation28_spill] sm:$0xff] %v4730_v9  ;;  %v4743_v0 = vpop.eup %2991  ;;  %3003 = vpow2.f32 %v2785_v1  ;;  %v2793_v53 = vmul.f32 -1.442695, %v4739_v48  ;;  %v1662_v22 = vand.u32 2147483648, %v4747_v55  ;;  %v4755_v1 = vadd.f32 1.0, %v4626_v58 }
 0x138   : > { %6692 = vst [vmem:[#allocation32_spill] sm:$0xff] %v4736_v49  ;;  %v2994_v63 = vpop.eup %2993  ;;  %3005 = vpow2.f32 %v2786_v29  ;;  %v4761_v29 = vadd.f32 1.0, %v4642_v12  ;;  %v4770_v49 = vadd.f32 1.0, %v4666_v51  ;;  %v4773_v58 = vadd.f32 1.0, %v4674_v8 }
 0x139   : > { %6693 = vst [vmem:[#allocation35_spill] sm:$0xff] %v4739_v48  ;;  %v2996_v35 = vpop.eup %2995  ;;  %3007 = vpow2.f32 %v2787_v7  ;;  %v4764_v7 = vadd.f32 1.0, %v4650_v24  ;;  %v4767_v48 = vadd.f32 1.0, %v4658_v4  ;;  %v1677_v12 = vand.u32 2147483648, %v4755_v1 }
 0x13a   : > { %v2998_v33 = vpop.eup %2997  ;;  %3009 = vpow2.f32 %v2788_v27  ;;  %v4778_v24 = vadd.f32 1.0, %v4682_v54  ;;  %v1692_v4 = vand.u32 2147483648, %v4758_v14  ;;  %v4784_v44 = vadd.f32 1.0, %v4690_v57 }
 0x13b   : > { %v3000_v9 = vpop.eup %2999  ;;  %3011 = vpow2.f32 %v2789_v42  ;;  %v4780_v42 = vor.u32 1.1754944e-38, %v1662_v22  ;;  %v4787_v8 = vadd.f32 1.0, %v4698_v6  ;;  %v1707_v22 = vand.u32 2147483648, %v4761_v29 }
 0x13c   : > { %v3002_v27 = vpop.eup %3001  ;;  %3013 = vpow2.f32 %v2790_v18  ;;  %v4798_v57 = vadd.f32 1.0, %v4714_v17  ;;  %v4800_v6 = vadd.f32 1.0, %v2984_v37  ;;  %v4802_v5 = vor.u32 1.1754944e-38, %v1677_v12 }
 0x13d   : > { %v3004_v62 = vpop.eup %3003  ;;  %3015 = vpow2.f32 %v2791_v38  ;;  %v4792_v38 = vadd.f32 1.0, %v4706_v31  ;;  %v4805_v60 = vor.u32 1.1754944e-38, %v1692_v4  ;;  %v1722_v54 = vand.u32 2147483648, %v4764_v7 }
 0x13e   : > { %v3006_v51 = vpop.eup %3005  ;;  %3017 = vrcp.f32 %v4747_v55  ;;  %v4811_v17 = vadd.f32 1.0, %v4724_v45  ;;  %v4814_v37 = vadd.f32 1.0, %v4733_v39  ;;  %v4819_v4 = vadd.f32 1.0, %v2990_v26 }
 0x13f   : > { %v3008_v50 = vpop.eup %3007  ;;  %3019 = vrcp.f32 %v4755_v1  ;;  %v4821_v34 = vor.u32 1.1754944e-38, %v1707_v22  ;;  %v1737_v31 = vand.u32 2147483648, %v4767_v48  ;;  %v4828_v45 = vadd.f32 1.0, %v4743_v0 }
 0x140   : > { %v3010_v16 = vpop.eup %3009  ;;  %3021 = vrcp.f32 %v4758_v14  ;;  %v1752_v39 = vand.u32 2147483648, %v4770_v49  ;;  %v4836_v26 = vadd.f32 1.0, %v2996_v35  ;;  %v4838_v22 = vor.u32 1.1754944e-38, %v1722_v54 }
 0x141   : > { %v3012_v18 = vpop.eup %3011  ;;  %3023 = vrcp.f32 %v4761_v29  ;;  %v4844_v0 = vadd.f32 1.0, %v2998_v33  ;;  %v4853_v54 = vor.u32 1.1754944e-38, %v1737_v31  ;;  %v1767_v52 = vand.u32 2147483648, %v4773_v58 }
 0x142   : > { %v3014_v43 = vpop.eup %3013  ;;  %3025 = vpow2.f32 %v2792_v56  ;;  %v4830_v56 = vadd.f32 1.0, %v2994_v63  ;;  %6695 = vst [vmem:[#allocation39_spill] sm:$0xff] %v4836_v26  ;;  %v4846_v63 = vadd.f32 1.0, %v3000_v9  ;;  %v4857_v59 = vadd.f32 1.0, %v3002_v27 }
 0x143   : > { %v4817_v11 = vpop.eup %3015  ;;  %3027 = vrcp.f32 %v4764_v7  ;;  %6696 = vst [vmem:[#allocation43_spill] sm:$0xff] %v4844_v0  ;;  %v4863_v33 = vor.u32 1.1754944e-38, %v1752_v39  ;;  %v4867_v21 = vadd.f32 1.0, %v3006_v51  ;;  %vm1656_vm0 = vweird.f32 %v4747_v55 }
 0x144   : > { %v4825_v32 = vpop.eup %3017  ;;  %6694 = vst [vmem:[#allocation37_spill] sm:$0xff] %v4830_v56  ;;  %3029 = vrcp.f32 %v4767_v48  ;;  %v1782_v27 = vand.u32 2147483648, %v4778_v24  ;;  %v4876_v36 = vadd.f32 1.0, %v3008_v50  ;;  %vm1671_vm1 = vweird.f32 %v4755_v1 }
 0x145   : > { %v4834_v12 = vpop.eup %3019  ;;  %3031 = vrcp.f32 %v4770_v49  ;;  %6697 = vst [vmem:[#allocation47_spill] sm:$0xff] %v4846_v63  ;;  %v1652_v35 = vmul.f32 %v4825_v32, %v4747_v55  ;;  %v4885_v61 = vadd.f32 1.0, %v3010_v16  ;;  %vm1686_vm2 = vweird.f32 %v4758_v14 }
 0x146   : > { %v4842_v30 = vpop.eup %3021  ;;  %3033 = vpow2.f32 %v2793_v53  ;;  %6698 = vst [vmem:[#allocation48_spill] sm:$0xff] %v4857_v59  ;;  %v4859_v53 = vadd.f32 1.0, %v3004_v62  ;;  %v1667_v9 = vmul.f32 %v4834_v12, %v4755_v1  ;;  %v4888_v28 = vor.u32 1.1754944e-38, %v1767_v52 }
 0x147   : > { %v4849_v19 = vpop.eup %3023  ;;  %3035 = vrcp.f32 %v4773_v58  ;;  %6700 = vst [vmem:[#allocation53_spill] sm:$0xff] %v4867_v21  ;;  %v1682_v31 = vmul.f32 %v4842_v30, %v4758_v14  ;;  %v1653_v23 = vsub.f32 1.0, %v1652_v35  ;;  %v4891_v2 = vadd.f32 1.0, %v3012_v18 }
 0x148   : > { %v3026_v3 = vpop.eup %3025  ;;  %6699 = vst [vmem:[#allocation52_spill] sm:$0xff] %v4859_v53  ;;  %v1697_v39 = vmul.f32 %v4849_v19, %v4761_v29  ;;  %3037 = vrcp.f32 %v4778_v24  ;;  %v1668_v13 = vsub.f32 1.0, %v1667_v9  ;;  %vm1701_vm3 = vweird.f32 %v4761_v29 }
 0x149   : > { %v4865_v40 = vpop.eup %3027  ;;  %6701 = vst [vmem:[#allocation56_spill] sm:$0xff] %v4876_v36  ;;  %3039 = vrcp.f32 %v4784_v44  ;;  %v1797_v20 = vand.u32 2147483648, %v4784_v44  ;;  %v4898_v16 = vadd.f32 1.0, %v3014_v43  ;;  %v1683_v35 = vsub.f32 1.0, %v1682_v31 }
 0x14a   : > { %v4874_v62 = vpop.eup %3029  ;;  %6702 = vst [vmem:[#allocation57_spill] sm:$0xff] %v4885_v61  ;;  %3041 = vrcp.f32 %v4787_v8  ;;  %v1712_v52 = vmul.f32 %v4865_v40, %v4764_v7  ;;  %v4902_v15 = vor.u32 1.1754944e-38, %v1782_v27  ;;  %v1698_v25 = vsub.f32 1.0, %v1697_v39 }
 0x14b   : > { %v4883_v41 = vpop.eup %3031  ;;  %6703 = vst [vmem:[#allocation67_spill] sm:$0xff] %v4891_v2  ;;  %v1727_v18 = vmul.f32 %v4874_v62, %v4767_v48  ;;  %v4911_v43 = vadd.f32 1.0, %v4817_v11  ;;  %v4913_v31 = vadd.f32 1.0, %v3026_v3  ;;  %v1654_v10 = vmul.f32 %v4825_v32, %v1653_v23 }
 0x14c   : > { %v3034_v50 = vpop.eup %3033  ;;  %6704 = vst [vmem:[#allocation73_spill] sm:$0xff] %v4898_v16  ;;  %v1742_v9 = vmul.f32 %v4883_v41, %v4770_v49  ;;  %v6708_v16 = vand.u32 2147483647, %v4747_v55  ;;  %v1669_v11 = vmul.f32 %v4834_v12, %v1668_v13  ;;  %v6711_v3 = vand.u32 2147483647, %v4755_v1 }
 0x14d   : > { %v4896_v51 = vpop.eup %3035  ;;  %6705 = vst [vmem:[#allocation95_spill] sm:$0xff] %v4911_v43  ;;  %v4920_v46 = vadd.f32 1.0, %v3034_v50  ;;  %v4938_v27 = vor.u32 1.1754944e-38, %v1797_v20  ;;  %vm1657_vm9 = vweird.f32 %v4825_v32  ;;  %vm1672_vm10 = vweird.f32 %v4834_v12 }
 0x14e   : > { %6706 = vst [vmem:[#allocation96_spill] sm:$0xff] %v4913_v31  ;;  %v4918_v39 = vpop.eup %3037  ;;  %vm4924_vm6 = vcmp.eq.f32.partialorder %v6708_v16, 8.507059e+37  ;;  %vm4931_vm7 = vcmp.eq.f32.partialorder %v6711_v3, 8.507059e+37  ;;  %v1757_v50 = vmul.f32 %v4896_v51, %v4773_v58  ;;  %v1684_v13 = vmul.f32 %v4842_v30, %v1683_v35  ;;  %vm4971_vm15 = vmor %vm1656_vm0, %vm1657_vm9 }
 0x14f   : > { %6707 = vst [vmem:[#allocation25_spill] sm:$0xff] %v4920_v46  ;;  %v4940_v47 = vpop.eup %3039  ;;  %v6714_v16 = vand.u32 2147483647, %v4758_v14  ;;  %v1713_v46 = vsub.f32 1.0, %v1712_v52  ;;  %v1699_v20 = vmul.f32 %v4849_v19, %v1698_v25  ;;  %v6717_v43 = vand.u32 2147483647, %v4761_v29  ;;  %vm4983_vm8 = vmor %vm1671_vm1, %vm1672_vm10 }
 0x150   : > { %v4951_v31 = vpop.eup %3041  ;;  %v1728_v36 = vsub.f32 1.0, %v1727_v18  ;;  %v1743_v21 = vsub.f32 1.0, %v1742_v9  ;;  %3043 = vrcp.f32 %v4792_v38  ;;  %v1655_v35 = vadd.f32 %v4825_v32, %v1654_v10 }
 0x151   : > { %vm4947_vm11 = vcmp.eq.f32.partialorder %v6714_v16, 8.507059e+37  ;;  %vm4956_vm12 = vcmp.eq.f32.partialorder %v6717_v43, 8.507059e+37  ;;  %vm1687_vm14 = vweird.f32 %v4842_v30  ;;  %v1772_v52 = vmul.f32 %v4918_v39, %v4778_v24 }
 0x152   : > { %v1812_v25 = vand.u32 2147483648, %v4787_v8  ;;  %v1670_v9 = vadd.f32 %v4834_v12, %v1669_v11  ;;  %vm1702_vm13 = vweird.f32 %v4849_v19  ;;  %v1758_v10 = vsub.f32 1.0, %v1757_v50  ;;  %vm5003_vm1 = vmor %vm1686_vm2, %vm1687_vm14 }
 0x153   : > { %v1787_v43 = vmul.f32 %v4940_v47, %v4784_v44  ;;  %v1685_v55 = vadd.f32 %v4842_v30, %v1684_v13  ;;  %v1714_v53 = vmul.f32 %v4865_v40, %v1713_v46  ;;  %v6724_v11 = vand.u32 2147483647, %v4764_v7  ;;  %vm5031_vm10 = vmor %vm1701_vm3, %vm1702_vm13 }
 0x154   : > { %v1802_v1 = vmul.f32 %v4951_v31, %v4787_v8  ;;  %v1700_v46 = vadd.f32 %v4849_v19, %v1699_v20  ;;  %v6729_v59 = vand.u32 2147483647, %v4767_v48  ;;  %v1744_v0 = vmul.f32 %v4883_v41, %v1743_v21 }
 0x155   : > { %vm4992_vm9 = vcmp.eq.f32.partialorder %v6724_v11, 8.507059e+37  ;;  %v1729_v11 = vmul.f32 %v4874_v62, %v1728_v36  ;;  %v6732_v14 = vand.u32 2147483647, %v4770_v49  ;;  %v1659_v36 = vsel %vm4971_vm15, %v4825_v32, %v1655_v35 }
 0x156   : > { %vm5012_vm5 = vcmp.eq.f32.partialorder %v6729_v59, 8.507059e+37  ;;  %vm1747_vm4 = vweird.f32 %v4883_v41  ;;  %v1773_v21 = vsub.f32 1.0, %v1772_v52  ;;  %3045 = vrcp.f32 %v4798_v57  ;;  %v5038_v20 = vpop.eup %3043 }
 0x157   : > { %vm5019_vm2 = vcmp.eq.f32.partialorder %v6732_v14, 8.507059e+37  ;;  %v1674_v32 = vsel %vm4983_vm8, %v4834_v12, %v1670_v9  ;;  %v1759_v35 = vmul.f32 %v4896_v51, %v1758_v10  ;;  %v6737_v29 = vand.u32 2147483647, %v4773_v58 }
 0x158   : > { %v1788_v14 = vsub.f32 1.0, %v1787_v43  ;;  %3047 = vrcp.f32 %v4800_v6  ;;  %v1689_v52 = vsel %vm5003_vm1, %v4842_v30, %v1685_v55  ;;  %v1715_v56 = vadd.f32 %v4865_v40, %v1714_v53 }
 0x159   : > { %vm5046_vm3 = vcmp.eq.f32.partialorder %v6737_v29, 8.507059e+37  ;;  %vm6740_vm13 = vweird.f32 %v4865_v40  ;;  %vm6741_vm8 = vweird.f32 %v4764_v7  ;;  %v1803_v9 = vsub.f32 1.0, %v1802_v1 }
 0x15a   : > { %vm5059_vm15 = vmor %vm6741_vm8, %vm6740_vm13  ;;  %v5063_v10 = vor.u32 1.1754944e-38, %v1812_v25  ;;  %v1704_v43 = vsel %vm5031_vm10, %v4849_v19, %v1700_v46  ;;  %v1730_v16 = vadd.f32 %v4874_v62, %v1729_v11  ;;  %vm6744_vm1 = vweird.f32 %v4874_v62 }
 0x15b   : > { %vm6745_vm0 = vweird.f32 %v4767_v48  ;;  %v1745_v7 = vadd.f32 %v4883_v41, %v1744_v0  ;;  %vm1762_vm13 = vweird.f32 %v4896_v51  ;;  %v5082_v53 = vsel %vm4924_vm6, %v4780_v42, %v1659_v36 }
 0x15c   : > { %vm5073_vm14 = vmor %vm6745_vm0, %vm6744_vm1  ;;  %v5087_v19 = vsel %vm4931_vm7, %v4802_v5, %v1674_v32  ;;  %vm6748_vm0 = vweird.f32 %v4770_v49  ;;  %v1774_v0 = vmul.f32 %v4918_v39, %v1773_v21  ;;  %v6751_v25 = vand.u32 2147483647, %v4778_v24  ;;  %v5120_v13 = vpop.eup %3045 }
 0x15d   : > { %vm5093_vm10 = vmor %vm6748_vm0, %vm1747_vm4  ;;  %v1817_v5 = vmul.f32 %v5038_v20, %v4792_v38  ;;  %v5109_v42 = vsel %vm4947_vm11, %v4805_v60, %v1689_v52  ;;  %v1760_v49 = vadd.f32 %v4896_v51, %v1759_v35  ;;  %v1789_v23 = vmul.f32 %v4940_v47, %v1788_v14 }
 0x15e   : > { %vm5100_vm8 = vcmp.eq.f32.partialorder %v6751_v25, 8.507059e+37  ;;  %v6754_v55 = vand.u32 2147483647, %v4784_v44  ;;  %3049 = vrcp.f32 %v4811_v17  ;;  %v5125_v3 = vsel %vm4956_vm12, %v4821_v34, %v1704_v43  ;;  %v5146_v36 = vpop.eup %3047 }
 0x15f   : > { %v1719_v60 = vsel %vm5059_vm15, %v4865_v40, %v1715_v56  ;;  %vm6757_vm6 = vweird.f32 %v4773_v58  ;;  %vm1777_vm11 = vweird.f32 %v4918_v39  ;;  %v1804_v11 = vmul.f32 %v4951_v31, %v1803_v9 }
 0x160   : > { %vm5115_vm4 = vcmp.eq.f32.partialorder %v6754_v55, 8.507059e+37  ;;  %vm5134_vm7 = vmor %vm6757_vm6, %vm1762_vm13  ;;  %v6760_v61 = vand.u32 2147483647, %v4787_v8  ;;  %v1734_v40 = vsel %vm5073_vm14, %v4874_v62, %v1730_v16  ;;  %v1749_v58 = vsel %vm5093_vm10, %v4883_v41, %v1745_v7 }
 0x161   : > { %vm1792_vm15 = vweird.f32 %v4940_v47  ;;  %3051 = vrcp.f32 %v4814_v37  ;;  %v1775_v56 = vadd.f32 %v4918_v39, %v1774_v0  ;;  %vm1807_vm1 = vweird.f32 %v4951_v31 }
 0x162   : > { %vm5142_vm12 = vcmp.eq.f32.partialorder %v6760_v61, 8.507059e+37  ;;  %v1818_v59 = vsub.f32 1.0, %v1817_v5  ;;  %v1825_v21 = vand.u32 2147483647, %v4792_v38  ;;  %v5162_v32 = vsel %vm4992_vm9, %v4838_v22, %v1719_v60 }
 0x163   : > { %v1764_v41 = vsel %vm5134_vm7, %v4896_v51, %v1760_v49  ;;  %vm6763_vm14 = vweird.f32 %v4778_v24  ;;  %v1790_v35 = vadd.f32 %v4940_v47, %v1789_v23  ;;  %v1832_v29 = vmul.f32 %v5120_v13, %v4798_v57 }
 0x164   : > { %vm5169_vm13 = vmor %vm6763_vm14, %vm1777_vm11  ;;  %v5179_v22 = vsel %vm5012_vm5, %v4853_v54, %v1734_v40  ;;  %v5184_v51 = vsel %vm5019_vm2, %v4863_v33, %v1749_v58  ;;  %vm6766_vm9 = vweird.f32 %v4784_v44  ;;  %v1805_v50 = vadd.f32 %v4951_v31, %v1804_v11  ;;  %v5195_v52 = vpop.eup %3049  ;;  %v6778_v11 = vld [vmem:[#allocation37_spill] sm:$0xff]  ;;  %v6781_v40 = vld [vmem:[#allocation39_spill] sm:$0xff] }
 0x165   : > { %vm5188_vm0 = vmor %vm6766_vm9, %vm1792_vm15  ;;  %v1847_v14 = vmul.f32 %v5146_v36, %v4800_v6  ;;  %vm6769_vm5 = vweird.f32 %v4787_v8  ;;  %vm1821_vm2 = vweird.f32 %v4792_v38  ;;  %v1827_v44 = vand.u32 2147483648, %v4792_v38 }
 0x166   : > { %vm5199_vm10 = vmor %vm6769_vm5, %vm1807_vm1  ;;  %vm1836_vm6 = vweird.f32 %v4798_v57  ;;  %3053 = vrcp.f32 %v4819_v4  ;;  %v5210_v26 = vsel %vm5046_vm3, %v4888_v28, %v1764_v41  ;;  %v1779_v8 = vsel %vm5169_vm13, %v4918_v39, %v1775_v56 }
 0x167   : > { %v1819_v54 = vmul.f32 %v5038_v20, %v1818_v59  ;;  %vm5216_vm7 = vcmp.eq.f32.partialorder %v1825_v21, 8.507059e+37  ;;  %v1840_v12 = vand.u32 2147483647, %v4798_v57  ;;  %v5221_v9 = vpop.eup %3051  ;;  %v1794_v18 = vsel %vm5188_vm0, %v4940_v47, %v1790_v35 }
 0x168   : > { %v1833_v28 = vsub.f32 1.0, %v1832_v29  ;;  %v1842_v43 = vand.u32 2147483648, %v4798_v57  ;;  %3055 = vrcp.f32 %v4828_v45  ;;  %v1809_v39 = vsel %vm5199_vm10, %v4951_v31, %v1805_v50 }
 0x169   : > { %vm1822_vm3 = vweird.f32 %v5038_v20  ;;  %v1848_v16 = vsub.f32 1.0, %v1847_v14  ;;  %v1862_v30 = vmul.f32 %v5195_v52, %v4811_v17  ;;  %v5237_v7 = vsel %vm5100_vm8, %v4902_v15, %v1779_v8 }
 0x16a   : > { %v1828_v47 = vor.u32 1.1754944e-38, %v1827_v44  ;;  %v1855_v48 = vand.u32 2147483647, %v4800_v6  ;;  %v1857_v0 = vand.u32 2147483648, %v4800_v6  ;;  %v5244_v31 = vsel %vm5115_vm4, %v4938_v27, %v1794_v18  ;;  %vm5259_vm8 = vmor %vm1821_vm2, %vm1822_vm3 }
 0x16b   : > { %v1820_v25 = vadd.f32 %v5038_v20, %v1819_v54  ;;  %vm1851_vm11 = vweird.f32 %v4800_v6  ;;  %v1877_v5 = vmul.f32 %v5221_v9, %v4814_v37  ;;  %v5255_v15 = vsel %vm5142_vm12, %v5063_v10, %v1809_v39 }
 0x16c   : > { %v5250_v2 = vpop.eup %3053  ;;  %v1834_v27 = vmul.f32 %v5120_v13, %v1833_v28  ;;  %vm5264_vm4 = vcmp.eq.f32.partialorder %v1840_v12, 8.507059e+37  ;;  %v1843_v55 = vor.u32 1.1754944e-38, %v1842_v43  ;;  %v1872_v1 = vand.u32 2147483648, %v4811_v17  ;;  %v6788_v12 = vld [vmem:[#allocation43_spill] sm:$0xff] }
 0x16d   : > { %v1849_v60 = vmul.f32 %v5146_v36, %v1848_v16  ;;  %v1863_v46 = vsub.f32 1.0, %v1862_v30  ;;  %v1870_v10 = vand.u32 2147483647, %v4811_v17  ;;  %3057 = vrcp.f32 %v6778_v11  ;;  %v6789_v43 = vld [vmem:[#allocation47_spill] sm:$0xff] }
 0x16e   : > { %v5272_v38 = vpop.eup %3055  ;;  %vm1837_vm12 = vweird.f32 %v5120_v13  ;;  %vm5275_vm15 = vcmp.eq.f32.partialorder %v1855_v48, 8.507059e+37  ;;  %v1858_v34 = vor.u32 1.1754944e-38, %v1857_v0  ;;  %3059 = vrcp.f32 %v6781_v40 }
 0x16f   : > { %v1824_v58 = vsel %vm5259_vm8, %v5038_v20, %v1820_v25  ;;  %vm1852_vm1 = vweird.f32 %v5146_v36  ;;  %v1878_v56 = vsub.f32 1.0, %v1877_v5  ;;  %v1892_v59 = vmul.f32 %v5250_v2, %v4819_v4  ;;  %vm5291_vm9 = vmor %vm1836_vm6, %vm1837_vm12 }
 0x170   : > { %v1835_v21 = vadd.f32 %v5120_v13, %v1834_v27  ;;  %vm1866_vm14 = vweird.f32 %v4811_v17  ;;  %v1873_v41 = vor.u32 1.1754944e-38, %v1872_v1  ;;  %vm1881_vm13 = vweird.f32 %v4814_v37  ;;  %vm5310_vm5 = vmor %vm1851_vm11, %vm1852_vm1 }
 0x171   : > { %v1850_v20 = vadd.f32 %v5146_v36, %v1849_v60  ;;  %v1864_v35 = vmul.f32 %v5195_v52, %v1863_v46  ;;  %vm5297_vm0 = vcmp.eq.f32.partialorder %v1870_v10, 8.507059e+37  ;;  %v1885_v24 = vand.u32 2147483647, %v4814_v37 }
 0x172   : > { %v1907_v50 = vmul.f32 %v5272_v38, %v4828_v45  ;;  %v5306_v57 = vsel %vm5216_vm7, %v1828_v47, %v1824_v58  ;;  %v1887_v63 = vand.u32 2147483648, %v4814_v37  ;;  %vm1896_vm10 = vweird.f32 %v4819_v4  ;;  %v6800_v58 = vld [vmem:[#allocation48_spill] sm:$0xff] }
 0x173   : > { %v1900_v44 = vand.u32 2147483647, %v4819_v4  ;;  %v5317_v8 = vpop.eup %3057  ;;  %vm1867_vm2 = vweird.f32 %v5195_v52  ;;  %v1879_v54 = vmul.f32 %v5221_v9, %v1878_v56  ;;  %v1893_v33 = vsub.f32 1.0, %v1892_v59 }
 0x174   : > { %3061 = vrcp.f32 %v6788_v12  ;;  %v5322_v6 = vpop.eup %3059  ;;  %v1839_v18 = vsel %vm5291_vm9, %v5120_v13, %v1835_v21  ;;  %vm1882_vm6 = vweird.f32 %v5221_v9  ;;  %v1902_v28 = vand.u32 2147483648, %v4819_v4  ;;  %vm5337_vm7 = vmor %vm1866_vm14, %vm1867_vm2 }
 0x175   : > { %3063 = vrcp.f32 %v6789_v43  ;;  %v1854_v39 = vsel %vm5310_vm5, %v5146_v36, %v1850_v20  ;;  %v1865_v16 = vadd.f32 %v5195_v52, %v1864_v35  ;;  %v1908_v30 = vsub.f32 1.0, %v1907_v50  ;;  %vm5368_vm8 = vmor %vm1881_vm13, %vm1882_vm6 }
 0x176   : > { %v1915_v47 = vand.u32 2147483647, %v4828_v45  ;;  %vm5341_vm3 = vcmp.eq.f32.partialorder %v1885_v24, 8.507059e+37  ;;  %v1888_v0 = vor.u32 1.1754944e-38, %v1887_v63  ;;  %v1917_v25 = vand.u32 2147483648, %v4828_v45  ;;  %v6801_v24 = vld [vmem:[#allocation52_spill] sm:$0xff] }
 0x177   : > { %v1922_v36 = vmul.f32 %v5317_v8, %v6778_v11  ;;  %v5350_v5 = vsel %vm5264_vm4, %v1843_v55, %v1839_v18  ;;  %v1880_v17 = vadd.f32 %v5221_v9, %v1879_v54  ;;  %v1894_v49 = vmul.f32 %v5250_v2, %v1893_v33 }
 0x178   : > { %vm5354_vm11 = vcmp.eq.f32.partialorder %v1900_v44, 8.507059e+37  ;;  %v1937_v1 = vmul.f32 %v5322_v6, %v6781_v40  ;;  %v5362_v60 = vsel %vm5275_vm15, %v1858_v34, %v1854_v39  ;;  %vm1897_vm4 = vweird.f32 %v5250_v2  ;;  %v6808_v39 = vld [vmem:[#allocation53_spill] sm:$0xff] }
 0x179   : > { %v1903_v55 = vor.u32 1.1754944e-38, %v1902_v28  ;;  %vm1911_vm12 = vweird.f32 %v4828_v45  ;;  %v1869_v10 = vsel %vm5337_vm7, %v5195_v52, %v1865_v16  ;;  %v1909_v61 = vmul.f32 %v5272_v38, %v1908_v30  ;;  %vm5403_vm14 = vmor %vm1896_vm10, %vm1897_vm4  ;;  %v6818_v34 = vld [vmem:[#allocation57_spill] sm:$0xff] }
 0x17a   : > { %v5374_v46 = vpop.eup %3061  ;;  %vm5380_vm15 = vcmp.eq.f32.partialorder %v1915_v47, 8.507059e+37  ;;  %v1932_v37 = vand.u32 2147483648, %v6778_v11  ;;  %3065 = vrcp.f32 %v6800_v58  ;;  %vm1912_vm1 = vweird.f32 %v5272_v38  ;;  %v6809_v47 = vld [vmem:[#allocation56_spill] sm:$0xff] }
 0x17b   : > { %v5386_v56 = vpop.eup %3063  ;;  %v1918_v59 = vor.u32 1.1754944e-38, %v1917_v25  ;;  %v1923_v21 = vsub.f32 1.0, %v1922_v36  ;;  %v1930_v62 = vand.u32 2147483647, %v6778_v11  ;;  %v1884_v52 = vsel %vm5368_vm8, %v5221_v9, %v1880_v17 }
 0x17c   : > { %v1895_v20 = vadd.f32 %v5250_v2, %v1894_v49  ;;  %v1938_v35 = vsub.f32 1.0, %v1937_v1  ;;  %3067 = vrcp.f32 %v6801_v24  ;;  %v5397_v50 = vsel %vm5297_vm0, %v1873_v41, %v1869_v10  ;;  %vm5423_vm0 = vmor %vm1911_vm12, %vm1912_vm1 }
 0x17d   : > { %vm1926_vm13 = vweird.f32 %v6778_v11  ;;  %vm1941_vm9 = vweird.f32 %v6781_v40  ;;  %v1952_v9 = vmul.f32 %v5374_v46, %v6788_v12  ;;  %v1910_v63 = vadd.f32 %v5272_v38, %v1909_v61 }
 0x17e   : > { %v1933_v29 = vor.u32 1.1754944e-38, %v1932_v37  ;;  %v1945_v41 = vand.u32 2147483647, %v6781_v40  ;;  %v1967_v44 = vmul.f32 %v5386_v56, %v6789_v43  ;;  %v5417_v4 = vsel %vm5341_vm3, %v1888_v0, %v1884_v52 }
 0x17f   : > { %v1924_v33 = vmul.f32 %v5317_v8, %v1923_v21  ;;  %vm5428_vm5 = vcmp.eq.f32.partialorder %v1930_v62, 8.507059e+37  ;;  %v1947_v28 = vand.u32 2147483648, %v6781_v40  ;;  %3069 = vrcp.f32 %v6808_v39 }
 0x180   : > { %v5434_v16 = vpop.eup %3065  ;;  %v1899_v45 = vsel %vm5403_vm14, %v5250_v2, %v1895_v20  ;;  %v1939_v30 = vmul.f32 %v5322_v6, %v1938_v35  ;;  %vm1956_vm10 = vweird.f32 %v6788_v12  ;;  %3071 = vrcp.f32 %v6809_v47 }
 0x181   : > { %vm1927_vm2 = vweird.f32 %v5317_v8  ;;  %vm1942_vm6 = vweird.f32 %v5322_v6  ;;  %v1953_v48 = vsub.f32 1.0, %v1952_v9  ;;  %v1960_v13 = vand.u32 2147483647, %v6788_v12 }
 0x182   : > { %v5445_v0 = vpop.eup %3067  ;;  %v1914_v25 = vsel %vm5423_vm0, %v5272_v38, %v1910_v63  ;;  %v1962_v2 = vand.u32 2147483648, %v6788_v12  ;;  %v1968_v36 = vsub.f32 1.0, %v1967_v44  ;;  %v1975_v17 = vand.u32 2147483647, %v6789_v43  ;;  %vm5465_vm3 = vmor %vm1926_vm13, %vm1927_vm2  ;;  %v6827_v38 = vld [vmem:[#allocation67_spill] sm:$0xff]  ;;  %v6838_v12 = vld [vmem:[#allocation73_spill] sm:$0xff] }
 0x183   : > { %v5454_v49 = vsel %vm5354_vm11, %v1903_v55, %v1899_v45  ;;  %v1925_v1 = vadd.f32 %v5317_v8, %v1924_v33  ;;  %vm5457_vm7 = vcmp.eq.f32.partialorder %v1945_v41, 8.507059e+37  ;;  %v1982_v10 = vmul.f32 %v5434_v16, %v6800_v58  ;;  %vm5482_vm8 = vmor %vm1941_vm9, %vm1942_vm6 }
 0x184   : > { %v1940_v61 = vadd.f32 %v5322_v6, %v1939_v30  ;;  %v1948_v27 = vor.u32 1.1754944e-38, %v1947_v28  ;;  %vm1971_vm11 = vweird.f32 %v6789_v43  ;;  %v1977_v55 = vand.u32 2147483648, %v6789_v43 }
 0x185   : > { %v5472_v37 = vpop.eup %3069  ;;  %v5476_v21 = vsel %vm5380_vm15, %v1918_v59, %v1914_v25  ;;  %v1954_v62 = vmul.f32 %v5374_v46, %v1953_v48  ;;  %vm5487_vm4 = vcmp.eq.f32.partialorder %v1960_v13, 8.507059e+37  ;;  %v1997_v20 = vmul.f32 %v5445_v0, %v6801_v24 }
 0x186   : > { %3073 = vrcp.f32 %v6818_v34  ;;  %v5494_v59 = vpop.eup %3071  ;;  %vm1957_vm12 = vweird.f32 %v5374_v46  ;;  %v1963_v40 = vor.u32 1.1754944e-38, %v1962_v2  ;;  %v1969_v35 = vmul.f32 %v5386_v56, %v1968_v36 }
 0x187   : > { %vm5498_vm15 = vcmp.eq.f32.partialorder %v1975_v17, 8.507059e+37  ;;  %v1929_v9 = vsel %vm5465_vm3, %v5317_v8, %v1925_v1  ;;  %v1983_v63 = vsub.f32 1.0, %v1982_v10  ;;  %v1990_v41 = vand.u32 2147483647, %v6800_v58  ;;  %vm5525_vm14 = vmor %vm1956_vm10, %vm1957_vm12 }
 0x188   : > { %v1992_v44 = vand.u32 2147483648, %v6800_v58  ;;  %v1944_v54 = vsel %vm5482_vm8, %v5322_v6, %v1940_v61  ;;  %vm1972_vm1 = vweird.f32 %v5386_v56  ;;  %v1978_v33 = vor.u32 1.1754944e-38, %v1977_v55 }
 0x189   : > { %v2012_v28 = vmul.f32 %v5472_v37, %v6808_v39  ;;  %v1955_v45 = vadd.f32 %v5374_v46, %v1954_v62  ;;  %v1998_v30 = vsub.f32 1.0, %v1997_v20  ;;  %v2005_v8 = vand.u32 2147483647, %v6801_v24  ;;  %vm5540_vm9 = vmor %vm1971_vm11, %vm1972_vm1 }
 0x18a   : > { %v2027_v48 = vmul.f32 %v5494_v59, %v6809_v47  ;;  %v5519_v13 = vsel %vm5428_vm5, %v1933_v29, %v1929_v9  ;;  %v1970_v25 = vadd.f32 %v5386_v56, %v1969_v35  ;;  %vm1986_vm13 = vweird.f32 %v6800_v58 }
 0x18b   : > { %v2007_v2 = vand.u32 2147483648, %v6801_v24  ;;  %v5536_v29 = vsel %vm5457_vm7, %v1948_v27, %v1944_v54  ;;  %v1984_v18 = vmul.f32 %v5434_v16, %v1983_v63  ;;  %vm5545_vm0 = vcmp.eq.f32.partialorder %v1990_v41, 8.507059e+37 }
 0x18c   : > { %v5532_v36 = vpop.eup %3073  ;;  %v1993_v1 = vor.u32 1.1754944e-38, %v1992_v44  ;;  %vm2001_vm5 = vweird.f32 %v6801_v24  ;;  %vm1987_vm10 = vweird.f32 %v5434_v16  ;;  %v2013_v23 = vsub.f32 1.0, %v2012_v28 }
 0x18d   : > { %v2020_v10 = vand.u32 2147483647, %v6808_v39  ;;  %3075 = vrcp.f32 %v6827_v38  ;;  %v1959_v43 = vsel %vm5525_vm14, %v5374_v46, %v1955_v45  ;;  %v1999_v61 = vmul.f32 %v5445_v0, %v1998_v30  ;;  %vm5580_vm3 = vmor %vm1986_vm13, %vm1987_vm10 }
 0x18e   : > { %vm5557_vm2 = vcmp.eq.f32.partialorder %v2005_v8, 8.507059e+37  ;;  %v2022_v55 = vand.u32 2147483648, %v6808_v39  ;;  %v2028_v11 = vsub.f32 1.0, %v2027_v48  ;;  %v1974_v62 = vsel %vm5540_vm9, %v5386_v56, %v1970_v25 }
 0x18f   : > { %v2008_v20 = vor.u32 1.1754944e-38, %v2007_v2  ;;  %v2035_v35 = vand.u32 2147483647, %v6809_v47  ;;  %v2042_v9 = vmul.f32 %v5532_v36, %v6818_v34  ;;  %v1985_v46 = vadd.f32 %v5434_v16, %v1984_v18 }
 0x190   : > { %vm2002_vm6 = vweird.f32 %v5445_v0  ;;  %vm2016_vm7 = vweird.f32 %v6808_v39  ;;  %v2037_v63 = vand.u32 2147483648, %v6809_v47  ;;  %v5574_v41 = vsel %vm5487_vm4, %v1963_v40, %v1959_v43  ;;  %v6841_v43 = vld [vmem:[#allocation95_spill] sm:$0xff] }
 0x191   : > { %v2014_v44 = vmul.f32 %v5472_v37, %v2013_v23  ;;  %vm5585_vm11 = vcmp.eq.f32.partialorder %v2020_v10, 8.507059e+37  ;;  %vm2031_vm8 = vweird.f32 %v6809_v47  ;;  %v5592_v52 = vsel %vm5498_vm15, %v1978_v33, %v1974_v62  ;;  %vm5600_vm4 = vmor %vm2001_vm5, %vm2002_vm6 }
 0x192   : > { %v2000_v40 = vadd.f32 %v5445_v0, %v1999_v61  ;;  %v2023_v28 = vor.u32 1.1754944e-38, %v2022_v55  ;;  %v2029_v58 = vmul.f32 %v5494_v59, %v2028_v11  ;;  %vm2017_vm12 = vweird.f32 %v5472_v37  ;;  %v6846_v11 = vld [vmem:[#allocation96_spill] sm:$0xff] }
 0x193   : > { %v5596_v45 = vpop.eup %3075  ;;  %vm5605_vm1 = vcmp.eq.f32.partialorder %v2035_v35, 8.507059e+37  ;;  %v2043_v14 = vsub.f32 1.0, %v2042_v9  ;;  %v2050_v33 = vand.u32 2147483647, %v6818_v34  ;;  %v1989_v48 = vsel %vm5580_vm3, %v5434_v16, %v1985_v46  ;;  %vm5624_vm13 = vmor %vm2016_vm7, %vm2017_vm12 }
 0x194   : > { %vm2032_vm15 = vweird.f32 %v5494_v59  ;;  %v2038_v24 = vor.u32 1.1754944e-38, %v2037_v63  ;;  %v2052_v6 = vand.u32 2147483648, %v6818_v34  ;;  %v2015_v25 = vadd.f32 %v5472_v37, %v2014_v44  ;;  %v6848_v44 = vld [vmem:[#allocation44_spill] sm:$0xff] }
 0x195   : > { %vm2046_vm14 = vweird.f32 %v6818_v34  ;;  %v2067_v2 = vand.u32 2147483648, %v6827_v38  ;;  %3077 = vrcp.f32 %v6838_v12  ;;  %v2004_v18 = vsel %vm5600_vm4, %v5445_v0, %v2000_v40  ;;  %vm5638_vm9 = vmor %vm2031_vm8, %vm2032_vm15  ;;  %v6856_v0 = vld [vmem:[#allocation4_spill] sm:$0xff] }
 0x196   : > { %v2030_v23 = vadd.f32 %v5494_v59, %v2029_v58  ;;  %v2057_v10 = vmul.f32 %v5596_v45, %v6827_v38  ;;  %3079 = vrcp.f32 %v6841_v43  ;;  %v5634_v61 = vsel %vm5545_vm0, %v1993_v1, %v1989_v48  ;;  %v6847_v1 = vld [vmem:[#allocation25_spill] sm:$0xff] }
 0x197   : > { %v2044_v39 = vmul.f32 %v5532_v36, %v2043_v14  ;;  %vm5643_vm5 = vcmp.eq.f32.partialorder %v2050_v33, 8.507059e+37  ;;  %3081 = vrcp.f32 %v6846_v11  ;;  %v2053_v62 = vor.u32 1.1754944e-38, %v2052_v6  ;;  %v6850_v14 = vld [vmem:[#allocation58_spill] sm:$0xff] }
 0x198   : > { %v2065_v35 = vand.u32 2147483647, %v6827_v38  ;;  %v2082_v17 = vand.u32 2147483648, %v6838_v12  ;;  %3083 = vrcp.f32 %v6847_v1  ;;  %v5653_v47 = vsel %vm5557_vm2, %v2008_v20, %v2004_v18  ;;  %v6849_v20 = vld [vmem:[#allocation50_spill] sm:$0xff]  ;;  %v6855_v18 = vld [vmem:[#allocation3_spill] sm:$0xff] }
 0x199   : > { %v2019_v9 = vsel %vm5624_vm13, %v5472_v37, %v2015_v25  ;;  %vm2047_vm0 = vweird.f32 %v5532_v36  ;;  %vm2061_vm10 = vweird.f32 %v6827_v38  ;;  %v5660_v46 = vor.u32 1.1754944e-38, %v2067_v2  ;;  %v6854_v25 = vld [vmem:[#allocation69_spill] sm:$0xff] }
 0x19a   : > { %v2034_v63 = vsel %vm5638_vm9, %v5494_v59, %v2030_v23  ;;  %v2058_v56 = vsub.f32 1.0, %v2057_v10  ;;  %v5667_v27 = vmul.f32 %v5082_v53, %v6848_v44  ;;  %v5671_v40 = vmul.f32 %v5109_v42, %v6849_v20  ;;  %v6851_v59 = vld [vmem:[#allocation59_spill] sm:$0xff]  ;;  %vm5693_vm2 = vmor %vm2046_vm14, %vm2047_vm0  ;;  %v6858_v44 = vld [vmem:[#allocation6_spill] sm:$0xff] }
 0x19b   : > { %v5673_v37 = vpop.eup %3077  ;;  %v2045_v58 = vadd.f32 %v5532_v36, %v2044_v39  ;;  %v2080_v30 = vand.u32 2147483647, %v6838_v12  ;;  %v5679_v33 = vmul.f32 %v5087_v19, %v6850_v14  ;;  %v5683_v48 = vmul.f32 %v5125_v3, %v6851_v59 }
 0x19c   : > { %v5685_v53 = vpop.eup %3079  ;;  %v5689_v42 = vsel %vm5585_vm11, %v2023_v28, %v2019_v9  ;;  %vm2062_vm6 = vweird.f32 %v5596_v45  ;;  %v5698_v19 = vor.u32 1.1754944e-38, %v2082_v17  ;;  %v5702_v3 = vmul.f32 %v5162_v32, %v6854_v25  ;;  %v6857_v17 = vld [vmem:[#allocation5_spill] sm:$0xff] }
 0x19d   : > { %v5704_v2 = vpop.eup %3081  ;;  %v5708_v54 = vsel %vm5605_vm1, %v2038_v24, %v2034_v63  ;;  %v2095_v34 = vand.u32 2147483647, %v6841_v43  ;;  %v2097_v28 = vand.u32 2147483648, %v6841_v43  ;;  %v5714_v16 = vmul.f32 %v5179_v22, %v6855_v18  ;;  %v6862_v18 = vld [vmem:[#allocation8_spill] sm:$0xff]  ;;  %vm5780_vm12 = vmor %vm2061_vm10, %vm2062_vm6 }
 0x19e   : > { %v5716_v23 = vpop.eup %3083  ;;  %v2059_v10 = vmul.f32 %v5596_v45, %v2058_v56  ;;  %v2072_v32 = vmul.f32 %v5673_v37, %v6838_v12  ;;  %v5723_v8 = vmul.f32 %v5184_v51, %v6856_v0  ;;  %v2163_v24 = vadd.f32 %v5671_v40, %v5667_v27 }
 0x19f   : > { %v2049_v39 = vsel %vm5693_vm2, %v5532_v36, %v2045_v58  ;;  %v2087_v22 = vmul.f32 %v5685_v53, %v6841_v43  ;;  %v5734_v9 = vmul.f32 %v5210_v26, %v6857_v17  ;;  %v2178_v63 = vadd.f32 %v5683_v48, %v5679_v33  ;;  %v6859_v58 = vld [vmem:[#allocation7_spill] sm:$0xff] }
 0x1a0   : > { %vm2076_vm7 = vweird.f32 %v6838_v12  ;;  %v2102_v51 = vmul.f32 %v5704_v2, %v6846_v11  ;;  %v2110_v56 = vand.u32 2147483647, %v6846_v11  ;;  %v5744_v36 = vmul.f32 %v5237_v7, %v6858_v44 }
 0x1a1   : > { %v2164_v20 = vadd.f32 %v2163_v24, %v5702_v3  ;;  %vm2077_vm3 = vweird.f32 %v5673_v37  ;;  %vm2091_vm11 = vweird.f32 %v6841_v43  ;;  %v2117_v26 = vmul.f32 %v5716_v23, %v6847_v1 }
 0x1a2   : > { %v5753_v14 = vmul.f32 %v5244_v31, %v6859_v58  ;;  %v2179_v59 = vadd.f32 %v2178_v63, %v5714_v16  ;;  %v5758_v6 = vsel %vm5643_vm5, %v2053_v62, %v2049_v39  ;;  %vm5760_vm8 = vcmp.eq.f32.partialorder %v2065_v35, 8.507059e+37  ;;  %v6863_v63 = vld [vmem:[#allocation9_spill] sm:$0xff]  ;;  %v6866_v39 = vld [vmem:[#allocation10_spill] sm:$0xff]  ;;  %v6877_v35 = vld [vmem:[#allocation15_spill] sm:$0xff] }
 0x1a3   : > { %v2073_v25 = vsub.f32 1.0, %v2072_v32  ;;  %vm2106_vm4 = vweird.f32 %v6846_v11  ;;  %v5767_v0 = vmul.f32 %v5255_v15, %v6862_v18  ;;  %v2165_v31 = vadd.f32 %v2164_v20, %v5723_v8  ;;  %v6867_v20 = vld [vmem:[#allocation11_spill] sm:$0xff]  ;;  %vm5850_vm0 = vmor %vm2076_vm7, %vm2077_vm3 }
 0x1a4   : > { %v2060_v24 = vadd.f32 %v5596_v45, %v2059_v10  ;;  %v2088_v17 = vsub.f32 1.0, %v2087_v22  ;;  %v5773_v55 = vmul.f32 %v5306_v57, %v6863_v63  ;;  %v2180_v62 = vadd.f32 %v2179_v59, %v5734_v9 }
 0x1a5   : > { %v5784_v15 = vor.u32 1.1754944e-38, %v2097_v28  ;;  %v2103_v32 = vsub.f32 1.0, %v2102_v51  ;;  %v5788_v10 = vmul.f32 %v5350_v5, %v6866_v39  ;;  %v2166_v57 = vadd.f32 %v2165_v31, %v5744_v36  ;;  %v6870_v5 = vld [vmem:[#allocation12_spill] sm:$0xff] }
 0x1a6   : > { %v2112_v22 = vand.u32 2147483648, %v6846_v11  ;;  %v2118_v44 = vsub.f32 1.0, %v2117_v26  ;;  %v5794_v58 = vmul.f32 %v5362_v60, %v6867_v20  ;;  %v2181_v38 = vadd.f32 %v2180_v62, %v5753_v14  ;;  %v6900_v62 = vld [vmem:[#allocation32_spill] sm:$0xff] }
 0x1a7   : > { %v2074_v59 = vmul.f32 %v5673_v37, %v2073_v25  ;;  %vm5798_vm1 = vcmp.eq.f32.partialorder %v2080_v30, 8.507059e+37  ;;  %vm2121_vm15 = vweird.f32 %v6847_v1  ;;  %v5805_v51 = vmul.f32 %v5397_v50, %v6870_v5  ;;  %v6873_v30 = vld [vmem:[#allocation13_spill] sm:$0xff] }
 0x1a8   : > { %v2167_v26 = vadd.f32 %v2166_v57, %v5767_v0  ;;  %v2064_v60 = vsel %vm5780_vm12, %v5596_v45, %v2060_v24  ;;  %v2089_v18 = vmul.f32 %v5685_v53, %v2088_v17  ;;  %vm5812_vm14 = vcmp.eq.f32.partialorder %v2095_v34, 8.507059e+37  ;;  %v6876_v24 = vld [vmem:[#allocation14_spill] sm:$0xff]  ;;  %v6878_v57 = vld [vmem:[#allocation16_spill] sm:$0xff] }
 0x1a9   : > { %v5818_v31 = vmul.f32 %v5417_v4, %v6873_v30  ;;  %v2182_v63 = vadd.f32 %v2181_v38, %v5773_v55  ;;  %v2104_v50 = vmul.f32 %v5704_v2, %v2103_v32  ;;  %vm5822_vm13 = vcmp.eq.f32.partialorder %v2110_v56, 8.507059e+37  ;;  %v6881_v38 = vld [vmem:[#allocation17_spill] sm:$0xff]  ;;  %v6884_v30 = vld [vmem:[#allocation18_spill] sm:$0xff] }
 0x1aa   : > { %v2125_v45 = vand.u32 2147483647, %v6847_v1  ;;  %v5829_v34 = vmul.f32 %v5454_v49, %v6876_v24  ;;  %v2168_v17 = vadd.f32 %v2167_v26, %v5788_v10  ;;  %vm2092_vm9 = vweird.f32 %v5685_v53  ;;  %v6887_v24 = vld [vmem:[#allocation19_spill] sm:$0xff] }
 0x1ab   : > { %v2119_v4 = vmul.f32 %v5716_v23, %v2118_v44  ;;  %v5836_v39 = vmul.f32 %v5476_v21, %v6877_v35  ;;  %v2183_v56 = vadd.f32 %v2182_v63, %v5794_v58  ;;  %v2075_v32 = vadd.f32 %v5673_v37, %v2074_v59  ;;  %vm5863_vm2 = vmor %vm2091_vm11, %vm2092_vm9  ;;  %v6895_v44 = vld [vmem:[#allocation23_spill] sm:$0xff] }
 0x1ac   : > { %vm2107_vm5 = vweird.f32 %v5704_v2  ;;  %v5843_v49 = vmul.f32 %v5519_v13, %v6878_v57  ;;  %v2169_v20 = vadd.f32 %v2168_v17, %v5805_v51  ;;  %v2090_v21 = vadd.f32 %v5685_v53, %v2089_v18  ;;  %v6894_v57 = vld [vmem:[#allocation22_spill] sm:$0xff] }
 0x1ad   : > { %vm2122_vm10 = vweird.f32 %v5716_v23  ;;  %v5858_v59 = vmul.f32 %v5536_v29, %v6881_v38  ;;  %v2184_v13 = vadd.f32 %v2183_v56, %v5818_v31  ;;  %v2105_v12 = vadd.f32 %v5704_v2, %v2104_v50  ;;  %vm5879_vm6 = vmor %vm2106_vm4, %vm2107_vm5  ;;  %v6896_v38 = vld [vmem:[#allocation24_spill] sm:$0xff] }
 0x1ae   : > { %v2127_v26 = vand.u32 2147483648, %v6847_v1  ;;  %v5871_v18 = vmul.f32 %v5574_v41, %v6884_v30  ;;  %v2170_v63 = vadd.f32 %v2169_v20, %v5829_v34  ;;  %v2069_v29 = vsel %vm5760_vm8, %v5660_v46, %v2064_v60  ;;  %vm5896_vm7 = vmor %vm2121_vm15, %vm2122_vm10  ;;  %v6890_v46 = vld [vmem:[#allocation20_spill] sm:$0xff] }
 0x1af   : > { %v2120_v50 = vadd.f32 %v5716_v23, %v2119_v4  ;;  %v5886_v17 = vmul.f32 %v5592_v52, %v6887_v24  ;;  %v2185_v41 = vadd.f32 %v2184_v13, %v5836_v39  ;;  %v2079_v35 = vsel %vm5850_vm0, %v5673_v37, %v2075_v32 }
 0x1b0   : > { %v2113_v7 = vor.u32 1.1754944e-38, %v2112_v22  ;;  %v5902_v60 = vmul.f32 %v5634_v61, %v6890_v46  ;;  %v2171_v52 = vadd.f32 %v2170_v63, %v5843_v49  ;;  %v2094_v4 = vsel %vm5863_vm2, %v5685_v53, %v2090_v21  ;;  %v6893_v22 = vld [vmem:[#allocation21_spill] sm:$0xff] }
 0x1b1   : > { %vm5908_vm3 = vcmp.eq.f32.partialorder %v2125_v45, 8.507059e+37  ;;  %v5914_v1 = vmul.f32 %v5653_v47, %v6893_v22  ;;  %v2186_v56 = vadd.f32 %v2185_v41, %v5858_v59  ;;  %v2109_v61 = vsel %vm5879_vm6, %v5704_v2, %v2105_v12 }
 0x1b2   : > { %v2128_v32 = vor.u32 1.1754944e-38, %v2127_v26  ;;  %v5922_v20 = vmul.f32 %v5689_v42, %v6894_v57  ;;  %v2172_v53 = vadd.f32 %v2171_v52, %v5871_v18  ;;  %v2084_v45 = vsel %vm5798_vm1, %v5698_v19, %v2079_v35  ;;  %v6898_v26 = vld [vmem:[#allocation31_spill] sm:$0xff] }
 0x1b3   : > { %v2124_v47 = vsel %vm5896_vm7, %v5716_v23, %v2120_v50  ;;  %v5933_v21 = vmul.f32 %v5708_v54, %v6895_v44  ;;  %v2187_v2 = vadd.f32 %v2186_v56, %v5886_v17  ;;  %v2099_v42 = vsel %vm5812_vm14, %v5784_v15, %v2094_v4  ;;  %v6897_v23 = vld [vmem:[#allocation45_spill] sm:$0xff]  ;;  %v6901_v50 = vld [vmem:[#allocation35_spill] sm:$0xff] }
 0x1b4   : > { %v5941_v13 = vmul.f32 %v5758_v6, %v6896_v38  ;;  %v2173_v19 = vadd.f32 %v2172_v53, %v5902_v60  ;;  %v2114_v28 = vsel %vm5822_vm13, %v2113_v7, %v2109_v61  ;;  %v5947_v5 = vmul.f32 %v2069_v29, %v6897_v23  ;;  %v6899_v6 = vld [vmem:[#allocation28_spill] sm:$0xff]  ;;  %v2270_v44 = vld [vmem:[%s6240_s6 + $0x60] sm:$0xff]  ;;  %v2267_v38 = vld [vmem:[%s6240_s6 + $0x48] sm:$0xff] }
 0x1b5   : > { %v2188_v54 = vadd.f32 %v2187_v2, %v5914_v1  ;;  %v2129_v12 = vsel %vm5908_vm3, %v2128_v32, %v2124_v47  ;;  %v5953_v25 = vmul.f32 %v2084_v45, %v6898_v26  ;;  %v5957_v30 = vmul.f32 %v2099_v42, %v6899_v6  ;;  %v2273_v53 = vld [vmem:[%s6240_s6 + $0x78] sm:$0xff]  ;;  %v2272_v45 = vld [vmem:[%s6240_s6 + $0x70] sm:$0xff]  ;;  %v2271_v47 = vld [vmem:[%s6240_s6 + $0x68] sm:$0xff] }
 0x1b6   : > { %v2174_v15 = vadd.f32 %v2173_v19, %v5922_v20  ;;  %v5961_v43 = vmul.f32 %v2114_v28, %v6900_v62  ;;  %v5965_v24 = vmul.f32 %v2129_v12, %v6901_v50  ;;  %2275 = vmatpush.msra.mxu1 %v2273_v53  ;;  %v2269_v2 = vld [vmem:[%s6240_s6 + $0x58] sm:$0xff]  ;;  %v2268_v42 = vld [vmem:[%s6240_s6 + $0x50] sm:$0xff]  ;;  %v2266_v19 = vld [vmem:[%s6240_s6 + $0x40] sm:$0xff] }
 0x1b7   : > { %v2189_v63 = vadd.f32 %v2188_v54, %v5933_v21  ;;  %v2265_v28 = vld [vmem:[%s6240_s6 + $0x38] sm:$0xff]  ;;  %v2264_v23 = vld [vmem:[%s6240_s6 + $0x30] sm:$0xff]  ;;  %v2263_v54 = vld [vmem:[%s6240_s6 + $0x28] sm:$0xff] }
 0x1b8   : > { %v2175_v29 = vadd.f32 %v2174_v15, %v5941_v13  ;;  %2276 = vmatpush.msra.mxu1 %v2272_v45  ;;  %v2262_v12 = vld [vmem:[%s6240_s6 + $0x20] sm:$0xff]  ;;  %v2261_v26 = vld [vmem:[%s6240_s6 + $0x18] sm:$0xff]  ;;  %v2260_v15 = vld [vmem:[%s6240_s6 + $0x10] sm:$0xff] }
 0x1b9   : > { %v2190_v41 = vadd.f32 %v2189_v63, %v5947_v5  ;;  %v2259_v6 = vld [vmem:[%s6240_s6 + $0x8] sm:$0xff]  ;;  %v2258_v63 = vld [vmem:[%s6240_s6] sm:$0xff]  ;;  %v2840_v45 = vld [vmem:[%s6242_s8 + $0x38] sm:$0xff] }
 0x1ba   : > { %v2176_v35 = vadd.f32 %v2175_v29, %v5953_v25  ;;  %2277 = vmatpush.msra.mxu1 %v2271_v47  ;;  %v2217_v62 = vld [vmem:[%s6239_s5] sm:$0x1]  ;;  %2427 = vmatpush.bf16.msrb.mxu0 %v2840_v45  ;;  %v2839_v47 = vld [vmem:[%s6242_s8 + $0x30] sm:$0xff] }
 0x1bb   : > { %v2191_v7 = vadd.f32 %v2190_v41, %v5957_v30  ;;  %2921 = vmatpush.bf16.msra.mxu2 %v2840_v45  ;;  %2922 = vmatpush.bf16.msra.mxu3 %v2840_v45 }
 0x1bc   : > { %v2177_v11 = vadd.f32 %v2176_v35, %v5961_v43  ;;  %2278 = vmatpush.msra.mxu1 %v2270_v44  ;;  %v2838_v44 = vld [vmem:[%s6242_s8 + $0x28] sm:$0xff] }
 0x1bd   : > { %v2192_v46 = vadd.f32 %v2191_v7, %v5965_v24 }
 0x1be   : > { %2279 = vmatpush.msra.mxu1 %v2269_v2  ;;  %2428 = vmatpush.bf16.msrb.mxu0 %v2839_v47  ;;  %v2837_v2 = vld [vmem:[%s6242_s8 + $0x20] sm:$0xff] }
 0x1bf   : > { %v2193_v52 = vadd.f32 %v2192_v46, %v2177_v11  ;;  %2924 = vmatpush.bf16.msra.mxu2 %v2839_v47  ;;  %2925 = vmatpush.bf16.msra.mxu3 %v2839_v47 }
 0x1c0   : > { %2280 = vmatpush.msra.mxu1 %v2268_v42  ;;  %v2836_v42 = vld [vmem:[%s6242_s8 + $0x18] sm:$0xff] }
 0x1c1   : > { %v2194_v4 = vrot.slane %v2193_v52, 4 }
 0x1c2   : > { %2281 = vmatpush.msra.mxu1 %v2267_v38  ;;  %2429 = vmatpush.bf16.msrb.mxu0 %v2838_v44  ;;  %v2835_v38 = vld [vmem:[%s6242_s8 + $0x10] sm:$0xff] }
 0x1c3   : > { %v2195_v37 = vadd.f32 %v2194_v4, %v2193_v52  ;;  %2927 = vmatpush.bf16.msra.mxu2 %v2838_v44  ;;  %2928 = vmatpush.bf16.msra.mxu3 %v2838_v44 }
 0x1c4   : > { %2282 = vmatpush.msra.mxu1 %v2266_v19  ;;  %v2834_v19 = vld [vmem:[%s6242_s8 + $0x8] sm:$0xff] }
 0x1c5   : > { %v2196_v22 = vrot.slane %v2195_v37, 2 }
 0x1c6   : > { %2283 = vmatpush.msra.mxu1 %v2265_v28  ;;  %2430 = vmatpush.bf16.msrb.mxu0 %v2837_v2  ;;  %v2274_v28 = vld [vmem:[%s6241_s7] sm:$0x1] }
 0x1c7   : > { %v2197_v56 = vadd.f32 %v2196_v22, %v2195_v37  ;;  %2930 = vmatpush.bf16.msra.mxu2 %v2837_v2  ;;  %2931 = vmatpush.bf16.msra.mxu3 %v2837_v2 }
 0x1c8   : > { %2284 = vmatpush.msra.mxu1 %v2264_v23  ;;  %v2833_v23 = vld [vmem:[%s6242_s8] sm:$0xff] }
 0x1c9   : > { %v2198_v61 = vrot.slane %v2197_v56, 1 }
 0x1ca   : > { %2285 = vmatpush.msra.mxu1 %v2263_v54  ;;  %2431 = vmatpush.bf16.msrb.mxu0 %v2836_v42 }
 0x1cb   : > { %v2199_v32 = vadd.f32 %v2198_v61, %v2197_v56  ;;  %2933 = vmatpush.bf16.msra.mxu2 %v2836_v42  ;;  %2934 = vmatpush.bf16.msra.mxu3 %v2836_v42 }
 0x1cc   : > { %2286 = vmatpush.msra.mxu1 %v2262_v12 }
 0x1cd   : > { %v2200_v57 = vmul.f32 0.00390625, %v2199_v32 }
 0x1ce   : > { %2287 = vmatpush.msra.mxu1 %v2261_v26  ;;  %2432 = vmatpush.bf16.msrb.mxu0 %v2835_v38 }
 0x1cf   : > { %2234 = vmatmul.f32.vlgmr.msra.gmra.mxu0 %v2200_v57  ;;  %2936 = vmatpush.bf16.msra.mxu2 %v2835_v38 }
 0x1d0   : > { %2288 = vmatpush.msra.mxu1 %v2260_v15  ;;  %2937 = vmatpush.bf16.msra.mxu3 %v2835_v38 }
 0x1d2   : > { %2289 = vmatpush.msra.mxu1 %v2259_v6  ;;  %2433 = vmatpush.bf16.msrb.mxu0 %v2834_v19 }
 0x1d3   : > { %2939 = vmatpush.bf16.msra.mxu2 %v2834_v19 }
 0x1d4   : > { %2290 = vmatpush.msra.mxu1 %v2258_v63  ;;  %2940 = vmatpush.bf16.msra.mxu3 %v2834_v19 }
 0x1d6   : > { %2920 = vmatpush.bf16.msrb.mxu1 %v2840_v45  ;;  %2434 = vmatpush.bf16.msrb.mxu0 %v2833_v23 }
 0x1d7   : > { %2942 = vmatpush.bf16.msra.mxu2 %v2833_v23 }
 0x1d8   : > { %2943 = vmatpush.bf16.msra.mxu3 %v2833_v23 }
 0x1da   : > { %2923 = vmatpush.bf16.msrb.mxu1 %v2839_v47 }
 0x1de   : > { %2926 = vmatpush.bf16.msrb.mxu1 %v2838_v44 }
 0x1e2   : > { %2929 = vmatpush.bf16.msrb.mxu1 %v2837_v2 }
 0x1e6   : > { %2932 = vmatpush.bf16.msrb.mxu1 %v2836_v42 }
 0x1ea   : > { %2935 = vmatpush.bf16.msrb.mxu1 %v2835_v38 }
 0x1ee   : > { %2938 = vmatpush.bf16.msrb.mxu1 %v2834_v19 }
 0x1f2   : > { %2941 = vmatpush.bf16.msrb.mxu1 %v2833_v23 }
 0x24c   : > { %v2235_v29 = vpop.f32.mrf.mxu0 }
 0x24d   : > { %v2236_v50 = vadd.f32 %v2235_v29, %v2217_v62 }
 0x24f   : > { %v2794_v41 = vmul.f32 -1.442695, %v2236_v50 }
 0x251   : > { %3085 = vpow2.f32 %v2794_v41 }
 0x257   : > { %v3086_v35 = vpop.eup %3085 }
 0x258   : > { %v2241_v7 = vadd.f32 1.0, %v3086_v35 }
 0x25a   : > { %3087 = vrcp.f32 %v2241_v7  ;;  %v2253_v4 = vand.u32 2147483648, %v2241_v7  ;;  %v2251_v22 = vand.u32 2147483647, %v2241_v7  ;;  %vm2247_vm8 = vweird.f32 %v2241_v7 }
 0x25c   : > { %v2254_v61 = vor.u32 1.1754944e-38, %v2253_v4  ;;  %vm2252_vm12 = vcmp.eq.f32.partialorder %v2251_v22, 8.507059e+37 }
 0x260   : > { %v3088_v11 = vpop.eup %3087 }
 0x261   : > { %v2243_v46 = vmul.f32 %v3088_v11, %v2241_v7  ;;  %vm2248_vm11 = vweird.f32 %v3088_v11 }
 0x262   : > { %vm2249_vm4 = vmor %vm2247_vm8, %vm2248_vm11 }
 0x263   : > { %v2244_v52 = vsub.f32 1.0, %v2243_v46 }
 0x265   : > { %v2245_v37 = vmul.f32 %v3088_v11, %v2244_v52 }
 0x267   : > { %v2246_v56 = vadd.f32 %v3088_v11, %v2245_v37 }
 0x269   : > { %v2250_v32 = vsel %vm2249_vm4, %v3088_v11, %v2246_v56 }
 0x26a   : > { %v2255_v57 = vsel %vm2252_vm12, %v2254_v61, %v2250_v32 }
 0x26b   : > { %v2257_v53 = vmul.f32 %v2255_v57, %v2236_v50 }
 0x26d   : > { %2291 = vmatmul.f32.vlgmr.msra.gmra.mxu1 %v2257_v53 }
 0x2ea   : > { %v2292_v54 = vpop.f32.mrf.mxu1 }
 0x2eb   : > { %v2293_v12 = vadd.f32 %v2292_v54, %v2274_v28 }
 0x2ed   : > { %v2795_v26 = vmul.f32 -1.442695, %v2293_v12 }
 0x2ef   : > { %3089 = vpow2.f32 %v2795_v26 }
 0x2f5   : > { %v3090_v15 = vpop.eup %3089 }
 0x2f6   : > { %v2298_v6 = vadd.f32 1.0, %v3090_v15 }
 0x2f8   : > { %3091 = vrcp.f32 %v2298_v6  ;;  %v2310_v50 = vand.u32 2147483648, %v2298_v6  ;;  %v2308_v35 = vand.u32 2147483647, %v2298_v6  ;;  %vm2304_vm15 = vweird.f32 %v2298_v6 }
 0x2fa   : > { %v2311_v11 = vor.u32 1.1754944e-38, %v2310_v50  ;;  %vm2309_vm13 = vcmp.eq.f32.partialorder %v2308_v35, 8.507059e+37 }
 0x2fe   : > { %v3092_v63 = vpop.eup %3091 }
 0x2ff   : > { %v2300_v62 = vmul.f32 %v3092_v63, %v2298_v6  ;;  %vm2305_vm1 = vweird.f32 %v3092_v63 }
 0x300   : > { %vm2306_vm14 = vmor %vm2304_vm15, %vm2305_vm1 }
 0x301   : > { %v2301_v29 = vsub.f32 1.0, %v2300_v62 }
 0x303   : > { %v2302_v41 = vmul.f32 %v3092_v63, %v2301_v29  ;;  %v2594_v29 = vld [vmem:[%s6091_s30 + $0x30] sm:$0xff] }
 0x305   : > { %v2303_v7 = vadd.f32 %v3092_v63, %v2302_v41 }
 0x307   : > { %v2307_v46 = vsel %vm2306_vm14, %v3092_v63, %v2303_v7 }
 0x308   : > { %v2312_v52 = vsel %vm2309_vm13, %v2311_v11, %v2307_v46 }
 0x309   : > { %v2314_v4 = vperm.slane %v2312_v52, 0 }
 0x30b   : > { %v2315_v37 = vmul.f32 %v2314_v4, %v5667_v27  ;;  %v2316_v22 = vmul.f32 %v2314_v4, %v5679_v33  ;;  %v2321_v56 = vmul.f32 %v2314_v4, %v5723_v8  ;;  %v2322_v61 = vmul.f32 %v2314_v4, %v5734_v9 }
 0x30c   : > { %v2327_v32 = vmul.f32 %v2314_v4, %v5788_v10  ;;  %v2328_v57 = vmul.f32 %v2314_v4, %v5794_v58  ;;  %v2337_v53 = vmul.f32 %v2314_v4, %v5902_v60  ;;  %v2338_v45 = vmul.f32 %v2314_v4, %v5914_v1 }
 0x30d   : > { %v2347_v47 = vpack.c.bf16 %v2316_v22, %v2315_v37  ;;  %v2350_v44 = vpack.c.bf16 %v2322_v61, %v2321_v56  ;;  %v2317_v27 = vmul.f32 %v2314_v4, %v5671_v40  ;;  %v2318_v33 = vmul.f32 %v2314_v4, %v5683_v48  ;;  %v2600_v56 = vld [vmem:[%s6091_s30 + $0x60] sm:$0xff]  ;;  %v2610_v61 = vld [vmem:[%s6091_s30 + $0xb0] sm:$0xff] }
 0x30e   : > { %v2353_v2 = vpack.c.bf16 %v2328_v57, %v2327_v32  ;;  %v2358_v42 = vpack.c.bf16 %v2338_v45, %v2337_v53  ;;  %v2323_v8 = vmul.f32 %v2314_v4, %v5744_v36  ;;  %v2324_v9 = vmul.f32 %v2314_v4, %v5753_v14 }
 0x30f   : > { %2435 = vmatmul.bf16.vlgmr.msrb.gmra.mxu0 %v2347_v47  ;;  %2450 = vmatmul.bf16.vlgmr.msrb.gmra.mxu1 %v2350_v44  ;;  %v2329_v10 = vmul.f32 %v2314_v4, %v5805_v51  ;;  %v2330_v58 = vmul.f32 %v2314_v4, %v5818_v31  ;;  %v2339_v60 = vmul.f32 %v2314_v4, %v5922_v20  ;;  %v2589_v47 = vld [vmem:[%s6091_s30 + $0x8] sm:$0xff]  ;;  %v2595_v44 = vld [vmem:[%s6091_s30 + $0x38] sm:$0xff] }
 0x310   : > { %2465 = vmatmul.bf16.vlgmr.msra.gmra.mxu2 %v2353_v2  ;;  %2490 = vmatmul.bf16.vlgmr.msra.gmra.mxu3 %v2358_v42  ;;  %v2340_v1 = vmul.f32 %v2314_v4, %v5933_v21  ;;  %v2348_v38 = vpack.c.bf16 %v2318_v33, %v2317_v27  ;;  %v2351_v19 = vpack.c.bf16 %v2324_v9, %v2323_v8 }
 0x311   : > { %v2354_v28 = vpack.c.bf16 %v2330_v58, %v2329_v10  ;;  %v2319_v40 = vmul.f32 %v2314_v4, %v5702_v3  ;;  %v2320_v48 = vmul.f32 %v2314_v4, %v5714_v16  ;;  %v2325_v36 = vmul.f32 %v2314_v4, %v5767_v0 }
 0x312   : > { %v2359_v23 = vpack.c.bf16 %v2340_v1, %v2339_v60  ;;  %v2326_v14 = vmul.f32 %v2314_v4, %v5773_v55  ;;  %v2331_v51 = vmul.f32 %v2314_v4, %v5829_v34  ;;  %v2332_v31 = vmul.f32 %v2314_v4, %v5836_v39 }
 0x313   : > { %v2341_v20 = vmul.f32 %v2314_v4, %v5941_v13  ;;  %v2342_v21 = vmul.f32 %v2314_v4, %v5947_v5  ;;  %v2349_v54 = vpack.c.bf16 %v2320_v48, %v2319_v40  ;;  %v2333_v3 = vmul.f32 %v2314_v4, %v5843_v49 }
 0x314   : > { %v2352_v12 = vpack.c.bf16 %v2326_v14, %v2325_v36  ;;  %v2355_v26 = vpack.c.bf16 %v2332_v31, %v2331_v51  ;;  %v2334_v16 = vmul.f32 %v2314_v4, %v5858_v59  ;;  %v2343_v0 = vmul.f32 %v2314_v4, %v5953_v25  ;;  %v6086_v59 = vld [vmem:[%s6243_s9] ss:$0 sm:$0xff]  ;;  %v2590_v51 = vld [vmem:[%s6091_s30 + $0x10] sm:$0xff] }
 0x315   : > { %v2360_v15 = vpack.c.bf16 %v2342_v21, %v2341_v20  ;;  %v2344_v55 = vmul.f32 %v2314_v4, %v5957_v30  ;;  %v2335_v13 = vmul.f32 %v2314_v4, %v5871_v18  ;;  %v2336_v5 = vmul.f32 %v2314_v4, %v5886_v17  ;;  %v6096_v18 = vld [vmem:[%s6244_s10] ss:$0 sm:$0xff] }
 0x316   : > { %v2356_v34 = vpack.c.bf16 %v2334_v16, %v2333_v3  ;;  %v2345_v6 = vmul.f32 %v2314_v4, %v5961_v43  ;;  %v2346_v63 = vmul.f32 %v2314_v4, %v5965_v24  ;;  %v2588_v24 = vld [vmem:[%s6091_s30] sm:$0xff] }
 0x317   : > { %v2361_v39 = vpack.c.bf16 %v2344_v55, %v2343_v0  ;;  %v2357_v49 = vpack.c.bf16 %v2336_v5, %v2335_v13  ;;  %v2596_v31 = vld [vmem:[%s6091_s30 + $0x40] sm:$0xff]  ;;  %v2602_v13 = vld [vmem:[%s6091_s30 + $0x70] sm:$0xff] }
 0x318   : > { %v2362_v62 = vpack.c.bf16 %v2346_v63, %v2345_v6  ;;  %v2612_v5 = vld [vmem:[%s6091_s30 + $0xc0] sm:$0xff] }
 0x31f   : > { %2440 = vmatmul.bf16.gmra.mxu0 %v2348_v38  ;;  %2455 = vmatmul.bf16.gmra.mxu1 %v2351_v19 }
 0x320   : > { %2470 = vmatmul.bf16.gmra.mxu2 %v2354_v28  ;;  %2495 = vmatmul.bf16.gmra.mxu3 %v2359_v23  ;;  %v2601_v28 = vld [vmem:[%s6091_s30 + $0x68] sm:$0xff]  ;;  %v2611_v23 = vld [vmem:[%s6091_s30 + $0xb8] sm:$0xff] }
 0x32f   : > { %2445 = vmatmul.bf16.gmra.mxu0 %v2349_v54  ;;  %2460 = vmatmul.bf16.gmra.mxu1 %v2352_v12 }
 0x330   : > { %2475 = vmatmul.bf16.gmra.mxu2 %v2355_v26  ;;  %2500 = vmatmul.bf16.gmra.mxu3 %v2360_v15 }
 0x340   : > { %2480 = vmatmul.bf16.gmra.mxu2 %v2356_v34  ;;  %2505 = vmatmul.bf16.gmra.mxu3 %v2361_v39 }
 0x350   : > { %2485 = vmatmul.bf16.gmra.mxu2 %v2357_v49  ;;  %2510 = vmatmul.bf16.gmra.mxu3 %v2362_v62 }
 0x38c   : > { %v2436_v17 = vpop.f32.mrf.mxu0  ;;  %v2451_v25 = vpop.f32.mrf.mxu1 }
 0x38d   : > { %v2520_v30 = vmul.f32 %v6086_v59, %v2436_v17  ;;  %v2526_v43 = vmul.f32 %v6086_v59, %v2451_v25  ;;  %v2591_v17 = vld [vmem:[%s6091_s30 + $0x18] sm:$0xff]  ;;  %v2597_v25 = vld [vmem:[%s6091_s30 + $0x48] sm:$0xff] }
 0x38f   : > { %v2556_v50 = vadd.f32 %v6096_v18, %v2520_v30  ;;  %v2562_v41 = vadd.f32 %v6096_v18, %v2526_v43 }
 0x391   : > { %v2620_v35 = vadd.f32 %v2588_v24, %v2556_v50  ;;  %v2626_v7 = vadd.f32 %v2594_v29, %v2562_v41 }
 0x393   : > { %2652 = vst [vmem:[%s6107_s16] sm:$0xff] %v2620_v35  ;;  %v2466_v11 = vpop.f32.mrf.mxu2  ;;  %v2491_v46 = vpop.f32.mrf.mxu3 }
 0x394   : > { %2658 = vst [vmem:[%s6107_s16 + $0x30] sm:$0xff] %v2626_v7  ;;  %v2532_v52 = vmul.f32 %v6086_v59, %v2466_v11  ;;  %v2542_v4 = vmul.f32 %v6086_v59, %v2491_v46  ;;  %v2438_v37 = vpop.f32.mrf.mxu0  ;;  %v2453_v22 = vpop.f32.mrf.mxu1 }
 0x395   : > { %v2521_v32 = vmul.f32 %v6086_v59, %v2438_v37  ;;  %v2527_v57 = vmul.f32 %v6086_v59, %v2453_v22  ;;  %v2603_v37 = vld [vmem:[%s6091_s30 + $0x78] sm:$0xff]  ;;  %v2613_v22 = vld [vmem:[%s6091_s30 + $0xc8] sm:$0xff] }
 0x396   : > { %v2568_v53 = vadd.f32 %v6096_v18, %v2532_v52  ;;  %v2578_v45 = vadd.f32 %v6096_v18, %v2542_v4 }
 0x397   : > { %v2557_v2 = vadd.f32 %v6096_v18, %v2521_v32  ;;  %v2563_v42 = vadd.f32 %v6096_v18, %v2527_v57 }
 0x398   : > { %v2632_v27 = vadd.f32 %v2600_v56, %v2568_v53  ;;  %v2642_v33 = vadd.f32 %v2610_v61, %v2578_v45  ;;  %v2592_v53 = vld [vmem:[%s6091_s30 + $0x20] sm:$0xff]  ;;  %v2598_v45 = vld [vmem:[%s6091_s30 + $0x50] sm:$0xff] }
 0x399   : > { %v2621_v8 = vadd.f32 %v2589_v47, %v2557_v2  ;;  %v2627_v9 = vadd.f32 %v2595_v44, %v2563_v42 }
 0x39a   : > { %2664 = vst [vmem:[%s6107_s16 + $0x60] sm:$0xff] %v2632_v27 }
 0x39b   : > { %2674 = vst [vmem:[%s6107_s16 + $0xb0] sm:$0xff] %v2642_v33  ;;  %v2468_v10 = vpop.f32.mrf.mxu2  ;;  %v2493_v58 = vpop.f32.mrf.mxu3 }
 0x39c   : > { %2653 = vst [vmem:[%s6107_s16 + $0x8] sm:$0xff] %v2621_v8  ;;  %v2533_v60 = vmul.f32 %v6086_v59, %v2468_v10  ;;  %v2543_v1 = vmul.f32 %v6086_v59, %v2493_v58  ;;  %v2441_v38 = vpop.f32.mrf.mxu0  ;;  %v2456_v19 = vpop.f32.mrf.mxu1 }
 0x39d   : > { %2659 = vst [vmem:[%s6107_s16 + $0x38] sm:$0xff] %v2627_v9  ;;  %v2522_v40 = vmul.f32 %v6086_v59, %v2441_v38  ;;  %v2528_v48 = vmul.f32 %v6086_v59, %v2456_v19  ;;  %v2604_v38 = vld [vmem:[%s6091_s30 + $0x80] sm:$0xff]  ;;  %v2614_v19 = vld [vmem:[%s6091_s30 + $0xd0] sm:$0xff] }
 0x39e   : > { %v2569_v36 = vadd.f32 %v6096_v18, %v2533_v60  ;;  %v2579_v14 = vadd.f32 %v6096_v18, %v2543_v1 }
 0x39f   : > { %v2558_v20 = vadd.f32 %v6096_v18, %v2522_v40  ;;  %v2564_v21 = vadd.f32 %v6096_v18, %v2528_v48 }
 0x3a0   : > { %v2633_v54 = vadd.f32 %v2601_v28, %v2569_v36  ;;  %v2643_v12 = vadd.f32 %v2611_v23, %v2579_v14  ;;  %v2593_v36 = vld [vmem:[%s6091_s30 + $0x28] sm:$0xff]  ;;  %v2599_v14 = vld [vmem:[%s6091_s30 + $0x58] sm:$0xff] }
 0x3a1   : > { %v2622_v26 = vadd.f32 %v2590_v51, %v2558_v20  ;;  %v2628_v15 = vadd.f32 %v2596_v31, %v2564_v21 }
 0x3a2   : > { %2665 = vst [vmem:[%s6107_s16 + $0x68] sm:$0xff] %v2633_v54 }
 0x3a3   : > { %2675 = vst [vmem:[%s6107_s16 + $0xb8] sm:$0xff] %v2643_v12  ;;  %v2471_v3 = vpop.f32.mrf.mxu2  ;;  %v2496_v16 = vpop.f32.mrf.mxu3 }
 0x3a4   : > { %2654 = vst [vmem:[%s6107_s16 + $0x10] sm:$0xff] %v2622_v26  ;;  %v2534_v0 = vmul.f32 %v6086_v59, %v2471_v3  ;;  %v2544_v55 = vmul.f32 %v6086_v59, %v2496_v16  ;;  %v2443_v34 = vpop.f32.mrf.mxu0  ;;  %v2458_v39 = vpop.f32.mrf.mxu1 }
 0x3a5   : > { %2660 = vst [vmem:[%s6107_s16 + $0x40] sm:$0xff] %v2628_v15  ;;  %v2523_v6 = vmul.f32 %v6086_v59, %v2443_v34  ;;  %v2529_v63 = vmul.f32 %v6086_v59, %v2458_v39 }
 0x3a6   : > { %v2570_v49 = vadd.f32 %v6096_v18, %v2534_v0  ;;  %v2580_v62 = vadd.f32 %v6096_v18, %v2544_v55  ;;  %v2605_v0 = vld [vmem:[%s6091_s30 + $0x88] sm:$0xff]  ;;  %v2615_v55 = vld [vmem:[%s6091_s30 + $0xd8] sm:$0xff] }
 0x3a7   : > { %v2559_v30 = vadd.f32 %v6096_v18, %v2523_v6  ;;  %v2565_v43 = vadd.f32 %v6096_v18, %v2529_v63 }
 0x3a8   : > { %v2634_v24 = vadd.f32 %v2602_v13, %v2570_v49  ;;  %v2644_v29 = vadd.f32 %v2612_v5, %v2580_v62 }
 0x3a9   : > { %v2623_v50 = vadd.f32 %v2591_v17, %v2559_v30  ;;  %v2629_v41 = vadd.f32 %v2597_v25, %v2565_v43  ;;  %v2606_v17 = vld [vmem:[%s6091_s30 + $0x90] sm:$0xff]  ;;  %v2616_v25 = vld [vmem:[%s6091_s30 + $0xe0] sm:$0xff] }
 0x3aa   : > { %2666 = vst [vmem:[%s6107_s16 + $0x70] sm:$0xff] %v2634_v24 }
 0x3ab   : > { %2676 = vst [vmem:[%s6107_s16 + $0xc0] sm:$0xff] %v2644_v29  ;;  %v2473_v35 = vpop.f32.mrf.mxu2  ;;  %v2498_v7 = vpop.f32.mrf.mxu3 }
 0x3ac   : > { %2655 = vst [vmem:[%s6107_s16 + $0x18] sm:$0xff] %v2623_v50  ;;  %v2535_v11 = vmul.f32 %v6086_v59, %v2473_v35  ;;  %v2545_v46 = vmul.f32 %v6086_v59, %v2498_v7  ;;  %v2446_v52 = vpop.f32.mrf.mxu0  ;;  %v2461_v4 = vpop.f32.mrf.mxu1 }
 0x3ad   : > { %2661 = vst [vmem:[%s6107_s16 + $0x48] sm:$0xff] %v2629_v41  ;;  %v2524_v56 = vmul.f32 %v6086_v59, %v2446_v52  ;;  %v2530_v61 = vmul.f32 %v6086_v59, %v2461_v4 }
 0x3ae   : > { %v2571_v32 = vadd.f32 %v6096_v18, %v2535_v11  ;;  %v2581_v57 = vadd.f32 %v6096_v18, %v2545_v46  ;;  %v2607_v11 = vld [vmem:[%s6091_s30 + $0x98] sm:$0xff]  ;;  %v2617_v46 = vld [vmem:[%s6091_s30 + $0xe8] sm:$0xff] }
 0x3af   : > { %v2560_v47 = vadd.f32 %v6096_v18, %v2524_v56  ;;  %v2566_v44 = vadd.f32 %v6096_v18, %v2530_v61 }
 0x3b0   : > { %v2635_v2 = vadd.f32 %v2603_v37, %v2571_v32  ;;  %v2645_v42 = vadd.f32 %v2613_v22, %v2581_v57 }
 0x3b1   : > { %v2624_v27 = vadd.f32 %v2592_v53, %v2560_v47  ;;  %v2630_v33 = vadd.f32 %v2598_v45, %v2566_v44  ;;  %v2608_v53 = vld [vmem:[%s6091_s30 + $0xa0] sm:$0xff]  ;;  %v2618_v45 = vld [vmem:[%s6091_s30 + $0xf0] sm:$0xff] }
 0x3b2   : > { %2667 = vst [vmem:[%s6107_s16 + $0x78] sm:$0xff] %v2635_v2 }
 0x3b3   : > { %2677 = vst [vmem:[%s6107_s16 + $0xc8] sm:$0xff] %v2645_v42  ;;  %v2476_v8 = vpop.f32.mrf.mxu2  ;;  %v2501_v9 = vpop.f32.mrf.mxu3 }
 0x3b4   : > { %2656 = vst [vmem:[%s6107_s16 + $0x20] sm:$0xff] %v2624_v27  ;;  %v2536_v10 = vmul.f32 %v6086_v59, %v2476_v8  ;;  %v2546_v58 = vmul.f32 %v6086_v59, %v2501_v9  ;;  %v2448_v60 = vpop.f32.mrf.mxu0  ;;  %v2463_v1 = vpop.f32.mrf.mxu1 }
 0x3b5   : > { %2662 = vst [vmem:[%s6107_s16 + $0x50] sm:$0xff] %v2630_v33  ;;  %v2525_v28 = vmul.f32 %v6086_v59, %v2448_v60  ;;  %v2531_v23 = vmul.f32 %v6086_v59, %v2463_v1 }
 0x3b6   : > { %v2572_v40 = vadd.f32 %v6096_v18, %v2536_v10  ;;  %v2582_v48 = vadd.f32 %v6096_v18, %v2546_v58  ;;  %v2609_v10 = vld [vmem:[%s6091_s30 + $0xa8] sm:$0xff]  ;;  %v2619_v58 = vld [vmem:[%s6091_s30 + $0xf8] sm:$0xff] }
 0x3b7   : > { %v2561_v51 = vadd.f32 %v6096_v18, %v2525_v28  ;;  %v2567_v31 = vadd.f32 %v6096_v18, %v2531_v23 }
 0x3b8   : > { %v2636_v20 = vadd.f32 %v2604_v38, %v2572_v40  ;;  %v2646_v21 = vadd.f32 %v2614_v19, %v2582_v48 }
 0x3b9   : > { %v2625_v54 = vadd.f32 %v2593_v36, %v2561_v51  ;;  %v2631_v12 = vadd.f32 %v2599_v14, %v2567_v31 }
 0x3ba   : > { %2668 = vst [vmem:[%s6107_s16 + $0x80] sm:$0xff] %v2636_v20 }
 0x3bb   : > { %2678 = vst [vmem:[%s6107_s16 + $0xd0] sm:$0xff] %v2646_v21  ;;  %v2478_v26 = vpop.f32.mrf.mxu2  ;;  %v2503_v15 = vpop.f32.mrf.mxu3 }
 0x3bc   : > { %2657 = vst [vmem:[%s6107_s16 + $0x28] sm:$0xff] %v2625_v54  ;;  %v2537_v3 = vmul.f32 %v6086_v59, %v2478_v26  ;;  %v2547_v16 = vmul.f32 %v6086_v59, %v2503_v15 }
 0x3bd   : > { %2663 = vst [vmem:[%s6107_s16 + $0x58] sm:$0xff] %v2631_v12 }
 0x3be   : > { %v2573_v34 = vadd.f32 %v6096_v18, %v2537_v3  ;;  %v2583_v39 = vadd.f32 %v6096_v18, %v2547_v16 }
 0x3c0   : > { %v2637_v13 = vadd.f32 %v2605_v0, %v2573_v34  ;;  %v2647_v5 = vadd.f32 %v2615_v55, %v2583_v39 }
 0x3c2   : > { %2669 = vst [vmem:[%s6107_s16 + $0x88] sm:$0xff] %v2637_v13 }
 0x3c3   : > { %2679 = vst [vmem:[%s6107_s16 + $0xd8] sm:$0xff] %v2647_v5  ;;  %v2481_v6 = vpop.f32.mrf.mxu2  ;;  %v2506_v63 = vpop.f32.mrf.mxu3 }
 0x3c4   : > { %v2538_v49 = vmul.f32 %v6086_v59, %v2481_v6  ;;  %v2548_v62 = vmul.f32 %v6086_v59, %v2506_v63 }
 0x3c6   : > { %v2574_v30 = vadd.f32 %v6096_v18, %v2538_v49  ;;  %v2584_v43 = vadd.f32 %v6096_v18, %v2548_v62 }
 0x3c8   : > { %v2638_v24 = vadd.f32 %v2606_v17, %v2574_v30  ;;  %v2648_v29 = vadd.f32 %v2616_v25, %v2584_v43 }
 0x3ca   : > { %2670 = vst [vmem:[%s6107_s16 + $0x90] sm:$0xff] %v2638_v24 }
 0x3cb   : > { %2680 = vst [vmem:[%s6107_s16 + $0xe0] sm:$0xff] %v2648_v29  ;;  %v2483_v50 = vpop.f32.mrf.mxu2  ;;  %v2508_v41 = vpop.f32.mrf.mxu3 }
 0x3cc   : > { %v2539_v35 = vmul.f32 %v6086_v59, %v2483_v50  ;;  %v2549_v7 = vmul.f32 %v6086_v59, %v2508_v41 }
 0x3ce   : > { %v2575_v52 = vadd.f32 %v6096_v18, %v2539_v35  ;;  %v2585_v4 = vadd.f32 %v6096_v18, %v2549_v7 }
 0x3d0   : > { %v2639_v37 = vadd.f32 %v2607_v11, %v2575_v52  ;;  %v2649_v22 = vadd.f32 %v2617_v46, %v2585_v4 }
 0x3d2   : > { %2671 = vst [vmem:[%s6107_s16 + $0x98] sm:$0xff] %v2639_v37 }
 0x3d3   : > { %2681 = vst [vmem:[%s6107_s16 + $0xe8] sm:$0xff] %v2649_v22  ;;  %v2486_v56 = vpop.f32.mrf.mxu2  ;;  %v2511_v61 = vpop.f32.mrf.mxu3 }
 0x3d4   : > { %v2540_v32 = vmul.f32 %v6086_v59, %v2486_v56  ;;  %v2550_v57 = vmul.f32 %v6086_v59, %v2511_v61 }
 0x3d6   : > { %v2576_v47 = vadd.f32 %v6096_v18, %v2540_v32  ;;  %v2586_v44 = vadd.f32 %v6096_v18, %v2550_v57 }
 0x3d8   : > { %v2640_v2 = vadd.f32 %v2608_v53, %v2576_v47  ;;  %v2650_v42 = vadd.f32 %v2618_v45, %v2586_v44 }
 0x3da   : > { %2672 = vst [vmem:[%s6107_s16 + $0xa0] sm:$0xff] %v2640_v2 }
 0x3db   : > { %2682 = vst [vmem:[%s6107_s16 + $0xf0] sm:$0xff] %v2650_v42  ;;  %v2488_v27 = vpop.f32.mrf.mxu2  ;;  %v2513_v33 = vpop.f32.mrf.mxu3 }
 0x3dc   : > { %v2541_v8 = vmul.f32 %v6086_v59, %v2488_v27  ;;  %v2551_v9 = vmul.f32 %v6086_v59, %v2513_v33 }
 0x3de   : > { %v2577_v60 = vadd.f32 %v6096_v18, %v2541_v8  ;;  %v2587_v1 = vadd.f32 %v6096_v18, %v2551_v9 }
 0x3e0   : > { %v2641_v38 = vadd.f32 %v2609_v10, %v2577_v60  ;;  %v2651_v19 = vadd.f32 %v2619_v58, %v2587_v1 }
 0x3e2   : > { %2673 = vst [vmem:[%s6107_s16 + $0xa8] sm:$0xff] %v2641_v38 }
 0x3e3   : > { %2683 = vst [vmem:[%s6107_s16 + $0xf8] sm:$0xff] %v2651_v19 }
 0x3e4 PF: > { %s22_s21 = sadd.s32 1, %s3100_s21  }
 0x3e5   : > { %p19_p4 = scmp.ge.s32.totalorder %s22_s21, 4  }
 0x3e7   :  { %21 = sbr.rel (!%p19_p4) target bundleno = 1 (0x1), region = 104 }

</bundles_post_ra>
